<compile_context>
chip_gen: v5e
topology: v5e:2x2
jax: 0.10.0
libtpu: 0.0.40
codegen_flags: <defaults>
</compile_context>

<pallas_src>
import numpy as np
import jax
import jax.numpy as jnp
from jax.experimental import pallas as pl
from jax.experimental.pallas import tpu as pltpu

# bf16 conv path per perf review; set to jnp.float32 for bit-closer fidelity.
CONV_DTYPE = jnp.bfloat16
_EPS = 1e-5
_VMEM_LIMIT = 32 * 1024 * 1024  # plenty of headroom for these strip sizes


# ---------------------------------------------------------------------------
# Kernel 1: upsample + F.pad + concat + conv1 (pre-BN) + partial BN stats
# ---------------------------------------------------------------------------
def _up_concat_conv1_kernel(x1_ref, x2_ref, up_ref, w1_ref,
                            y1_ref, st1_ref, pad_ref):
    H, W, C2 = x2_ref.shape
    C1 = x1_ref.shape[-1]
    Hp, Wp, Cin = pad_ref.shape            # H+2, W+2, C1+C2
    Cmid = w1_ref.shape[-1]
    cdt = pad_ref.dtype

    # Zero only the 1-px halo ring; interior is fully overwritten every step.
    # (Scratch persists across grid steps and is per-core on megacore, so the
    # ring is re-zeroed each iteration rather than gated on program_id.)
    pad_ref[0:1, :, :] = jnp.zeros((1, Wp, Cin), cdt)
    pad_ref[Hp - 1:Hp, :, :] = jnp.zeros((1, Wp, Cin), cdt)
    pad_ref[:, 0:1, :] = jnp.zeros((Hp, 1, Cin), cdt)
    pad_ref[:, Wp - 1:Wp, :] = jnp.zeros((Hp, 1, Cin), cdt)

    # torch.cat([x2, x1_up], dim=1): skip connection x2 -> channels [0, C2)
    pad_ref[1:H + 1, 1:W + 1, 0:C2] = x2_ref[...].astype(cdt)

    # bilinear x2 (align_corners=True) upsample + F.pad of x1 as ONE matmul
    # with a precomputed (H*W, h*w) interpolation matrix.  Channels stay on
    # the lane dim, so only a free leading-dim split reshape is needed.
    up = jnp.dot(up_ref[...], x1_ref[...],
                 preferred_element_type=jnp.float32)          # (H*W, C1)
    pad_ref[1:H + 1, 1:W + 1, C2:Cin] = up.reshape(H, W, C1).astype(cdt)

    # conv1: 9 accumulated shifted-window matmuls (no im2col scratch).
    acc = jnp.zeros((H * W, Cmid), jnp.float32)
    for tap in range(9):
        dy, dx = tap // 3, tap % 3
        win = pad_ref[dy:dy + H, dx:dx + W, :]                # (H, W, Cin)
        acc = acc + jnp.dot(win.reshape(H * W, Cin), w1_ref[tap],
                            preferred_element_type=jnp.float32)

    y1_ref[...] = acc.astype(y1_ref.dtype)
    # Partial BN stats (f32 sum / sum-of-squares).  Finalized across the grid
    # in XLA.  Single-pass sumsq is a fidelity trade-off vs. Welford.
    st1_ref[0:1, :] = jnp.sum(acc, axis=0, keepdims=True)
    st1_ref[1:2, :] = jnp.sum(acc * acc, axis=0, keepdims=True)


# ---------------------------------------------------------------------------
# Kernel 2: BN1(scale/shift) + ReLU + pad + conv2 (pre-BN) + partial BN stats
# ---------------------------------------------------------------------------
def _bn_relu_conv2_kernel(y1_ref, sc_ref, sh_ref, w2_ref,
                          y2_ref, st2_ref, pad_ref):
    Hp, Wp, Cmid = pad_ref.shape
    H, W = Hp - 2, Wp - 2
    Cout = w2_ref.shape[-1]
    cdt = pad_ref.dtype

    # BN1 applied as precomputed per-channel scale/shift (f32), fused ReLU.
    y1 = jnp.maximum(
        y1_ref[...].astype(jnp.float32) * sc_ref[...] + sh_ref[...], 0.0)

    pad_ref[0:1, :, :] = jnp.zeros((1, Wp, Cmid), cdt)
    pad_ref[Hp - 1:Hp, :, :] = jnp.zeros((1, Wp, Cmid), cdt)
    pad_ref[:, 0:1, :] = jnp.zeros((Hp, 1, Cmid), cdt)
    pad_ref[:, Wp - 1:Wp, :] = jnp.zeros((Hp, 1, Cmid), cdt)
    pad_ref[1:H + 1, 1:W + 1, :] = y1.reshape(H, W, Cmid).astype(cdt)

    acc = jnp.zeros((H * W, Cout), jnp.float32)
    for tap in range(9):
        dy, dx = tap // 3, tap % 3
        win = pad_ref[dy:dy + H, dx:dx + W, :]                # (H, W, Cmid)
        acc = acc + jnp.dot(win.reshape(H * W, Cmid), w2_ref[tap],
                            preferred_element_type=jnp.float32)

    y2_ref[...] = acc
    st2_ref[0:1, :] = jnp.sum(acc, axis=0, keepdims=True)
    st2_ref[1:2, :] = jnp.sum(acc * acc, axis=0, keepdims=True)


# ---------------------------------------------------------------------------
# Kernel 3: BN2(scale/shift) + ReLU epilogue, lane-dense (B, H, W*Cout) slab
# ---------------------------------------------------------------------------
def _bn2_relu_kernel(y_ref, sc_ref, sh_ref, o_ref):
    o_ref[...] = jnp.maximum(
        y_ref[...] * sc_ref[...] + sh_ref[...], 0.0).astype(o_ref.dtype)


# ---------------------------------------------------------------------------
# Host-side (static-shape) interpolation matrix: bilinear x2 + F.pad fused
# ---------------------------------------------------------------------------
def _upsample_pad_matrix(h, w, H, W):
    """(H*W, h*w) matrix M with  up_padded[i, j, c] = (M @ x1_flat)[i*W+j, c].

    Encodes nn.Upsample(scale_factor=2, mode='bilinear', align_corners=True)
    followed by F.pad([dx//2, dx-dx//2, dy//2, dy-dy//2]).
    """
    ho, wo = 2 * h, 2 * w
    dy, dx = H - ho, W - wo
    if dy < 0 or dx < 0:
        raise ValueError(
            "x2 spatial dims must be >= 2x x1 dims; negative F.pad (cropping) "
            "is not supported by this kernel.")

    def interp(n_in, n_out):
        m = np.zeros((n_out, n_in), np.float64)
        if n_out == 1:
            m[0, 0] = 1.0
            return m
        src = np.arange(n_out, dtype=np.float64) * (n_in - 1) / (n_out - 1)
        lo = np.clip(np.floor(src).astype(np.int64), 0, n_in - 1)
        hi = np.minimum(lo + 1, n_in - 1)
        frac = src - lo
        m[np.arange(n_out), lo] += 1.0 - frac
        m[np.arange(n_out), hi] += frac
        return m

    ry_p = np.zeros((H, h), np.float64)
    ry_p[dy // 2: dy // 2 + ho, :] = interp(h, ho)
    rx_p = np.zeros((W, w), np.float64)
    rx_p[dx // 2: dx // 2 + wo, :] = interp(w, wo)
    return np.kron(ry_p, rx_p).astype(np.float32)            # (H*W, h*w)


def _bn_affine(stat_tot, gamma, beta, n):
    """Finalize two-pass BN: (2, C) global sums -> (1, C) scale / shift."""
    mean = stat_tot[0] / n
    var = jnp.maximum(stat_tot[1] / n - mean * mean, 0.0)
    scale = gamma.astype(jnp.float32) * jax.lax.rsqrt(var + _EPS)
    shift = beta.astype(jnp.float32) - mean * scale
    return scale.reshape(1, -1), shift.reshape(1, -1)


# ---------------------------------------------------------------------------
# Pallas wrapper (NHWC)
# ---------------------------------------------------------------------------
def _up_forward_nhwc_impl(x1, x2, params):
    B, h, w, C1 = x1.shape
    Bx, H, W, C2 = x2.shape
    assert B == Bx
    Cin = C1 + C2
    Cmid = params["w1"].shape[-1]
    Cout = params["w2"].shape[-1]
    n = B * H * W

    up_mat = jnp.asarray(_upsample_pad_matrix(h, w, H, W)).astype(CONV_DTYPE)
    x1f = x1.astype(CONV_DTYPE).reshape(B, h * w, C1)
    x2f = x2.astype(CONV_DTYPE)
    # pack 3x3 taps onto a leading axis: (3,3,Ci,Co) -> (9, Ci, Co)
    w1p = params["w1"].reshape(9, Cin, Cmid).astype(CONV_DTYPE)
    w2p = params["w2"].reshape(9, Cmid, Cout).astype(CONV_DTYPE)

    cparams = pltpu.CompilerParams(
        dimension_semantics=("parallel",),        # both TCs on v7x
        vmem_limit_bytes=_VMEM_LIMIT)

    # ---- pass 1: upsample + pad + concat + conv1 (pre-BN) ------------------
    ce1 = pl.CostEstimate(
        flops=int(B * (2 * H * W * h * w * C1 + 18 * H * W * Cin * Cmid)),
        transcendentals=0,
        bytes_accessed=int(2 * (B * (h * w * C1 + H * W * C2 + H * W * Cmid)
                                + H * W * h * w + 9 * Cin * Cmid)
                           + 4 * B * 2 * Cmid))
    y1pre, st1 = pl.pallas_call(
        _up_concat_conv1_kernel,
        grid=(B,),
        in_specs=[
            pl.BlockSpec((None, h * w, C1), lambda b: (b, 0, 0)),
            pl.BlockSpec((None, H, W, C2), lambda b: (b, 0, 0, 0)),
            pl.BlockSpec((H * W, h * w), lambda b: (0, 0)),
            pl.BlockSpec((9, Cin, Cmid), lambda b: (0, 0, 0)),
        ],
        out_specs=(
            pl.BlockSpec((None, H * W, Cmid), lambda b: (b, 0, 0)),
            pl.BlockSpec((None, 2, Cmid), lambda b: (b, 0, 0)),
        ),
        out_shape=(
            jax.ShapeDtypeStruct((B, H * W, Cmid), CONV_DTYPE),
            jax.ShapeDtypeStruct((B, 2, Cmid), jnp.float32),
        ),
        scratch_shapes=[pltpu.VMEM((H + 2, W + 2, Cin), CONV_DTYPE)],
        compiler_params=cparams,
        cost_estimate=ce1,
    )(x1f, x2f, up_mat, w1p)

    # finalize BN1 across the batch (tiny O(Cmid) work in XLA)
    sc1, sh1 = _bn_affine(jnp.sum(st1, axis=0), params["g1"], params["b1"], n)

    # ---- pass 2: BN1 + ReLU + pad + conv2 (pre-BN) --------------------------
    ce2 = pl.CostEstimate(
        flops=int(B * (18 * H * W * Cmid * Cout + 3 * H * W * Cmid)),
        transcendentals=0,
        bytes_accessed=int(2 * (B * H * W * Cmid + 9 * Cmid * Cout)
                           + 4 * B * (H * W * Cout + 2 * Cout)))
    y2pre, st2 = pl.pallas_call(
        _bn_relu_conv2_kernel,
        grid=(B,),
        in_specs=[
            pl.BlockSpec((None, H * W, Cmid), lambda b: (b, 0, 0)),
            pl.BlockSpec((1, Cmid), lambda b: (0, 0)),
            pl.BlockSpec((1, Cmid), lambda b: (0, 0)),
            pl.BlockSpec((9, Cmid, Cout), lambda b: (0, 0, 0)),
        ],
        out_specs=(
            pl.BlockSpec((None, H * W, Cout), lambda b: (b, 0, 0)),
            pl.BlockSpec((None, 2, Cout), lambda b: (b, 0, 0)),
        ),
        out_shape=(
            jax.ShapeDtypeStruct((B, H * W, Cout), jnp.float32),
            jax.ShapeDtypeStruct((B, 2, Cout), jnp.float32),
        ),
        scratch_shapes=[pltpu.VMEM((H + 2, W + 2, Cmid), CONV_DTYPE)],
        compiler_params=cparams,
        cost_estimate=ce2,
    )(y1pre, sc1, sh1, w2p)

    # finalize BN2
    sc2, sh2 = _bn_affine(jnp.sum(st2, axis=0), params["g2"], params["b2"], n)

    # ---- pass 3: BN2 + ReLU epilogue, lane-dense stores ---------------------
    # Reinterpret (B, H*W, Cout) as (B, H, W*Cout): free XLA reshape (same
    # memory order) so the kernel loads/stores full 128-lane vregs, and tile
    # the per-channel scale/shift across W to match the lane layout.
    y2pre_ld = y2pre.reshape(B, H, W * Cout)
    sc2_ld = jnp.tile(sc2[0], W).reshape(1, W * Cout)
    sh2_ld = jnp.tile(sh2[0], W).reshape(1, W * Cout)
    ce3 = pl.CostEstimate(
        flops=int(3 * B * H * W * Cout),
        transcendentals=0,
        bytes_accessed=int(8 * B * H * W * Cout))
    out = pl.pallas_call(
        _bn2_relu_kernel,
        grid=(B,),
        in_specs=[
            pl.BlockSpec((None, H, W * Cout), lambda b: (b, 0, 0)),
            pl.BlockSpec((1, W * Cout), lambda b: (0, 0)),
            pl.BlockSpec((1, W * Cout), lambda b: (0, 0)),
        ],
        out_specs=pl.BlockSpec((None, H, W * Cout), lambda b: (b, 0, 0)),
        out_shape=jax.ShapeDtypeStruct((B, H, W * Cout), jnp.float32),
        compiler_params=cparams,
        cost_estimate=ce3,
    )(y2pre_ld, sc2_ld, sh2_ld)

    return out.reshape(B, H, W, Cout)                         # NHWC


@jax.jit
def up_forward_nhwc(x1_nhwc, x2_nhwc, params):
    """Up.forward in NHWC (preferred entry point: no layout transposes)."""
    return _up_forward_nhwc_impl(x1_nhwc, x2_nhwc, params)


@jax.jit
def up_forward(x1_nchw, x2_nchw, params):
    """Up.forward(x1, x2) with bilinear=True.  NCHW in, NCHW out (PyTorch
    parity).  Production NHWC graphs should call up_forward_nhwc instead."""
    x1 = jnp.transpose(x1_nchw, (0, 2, 3, 1))
    x2 = jnp.transpose(x2_nchw, (0, 2, 3, 1))
    out = _up_forward_nhwc_impl(x1, x2, params)
    return jnp.transpose(out, (0, 3, 1, 2))


# ---------------------------------------------------------------------------
# Deterministic parameter init (shapes of Up(in_channels=8, out_channels=8))
# ---------------------------------------------------------------------------
def init_params(key, in_channels, out_channels):
    mid_channels = in_channels // 2
    k1, k2, k3, k4 = jax.random.split(key, 4)
    return {
        # conv weights stored HWIO (3, 3, Cin, Cout)
        "w1": 0.1 * jax.random.normal(k1, (3, 3, in_channels, mid_channels),
                                      jnp.float32),
        "w2": 0.1 * jax.random.normal(k3, (3, 3, mid_channels, out_channels),
                                      jnp.float32),
        # conv biases exist in the PyTorch module but are exactly cancelled by
        # training-mode BatchNorm mean subtraction -> not used in the kernel.
        "cb1": 0.1 * jax.random.normal(k2, (mid_channels,), jnp.float32),
        "cb2": 0.1 * jax.random.normal(k4, (out_channels,), jnp.float32),
        "g1": jnp.ones((mid_channels,), jnp.float32),   # BN weight default
        "b1": jnp.zeros((mid_channels,), jnp.float32),  # BN bias default
        "g2": jnp.ones((out_channels,), jnp.float32),
        "b2": jnp.zeros((out_channels,), jnp.float32),
    }


if __name__ == "__main__":
    key = jax.random.PRNGKey(0)
    k_x1, k_x2, k_p = jax.random.split(key, 3)

    in_channels, out_channels = 8, 8
    B, H, W = 2, 16, 16
    # UNet convention: x1 (deeper, half spatial) and x2 (skip) each carry
    # in_channels // 2 channels; their concat has `in_channels` channels.
    x1 = jax.random.normal(k_x1, (B, in_channels // 2, H // 2, W // 2),
                           jnp.float32)
    x2 = jax.random.normal(k_x2, (B, in_channels // 2, H, W), jnp.float32)

    params = init_params(k_p, in_channels, out_channels)

    out = up_forward(x1, x2, params)
    out = jax.block_until_ready(out)

    assert out.shape == (B, out_channels, H, W), out.shape
    assert bool(jnp.all(jnp.isfinite(out)))
    print("KERNEL_OK")
</pallas_src>

<mosaic_0001>
module attributes {stable_mosaic.version = 11 : i64} {
  func.func @_bn_relu_conv2_kernel(%arg0: i32, %arg1: memref<1x256x4xbf16, #tpu.memory_space<vmem>>, %arg2: memref<1x4xf32, #tpu.memory_space<vmem>>, %arg3: memref<1x4xf32, #tpu.memory_space<vmem>>, %arg4: memref<9x4x8xbf16, #tpu.memory_space<vmem>>, %arg5: memref<1x256x8xf32, #tpu.memory_space<vmem>>, %arg6: memref<1x2x8xf32, #tpu.memory_space<vmem>>, %arg7: memref<18x18x4xbf16, #tpu.memory_space<vmem>>) attributes {dimension_semantics = [#tpu.dimension_semantics<parallel>], iteration_bounds = array<i64: 2>, scalar_prefetch = 0 : i64, scratch_operands = 1 : i64, tpu.core_type = #tpu.core_type<tc>, window_params = [{transform_indices = @transform_0, window_bounds = array<i64: 1, 256, 4>}, {pipeline_mode = #tpu.pipeline_mode<synchronous>, transform_indices = @transform_1, window_bounds = array<i64: 1, 4>}, {pipeline_mode = #tpu.pipeline_mode<synchronous>, transform_indices = @transform_2, window_bounds = array<i64: 1, 4>}, {pipeline_mode = #tpu.pipeline_mode<synchronous>, transform_indices = @transform_3, window_bounds = array<i64: 9, 4, 8>}, {transform_indices = @transform_4, window_bounds = array<i64: 1, 256, 8>}, {transform_indices = @transform_5, window_bounds = array<i64: 1, 2, 8>}]} {
    %c0 = arith.constant 0 : index
    %c0_0 = arith.constant 0 : index
    %c0_1 = arith.constant 0 : index
    %0 = vector.load %arg1[%c0, %c0_0, %c0_1] : memref<1x256x4xbf16, #tpu.memory_space<vmem>>, vector<1x256x4xbf16>
    %1 = vector.shape_cast %0 : vector<1x256x4xbf16> to vector<256x4xbf16>
    %2 = arith.extf %1 : vector<256x4xbf16> to vector<256x4xf32>
    %c0_2 = arith.constant 0 : index
    %c0_3 = arith.constant 0 : index
    %3 = vector.load %arg2[%c0_2, %c0_3] : memref<1x4xf32, #tpu.memory_space<vmem>>, vector<1x4xf32>
    %4 = vector.broadcast %3 : vector<1x4xf32> to vector<256x4xf32>
    %5 = arith.mulf %2, %4 : vector<256x4xf32>
    %c0_4 = arith.constant 0 : index
    %c0_5 = arith.constant 0 : index
    %6 = vector.load %arg3[%c0_4, %c0_5] : memref<1x4xf32, #tpu.memory_space<vmem>>, vector<1x4xf32>
    %7 = vector.broadcast %6 : vector<1x4xf32> to vector<256x4xf32>
    %8 = arith.addf %5, %7 : vector<256x4xf32>
    %cst = arith.constant 0.000000e+00 : f32
    %9 = vector.broadcast %cst : f32 to vector<256x4xf32>
    %10 = arith.maximumf %8, %9 : vector<256x4xf32>
    %cst_6 = arith.constant 0.000000e+00 : bf16
    %11 = vector.broadcast %cst_6 : bf16 to vector<1x18x4xbf16>
    %c0_7 = arith.constant 0 : index
    %c0_8 = arith.constant 0 : index
    %c0_9 = arith.constant 0 : index
    %12 = vector.load %arg7[%c0_7, %c0_8, %c0_9] : memref<18x18x4xbf16, #tpu.memory_space<vmem>>, vector<1x18x4xbf16>
    tpu.vector_store %arg7[%c0_7, %c0_8, %c0_9], %11 {strides = array<i32>} : memref<18x18x4xbf16, #tpu.memory_space<vmem>>, vector<1x18x4xbf16>,
    %cst_10 = arith.constant 0.000000e+00 : bf16
    %13 = vector.broadcast %cst_10 : bf16 to vector<1x18x4xbf16>
    %c17 = arith.constant 17 : index
    %c0_11 = arith.constant 0 : index
    %c0_12 = arith.constant 0 : index
    %14 = vector.load %arg7[%c17, %c0_11, %c0_12] : memref<18x18x4xbf16, #tpu.memory_space<vmem>>, vector<1x18x4xbf16>
    tpu.vector_store %arg7[%c17, %c0_11, %c0_12], %13 {strides = array<i32>} : memref<18x18x4xbf16, #tpu.memory_space<vmem>>, vector<1x18x4xbf16>,
    %cst_13 = arith.constant 0.000000e+00 : bf16
    %15 = vector.broadcast %cst_13 : bf16 to vector<18x1x4xbf16>
    %c0_14 = arith.constant 0 : index
    %c0_15 = arith.constant 0 : index
    %c0_16 = arith.constant 0 : index
    %16 = vector.load %arg7[%c0_14, %c0_15, %c0_16] : memref<18x18x4xbf16, #tpu.memory_space<vmem>>, vector<18x1x4xbf16>
    tpu.vector_store %arg7[%c0_14, %c0_15, %c0_16], %15 {strides = array<i32>} : memref<18x18x4xbf16, #tpu.memory_space<vmem>>, vector<18x1x4xbf16>,
    %cst_17 = arith.constant 0.000000e+00 : bf16
    %17 = vector.broadcast %cst_17 : bf16 to vector<18x1x4xbf16>
    %c0_18 = arith.constant 0 : index
    %c17_19 = arith.constant 17 : index
    %c0_20 = arith.constant 0 : index
    %18 = vector.load %arg7[%c0_18, %c17_19, %c0_20] : memref<18x18x4xbf16, #tpu.memory_space<vmem>>, vector<18x1x4xbf16>
    tpu.vector_store %arg7[%c0_18, %c17_19, %c0_20], %17 {strides = array<i32>} : memref<18x18x4xbf16, #tpu.memory_space<vmem>>, vector<18x1x4xbf16>,
    %19 = vector.shape_cast %10 : vector<256x4xf32> to vector<16x16x4xf32>
    %20 = arith.truncf %19 : vector<16x16x4xf32> to vector<16x16x4xbf16>
    %c1 = arith.constant 1 : index
    %c1_21 = arith.constant 1 : index
    %c0_22 = arith.constant 0 : index
    %21 = vector.load %arg7[%c1, %c1_21, %c0_22] : memref<18x18x4xbf16, #tpu.memory_space<vmem>>, vector<16x16x4xbf16>
    tpu.vector_store %arg7[%c1, %c1_21, %c0_22], %20 {strides = array<i32>} : memref<18x18x4xbf16, #tpu.memory_space<vmem>>, vector<16x16x4xbf16>,
    %cst_23 = arith.constant 0.000000e+00 : f32
    %22 = vector.broadcast %cst_23 : f32 to vector<256x8xf32>
    %c0_24 = arith.constant 0 : index
    %c0_25 = arith.constant 0 : index
    %c0_26 = arith.constant 0 : index
    %23 = vector.load %arg7[%c0_24, %c0_25, %c0_26] : memref<18x18x4xbf16, #tpu.memory_space<vmem>>, vector<16x16x4xbf16>
    %24 = vector.shape_cast %23 : vector<16x16x4xbf16> to vector<256x4xbf16>
    %c0_27 = arith.constant 0 : index
    %c0_28 = arith.constant 0 : index
    %c0_29 = arith.constant 0 : index
    %25 = vector.load %arg4[%c0_27, %c0_28, %c0_29] : memref<9x4x8xbf16, #tpu.memory_space<vmem>>, vector<1x4x8xbf16>
    %26 = vector.shape_cast %25 : vector<1x4x8xbf16> to vector<4x8xbf16>
    %cst_30 = arith.constant dense<0.000000e+00> : vector<256x8xf32>
    %27 = tpu.matmul %24, %26, %cst_30 {dimension_numbers = #tpu.dot_dimension_numbers<[1], [0], [0], [1], [0, 0, 1, 1], [], []>} : vector<256x4xbf16>, vector<4x8xbf16>, vector<256x8xf32> -> vector<256x8xf32>
    %28 = arith.addf %22, %27 : vector<256x8xf32>
    %c0_31 = arith.constant 0 : index
    %c1_32 = arith.constant 1 : index
    %c0_33 = arith.constant 0 : index
    %29 = vector.load %arg7[%c0_31, %c1_32, %c0_33] : memref<18x18x4xbf16, #tpu.memory_space<vmem>>, vector<16x16x4xbf16>
    %30 = vector.shape_cast %29 : vector<16x16x4xbf16> to vector<256x4xbf16>
    %c1_34 = arith.constant 1 : index
    %c0_35 = arith.constant 0 : index
    %c0_36 = arith.constant 0 : index
    %31 = vector.load %arg4[%c1_34, %c0_35, %c0_36] : memref<9x4x8xbf16, #tpu.memory_space<vmem>>, vector<1x4x8xbf16>
    %32 = vector.shape_cast %31 : vector<1x4x8xbf16> to vector<4x8xbf16>
    %cst_37 = arith.constant dense<0.000000e+00> : vector<256x8xf32>
    %33 = tpu.matmul %30, %32, %cst_37 {dimension_numbers = #tpu.dot_dimension_numbers<[1], [0], [0], [1], [0, 0, 1, 1], [], []>} : vector<256x4xbf16>, vector<4x8xbf16>, vector<256x8xf32> -> vector<256x8xf32>
    %34 = arith.addf %28, %33 : vector<256x8xf32>
    %c0_38 = arith.constant 0 : index
    %c2 = arith.constant 2 : index
    %c0_39 = arith.constant 0 : index
    %35 = vector.load %arg7[%c0_38, %c2, %c0_39] : memref<18x18x4xbf16, #tpu.memory_space<vmem>>, vector<16x16x4xbf16>
    %36 = vector.shape_cast %35 : vector<16x16x4xbf16> to vector<256x4xbf16>
    %c2_40 = arith.constant 2 : index
    %c0_41 = arith.constant 0 : index
    %c0_42 = arith.constant 0 : index
    %37 = vector.load %arg4[%c2_40, %c0_41, %c0_42] : memref<9x4x8xbf16, #tpu.memory_space<vmem>>, vector<1x4x8xbf16>
    %38 = vector.shape_cast %37 : vector<1x4x8xbf16> to vector<4x8xbf16>
    %cst_43 = arith.constant dense<0.000000e+00> : vector<256x8xf32>
    %39 = tpu.matmul %36, %38, %cst_43 {dimension_numbers = #tpu.dot_dimension_numbers<[1], [0], [0], [1], [0, 0, 1, 1], [], []>} : vector<256x4xbf16>, vector<4x8xbf16>, vector<256x8xf32> -> vector<256x8xf32>
    %40 = arith.addf %34, %39 : vector<256x8xf32>
    %c1_44 = arith.constant 1 : index
    %c0_45 = arith.constant 0 : index
    %c0_46 = arith.constant 0 : index
    %41 = vector.load %arg7[%c1_44, %c0_45, %c0_46] : memref<18x18x4xbf16, #tpu.memory_space<vmem>>, vector<16x16x4xbf16>
    %42 = vector.shape_cast %41 : vector<16x16x4xbf16> to vector<256x4xbf16>
    %c3 = arith.constant 3 : index
    %c0_47 = arith.constant 0 : index
    %c0_48 = arith.constant 0 : index
    %43 = vector.load %arg4[%c3, %c0_47, %c0_48] : memref<9x4x8xbf16, #tpu.memory_space<vmem>>, vector<1x4x8xbf16>
    %44 = vector.shape_cast %43 : vector<1x4x8xbf16> to vector<4x8xbf16>
    %cst_49 = arith.constant dense<0.000000e+00> : vector<256x8xf32>
    %45 = tpu.matmul %42, %44, %cst_49 {dimension_numbers = #tpu.dot_dimension_numbers<[1], [0], [0], [1], [0, 0, 1, 1], [], []>} : vector<256x4xbf16>, vector<4x8xbf16>, vector<256x8xf32> -> vector<256x8xf32>
    %46 = arith.addf %40, %45 : vector<256x8xf32>
    %c1_50 = arith.constant 1 : index
    %c1_51 = arith.constant 1 : index
    %c0_52 = arith.constant 0 : index
    %47 = vector.load %arg7[%c1_50, %c1_51, %c0_52] : memref<18x18x4xbf16, #tpu.memory_space<vmem>>, vector<16x16x4xbf16>
    %48 = vector.shape_cast %47 : vector<16x16x4xbf16> to vector<256x4xbf16>
    %c4 = arith.constant 4 : index
    %c0_53 = arith.constant 0 : index
    %c0_54 = arith.constant 0 : index
    %49 = vector.load %arg4[%c4, %c0_53, %c0_54] : memref<9x4x8xbf16, #tpu.memory_space<vmem>>, vector<1x4x8xbf16>
    %50 = vector.shape_cast %49 : vector<1x4x8xbf16> to vector<4x8xbf16>
    %cst_55 = arith.constant dense<0.000000e+00> : vector<256x8xf32>
    %51 = tpu.matmul %48, %50, %cst_55 {dimension_numbers = #tpu.dot_dimension_numbers<[1], [0], [0], [1], [0, 0, 1, 1], [], []>} : vector<256x4xbf16>, vector<4x8xbf16>, vector<256x8xf32> -> vector<256x8xf32>
    %52 = arith.addf %46, %51 : vector<256x8xf32>
    %c1_56 = arith.constant 1 : index
    %c2_57 = arith.constant 2 : index
    %c0_58 = arith.constant 0 : index
    %53 = vector.load %arg7[%c1_56, %c2_57, %c0_58] : memref<18x18x4xbf16, #tpu.memory_space<vmem>>, vector<16x16x4xbf16>
    %54 = vector.shape_cast %53 : vector<16x16x4xbf16> to vector<256x4xbf16>
    %c5 = arith.constant 5 : index
    %c0_59 = arith.constant 0 : index
    %c0_60 = arith.constant 0 : index
    %55 = vector.load %arg4[%c5, %c0_59, %c0_60] : memref<9x4x8xbf16, #tpu.memory_space<vmem>>, vector<1x4x8xbf16>
    %56 = vector.shape_cast %55 : vector<1x4x8xbf16> to vector<4x8xbf16>
    %cst_61 = arith.constant dense<0.000000e+00> : vector<256x8xf32>
    %57 = tpu.matmul %54, %56, %cst_61 {dimension_numbers = #tpu.dot_dimension_numbers<[1], [0], [0], [1], [0, 0, 1, 1], [], []>} : vector<256x4xbf16>, vector<4x8xbf16>, vector<256x8xf32> -> vector<256x8xf32>
    %58 = arith.addf %52, %57 : vector<256x8xf32>
    %c2_62 = arith.constant 2 : index
    %c0_63 = arith.constant 0 : index
    %c0_64 = arith.constant 0 : index
    %59 = vector.load %arg7[%c2_62, %c0_63, %c0_64] : memref<18x18x4xbf16, #tpu.memory_space<vmem>>, vector<16x16x4xbf16>
    %60 = vector.shape_cast %59 : vector<16x16x4xbf16> to vector<256x4xbf16>
    %c6 = arith.constant 6 : index
    %c0_65 = arith.constant 0 : index
    %c0_66 = arith.constant 0 : index
    %61 = vector.load %arg4[%c6, %c0_65, %c0_66] : memref<9x4x8xbf16, #tpu.memory_space<vmem>>, vector<1x4x8xbf16>
    %62 = vector.shape_cast %61 : vector<1x4x8xbf16> to vector<4x8xbf16>
    %cst_67 = arith.constant dense<0.000000e+00> : vector<256x8xf32>
    %63 = tpu.matmul %60, %62, %cst_67 {dimension_numbers = #tpu.dot_dimension_numbers<[1], [0], [0], [1], [0, 0, 1, 1], [], []>} : vector<256x4xbf16>, vector<4x8xbf16>, vector<256x8xf32> -> vector<256x8xf32>
    %64 = arith.addf %58, %63 : vector<256x8xf32>
    %c2_68 = arith.constant 2 : index
    %c1_69 = arith.constant 1 : index
    %c0_70 = arith.constant 0 : index
    %65 = vector.load %arg7[%c2_68, %c1_69, %c0_70] : memref<18x18x4xbf16, #tpu.memory_space<vmem>>, vector<16x16x4xbf16>
    %66 = vector.shape_cast %65 : vector<16x16x4xbf16> to vector<256x4xbf16>
    %c7 = arith.constant 7 : index
    %c0_71 = arith.constant 0 : index
    %c0_72 = arith.constant 0 : index
    %67 = vector.load %arg4[%c7, %c0_71, %c0_72] : memref<9x4x8xbf16, #tpu.memory_space<vmem>>, vector<1x4x8xbf16>
    %68 = vector.shape_cast %67 : vector<1x4x8xbf16> to vector<4x8xbf16>
    %cst_73 = arith.constant dense<0.000000e+00> : vector<256x8xf32>
    %69 = tpu.matmul %66, %68, %cst_73 {dimension_numbers = #tpu.dot_dimension_numbers<[1], [0], [0], [1], [0, 0, 1, 1], [], []>} : vector<256x4xbf16>, vector<4x8xbf16>, vector<256x8xf32> -> vector<256x8xf32>
    %70 = arith.addf %64, %69 : vector<256x8xf32>
    %c2_74 = arith.constant 2 : index
    %c2_75 = arith.constant 2 : index
    %c0_76 = arith.constant 0 : index
    %71 = vector.load %arg7[%c2_74, %c2_75, %c0_76] : memref<18x18x4xbf16, #tpu.memory_space<vmem>>, vector<16x16x4xbf16>
    %72 = vector.shape_cast %71 : vector<16x16x4xbf16> to vector<256x4xbf16>
    %c8 = arith.constant 8 : index
    %c0_77 = arith.constant 0 : index
    %c0_78 = arith.constant 0 : index
    %73 = vector.load %arg4[%c8, %c0_77, %c0_78] : memref<9x4x8xbf16, #tpu.memory_space<vmem>>, vector<1x4x8xbf16>
    %74 = vector.shape_cast %73 : vector<1x4x8xbf16> to vector<4x8xbf16>
    %cst_79 = arith.constant dense<0.000000e+00> : vector<256x8xf32>
    %75 = tpu.matmul %72, %74, %cst_79 {dimension_numbers = #tpu.dot_dimension_numbers<[1], [0], [0], [1], [0, 0, 1, 1], [], []>} : vector<256x4xbf16>, vector<4x8xbf16>, vector<256x8xf32> -> vector<256x8xf32>
    %76 = arith.addf %70, %75 : vector<256x8xf32>
    %c0_80 = arith.constant 0 : index
    %c0_81 = arith.constant 0 : index
    %c0_82 = arith.constant 0 : index
    %77 = vector.load %arg5[%c0_80, %c0_81, %c0_82] : memref<1x256x8xf32, #tpu.memory_space<vmem>>, vector<1x256x8xf32>
    %78 = vector.shape_cast %77 : vector<1x256x8xf32> to vector<256x8xf32>
    %79 = vector.shape_cast %76 : vector<256x8xf32> to vector<1x256x8xf32>
    tpu.vector_store %arg5[%c0_80, %c0_81, %c0_82], %79 {strides = array<i32>} : memref<1x256x8xf32, #tpu.memory_space<vmem>>, vector<1x256x8xf32>,
    %cst_83 = arith.constant dense<0.000000e+00> : vector<8xf32>
    %80 = vector.multi_reduction <add>, %76, %cst_83 [0] : vector<256x8xf32> to vector<8xf32>
    %81 = vector.shape_cast %80 : vector<8xf32> to vector<1x8xf32>
    %c0_84 = arith.constant 0 : index
    %c0_85 = arith.constant 0 : index
    %c0_86 = arith.constant 0 : index
    %82 = vector.load %arg6[%c0_84, %c0_85, %c0_86] : memref<1x2x8xf32, #tpu.memory_space<vmem>>, vector<1x1x8xf32>
    %83 = vector.shape_cast %82 : vector<1x1x8xf32> to vector<1x8xf32>
    %84 = vector.shape_cast %81 : vector<1x8xf32> to vector<1x1x8xf32>
    tpu.vector_store %arg6[%c0_84, %c0_85, %c0_86], %84 {strides = array<i32>} : memref<1x2x8xf32, #tpu.memory_space<vmem>>, vector<1x1x8xf32>,
    %85 = arith.mulf %76, %76 : vector<256x8xf32>
    %cst_87 = arith.constant dense<0.000000e+00> : vector<8xf32>
    %86 = vector.multi_reduction <add>, %85, %cst_87 [0] : vector<256x8xf32> to vector<8xf32>
    %87 = vector.shape_cast %86 : vector<8xf32> to vector<1x8xf32>
    %c0_88 = arith.constant 0 : index
    %c1_89 = arith.constant 1 : index
    %c0_90 = arith.constant 0 : index
    %88 = vector.load %arg6[%c0_88, %c1_89, %c0_90] : memref<1x2x8xf32, #tpu.memory_space<vmem>>, vector<1x1x8xf32>
    %89 = vector.shape_cast %88 : vector<1x1x8xf32> to vector<1x8xf32>
    %90 = vector.shape_cast %87 : vector<1x8xf32> to vector<1x1x8xf32>
    tpu.vector_store %arg6[%c0_88, %c1_89, %c0_90], %90 {strides = array<i32>} : memref<1x2x8xf32, #tpu.memory_space<vmem>>, vector<1x1x8xf32>,
    return
  }
  func.func @transform_0(%arg0: i32) -> (i32, i32, i32) {
    %c0_i32 = arith.constant 0 : i32
    %c0_i32_0 = arith.constant 0 : i32
    %c0_i32_1 = arith.constant 0 : i32
    return %arg0, %c0_i32, %c0_i32_0 : i32, i32, i32
  }
  func.func @transform_1(%arg0: i32) -> (i32, i32) {
    %c0_i32 = arith.constant 0 : i32
    %c0_i32_0 = arith.constant 0 : i32
    %c0_i32_1 = arith.constant 0 : i32
    return %c0_i32, %c0_i32_0 : i32, i32
  }
  func.func @transform_2(%arg0: i32) -> (i32, i32) {
    %c0_i32 = arith.constant 0 : i32
    %c0_i32_0 = arith.constant 0 : i32
    %c0_i32_1 = arith.constant 0 : i32
    return %c0_i32, %c0_i32_0 : i32, i32
  }
  func.func @transform_3(%arg0: i32) -> (i32, i32, i32) {
    %c0_i32 = arith.constant 0 : i32
    %c0_i32_0 = arith.constant 0 : i32
    %c0_i32_1 = arith.constant 0 : i32
    %c0_i32_2 = arith.constant 0 : i32
    return %c0_i32, %c0_i32_0, %c0_i32_1 : i32, i32, i32
  }
  func.func @transform_4(%arg0: i32) -> (i32, i32, i32) {
    %c0_i32 = arith.constant 0 : i32
    %c0_i32_0 = arith.constant 0 : i32
    %c0_i32_1 = arith.constant 0 : i32
    return %arg0, %c0_i32, %c0_i32_0 : i32, i32, i32
  }
  func.func @transform_5(%arg0: i32) -> (i32, i32, i32) {
    %c0_i32 = arith.constant 0 : i32
    %c0_i32_0 = arith.constant 0 : i32
    %c0_i32_1 = arith.constant 0 : i32
    return %arg0, %c0_i32, %c0_i32_0 : i32, i32, i32
  }
}

module attributes {stable_mosaic.version = 11 : i64} {
  func.func @_up_concat_conv1_kernel(%arg0: i32, %arg1: memref<1x64x4xbf16, #tpu.memory_space<vmem>>, %arg2: memref<1x16x16x4xbf16, #tpu.memory_space<vmem>>, %arg3: memref<256x64xbf16, #tpu.memory_space<vmem>>, %arg4: memref<9x8x4xbf16, #tpu.memory_space<vmem>>, %arg5: memref<1x256x4xbf16, #tpu.memory_space<vmem>>, %arg6: memref<1x2x4xf32, #tpu.memory_space<vmem>>, %arg7: memref<18x18x8xbf16, #tpu.memory_space<vmem>>) attributes {dimension_semantics = [#tpu.dimension_semantics<parallel>], iteration_bounds = array<i64: 2>, scalar_prefetch = 0 : i64, scratch_operands = 1 : i64, tpu.core_type = #tpu.core_type<tc>, window_params = [{transform_indices = @transform_0, window_bounds = array<i64: 1, 64, 4>}, {transform_indices = @transform_1, window_bounds = array<i64: 1, 16, 16, 4>}, {pipeline_mode = #tpu.pipeline_mode<synchronous>, transform_indices = @transform_2, window_bounds = array<i64: 256, 64>}, {pipeline_mode = #tpu.pipeline_mode<synchronous>, transform_indices = @transform_3, window_bounds = array<i64: 9, 8, 4>}, {transform_indices = @transform_4, window_bounds = array<i64: 1, 256, 4>}, {transform_indices = @transform_5, window_bounds = array<i64: 1, 2, 4>}]} {
    %cst = arith.constant 0.000000e+00 : bf16
    %0 = vector.broadcast %cst : bf16 to vector<1x18x8xbf16>
    %c0 = arith.constant 0 : index
    %c0_0 = arith.constant 0 : index
    %c0_1 = arith.constant 0 : index
    %1 = vector.load %arg7[%c0, %c0_0, %c0_1] : memref<18x18x8xbf16, #tpu.memory_space<vmem>>, vector<1x18x8xbf16>
    tpu.vector_store %arg7[%c0, %c0_0, %c0_1], %0 {strides = array<i32>} : memref<18x18x8xbf16, #tpu.memory_space<vmem>>, vector<1x18x8xbf16>,
    %cst_2 = arith.constant 0.000000e+00 : bf16
    %2 = vector.broadcast %cst_2 : bf16 to vector<1x18x8xbf16>
    %c17 = arith.constant 17 : index
    %c0_3 = arith.constant 0 : index
    %c0_4 = arith.constant 0 : index
    %3 = vector.load %arg7[%c17, %c0_3, %c0_4] : memref<18x18x8xbf16, #tpu.memory_space<vmem>>, vector<1x18x8xbf16>
    tpu.vector_store %arg7[%c17, %c0_3, %c0_4], %2 {strides = array<i32>} : memref<18x18x8xbf16, #tpu.memory_space<vmem>>, vector<1x18x8xbf16>,
    %cst_5 = arith.constant 0.000000e+00 : bf16
    %4 = vector.broadcast %cst_5 : bf16 to vector<18x1x8xbf16>
    %c0_6 = arith.constant 0 : index
    %c0_7 = arith.constant 0 : index
    %c0_8 = arith.constant 0 : index
    %5 = vector.load %arg7[%c0_6, %c0_7, %c0_8] : memref<18x18x8xbf16, #tpu.memory_space<vmem>>, vector<18x1x8xbf16>
    tpu.vector_store %arg7[%c0_6, %c0_7, %c0_8], %4 {strides = array<i32>} : memref<18x18x8xbf16, #tpu.memory_space<vmem>>, vector<18x1x8xbf16>,
    %cst_9 = arith.constant 0.000000e+00 : bf16
    %6 = vector.broadcast %cst_9 : bf16 to vector<18x1x8xbf16>
    %c0_10 = arith.constant 0 : index
    %c17_11 = arith.constant 17 : index
    %c0_12 = arith.constant 0 : index
    %7 = vector.load %arg7[%c0_10, %c17_11, %c0_12] : memref<18x18x8xbf16, #tpu.memory_space<vmem>>, vector<18x1x8xbf16>
    tpu.vector_store %arg7[%c0_10, %c17_11, %c0_12], %6 {strides = array<i32>} : memref<18x18x8xbf16, #tpu.memory_space<vmem>>, vector<18x1x8xbf16>,
    %c0_13 = arith.constant 0 : index
    %c0_14 = arith.constant 0 : index
    %c0_15 = arith.constant 0 : index
    %c0_16 = arith.constant 0 : index
    %8 = vector.load %arg2[%c0_13, %c0_14, %c0_15, %c0_16] : memref<1x16x16x4xbf16, #tpu.memory_space<vmem>>, vector<1x16x16x4xbf16>
    %9 = vector.shape_cast %8 : vector<1x16x16x4xbf16> to vector<16x16x4xbf16>
    %c1 = arith.constant 1 : index
    %c1_17 = arith.constant 1 : index
    %c0_18 = arith.constant 0 : index
    %10 = vector.load %arg7[%c1, %c1_17, %c0_18] : memref<18x18x8xbf16, #tpu.memory_space<vmem>>, vector<16x16x4xbf16>
    tpu.vector_store %arg7[%c1, %c1_17, %c0_18], %9 {strides = array<i32>} : memref<18x18x8xbf16, #tpu.memory_space<vmem>>, vector<16x16x4xbf16>,
    %c0_19 = arith.constant 0 : index
    %c0_20 = arith.constant 0 : index
    %11 = vector.load %arg3[%c0_19, %c0_20] : memref<256x64xbf16, #tpu.memory_space<vmem>>, vector<256x64xbf16>
    %c0_21 = arith.constant 0 : index
    %c0_22 = arith.constant 0 : index
    %c0_23 = arith.constant 0 : index
    %12 = vector.load %arg1[%c0_21, %c0_22, %c0_23] : memref<1x64x4xbf16, #tpu.memory_space<vmem>>, vector<1x64x4xbf16>
    %13 = vector.shape_cast %12 : vector<1x64x4xbf16> to vector<64x4xbf16>
    %cst_24 = arith.constant dense<0.000000e+00> : vector<256x4xf32>
    %14 = tpu.matmul %11, %13, %cst_24 {dimension_numbers = #tpu.dot_dimension_numbers<[1], [0], [0], [1], [0, 0, 1, 1], [], []>} : vector<256x64xbf16>, vector<64x4xbf16>, vector<256x4xf32> -> vector<256x4xf32>
    %15 = vector.shape_cast %14 : vector<256x4xf32> to vector<16x16x4xf32>
    %16 = arith.truncf %15 : vector<16x16x4xf32> to vector<16x16x4xbf16>
    %c1_25 = arith.constant 1 : index
    %c1_26 = arith.constant 1 : index
    %c4 = arith.constant 4 : index
    %17 = vector.load %arg7[%c1_25, %c1_26, %c4] : memref<18x18x8xbf16, #tpu.memory_space<vmem>>, vector<16x16x4xbf16>
    tpu.vector_store %arg7[%c1_25, %c1_26, %c4], %16 {strides = array<i32>} : memref<18x18x8xbf16, #tpu.memory_space<vmem>>, vector<16x16x4xbf16>,
    %cst_27 = arith.constant 0.000000e+00 : f32
    %18 = vector.broadcast %cst_27 : f32 to vector<256x4xf32>
    %c0_28 = arith.constant 0 : index
    %c0_29 = arith.constant 0 : index
    %c0_30 = arith.constant 0 : index
    %19 = vector.load %arg7[%c0_28, %c0_29, %c0_30] : memref<18x18x8xbf16, #tpu.memory_space<vmem>>, vector<16x16x8xbf16>
    %20 = vector.shape_cast %19 : vector<16x16x8xbf16> to vector<256x8xbf16>
    %c0_31 = arith.constant 0 : index
    %c0_32 = arith.constant 0 : index
    %c0_33 = arith.constant 0 : index
    %21 = vector.load %arg4[%c0_31, %c0_32, %c0_33] : memref<9x8x4xbf16, #tpu.memory_space<vmem>>, vector<1x8x4xbf16>
    %22 = vector.shape_cast %21 : vector<1x8x4xbf16> to vector<8x4xbf16>
    %cst_34 = arith.constant dense<0.000000e+00> : vector<256x4xf32>
    %23 = tpu.matmul %20, %22, %cst_34 {dimension_numbers = #tpu.dot_dimension_numbers<[1], [0], [0], [1], [0, 0, 1, 1], [], []>} : vector<256x8xbf16>, vector<8x4xbf16>, vector<256x4xf32> -> vector<256x4xf32>
    %24 = arith.addf %18, %23 : vector<256x4xf32>
    %c0_35 = arith.constant 0 : index
    %c1_36 = arith.constant 1 : index
    %c0_37 = arith.constant 0 : index
    %25 = vector.load %arg7[%c0_35, %c1_36, %c0_37] : memref<18x18x8xbf16, #tpu.memory_space<vmem>>, vector<16x16x8xbf16>
    %26 = vector.shape_cast %25 : vector<16x16x8xbf16> to vector<256x8xbf16>
    %c1_38 = arith.constant 1 : index
    %c0_39 = arith.constant 0 : index
    %c0_40 = arith.constant 0 : index
    %27 = vector.load %arg4[%c1_38, %c0_39, %c0_40] : memref<9x8x4xbf16, #tpu.memory_space<vmem>>, vector<1x8x4xbf16>
    %28 = vector.shape_cast %27 : vector<1x8x4xbf16> to vector<8x4xbf16>
    %cst_41 = arith.constant dense<0.000000e+00> : vector<256x4xf32>
    %29 = tpu.matmul %26, %28, %cst_41 {dimension_numbers = #tpu.dot_dimension_numbers<[1], [0], [0], [1], [0, 0, 1, 1], [], []>} : vector<256x8xbf16>, vector<8x4xbf16>, vector<256x4xf32> -> vector<256x4xf32>
    %30 = arith.addf %24, %29 : vector<256x4xf32>
    %c0_42 = arith.constant 0 : index
    %c2 = arith.constant 2 : index
    %c0_43 = arith.constant 0 : index
    %31 = vector.load %arg7[%c0_42, %c2, %c0_43] : memref<18x18x8xbf16, #tpu.memory_space<vmem>>, vector<16x16x8xbf16>
    %32 = vector.shape_cast %31 : vector<16x16x8xbf16> to vector<256x8xbf16>
    %c2_44 = arith.constant 2 : index
    %c0_45 = arith.constant 0 : index
    %c0_46 = arith.constant 0 : index
    %33 = vector.load %arg4[%c2_44, %c0_45, %c0_46] : memref<9x8x4xbf16, #tpu.memory_space<vmem>>, vector<1x8x4xbf16>
    %34 = vector.shape_cast %33 : vector<1x8x4xbf16> to vector<8x4xbf16>
    %cst_47 = arith.constant dense<0.000000e+00> : vector<256x4xf32>
    %35 = tpu.matmul %32, %34, %cst_47 {dimension_numbers = #tpu.dot_dimension_numbers<[1], [0], [0], [1], [0, 0, 1, 1], [], []>} : vector<256x8xbf16>, vector<8x4xbf16>, vector<256x4xf32> -> vector<256x4xf32>
    %36 = arith.addf %30, %35 : vector<256x4xf32>
    %c1_48 = arith.constant 1 : index
    %c0_49 = arith.constant 0 : index
    %c0_50 = arith.constant 0 : index
    %37 = vector.load %arg7[%c1_48, %c0_49, %c0_50] : memref<18x18x8xbf16, #tpu.memory_space<vmem>>, vector<16x16x8xbf16>
    %38 = vector.shape_cast %37 : vector<16x16x8xbf16> to vector<256x8xbf16>
    %c3 = arith.constant 3 : index
    %c0_51 = arith.constant 0 : index
    %c0_52 = arith.constant 0 : index
    %39 = vector.load %arg4[%c3, %c0_51, %c0_52] : memref<9x8x4xbf16, #tpu.memory_space<vmem>>, vector<1x8x4xbf16>
    %40 = vector.shape_cast %39 : vector<1x8x4xbf16> to vector<8x4xbf16>
    %cst_53 = arith.constant dense<0.000000e+00> : vector<256x4xf32>
    %41 = tpu.matmul %38, %40, %cst_53 {dimension_numbers = #tpu.dot_dimension_numbers<[1], [0], [0], [1], [0, 0, 1, 1], [], []>} : vector<256x8xbf16>, vector<8x4xbf16>, vector<256x4xf32> -> vector<256x4xf32>
    %42 = arith.addf %36, %41 : vector<256x4xf32>
    %c1_54 = arith.constant 1 : index
    %c1_55 = arith.constant 1 : index
    %c0_56 = arith.constant 0 : index
    %43 = vector.load %arg7[%c1_54, %c1_55, %c0_56] : memref<18x18x8xbf16, #tpu.memory_space<vmem>>, vector<16x16x8xbf16>
    %44 = vector.shape_cast %43 : vector<16x16x8xbf16> to vector<256x8xbf16>
    %c4_57 = arith.constant 4 : index
    %c0_58 = arith.constant 0 : index
    %c0_59 = arith.constant 0 : index
    %45 = vector.load %arg4[%c4_57, %c0_58, %c0_59] : memref<9x8x4xbf16, #tpu.memory_space<vmem>>, vector<1x8x4xbf16>
    %46 = vector.shape_cast %45 : vector<1x8x4xbf16> to vector<8x4xbf16>
    %cst_60 = arith.constant dense<0.000000e+00> : vector<256x4xf32>
    %47 = tpu.matmul %44, %46, %cst_60 {dimension_numbers = #tpu.dot_dimension_numbers<[1], [0], [0], [1], [0, 0, 1, 1], [], []>} : vector<256x8xbf16>, vector<8x4xbf16>, vector<256x4xf32> -> vector<256x4xf32>
    %48 = arith.addf %42, %47 : vector<256x4xf32>
    %c1_61 = arith.constant 1 : index
    %c2_62 = arith.constant 2 : index
    %c0_63 = arith.constant 0 : index
    %49 = vector.load %arg7[%c1_61, %c2_62, %c0_63] : memref<18x18x8xbf16, #tpu.memory_space<vmem>>, vector<16x16x8xbf16>
    %50 = vector.shape_cast %49 : vector<16x16x8xbf16> to vector<256x8xbf16>
    %c5 = arith.constant 5 : index
    %c0_64 = arith.constant 0 : index
    %c0_65 = arith.constant 0 : index
    %51 = vector.load %arg4[%c5, %c0_64, %c0_65] : memref<9x8x4xbf16, #tpu.memory_space<vmem>>, vector<1x8x4xbf16>
    %52 = vector.shape_cast %51 : vector<1x8x4xbf16> to vector<8x4xbf16>
    %cst_66 = arith.constant dense<0.000000e+00> : vector<256x4xf32>
    %53 = tpu.matmul %50, %52, %cst_66 {dimension_numbers = #tpu.dot_dimension_numbers<[1], [0], [0], [1], [0, 0, 1, 1], [], []>} : vector<256x8xbf16>, vector<8x4xbf16>, vector<256x4xf32> -> vector<256x4xf32>
    %54 = arith.addf %48, %53 : vector<256x4xf32>
    %c2_67 = arith.constant 2 : index
    %c0_68 = arith.constant 0 : index
    %c0_69 = arith.constant 0 : index
    %55 = vector.load %arg7[%c2_67, %c0_68, %c0_69] : memref<18x18x8xbf16, #tpu.memory_space<vmem>>, vector<16x16x8xbf16>
    %56 = vector.shape_cast %55 : vector<16x16x8xbf16> to vector<256x8xbf16>
    %c6 = arith.constant 6 : index
    %c0_70 = arith.constant 0 : index
    %c0_71 = arith.constant 0 : index
    %57 = vector.load %arg4[%c6, %c0_70, %c0_71] : memref<9x8x4xbf16, #tpu.memory_space<vmem>>, vector<1x8x4xbf16>
    %58 = vector.shape_cast %57 : vector<1x8x4xbf16> to vector<8x4xbf16>
    %cst_72 = arith.constant dense<0.000000e+00> : vector<256x4xf32>
    %59 = tpu.matmul %56, %58, %cst_72 {dimension_numbers = #tpu.dot_dimension_numbers<[1], [0], [0], [1], [0, 0, 1, 1], [], []>} : vector<256x8xbf16>, vector<8x4xbf16>, vector<256x4xf32> -> vector<256x4xf32>
    %60 = arith.addf %54, %59 : vector<256x4xf32>
    %c2_73 = arith.constant 2 : index
    %c1_74 = arith.constant 1 : index
    %c0_75 = arith.constant 0 : index
    %61 = vector.load %arg7[%c2_73, %c1_74, %c0_75] : memref<18x18x8xbf16, #tpu.memory_space<vmem>>, vector<16x16x8xbf16>
    %62 = vector.shape_cast %61 : vector<16x16x8xbf16> to vector<256x8xbf16>
    %c7 = arith.constant 7 : index
    %c0_76 = arith.constant 0 : index
    %c0_77 = arith.constant 0 : index
    %63 = vector.load %arg4[%c7, %c0_76, %c0_77] : memref<9x8x4xbf16, #tpu.memory_space<vmem>>, vector<1x8x4xbf16>
    %64 = vector.shape_cast %63 : vector<1x8x4xbf16> to vector<8x4xbf16>
    %cst_78 = arith.constant dense<0.000000e+00> : vector<256x4xf32>
    %65 = tpu.matmul %62, %64, %cst_78 {dimension_numbers = #tpu.dot_dimension_numbers<[1], [0], [0], [1], [0, 0, 1, 1], [], []>} : vector<256x8xbf16>, vector<8x4xbf16>, vector<256x4xf32> -> vector<256x4xf32>
    %66 = arith.addf %60, %65 : vector<256x4xf32>
    %c2_79 = arith.constant 2 : index
    %c2_80 = arith.constant 2 : index
    %c0_81 = arith.constant 0 : index
    %67 = vector.load %arg7[%c2_79, %c2_80, %c0_81] : memref<18x18x8xbf16, #tpu.memory_space<vmem>>, vector<16x16x8xbf16>
    %68 = vector.shape_cast %67 : vector<16x16x8xbf16> to vector<256x8xbf16>
    %c8 = arith.constant 8 : index
    %c0_82 = arith.constant 0 : index
    %c0_83 = arith.constant 0 : index
    %69 = vector.load %arg4[%c8, %c0_82, %c0_83] : memref<9x8x4xbf16, #tpu.memory_space<vmem>>, vector<1x8x4xbf16>
    %70 = vector.shape_cast %69 : vector<1x8x4xbf16> to vector<8x4xbf16>
    %cst_84 = arith.constant dense<0.000000e+00> : vector<256x4xf32>
    %71 = tpu.matmul %68, %70, %cst_84 {dimension_numbers = #tpu.dot_dimension_numbers<[1], [0], [0], [1], [0, 0, 1, 1], [], []>} : vector<256x8xbf16>, vector<8x4xbf16>, vector<256x4xf32> -> vector<256x4xf32>
    %72 = arith.addf %66, %71 : vector<256x4xf32>
    %73 = arith.truncf %72 : vector<256x4xf32> to vector<256x4xbf16>
    %c0_85 = arith.constant 0 : index
    %c0_86 = arith.constant 0 : index
    %c0_87 = arith.constant 0 : index
    %74 = vector.load %arg5[%c0_85, %c0_86, %c0_87] : memref<1x256x4xbf16, #tpu.memory_space<vmem>>, vector<1x256x4xbf16>
    %75 = vector.shape_cast %74 : vector<1x256x4xbf16> to vector<256x4xbf16>
    %76 = vector.shape_cast %73 : vector<256x4xbf16> to vector<1x256x4xbf16>
    tpu.vector_store %arg5[%c0_85, %c0_86, %c0_87], %76 {strides = array<i32>} : memref<1x256x4xbf16, #tpu.memory_space<vmem>>, vector<1x256x4xbf16>,
    %cst_88 = arith.constant dense<0.000000e+00> : vector<4xf32>
    %77 = vector.multi_reduction <add>, %72, %cst_88 [0] : vector<256x4xf32> to vector<4xf32>
    %78 = vector.shape_cast %77 : vector<4xf32> to vector<1x4xf32>
    %c0_89 = arith.constant 0 : index
    %c0_90 = arith.constant 0 : index
    %c0_91 = arith.constant 0 : index
    %79 = vector.load %arg6[%c0_89, %c0_90, %c0_91] : memref<1x2x4xf32, #tpu.memory_space<vmem>>, vector<1x1x4xf32>
    %80 = vector.shape_cast %79 : vector<1x1x4xf32> to vector<1x4xf32>
    %81 = vector.shape_cast %78 : vector<1x4xf32> to vector<1x1x4xf32>
    tpu.vector_store %arg6[%c0_89, %c0_90, %c0_91], %81 {strides = array<i32>} : memref<1x2x4xf32, #tpu.memory_space<vmem>>, vector<1x1x4xf32>,
    %82 = arith.mulf %72, %72 : vector<256x4xf32>
    %cst_92 = arith.constant dense<0.000000e+00> : vector<4xf32>
    %83 = vector.multi_reduction <add>, %82, %cst_92 [0] : vector<256x4xf32> to vector<4xf32>
    %84 = vector.shape_cast %83 : vector<4xf32> to vector<1x4xf32>
    %c0_93 = arith.constant 0 : index
    %c1_94 = arith.constant 1 : index
    %c0_95 = arith.constant 0 : index
    %85 = vector.load %arg6[%c0_93, %c1_94, %c0_95] : memref<1x2x4xf32, #tpu.memory_space<vmem>>, vector<1x1x4xf32>
    %86 = vector.shape_cast %85 : vector<1x1x4xf32> to vector<1x4xf32>
    %87 = vector.shape_cast %84 : vector<1x4xf32> to vector<1x1x4xf32>
    tpu.vector_store %arg6[%c0_93, %c1_94, %c0_95], %87 {strides = array<i32>} : memref<1x2x4xf32, #tpu.memory_space<vmem>>, vector<1x1x4xf32>,
    return
  }
  func.func @transform_0(%arg0: i32) -> (i32, i32, i32) {
    %c0_i32 = arith.constant 0 : i32
    %c0_i32_0 = arith.constant 0 : i32
    %c0_i32_1 = arith.constant 0 : i32
    return %arg0, %c0_i32, %c0_i32_0 : i32, i32, i32
  }
  func.func @transform_1(%arg0: i32) -> (i32, i32, i32, i32) {
    %c0_i32 = arith.constant 0 : i32
    %c0_i32_0 = arith.constant 0 : i32
    %c0_i32_1 = arith.constant 0 : i32
    %c0_i32_2 = arith.constant 0 : i32
    return %arg0, %c0_i32, %c0_i32_0, %c0_i32_1 : i32, i32, i32, i32
  }
  func.func @transform_2(%arg0: i32) -> (i32, i32) {
    %c0_i32 = arith.constant 0 : i32
    %c0_i32_0 = arith.constant 0 : i32
    %c0_i32_1 = arith.constant 0 : i32
    return %c0_i32, %c0_i32_0 : i32, i32
  }
  func.func @transform_3(%arg0: i32) -> (i32, i32, i32) {
    %c0_i32 = arith.constant 0 : i32
    %c0_i32_0 = arith.constant 0 : i32
    %c0_i32_1 = arith.constant 0 : i32
    %c0_i32_2 = arith.constant 0 : i32
    return %c0_i32, %c0_i32_0, %c0_i32_1 : i32, i32, i32
  }
  func.func @transform_4(%arg0: i32) -> (i32, i32, i32) {
    %c0_i32 = arith.constant 0 : i32
    %c0_i32_0 = arith.constant 0 : i32
    %c0_i32_1 = arith.constant 0 : i32
    return %arg0, %c0_i32, %c0_i32_0 : i32, i32, i32
  }
  func.func @transform_5(%arg0: i32) -> (i32, i32, i32) {
    %c0_i32 = arith.constant 0 : i32
    %c0_i32_0 = arith.constant 0 : i32
    %c0_i32_1 = arith.constant 0 : i32
    return %arg0, %c0_i32, %c0_i32_0 : i32, i32, i32
  }
}

module attributes {stable_mosaic.version = 11 : i64} {
  func.func @_bn2_relu_kernel(%arg0: i32, %arg1: memref<1x16x128xf32, #tpu.memory_space<vmem>>, %arg2: memref<1x128xf32, #tpu.memory_space<vmem>>, %arg3: memref<1x128xf32, #tpu.memory_space<vmem>>, %arg4: memref<1x16x128xf32, #tpu.memory_space<vmem>>) attributes {dimension_semantics = [#tpu.dimension_semantics<parallel>], iteration_bounds = array<i64: 2>, scalar_prefetch = 0 : i64, scratch_operands = 0 : i64, tpu.core_type = #tpu.core_type<tc>, window_params = [{transform_indices = @transform_0, window_bounds = array<i64: 1, 16, 128>}, {pipeline_mode = #tpu.pipeline_mode<synchronous>, transform_indices = @transform_1, window_bounds = array<i64: 1, 128>}, {pipeline_mode = #tpu.pipeline_mode<synchronous>, transform_indices = @transform_2, window_bounds = array<i64: 1, 128>}, {transform_indices = @transform_3, window_bounds = array<i64: 1, 16, 128>}]} {
    %c0 = arith.constant 0 : index
    %c0_0 = arith.constant 0 : index
    %c0_1 = arith.constant 0 : index
    %0 = vector.load %arg1[%c0, %c0_0, %c0_1] : memref<1x16x128xf32, #tpu.memory_space<vmem>>, vector<1x16x128xf32>
    %1 = vector.shape_cast %0 : vector<1x16x128xf32> to vector<16x128xf32>
    %c0_2 = arith.constant 0 : index
    %c0_3 = arith.constant 0 : index
    %2 = vector.load %arg2[%c0_2, %c0_3] : memref<1x128xf32, #tpu.memory_space<vmem>>, vector<1x128xf32>
    %3 = vector.broadcast %2 : vector<1x128xf32> to vector<16x128xf32>
    %4 = arith.mulf %1, %3 : vector<16x128xf32>
    %c0_4 = arith.constant 0 : index
    %c0_5 = arith.constant 0 : index
    %5 = vector.load %arg3[%c0_4, %c0_5] : memref<1x128xf32, #tpu.memory_space<vmem>>, vector<1x128xf32>
    %6 = vector.broadcast %5 : vector<1x128xf32> to vector<16x128xf32>
    %7 = arith.addf %4, %6 : vector<16x128xf32>
    %cst = arith.constant 0.000000e+00 : f32
    %8 = vector.broadcast %cst : f32 to vector<16x128xf32>
    %9 = arith.maximumf %7, %8 : vector<16x128xf32>
    %c0_6 = arith.constant 0 : index
    %c0_7 = arith.constant 0 : index
    %c0_8 = arith.constant 0 : index
    %10 = vector.load %arg4[%c0_6, %c0_7, %c0_8] : memref<1x16x128xf32, #tpu.memory_space<vmem>>, vector<1x16x128xf32>
    %11 = vector.shape_cast %10 : vector<1x16x128xf32> to vector<16x128xf32>
    %12 = vector.shape_cast %9 : vector<16x128xf32> to vector<1x16x128xf32>
    tpu.vector_store %arg4[%c0_6, %c0_7, %c0_8], %12 {strides = array<i32>} : memref<1x16x128xf32, #tpu.memory_space<vmem>>, vector<1x16x128xf32>,
    return
  }
  func.func @transform_0(%arg0: i32) -> (i32, i32, i32) {
    %c0_i32 = arith.constant 0 : i32
    %c0_i32_0 = arith.constant 0 : i32
    %c0_i32_1 = arith.constant 0 : i32
    return %arg0, %c0_i32, %c0_i32_0 : i32, i32, i32
  }
  func.func @transform_1(%arg0: i32) -> (i32, i32) {
    %c0_i32 = arith.constant 0 : i32
    %c0_i32_0 = arith.constant 0 : i32
    %c0_i32_1 = arith.constant 0 : i32
    return %c0_i32, %c0_i32_0 : i32, i32
  }
  func.func @transform_2(%arg0: i32) -> (i32, i32) {
    %c0_i32 = arith.constant 0 : i32
    %c0_i32_0 = arith.constant 0 : i32
    %c0_i32_1 = arith.constant 0 : i32
    return %c0_i32, %c0_i32_0 : i32, i32
  }
  func.func @transform_3(%arg0: i32) -> (i32, i32, i32) {
    %c0_i32 = arith.constant 0 : i32
    %c0_i32_0 = arith.constant 0 : i32
    %c0_i32_1 = arith.constant 0 : i32
    return %arg0, %c0_i32, %c0_i32_0 : i32, i32, i32
  }
}

</mosaic_0001>

<bundles_post_ra>
// kernel: tile.14
= control target key start
LH: loop header
LB: loop body
LE: loop exit
PB: predicated region body
PF: predicated region fallthrough
CT: control target
= control target key end

     0   :  { %s28_s0 = inlined_call_operand.vmem [shape: f32[8], index: 0, kind: input, shape index: {}]   ;;  %s29_s1 = inlined_call_operand.vmem [shape: f32[16,8], index: 1, kind: output, shape index: {}]  }
   0x1   :  { %v4_v0 = vld [vmem:[%s28_s0] ss:$0 sm:$0xff] }
   0x2   :  { %5 = vst [vmem:[%s29_s1] sm:$0xff] %v4_v0 }
   0x3   :  { %8 = vst [vmem:[%s29_s1 + $0x8] sm:$0xff] %v4_v0 }

// kernel: tile.15
= control target key start
LH: loop header
LB: loop body
LE: loop exit
PB: predicated region body
PF: predicated region fallthrough
CT: control target
= control target key end

     0   :  { %s131_s10 = smov 120   ;;  %s132_s11 = smov 104   ;;  %vm3_vm0 = vcmask 64512   ;;  %vm9_vm1 = vcmask 1048512   ;;  %vm15_vm2 = vcmask 982912   ;;  %vm21_vm3 = vcmask 917312   ;;  %s207_s0 = inlined_call_operand.vmem [shape: f32[16,8], index: 0, kind: input, shape index: {}]   ;;  %s208_s1 = inlined_call_operand.vmem [shape: f32[1,128], index: 1, kind: output, shape index: {}]  }
   0x1   :  { %v101_v0 = vld [vmem:[%s207_s0 + $0xf] sm:$0x1]   ;;  %v103_v1 = vld [vmem:[%s207_s0 + $0xd] sm:$0x1]   ;;  %v105_v2 = vld [vmem:[%s207_s0 + $0xb] sm:$0x1]  }
   0x2   :  { %7 = vrot.lane.b32.xlu0 %v101_v0, %s131_s10  ;;  %19 = vrot.lane.b32.xlu1 %v103_v1, %s132_s11  ;;  %s133_s14 = smov 88   ;;  %v102_v3 = vld [vmem:[%s207_s0 + $0xe] sm:$0x1]   ;;  %v104_v4 = vld [vmem:[%s207_s0 + $0xc] sm:$0x1]   ;;  %s134_s19 = smov 112  }
   0x3   :  { %31 = vrot.lane.b32.xlu2 %v105_v2, %s133_s14  ;;  %s135_s20 = smov 96   ;;  %v106_v5 = vld [vmem:[%s207_s0 + $0xa] sm:$0x1]   ;;  %s136_s23 = smov 80   ;;  %v107_v6 = vld [vmem:[%s207_s0 + $0x9] sm:$0x1]  }
   0x4   :  { %v108_v7 = vld [vmem:[%s207_s0 + $0x8] sm:$0x1]   ;;  %s137_s28 = smov 72   ;;  %s138_s29 = smov 64   ;;  %v109_v8 = vld [vmem:[%s207_s0 + $0x7] sm:$0x1]  }
   0x5   :  { %s139_s3 = smov 56   ;;  %v110_v9 = vld [vmem:[%s207_s0 + $0x6] sm:$0x1]   ;;  %v111_v10 = vld [vmem:[%s207_s0 + $0x5] sm:$0x1]   ;;  %s140_s8 = smov 48  }
   0x6   :  { %s141_s9 = smov 40   ;;  %v112_v11 = vld [vmem:[%s207_s0 + $0x4] sm:$0x1]   ;;  %s142_s12 = smov 32   ;;  %v113_v12 = vld [vmem:[%s207_s0 + $0x3] sm:$0x1]  }
   0x7   :  { %v114_v13 = vld [vmem:[%s207_s0 + $0x2] sm:$0x1]   ;;  %s143_s17 = smov 24   ;;  %s144_s18 = smov 16   ;;  %v115_v14 = vld [vmem:[%s207_s0 + $0x1] sm:$0x1]  }
   0x8   :  { %s145_s21 = smov 8   ;;  %v2_v15 = vld [vmem:[%s207_s0] sm:$0x1]   ;;  %vm27_vm4 = vcmask 851712   ;;  %vm33_vm5 = vcmask 786112   ;;  %vm39_vm6 = vcmask 720512  }
   0x9   :  { %4 = vst.msk [vmem:[#allocation0] sm:$0x1] %vm3_vm0, %v2_v15   ;;  %vm45_vm7 = vcmask 654912   ;;  %vm51_vm8 = vcmask 589312   ;;  %vm57_vm9 = vcmask 523712   ;;  %vm63_vm10 = vcmask 458112  }
   0xa   :  { %13 = vrot.lane.b32.xlu0 %v102_v3, %s134_s19  ;;  %25 = vrot.lane.b32.xlu1 %v104_v4, %s135_s20  ;;  %vm69_vm11 = vcmask 392512   ;;  %vm75_vm12 = vcmask 326912   ;;  %vm81_vm13 = vcmask 261312   ;;  %vm87_vm14 = vcmask 195712  }
   0xb   :  { %37 = vrot.lane.b32.xlu2 %v106_v5, %s136_s23  ;;  %vm93_vm15 = vcmask 130112  }
  0x12   :  { %43 = vrot.lane.b32.xlu0 %v107_v6, %s137_s28  ;;  %49 = vrot.lane.b32.xlu1 %v108_v7, %s138_s29 }
  0x13   :  { %55 = vrot.lane.b32.xlu2 %v109_v8, %s139_s3 }
  0x1a   :  { %61 = vrot.lane.b32.xlu0 %v110_v9, %s140_s8  ;;  %67 = vrot.lane.b32.xlu1 %v111_v10, %s141_s9 }
  0x1b   :  { %73 = vrot.lane.b32.xlu2 %v112_v11, %s142_s12 }
  0x22   :  { %79 = vrot.lane.b32.xlu0 %v113_v12, %s143_s17  ;;  %85 = vrot.lane.b32.xlu1 %v114_v13, %s144_s18 }
  0x23   :  { %91 = vrot.lane.b32.xlu2 %v115_v14, %s145_s21 }
  0x5d   :  { %v32_v16 = vpop.permute.xlu2 %31  }
  0x65   :  { %v38_v17 = vpop.permute.xlu2 %37  }
  0x6d   :  { %v56_v18 = vpop.permute.xlu2 %55  }
  0x74   :  { %v8_v19 = vpop.permute.xlu0 %7   ;;  %v20_v20 = vpop.permute.xlu1 %19  }
  0x75   :  { %10 = vst.msk [vmem:[#allocation0] sm:$0x1] %vm9_vm1, %v8_v19   ;;  %v74_v21 = vpop.permute.xlu2 %73  }
  0x7c   :  { %v14_v22 = vpop.permute.xlu0 %13   ;;  %v26_v23 = vpop.permute.xlu1 %25  }
  0x7d   :  { %16 = vst.msk [vmem:[#allocation0] sm:$0x1] %vm15_vm2, %v14_v22   ;;  %v92_v24 = vpop.permute.xlu2 %91  }
  0x7e   :  { %22 = vst.msk [vmem:[#allocation0] sm:$0x1] %vm21_vm3, %v20_v20  }
  0x7f   :  { %28 = vst.msk [vmem:[#allocation0] sm:$0x1] %vm27_vm4, %v26_v23  }
  0x80   :  { %34 = vst.msk [vmem:[#allocation0] sm:$0x1] %vm33_vm5, %v32_v16  }
  0x81   :  { %40 = vst.msk [vmem:[#allocation0] sm:$0x1] %vm39_vm6, %v38_v17  }
  0x84   :  { %v44_v25 = vpop.permute.xlu0 %43   ;;  %v50_v26 = vpop.permute.xlu1 %49  }
  0x85   :  { %46 = vst.msk [vmem:[#allocation0] sm:$0x1] %vm45_vm7, %v44_v25  }
  0x86   :  { %52 = vst.msk [vmem:[#allocation0] sm:$0x1] %vm51_vm8, %v50_v26  }
  0x87   :  { %58 = vst.msk [vmem:[#allocation0] sm:$0x1] %vm57_vm9, %v56_v18  }
  0x8c   :  { %v62_v27 = vpop.permute.xlu0 %61   ;;  %v68_v28 = vpop.permute.xlu1 %67  }
  0x8d   :  { %64 = vst.msk [vmem:[#allocation0] sm:$0x1] %vm63_vm10, %v62_v27  }
  0x8e   :  { %70 = vst.msk [vmem:[#allocation0] sm:$0x1] %vm69_vm11, %v68_v28  }
  0x8f   :  { %76 = vst.msk [vmem:[#allocation0] sm:$0x1] %vm75_vm12, %v74_v21  }
  0x94   :  { %v80_v29 = vpop.permute.xlu0 %79   ;;  %v86_v30 = vpop.permute.xlu1 %85  }
  0x95   :  { %82 = vst.msk [vmem:[#allocation0] sm:$0x1] %vm81_vm13, %v80_v29  }
  0x96   :  { %88 = vst.msk [vmem:[#allocation0] sm:$0x1] %vm87_vm14, %v86_v30  }
  0x97   :  { %94 = vst.msk [vmem:[#allocation0] sm:$0x1] %vm93_vm15, %v92_v24  }
  0x9e   :  { %v97_v31 = vld [vmem:[#allocation0] sm:$0x1] }
  0x9f   :  { %100 = vst [vmem:[%s208_s1] sm:$0x1] %v97_v31 }

// kernel: up_forward.5
= control target key start
LH: loop header
LB: loop body
LE: loop exit
PB: predicated region body
PF: predicated region fallthrough
CT: control target
= control target key end

     0   :  { %s295_s12 = smov 0   ;;  %s312_s0 = inlined_call_operand.vmem [shape: f32[2,16,128], index: 0, kind: input, shape index: {}]   ;;  %s313_s1 = inlined_call_operand.vmem [shape: f32[1,128], index: 1, kind: input, shape index: {}]   ;;  %s314_s2 = inlined_call_operand.vmem [shape: f32[1,128], index: 2, kind: input, shape index: {}]   ;;  %s315_s3 = inlined_call_operand.vmem [shape: f32[2,16,128], index: 3, kind: output, shape index: {}]  }
   0x1 LB: > { %s244_s13 = sadd.s32 4294967295, %s273_s12   ;;  %p248_p0 = scmp.ge.s32.totalorder %s273_s12, 1  ;;  %s273_s12 = sphi %s295_s12, %s13_s12  }
   0x2   : > { %p137_p1 = scmp.lt.s32.totalorder %s273_s12, 3 }
   0x4   : > { %p138_p2 = pnand %p248_p0, %p137_p1 }
   0x5   : > { %p161_p3 = scmp.lt.s32.totalorder (!%p138_p2), %s244_s13, 1 }
   0x6   : > { %141 = sbr.rel (%p138_p2) target bundleno = 23 (0x17), region = 32 }
   0xb   : > { %s317_s13 = smov (!%p161_p3, %s244_s13), 1  ;;  %v265_v0 = vld [vmem:[%s313_s1] ss:$0 sm:$0xff] }
   0xc   : > { %s255_s16 = sshll.u32 %s317_s13, 4  ;;  %v266_v1 = vld [vmem:[%s314_s2] ss:$0 sm:$0xff] }
   0xd   : > { %s165_s19 = scalar_lea.vmem %s312_s0, %s255_s16  ;;  %s170_s24 = scalar_lea.vmem %s315_s3, %s255_s16 }
   0xe   : > { %v171_v2 = vld [vmem:[%s165_s19] sm:$0xff]  ;;  %v172_v3 = vld [vmem:[%s165_s19 + $0x8] sm:$0xff] }
   0xf   : > { %v177_v4 = vmul.f32 %v265_v0, %v171_v2  ;;  %v178_v5 = vmul.f32 %v265_v0, %v172_v3 }
  0x11   : > { %v183_v6 = vadd.f32 %v266_v1, %v177_v4  ;;  %v184_v7 = vadd.f32 %v266_v1, %v178_v5 }
  0x13   : > { %v185_v8 = vmax.f32 %v183_v6, 0.0  ;;  %v186_v9 = vmax.f32 %v184_v7, 0.0 }
  0x15   : > { %187 = vst [vmem:[%s170_s24] sm:$0xff] %v185_v8 }
  0x16   : > { %188 = vst [vmem:[%s170_s24 + $0x8] sm:$0xff] %v186_v9 }
  0x17 PF: > { %s13_s12 = sadd.s32 1, %s273_s12  }
  0x18   : > { %p10_p4 = scmp.ge.s32.totalorder %s13_s12, 4  }
  0x1a   :  { %12 = sbr.rel (!%p10_p4) target bundleno = 1 (0x1), region = 62 }

// kernel: up_forward.4
= control target key start
LH: loop header
LB: loop body
LE: loop exit
PB: predicated region body
PF: predicated region fallthrough
CT: control target
= control target key end

     0   :  { %s5844_s18 = smov 0   ;;  %s7441_s0 = inlined_call_operand.vmem [shape: bf16[2,256,4], index: 0, kind: input, shape index: {}]   ;;  %s7442_s1 = inlined_call_operand.vmem [shape: f32[1,4], index: 1, kind: input, shape index: {}]   ;;  %s7443_s2 = inlined_call_operand.vmem [shape: f32[1,4], index: 2, kind: input, shape index: {}]   ;;  %s7444_s3 = inlined_call_operand.vmem [shape: bf16[9,4,8], index: 3, kind: input, shape index: {}]   ;;  %s7445_s4 = inlined_call_operand.vmem [shape: f32[2,256,8], index: 4, kind: output, shape index: {0}]   ;;  %s7446_s5 = inlined_call_operand.vmem [shape: f32[2,2,8], index: 5, kind: output, shape index: {1}]  }
   0x1 LB: > { %s5198_s19 = sadd.s32 4294967295, %s5811_s18   ;;  %p5202_p0 = scmp.ge.s32.totalorder %s5811_s18, 1  ;;  %s5811_s18 = sphi %s5844_s18, %s16_s18  }
   0x2   : > { %p190_p1 = scmp.lt.s32.totalorder %s5811_s18, 3 }
   0x4   : > { %p191_p2 = pnand %p5202_p0, %p190_p1 }
   0x6   : > { %194 = sbr.rel (%p191_p2) target bundleno = 870 (0x366), region = 36 }
   0xb   : > { %v5208_v0 = vld [vmem:[%s7444_s3 + $0x2] sm:$0x3]  ;;  %vm1531_vm0 = vcmask 1041408   ;;  %p222_p3 = scmp.lt.s32.totalorder %s5198_s19, 1  ;;  %vm408_vm1 = vcmask 24576   ;;  %vm405_vm5 = vcmask 27648  }
   0xc   : > { %v1533_v1 = vsel %vm1531_vm0, %v5208_v0, 0  ;;  %vm415_vm2 = vsmask.f32 256  ;;  %v429_v3 = vld [vmem:[#allocation2 + $0x30] sm:$0x1]  ;;  %v5813_v18 = vmov 0  }
   0xd   : > { %5731 = vmatpush.bf16.msra.mxu1 %v1533_v1  ;;  %5732 = vmatpush.bf16.msra.mxu2 %v1533_v1  ;;  %s7480_s19 = smov (!%p222_p3, %s5198_s19), 1  ;;  %vm5860_vm3 = vmand %vm408_vm1, %vm415_vm2  ;;  %vm471_vm4 = vsmask.f32 7938  ;;  %v485_v4 = vld [vmem:[#allocation2 + $0x38] sm:$0x1]  ;;  %vm1482_vm12 = vcmask 31744  }
   0xe   : > { %5733 = vmatpush.bf16.msra.mxu3 %v1533_v1  ;;  %1542 = vmatpush.bf16.msra.mxu0 %v1533_v1  ;;  %s5602_s22 = sshll.u32 %s7480_s19, 7  ;;  %v430_v5 = vsel %vm5860_vm3, 0, %v429_v3  ;;  %vm5869_vm6 = vmand %vm408_vm1, %vm471_vm4  ;;  %v5881_v7 = vld [vmem:[%s7442_s1] ss:$0 sm:$0xff]  ;;  %v497_v17 = vld [vmem:[#allocation2 + $0x68] sm:$0x1] }
   0xf   : > { %s5876_s25 = scalar_lea.vmem %s7441_s0, %s5602_s22  ;;  %431 = vst [vmem:[#allocation2 + $0x30] sm:$0x1] %v430_v5  ;;  %v486_v8 = vsel %vm5869_vm6, 0, %v485_v4  ;;  %v5889_v10 = vld [vmem:[%s7443_s2] ss:$0 sm:$0xff]  ;;  %v498_v20 = vsel %vm5869_vm6, 0, %v497_v17  ;;  %vm5931_vm9 = vmand %vm405_vm5, %vm471_vm4 }
  0x10   : > { %v5718_v9 = vld [vmem:[%s5876_s25 + $0x18] sm:$0xff]   ;;  %487 = vst [vmem:[#allocation2 + $0x38] sm:$0x1] %v486_v8  ;;  %v441_v16 = vld [vmem:[#allocation2 + $0x60] sm:$0x1]  ;;  %vm1892_vm14 = vcmask 1042432  }
  0x11   : > { %v5722_v11 = vld [vmem:[%s5876_s25 + $0x38] sm:$0xff]   ;;  %v5666_v12 = vunpack.c.l.bf16 %v5718_v9  ;;  %v5667_v13 = vunpack.c.h.bf16 %v5718_v9  ;;  %406 = vst.msk [vmem:[#allocation2] sm:$0xf] %vm405_vm5, %v5813_v18  ;;  %v442_v19 = vsel %vm5860_vm3, 0, %v441_v16  ;;  %v453_v22 = vld [vmem:[#allocation2 + $0x90] sm:$0x1] }
  0x12   : > { %v5682_v14 = vunpack.c.l.bf16 %v5722_v11  ;;  %v5683_v15 = vunpack.c.h.bf16 %v5722_v11  ;;  %v5726_v21 = vld [vmem:[%s5876_s25 + $0x58] sm:$0xff]   ;;  %443 = vst [vmem:[#allocation2 + $0x60] sm:$0x1] %v442_v19  ;;  %v454_v30 = vsel %vm5860_vm3, 0, %v453_v22  ;;  %v5719_v36 = vld [vmem:[%s5876_s25 + $0x20] sm:$0xff]   ;;  %vm1893_vm15 = vcmask 1046532  }
  0x13   : > { %v311_v23 = vmul.f32 %v5881_v7, %v5666_v12  ;;  %v312_v24 = vmul.f32 %v5881_v7, %v5667_v13  ;;  %v509_v27 = vld [vmem:[#allocation2 + $0x98] sm:$0x1]  ;;  %499 = vst [vmem:[#allocation2 + $0x68] sm:$0x1] %v498_v20  ;;  %v5698_v28 = vunpack.c.l.bf16 %v5726_v21  ;;  %v5699_v29 = vunpack.c.h.bf16 %v5726_v21  ;;  %s5603_s6 = sshll.u32 %s7480_s19, 8  ;;  %s5207_s10 = sshll.u32 %s7480_s19, 1 }
  0x14   : > { %v319_v25 = vmul.f32 %v5881_v7, %v5682_v14  ;;  %v320_v26 = vmul.f32 %v5881_v7, %v5683_v15  ;;  %v510_v31 = vsel %vm5869_vm6, 0, %v509_v27  ;;  %455 = vst [vmem:[#allocation2 + $0x90] sm:$0x1] %v454_v30  ;;  %vm559_vm7 = vsmask.f32 4368  ;;  %s7067_s9 = scalar_lea.vmem %s7445_s4, %s5603_s6  ;;  %s235_s13 = scalar_lea.vmem %s7446_s5, %s5207_s10 }
  0x15   : > { %v347_v32 = vadd.f32 %v5889_v10, %v311_v23  ;;  %v348_v33 = vadd.f32 %v5889_v10, %v312_v24  ;;  %v327_v37 = vmul.f32 %v5881_v7, %v5698_v28  ;;  %v328_v38 = vmul.f32 %v5881_v7, %v5699_v29  ;;  %511 = vst [vmem:[#allocation2 + $0x98] sm:$0x1] %v510_v31  ;;  %vm5924_vm8 = vmor %vm415_vm2, %vm559_vm7 }
  0x16   : > { %v355_v34 = vadd.f32 %v5889_v10, %v319_v25  ;;  %v356_v35 = vadd.f32 %v5889_v10, %v320_v26  ;;  %407 = vst.msk [vmem:[#allocation2 + $0x4] sm:$0xf] %vm405_vm5, %v5813_v18  ;;  %v5670_v46 = vunpack.c.l.bf16 %v5719_v36  ;;  %v5671_v54 = vunpack.c.h.bf16 %v5719_v36  ;;  %v905_v3 = vld [vmem:[#allocation2 + $0x30] sm:$0xf] }
  0x17   : > { %v379_v39 = vmax.f32 %v347_v32, 0.0  ;;  %v380_v40 = vmax.f32 %v348_v33, 0.0  ;;  %v363_v43 = vadd.f32 %v5889_v10, %v327_v37  ;;  %v364_v44 = vadd.f32 %v5889_v10, %v328_v38  ;;  %409 = vst.msk [vmem:[#allocation2 + $0x8] sm:$0x1] %vm408_vm1, %v5813_v18  ;;  %v909_v9 = vld [vmem:[#allocation2 + $0x38] sm:$0x1] }
  0x18   : > { %v387_v41 = vmax.f32 %v355_v34, 0.0  ;;  %v388_v42 = vmax.f32 %v356_v35, 0.0  ;;  %v417_v45 = vld [vmem:[#allocation2] sm:$0x1]  ;;  %v313_v5 = vmul.f32 %v5881_v7, %v5670_v46  ;;  %411 = vst.msk [vmem:[#allocation2 + $0xcc] sm:$0xf] %vm405_vm5, %v5813_v18  ;;  %v314_v14 = vmul.f32 %v5881_v7, %v5671_v54 }
  0x19   : > { %v533_v47 = vpack.c.bf16 %v379_v39, %v379_v39  ;;  %v534_v48 = vpack.c.bf16 %v380_v40, %v380_v40  ;;  %v395_v51 = vmax.f32 %v363_v43, 0.0  ;;  %v396_v52 = vmax.f32 %v364_v44, 0.0  ;;  %v933_v20 = vld [vmem:[#allocation2 + $0x60] sm:$0xf]  ;;  %412 = vst.msk [vmem:[#allocation2 + $0xd0] sm:$0xf] %vm405_vm5, %v5813_v18 }
  0x1a   : > { %v541_v49 = vpack.c.bf16 %v387_v41, %v387_v41  ;;  %v542_v50 = vpack.c.bf16 %v388_v42, %v388_v42  ;;  %v418_v53 = vsel %vm5860_vm3, 0, %v417_v45  ;;  %v937_v25 = vld [vmem:[#allocation2 + $0x68] sm:$0x1]  ;;  %413 = vst.msk [vmem:[#allocation2 + $0xd4] sm:$0x1] %vm408_vm1, %v5813_v18  ;;  %v349_v36 = vadd.f32 %v5889_v10, %v313_v5  ;;  %vm6315_vm1 = vmor %vm1892_vm14, %vm1893_vm15 }
  0x1b   : > { %v613_v55 = vshrl.u32 %v533_v47, 16  ;;  %v616_v56 = vshll.u32 %v533_v47, 16  ;;  %v621_v57 = vshrl.u32 %v534_v48, 16  ;;  %v624_v58 = vshll.u32 %v534_v48, 16  ;;  %419 = vst [vmem:[#allocation2] sm:$0x1] %v418_v53 }
  0x1c   : > { %v681_v59 = vshrl.u32 %v541_v49, 16  ;;  %v684_v60 = vshll.u32 %v541_v49, 16  ;;  %v689_v61 = vshrl.u32 %v542_v50, 16  ;;  %v692_v62 = vshll.u32 %v542_v50, 16  ;;  %v961_v34 = vld [vmem:[#allocation2 + $0x90] sm:$0xf] }
  0x1d   : > { %v615_v0 = vrot.slane %v613_v55, 7  ;;  %v623_v1 = vrot.slane %v621_v57, 7  ;;  %v549_v4 = vpack.c.bf16 %v395_v51, %v395_v51  ;;  %v550_v13 = vpack.c.bf16 %v396_v52, %v396_v52  ;;  %v997_v31 = vld [vmem:[#allocation2 + $0x4] sm:$0xf]  ;;  %v965_v42 = vld [vmem:[#allocation2 + $0x98] sm:$0x1] }
  0x1e   : > { %v683_v11 = vrot.slane %v681_v59, 7  ;;  %v691_v12 = vrot.slane %v689_v61, 7  ;;  %v473_v30 = vld [vmem:[#allocation2 + $0x8] sm:$0x1]  ;;  %v5321_v35 = vld [vmem:[%s7444_s3 + $0x4] sm:$0x3]  ;;  %v5961_v45 = vadd.f32 %v5889_v10, %v314_v14 }
  0x1f   : > { %v618_v15 = vor.u32 %v616_v56, %v615_v0  ;;  %v619_v16 = vrot.slane %v615_v0, 4  ;;  %v626_v17 = vor.u32 %v624_v58, %v623_v1  ;;  %v628_v19 = vrot.slane %v623_v1, 4  ;;  %v5964_v50 = vld [vmem:[%s5876_s25 + $0x40] sm:$0xff]  }
  0x20   : > { %v686_v21 = vor.u32 %v684_v60, %v683_v11  ;;  %v687_v22 = vrot.slane %v683_v11, 4  ;;  %v694_v23 = vor.u32 %v692_v62, %v691_v12  ;;  %v696_v24 = vrot.slane %v691_v12, 4  ;;  %v5970_v55 = vld [vmem:[%s5876_s25 + $0x60] sm:$0xff]  }
  0x21   : > { %v627_v26 = vsel %vm5924_vm8, %v619_v16, %v626_v17  ;;  %v906_v27 = vsel %vm5931_vm9, %v618_v15, %v905_v3  ;;  %v910_v28 = vsel %vm5860_vm3, %v628_v19, %v909_v9  ;;  %v749_v29 = vshrl.u32 %v549_v4, 16  ;;  %v5338_v60 = vld [vmem:[%s7444_s3 + $0x6] sm:$0x3] }
  0x22   : > { %907 = vst [vmem:[#allocation2 + $0x30] sm:$0xf] %v906_v27  ;;  %v695_v32 = vsel %vm5924_vm8, %v687_v22, %v694_v23  ;;  %v934_v33 = vsel %vm5931_vm9, %v686_v21, %v933_v20  ;;  %v752_v18 = vshll.u32 %v549_v4, 16  ;;  %v757_v38 = vshrl.u32 %v550_v13, 16  ;;  %v996_v43 = vld [vmem:[#allocation2] sm:$0xf] }
  0x23   : > { %908 = vst.msk [vmem:[#allocation2 + $0x34] sm:$0xf] %vm405_vm5, %v627_v26  ;;  %v751_v37 = vrot.slane %v749_v29, 7  ;;  %v760_v39 = vshll.u32 %v550_v13, 16  ;;  %v2106_v40 = vsel %vm1531_vm0, %v5321_v35, 0  ;;  %v938_v41 = vsel %vm5860_vm3, %v696_v24, %v937_v25 }
  0x24   : > { %911 = vst [vmem:[#allocation2 + $0x38] sm:$0x1] %v910_v28  ;;  %vm1045_vm10 = vsmask.f32 3328  ;;  %vm1046_vm11 = vsmask.f32 7440  ;;  %2115 = vmatpush.bf16.msrb.mxu2 %v2106_v40  ;;  %v5686_v11 = vunpack.c.l.bf16 %v5964_v50  ;;  %v5687_v16 = vunpack.c.h.bf16 %v5964_v50 }
  0x25   : > { %v1058_v44 = vshll.u32 %v997_v31, 16  ;;  %935 = vst [vmem:[#allocation2 + $0x60] sm:$0xf] %v934_v33  ;;  %v754_v46 = vor.u32 %v752_v18, %v751_v37  ;;  %v755_v47 = vrot.slane %v751_v37, 4  ;;  %v759_v48 = vrot.slane %v757_v38, 7  ;;  %vm5997_vm13 = vmor %vm1045_vm10, %vm1046_vm11 }
  0x26   : > { %v1049_v49 = vshrl.u32 %v996_v43, 16  ;;  %936 = vst.msk [vmem:[#allocation2 + $0x64] sm:$0xf] %vm405_vm5, %v695_v32  ;;  %v474_v51 = vsel %vm5869_vm6, 0, %v473_v30  ;;  %v1052_v52 = vshll.u32 %v996_v43, 16  ;;  %v1062_v53 = vshrl.u32 %v997_v31, 16 }
  0x27   : > { %v381_v54 = vmax.f32 %v349_v36, 0.0  ;;  %939 = vst [vmem:[#allocation2 + $0x68] sm:$0x1] %v938_v41  ;;  %v762_v56 = vor.u32 %v760_v39, %v759_v48  ;;  %v764_v57 = vrot.slane %v759_v48, 4  ;;  %v962_v58 = vsel %vm5931_vm9, %v754_v46, %v961_v34 }
  0x28   : > { %v1051_v59 = vrot.slane %v1049_v49, 4  ;;  %963 = vst [vmem:[#allocation2 + $0x90] sm:$0xf] %v962_v58  ;;  %v1054_v61 = vrot.slane %v1052_v52, 5  ;;  %v5977_v62 = vrot.slane %v1058_v44, 5  ;;  %v5979_v0 = vrot.slane %v1062_v53, 4 }
  0x29   : > { %v2392_v1 = vsel %vm1531_vm0, %v5338_v60, 0  ;;  %v1004_v3 = vld [vmem:[#allocation2 + $0x30] sm:$0xf]  ;;  %v763_v4 = vsel %vm5924_vm8, %v755_v47, %v762_v56  ;;  %v966_v5 = vsel %vm5860_vm3, %v764_v57, %v965_v42  ;;  %475 = vst [vmem:[#allocation2 + $0x8] sm:$0x1] %v474_v51  ;;  %v382_v9 = vmax.f32 %v5961_v45, 0.0 }
  0x2a   : > { %2401 = vmatpush.bf16.msrb.mxu3 %v2392_v1  ;;  %v1005_v12 = vld [vmem:[#allocation2 + $0x34] sm:$0xf]  ;;  %v1145_v13 = vshrl.u32 %v1004_v3, 16  ;;  %v1148_v14 = vshll.u32 %v1004_v3, 16  ;;  %964 = vst.msk [vmem:[#allocation2 + $0x94] sm:$0xf] %vm405_vm5, %v763_v4  ;;  %v5989_v15 = vpack.c.bf16 %v381_v54, %v381_v54  ;;  %v1055_v21 = vor.u32 %v1054_v61, %v1051_v59 }
  0x2b   : > { %v1033_v17 = vld [vmem:[#allocation2 + $0x38] sm:$0x1]  ;;  %v1154_v19 = vshll.u32 %v1005_v12, 16  ;;  %v1158_v20 = vshrl.u32 %v1005_v12, 16  ;;  %967 = vst [vmem:[#allocation2 + $0x98] sm:$0x1] %v966_v5  ;;  %v5702_v22 = vunpack.c.l.bf16 %v5970_v55  ;;  %v1065_v27 = vor.u32 %v5979_v0, %v5977_v62 }
  0x2c   : > { %v1147_v23 = vrot.slane %v1145_v13, 4  ;;  %v1150_v24 = vrot.slane %v1148_v14, 5  ;;  %v1164_v25 = vshll.u32 %v1033_v17, 16  ;;  %v1012_v26 = vld [vmem:[#allocation2 + $0x60] sm:$0xf]  ;;  %v1056_v46 = vrot.slane %v1055_v21, 4 }
  0x2d   : > { %v1156_v28 = vrot.slane %v1154_v19, 5  ;;  %v1160_v29 = vrot.slane %v1158_v20, 4  ;;  %v1013_v30 = vld [vmem:[#allocation2 + $0x64] sm:$0xf]  ;;  %v1241_v31 = vshrl.u32 %v1012_v26, 16  ;;  %v1244_v32 = vshll.u32 %v1012_v26, 16 }
  0x2e   : > { %v1151_v33 = vor.u32 %v1150_v24, %v1147_v23  ;;  %v1166_v18 = vrot.slane %v1164_v25, 5  ;;  %v1037_v34 = vld [vmem:[#allocation2 + $0x68] sm:$0x1]  ;;  %v1250_v35 = vshll.u32 %v1013_v30, 16  ;;  %v1254_v36 = vshrl.u32 %v1013_v30, 16 }
  0x2f   : > { %v1161_v38 = vor.u32 %v1160_v29, %v1156_v28  ;;  %v1243_v39 = vrot.slane %v1241_v31, 4  ;;  %v1246_v40 = vrot.slane %v1244_v32, 5  ;;  %v1260_v41 = vshll.u32 %v1037_v34, 16  ;;  %v1020_v42 = vld [vmem:[#allocation2 + $0x90] sm:$0xf] }
  0x30   : > { %v1152_v43 = vrot.slane %v1151_v33, 4  ;;  %v1252_v44 = vrot.slane %v1250_v35, 5  ;;  %v1256_v45 = vrot.slane %v1254_v36, 4  ;;  %v1337_v52 = vshrl.u32 %v1020_v42, 16  ;;  %v1029_v19 = vld [vmem:[#allocation2 + $0x8] sm:$0x1] }
  0x31   : > { %v1162_v47 = vrot.slane %v1161_v38, 4  ;;  %v1247_v48 = vor.u32 %v1246_v40, %v1243_v39  ;;  %v1262_v49 = vrot.slane %v1260_v41, 5  ;;  %v1021_v51 = vld [vmem:[#allocation2 + $0x94] sm:$0xf]  ;;  %v1340_v57 = vshll.u32 %v1020_v42, 16 }
  0x32   : > { %v1157_v53 = vsel %vm5997_vm13, %v1152_v43, %v1156_v28  ;;  %v1257_v54 = vor.u32 %v1256_v45, %v1252_v44  ;;  %v1041_v56 = vld [vmem:[#allocation2 + $0x98] sm:$0x1]  ;;  %v1346_v58 = vshll.u32 %v1021_v51, 16  ;;  %v1339_v0 = vrot.slane %v1337_v52, 4  ;;  %v1028_v25 = vld [vmem:[%s7444_s3] sm:$0x3] }
  0x33   : > { %v1167_v59 = vsel %vm5997_vm13, %v1162_v47, %v1166_v18  ;;  %v1442_v60 = vunpack.c.l.b16 %v1157_v53  ;;  %v1248_v61 = vrot.slane %v1247_v48, 4  ;;  %v1342_v4 = vrot.slane %v1340_v57, 5  ;;  %v5419_v29 = vld [vmem:[%s7444_s3 + $0x8] sm:$0x3]  ;;  %v432_v30 = vld [vmem:[#allocation2 + $0x3c] sm:$0x1] }
  0x34   : > { %v1443_v1 = vunpack.c.l.b16 %v1167_v59  ;;  %v1258_v3 = vrot.slane %v1257_v54, 4  ;;  %v6005_v5 = vpack.c.bf16 %v382_v9, %v382_v9  ;;  %v1348_v13 = vrot.slane %v1346_v58, 5  ;;  %v488_v35 = vld [vmem:[#allocation2 + $0x44] sm:$0x1]  ;;  %v444_v43 = vld [vmem:[#allocation2 + $0x6c] sm:$0x1] }
  0x35   : > { %v1253_v12 = vsel %vm5997_vm13, %v1248_v61, %v1252_v44  ;;  %v1350_v14 = vshrl.u32 %v1021_v51, 16  ;;  %v1356_v17 = vshll.u32 %v1041_v56, 16  ;;  %v1343_v24 = vor.u32 %v1342_v4, %v1339_v0  ;;  %v456_v61 = vld [vmem:[#allocation2 + $0x9c] sm:$0x1] }
  0x36   : > { %v1470_v20 = vpack.c.b16 %v1443_v1, %v1442_v60  ;;  %v1263_v21 = vsel %vm5997_vm13, %v1258_v3, %v1262_v49  ;;  %v1450_v23 = vunpack.c.l.b16 %v1253_v12  ;;  %v1061_v28 = vsel %vm5997_vm13, %v1056_v46, %v5977_v62  ;;  %v500_v60 = vld [vmem:[#allocation2 + $0x74] sm:$0x1] }
  0x37   : > { %v1451_v26 = vunpack.c.l.b16 %v1263_v21  ;;  %v1352_v9 = vrot.slane %v1350_v14, 4  ;;  %v321_v31 = vmul.f32 %v5881_v7, %v5686_v11  ;;  %v1344_v32 = vrot.slane %v1343_v24, 4  ;;  %v5653_v21 = vld [vmem:[%s5876_s25] sm:$0xff]  }
  0x38   : > { %5213 = vmatmul.msk.bf16.vlgmr.msra.gmra.mxu1 %vm1482_vm12, %v1470_v20  ;;  %v1358_v33 = vrot.slane %v1356_v17, 5  ;;  %v1066_v18 = vrot.slane %v1065_v27, 4  ;;  %v1068_v34 = vshll.u32 %v1029_v19, 16  ;;  %v1434_v39 = vunpack.c.l.b16 %v1061_v28 }
  0x39   : > { %v1474_v36 = vpack.c.b16 %v1451_v26, %v1450_v23  ;;  %v1353_v38 = vor.u32 %v1352_v9, %v1348_v13  ;;  %v1753_v62 = vsel %vm1531_vm0, %v1028_v25, 0  ;;  %v1349_v40 = vsel %vm5997_vm13, %v1344_v32, %v1348_v13 }
  0x3a   : > { %v1070_v41 = vrot.slane %v1068_v34, 5  ;;  %1762 = vmatpush.bf16.msrb.mxu1 %v1753_v62  ;;  %v3046_v42 = vsel %vm1531_vm0, %v5419_v29, 0  ;;  %v433_v11 = vsel %vm5860_vm3, 0, %v432_v30  ;;  %v1458_v44 = vunpack.c.l.b16 %v1349_v40 }
  0x3b   : > { %5217 = vmatmul.msk.bf16.vlgmr.msra.gmra.mxu2 %vm1482_vm12, %v1474_v36  ;;  %v1354_v27 = vrot.slane %v1353_v38, 4  ;;  %3055 = vmatpush.bf16.msrb.mxu0 %v3046_v42  ;;  %434 = vst [vmem:[#allocation2 + $0x3c] sm:$0x1] %v433_v11  ;;  %v489_v45 = vsel %vm5869_vm6, 0, %v488_v35  ;;  %v630_v46 = vshrl.u32 %v5989_v15, 16  ;;  %v633_v48 = vshll.u32 %v5989_v15, 16 }
  0x3c   : > { %v1071_v47 = vsel %vm5997_vm13, %v1066_v18, %v1070_v41  ;;  %490 = vst [vmem:[#allocation2 + $0x44] sm:$0x1] %v489_v45  ;;  %v638_v49 = vshrl.u32 %v6005_v5, 16  ;;  %v641_v51 = vshll.u32 %v6005_v5, 16  ;;  %v322_v56 = vmul.f32 %v5881_v7, %v5687_v16  ;;  %v512_v5 = vld [vmem:[#allocation2 + $0xa4] sm:$0x1] }
  0x3d   : > { %v1359_v52 = vsel %vm5997_vm13, %v1354_v27, %v1358_v33  ;;  %v1435_v53 = vunpack.c.l.b16 %v1071_v47  ;;  %v632_v54 = vrot.slane %v630_v46, 7  ;;  %v357_v59 = vadd.f32 %v5889_v10, %v321_v31  ;;  %v420_v31 = vld [vmem:[#allocation2 + $0xc] sm:$0x1]  ;;  %v476_v35 = vld [vmem:[#allocation2 + $0x14] sm:$0x1] }
  0x3e   : > { %v1459_v57 = vunpack.c.l.b16 %v1359_v52  ;;  %v640_v58 = vrot.slane %v638_v49, 7  ;;  %v445_v15 = vsel %vm5860_vm3, 0, %v444_v43  ;;  %v358_v4 = vadd.f32 %v5889_v10, %v322_v56  ;;  %v6079_v52 = vld [vmem:[%s5876_s25 + $0x28] sm:$0xff]  }
  0x3f   : > { %v1466_v0 = vpack.c.b16 %v1435_v53, %v1434_v39  ;;  %v635_v1 = vor.u32 %v633_v48, %v632_v54  ;;  %v636_v3 = vrot.slane %v632_v54, 4  ;;  %446 = vst [vmem:[#allocation2 + $0x6c] sm:$0x1] %v445_v15  ;;  %v389_v13 = vmax.f32 %v357_v59, 0.0 }
  0x40   : > { %v1478_v50 = vpack.c.b16 %v1459_v57, %v1458_v44  ;;  %v643_v12 = vor.u32 %v641_v51, %v640_v58  ;;  %v645_v16 = vrot.slane %v640_v58, 4  ;;  %v390_v14 = vmax.f32 %v358_v4, 0.0 }
  0x41   : > { %5209 = vmatmul.msk.bf16.vlgmr.msra.gmra.mxu0 %vm1482_vm12, %v1466_v0  ;;  %v501_v17 = vsel %vm5869_vm6, 0, %v500_v60  ;;  %v5703_v19 = vunpack.c.h.bf16 %v5970_v55  ;;  %v329_v20 = vmul.f32 %v5881_v7, %v5702_v22  ;;  %v543_v25 = vpack.c.bf16 %v389_v13, %v389_v13 }
  0x42   : > { %5221 = vmatmul.msk.bf16.vlgmr.msra.gmra.mxu3 %vm1482_vm12, %v1478_v50  ;;  %v644_v23 = vsel %vm5924_vm8, %v636_v3, %v643_v12  ;;  %v912_v24 = vld [vmem:[#allocation2 + $0x3c] sm:$0xf]  ;;  %502 = vst [vmem:[#allocation2 + $0x74] sm:$0x1] %v501_v17  ;;  %v457_v26 = vsel %vm5860_vm3, 0, %v456_v61  ;;  %v513_v9 = vsel %vm5869_vm6, 0, %v512_v5  ;;  %v544_v28 = vpack.c.bf16 %v390_v14, %v390_v14 }
  0x43   : > { %v913_v55 = vsel %vm5931_vm9, %v635_v1, %v912_v24  ;;  %915 = vst.msk [vmem:[#allocation2 + $0x40] sm:$0xf] %vm405_vm5, %v644_v23  ;;  %v916_v22 = vld [vmem:[#allocation2 + $0x44] sm:$0x1]  ;;  %v330_v29 = vmul.f32 %v5881_v7, %v5703_v19  ;;  %v365_v30 = vadd.f32 %v5889_v10, %v329_v20  ;;  %v698_v33 = vshrl.u32 %v543_v25, 16 }
  0x44   : > { %914 = vst [vmem:[#allocation2 + $0x3c] sm:$0xf] %v913_v55  ;;  %v917_v32 = vsel %vm5860_vm3, %v645_v16, %v916_v22  ;;  %v701_v18 = vshll.u32 %v543_v25, 16  ;;  %v5654_v34 = vunpack.c.l.bf16 %v5653_v21  ;;  %v706_v36 = vshrl.u32 %v544_v28, 16 }
  0x45   : > { %918 = vst [vmem:[#allocation2 + $0x44] sm:$0x1] %v917_v32  ;;  %v709_v38 = vshll.u32 %v544_v28, 16  ;;  %v366_v39 = vadd.f32 %v5889_v10, %v330_v29  ;;  %v397_v62 = vmax.f32 %v365_v30, 0.0  ;;  %v700_v40 = vrot.slane %v698_v33, 7 }
  0x46   : > { %v940_v41 = vld [vmem:[#allocation2 + $0x6c] sm:$0xf]  ;;  %458 = vst [vmem:[#allocation2 + $0x9c] sm:$0x1] %v457_v26  ;;  %v5655_v42 = vunpack.c.h.bf16 %v5653_v21  ;;  %v305_v11 = vmul.f32 %v5881_v7, %v5654_v34  ;;  %v421_v43 = vsel %vm5860_vm3, 0, %v420_v31  ;;  %v708_v27 = vrot.slane %v706_v36, 7 }
  0x47   : > { %v398_v44 = vmax.f32 %v366_v39, 0.0  ;;  %514 = vst [vmem:[#allocation2 + $0xa4] sm:$0x1] %v513_v9  ;;  %v551_v45 = vpack.c.bf16 %v397_v62, %v397_v62  ;;  %v477_v46 = vsel %vm5869_vm6, 0, %v476_v35  ;;  %v703_v47 = vor.u32 %v701_v18, %v700_v40 }
  0x48   : > { %v704_v48 = vrot.slane %v700_v40, 4  ;;  %v306_v49 = vmul.f32 %v5881_v7, %v5655_v42  ;;  %v341_v51 = vadd.f32 %v5889_v10, %v305_v11  ;;  %422 = vst [vmem:[#allocation2 + $0xc] sm:$0x1] %v421_v43  ;;  %v711_v53 = vor.u32 %v709_v38, %v708_v27 }
  0x49   : > { %v713_v54 = vrot.slane %v708_v27, 4  ;;  %v944_v56 = vld [vmem:[#allocation2 + $0x74] sm:$0x1]  ;;  %v552_v57 = vpack.c.bf16 %v398_v44, %v398_v44  ;;  %v766_v58 = vshrl.u32 %v551_v45, 16  ;;  %478 = vst [vmem:[#allocation2 + $0x14] sm:$0x1] %v477_v46  ;;  %v941_v15 = vsel %vm5931_vm9, %v703_v47, %v940_v41 }
  0x4a   : > { %v1007_v59 = vld [vmem:[#allocation2 + $0x40] sm:$0xf]  ;;  %v769_v60 = vshll.u32 %v551_v45, 16  ;;  %v342_v61 = vadd.f32 %v5889_v10, %v306_v49  ;;  %v373_v0 = vmax.f32 %v341_v51, 0.0  ;;  %v712_v5 = vsel %vm5924_vm8, %v704_v48, %v711_v53  ;;  %942 = vst [vmem:[#allocation2 + $0x6c] sm:$0xf] %v941_v15 }
  0x4b   : > { %v1006_v1 = vld [vmem:[#allocation2 + $0x3c] sm:$0xf]  ;;  %v1178_v3 = vshll.u32 %v1007_v59, 16  ;;  %v1182_v4 = vshrl.u32 %v1007_v59, 16  ;;  %v945_v50 = vsel %vm5860_vm3, %v713_v54, %v944_v56  ;;  %943 = vst.msk [vmem:[#allocation2 + $0x70] sm:$0xf] %vm405_vm5, %v712_v5  ;;  %v5674_v17 = vunpack.c.l.bf16 %v6079_v52 }
  0x4c   : > { %v1034_v12 = vld [vmem:[#allocation2 + $0x44] sm:$0x1]  ;;  %v1169_v16 = vshrl.u32 %v1006_v1, 16  ;;  %v1172_v13 = vshll.u32 %v1006_v1, 16  ;;  %v527_v14 = vpack.c.bf16 %v373_v0, %v373_v0  ;;  %946 = vst [vmem:[#allocation2 + $0x74] sm:$0x1] %v945_v50  ;;  %v5675_v38 = vunpack.c.h.bf16 %v6079_v52 }
  0x4d   : > { %v1180_v19 = vrot.slane %v1178_v3, 5  ;;  %v1184_v20 = vrot.slane %v1182_v4, 4  ;;  %v1188_v21 = vshll.u32 %v1034_v12, 16  ;;  %v768_v23 = vrot.slane %v766_v58, 7  ;;  %v968_v55 = vld [vmem:[#allocation2 + $0x9c] sm:$0xf] }
  0x4e   : > { %v1171_v24 = vrot.slane %v1169_v16, 4  ;;  %v1174_v25 = vrot.slane %v1172_v13, 5  ;;  %v774_v26 = vshrl.u32 %v552_v57, 16  ;;  %v777_v9 = vshll.u32 %v552_v57, 16  ;;  %v972_v52 = vld [vmem:[#allocation2 + $0xa4] sm:$0x1] }
  0x4f   : > { %v1185_v22 = vor.u32 %v1184_v20, %v1180_v19  ;;  %v1190_v28 = vrot.slane %v1188_v21, 5  ;;  %v771_v29 = vor.u32 %v769_v60, %v768_v23  ;;  %v772_v30 = vrot.slane %v768_v23, 4  ;;  %v884_v12 = vld [vmem:[#allocation2 + $0xc] sm:$0xf] }
  0x50   : > { %v1175_v31 = vor.u32 %v1174_v25, %v1171_v24  ;;  %v776_v32 = vrot.slane %v774_v26, 7  ;;  %v374_v33 = vmax.f32 %v342_v61, 0.0  ;;  %v562_v18 = vshrl.u32 %v527_v14, 16 }
  0x51   : > { %v1186_v34 = vrot.slane %v1185_v22, 4  ;;  %v969_v35 = vsel %vm5931_vm9, %v771_v29, %v968_v55  ;;  %v565_v36 = vshll.u32 %v527_v14, 16  ;;  %v1014_v62 = vld [vmem:[#allocation2 + $0x6c] sm:$0xf]  ;;  %v316_v20 = vmul.f32 %v5881_v7, %v5675_v38  ;;  %v491_v29 = vld [vmem:[#allocation2 + $0x50] sm:$0x1] }
  0x52   : > { %v1176_v39 = vrot.slane %v1175_v31, 4  ;;  %v779_v40 = vor.u32 %v777_v9, %v776_v32  ;;  %v781_v41 = vrot.slane %v776_v32, 4  ;;  %970 = vst [vmem:[#allocation2 + $0x9c] sm:$0xf] %v969_v35  ;;  %v528_v42 = vpack.c.bf16 %v374_v33, %v374_v33  ;;  %v1015_v43 = vld [vmem:[#allocation2 + $0x70] sm:$0xf] }
  0x53   : > { %v1191_v11 = vsel %vm5997_vm13, %v1186_v34, %v1190_v28  ;;  %v1265_v27 = vshrl.u32 %v1014_v62, 16  ;;  %v1268_v44 = vshll.u32 %v1014_v62, 16  ;;  %v6095_v45 = vrot.slane %v562_v18, 7  ;;  %v1038_v48 = vld [vmem:[#allocation2 + $0x74] sm:$0x1] }
  0x54   : > { %v1181_v46 = vsel %vm5997_vm13, %v1176_v39, %v1180_v19  ;;  %v1445_v47 = vunpack.c.l.b16 %v1191_v11  ;;  %v1274_v49 = vshll.u32 %v1015_v43, 16  ;;  %v1278_v51 = vshrl.u32 %v1015_v43, 16  ;;  %v435_v28 = vld [vmem:[#allocation2 + $0x48] sm:$0x1]  ;;  %v888_v35 = vld [vmem:[#allocation2 + $0x14] sm:$0x1] }
  0x55   : > { %v1444_v53 = vunpack.c.l.b16 %v1181_v46  ;;  %v1267_v54 = vrot.slane %v1265_v27, 4  ;;  %v1270_v56 = vrot.slane %v1268_v44, 5  ;;  %v1284_v57 = vshll.u32 %v1038_v48, 16  ;;  %v447_v38 = vld [vmem:[#allocation2 + $0x78] sm:$0x1]  ;;  %v5724_v11 = vld [vmem:[%s5876_s25 + $0x48] sm:$0xff]  }
  0x56   : > { %v1276_v58 = vrot.slane %v1274_v49, 5  ;;  %v1280_v59 = vrot.slane %v1278_v51, 4  ;;  %v780_v15 = vsel %vm5924_vm8, %v772_v30, %v779_v40  ;;  %v973_v1 = vsel %vm5860_vm3, %v781_v41, %v972_v52 }
  0x57   : > { %v1471_v60 = vpack.c.b16 %v1445_v47, %v1444_v53  ;;  %v1271_v61 = vor.u32 %v1270_v56, %v1267_v54  ;;  %v1286_v0 = vrot.slane %v1284_v57, 5  ;;  %971 = vst.msk [vmem:[#allocation2 + $0xa0] sm:$0xf] %vm405_vm5, %v780_v15  ;;  %v567_v4 = vor.u32 %v565_v36, %v6095_v45 }
  0x58   : > { %v1281_v3 = vor.u32 %v1280_v59, %v1276_v58  ;;  %974 = vst [vmem:[#allocation2 + $0xa4] sm:$0x1] %v973_v1  ;;  %v568_v5 = vrot.slane %v6095_v45, 4  ;;  %v570_v50 = vshrl.u32 %v528_v42, 16  ;;  %v573_v14 = vshll.u32 %v528_v42, 16 }
  0x59   : > { %5214 = vmatmul.msk.bf16.gmra.mxu1 %vm1482_vm12, %v1471_v60  ;;  %v1272_v16 = vrot.slane %v1271_v61, 4  ;;  %v1022_v13 = vld [vmem:[#allocation2 + $0x9c] sm:$0xf]  ;;  %v315_v19 = vmul.f32 %v5881_v7, %v5674_v17  ;;  %v885_v9 = vsel %vm5931_vm9, %v567_v4, %v884_v12  ;;  %v352_v22 = vadd.f32 %v5889_v10, %v316_v20 }
  0x5a   : > { %v1282_v21 = vrot.slane %v1281_v3, 4  ;;  %v1361_v23 = vshrl.u32 %v1022_v13, 16  ;;  %v1364_v24 = vshll.u32 %v1022_v13, 16  ;;  %v572_v25 = vrot.slane %v570_v50, 7  ;;  %886 = vst [vmem:[#allocation2 + $0xc] sm:$0xf] %v885_v9 }
  0x5b   : > { %v1277_v26 = vsel %vm5997_vm13, %v1272_v16, %v1276_v58  ;;  %v351_v55 = vadd.f32 %v5889_v10, %v315_v19  ;;  %v384_v40 = vmax.f32 %v352_v22, 0.0  ;;  %v436_v41 = vsel %vm5860_vm3, 0, %v435_v28 }
  0x5c   : > { %v1287_v17 = vsel %vm5997_vm13, %v1282_v21, %v1286_v0  ;;  %v1452_v30 = vunpack.c.l.b16 %v1277_v26  ;;  %v1363_v31 = vrot.slane %v1361_v23, 4  ;;  %v1366_v32 = vrot.slane %v1364_v24, 5  ;;  %437 = vst [vmem:[#allocation2 + $0x48] sm:$0x1] %v436_v41 }
  0x5d   : > { %v1453_v33 = vunpack.c.l.b16 %v1287_v17  ;;  %v575_v18 = vor.u32 %v573_v14, %v572_v25  ;;  %v577_v34 = vrot.slane %v572_v25, 4  ;;  %v383_v36 = vmax.f32 %v351_v55, 0.0 }
  0x5e   : > { %v1023_v39 = vld [vmem:[#allocation2 + $0xa0] sm:$0xf]  ;;  %v1367_v62 = vor.u32 %v1366_v32, %v1363_v31  ;;  %v492_v42 = vsel %vm5869_vm6, 0, %v491_v29  ;;  %v538_v54 = vpack.c.bf16 %v384_v40, %v384_v40  ;;  %v5690_v57 = vunpack.c.l.bf16 %v5724_v11  ;;  %v5728_v40 = vld [vmem:[%s5876_s25 + $0x68] sm:$0xff]  }
  0x5f   : > { %v1475_v43 = vpack.c.b16 %v1453_v33, %v1452_v30  ;;  %v1042_v27 = vld [vmem:[#allocation2 + $0xa4] sm:$0x1]  ;;  %v1370_v44 = vshll.u32 %v1023_v39, 16  ;;  %v1374_v45 = vshrl.u32 %v1023_v39, 16  ;;  %v576_v46 = vsel %vm5924_vm8, %v568_v5, %v575_v18  ;;  %493 = vst [vmem:[#allocation2 + $0x50] sm:$0x1] %v492_v42 }
  0x60   : > { %v1368_v47 = vrot.slane %v1367_v62, 4  ;;  %v1380_v48 = vshll.u32 %v1042_v27, 16  ;;  %887 = vst.msk [vmem:[#allocation2 + $0x10] sm:$0xf] %vm405_vm5, %v576_v46  ;;  %v889_v49 = vsel %vm5860_vm3, %v577_v34, %v888_v35  ;;  %v537_v53 = vpack.c.bf16 %v383_v36, %v383_v36  ;;  %v503_v35 = vld [vmem:[#allocation2 + $0x80] sm:$0x1] }
  0x61   : > { %5218 = vmatmul.msk.bf16.gmra.mxu2 %vm1482_vm12, %v1475_v43  ;;  %v1372_v51 = vrot.slane %v1370_v44, 5  ;;  %v1376_v52 = vrot.slane %v1374_v45, 4  ;;  %890 = vst [vmem:[#allocation2 + $0x14] sm:$0x1] %v889_v49  ;;  %v5691_v58 = vunpack.c.h.bf16 %v5724_v11  ;;  %v448_v59 = vsel %vm5860_vm3, 0, %v447_v38  ;;  %v6159_v49 = vld [vmem:[%s5876_s25 + $0x8] sm:$0xff]  }
  0x62   : > { %v1382_v56 = vrot.slane %v1380_v48, 5  ;;  %v998_v61 = vld [vmem:[#allocation2 + $0xc] sm:$0xf]  ;;  %v647_v0 = vshrl.u32 %v537_v53, 16  ;;  %v650_v1 = vshll.u32 %v537_v53, 16  ;;  %v655_v50 = vshrl.u32 %v538_v54, 16 }
  0x63   : > { %v1373_v15 = vsel %vm5997_vm13, %v1368_v47, %v1372_v51  ;;  %v1377_v60 = vor.u32 %v1376_v52, %v1372_v51  ;;  %449 = vst [vmem:[#allocation2 + $0x78] sm:$0x1] %v448_v59  ;;  %v1073_v4 = vshrl.u32 %v998_v61, 16  ;;  %v1076_v5 = vshll.u32 %v998_v61, 16  ;;  %v919_v23 = vld [vmem:[#allocation2 + $0x48] sm:$0xf] }
  0x64   : > { %v1460_v3 = vunpack.c.l.b16 %v1373_v15  ;;  %v649_v16 = vrot.slane %v647_v0, 7  ;;  %v658_v13 = vshll.u32 %v538_v54, 16  ;;  %v323_v14 = vmul.f32 %v5881_v7, %v5690_v57  ;;  %v459_v27 = vld [vmem:[#allocation2 + $0xa8] sm:$0x1]  ;;  %v515_v44 = vld [vmem:[#allocation2 + $0xb0] sm:$0x1] }
  0x65   : > { %v1378_v12 = vrot.slane %v1377_v60, 4  ;;  %v1075_v19 = vrot.slane %v1073_v4, 4  ;;  %v1078_v20 = vrot.slane %v1076_v5, 5  ;;  %v657_v21 = vrot.slane %v655_v50, 7  ;;  %v6168_v15 = vld [vmem:[%s7442_s1] ss:$0 sm:$0xff] }
  0x66   : > { %v324_v24 = vmul.f32 %v5881_v7, %v5691_v58  ;;  %v652_v9 = vor.u32 %v650_v1, %v649_v16  ;;  %v653_v55 = vrot.slane %v649_v16, 4  ;;  %v359_v22 = vadd.f32 %v5889_v10, %v323_v14  ;;  %v923_v34 = vld [vmem:[#allocation2 + $0x50] sm:$0x1]  ;;  %v6179_v14 = vld [vmem:[%s7443_s2] ss:$0 sm:$0xff] }
  0x67   : > { %v1383_v25 = vsel %vm5997_vm13, %v1378_v12, %v1382_v56  ;;  %v6136_v26 = vld [vmem:[#allocation2 + $0x10] sm:$0xf]  ;;  %v1079_v17 = vor.u32 %v1078_v20, %v1075_v19  ;;  %v660_v32 = vor.u32 %v658_v13, %v657_v21  ;;  %v662_v33 = vrot.slane %v657_v21, 4 }
  0x68   : > { %v1461_v28 = vunpack.c.l.b16 %v1383_v25  ;;  %v6139_v29 = vld [vmem:[#allocation2 + $0x14] sm:$0x1]  ;;  %v1082_v30 = vshll.u32 %v6136_v26, 16  ;;  %v1086_v31 = vshrl.u32 %v6136_v26, 16  ;;  %v920_v18 = vsel %vm5931_vm9, %v652_v9, %v919_v23 }
  0x69   : > { %v1092_v7 = vshll.u32 %v6139_v29, 16  ;;  %v1080_v38 = vrot.slane %v1079_v17, 4  ;;  %921 = vst [vmem:[#allocation2 + $0x48] sm:$0xf] %v920_v18  ;;  %v661_v42 = vsel %vm5924_vm8, %v653_v55, %v660_v32  ;;  %v924_v11 = vsel %vm5860_vm3, %v662_v33, %v923_v34 }
  0x6a   : > { %v1479_v36 = vpack.c.b16 %v1461_v28, %v1460_v3  ;;  %v1084_v39 = vrot.slane %v1082_v30, 5  ;;  %v1088_v62 = vrot.slane %v1086_v31, 4  ;;  %v360_v43 = vadd.f32 %v5889_v10, %v324_v24  ;;  %922 = vst.msk [vmem:[#allocation2 + $0x4c] sm:$0xf] %vm405_vm5, %v661_v42  ;;  %v423_v42 = vld [vmem:[#allocation2 + $0x18] sm:$0x1] }
  0x6b   : > { %v1094_v41 = vrot.slane %v1092_v7, 5  ;;  %v391_v47 = vmax.f32 %v359_v22, 0.0  ;;  %v504_v48 = vsel %vm5869_vm6, 0, %v503_v35  ;;  %925 = vst [vmem:[#allocation2 + $0x50] sm:$0x1] %v924_v11  ;;  %v5706_v10 = vunpack.c.l.bf16 %v5728_v40 }
  0x6c   : > { %5222 = vmatmul.msk.bf16.gmra.mxu3 %vm1482_vm12, %v1479_v36  ;;  %v1085_v45 = vsel %vm5997_vm13, %v1080_v38, %v1084_v39  ;;  %v1089_v46 = vor.u32 %v1088_v62, %v1084_v39  ;;  %v392_v52 = vmax.f32 %v360_v43, 0.0  ;;  %v5707_v53 = vunpack.c.h.bf16 %v5728_v40  ;;  %505 = vst [vmem:[#allocation2 + $0x80] sm:$0x1] %v504_v48  ;;  %v947_v22 = vld [vmem:[#allocation2 + $0x78] sm:$0xf] }
  0x6d   : > { %v1436_v51 = vunpack.c.l.b16 %v1085_v45  ;;  %v545_v56 = vpack.c.bf16 %v391_v47, %v391_v47  ;;  %v460_v57 = vsel %vm5860_vm3, 0, %v459_v27  ;;  %v516_v58 = vsel %vm5869_vm6, 0, %v515_v44 }
  0x6e   : > { %v1090_v54 = vrot.slane %v1089_v46, 4  ;;  %v546_v59 = vpack.c.bf16 %v392_v52, %v392_v52  ;;  %v331_v60 = vmul.f32 %v6168_v15, %v5706_v10  ;;  %v332_v61 = vmul.f32 %v6168_v15, %v5707_v53  ;;  %461 = vst [vmem:[#allocation2 + $0xa8] sm:$0x1] %v460_v57  ;;  %v479_v53 = vld [vmem:[#allocation2 + $0x20] sm:$0x1] }
  0x6f   : > { %v5658_v0 = vunpack.c.l.bf16 %v6159_v49  ;;  %v715_v3 = vshrl.u32 %v545_v56, 16  ;;  %v718_v4 = vshll.u32 %v545_v56, 16  ;;  %517 = vst [vmem:[#allocation2 + $0xb0] sm:$0x1] %v516_v58  ;;  %v5659_v5 = vunpack.c.h.bf16 %v6159_v49 }
  0x70   : > { %v1095_v1 = vsel %vm5997_vm13, %v1090_v54, %v1094_v41  ;;  %v1008_v12 = vld [vmem:[#allocation2 + $0x48] sm:$0xf]  ;;  %v723_v16 = vshrl.u32 %v546_v59, 16  ;;  %v726_v13 = vshll.u32 %v546_v59, 16  ;;  %v367_v19 = vadd.f32 %v6179_v14, %v331_v60 }
  0x71   : > { %v1437_v50 = vunpack.c.l.b16 %v1095_v1  ;;  %v1193_v20 = vshrl.u32 %v1008_v12, 16  ;;  %v1196_v21 = vshll.u32 %v1008_v12, 16  ;;  %v717_v23 = vrot.slane %v715_v3, 7  ;;  %v1009_v9 = vld [vmem:[#allocation2 + $0x4c] sm:$0xf]  ;;  %v5721_v1 = vld [vmem:[%s5876_s25 + $0x30] sm:$0xff]  }
  0x72   : > { %v368_v24 = vadd.f32 %v6179_v14, %v332_v61  ;;  %v725_v55 = vrot.slane %v723_v16, 7  ;;  %v399_v28 = vmax.f32 %v367_v19, 0.0  ;;  %v307_v17 = vmul.f32 %v6168_v15, %v5658_v0  ;;  %v1035_v30 = vld [vmem:[#allocation2 + $0x50] sm:$0x1] }
  0x73   : > { %v1467_v25 = vpack.c.b16 %v1437_v50, %v1436_v51  ;;  %v1195_v31 = vrot.slane %v1193_v20, 4  ;;  %v1198_v7 = vrot.slane %v1196_v21, 5  ;;  %v1202_v32 = vshll.u32 %v1009_v9, 16  ;;  %v951_v38 = vld [vmem:[#allocation2 + $0x80] sm:$0x1] }
  0x74   : > { %v1206_v33 = vshrl.u32 %v1009_v9, 16  ;;  %v1212_v18 = vshll.u32 %v1035_v30, 16  ;;  %v720_v34 = vor.u32 %v718_v4, %v717_v23  ;;  %v721_v35 = vrot.slane %v717_v23, 4 }
  0x75   : > { %5210 = vmatmul.msk.bf16.gmra.mxu0 %vm1482_vm12, %v1467_v25  ;;  %v728_v36 = vor.u32 %v726_v13, %v725_v55  ;;  %v1199_v39 = vor.u32 %v1198_v7, %v1195_v31  ;;  %v1204_v62 = vrot.slane %v1202_v32, 5  ;;  %v730_v41 = vrot.slane %v725_v55, 4  ;;  %v975_v13 = vld [vmem:[#allocation2 + $0xa8] sm:$0xf] }
  0x76   : > { %v1208_v40 = vrot.slane %v1206_v33, 4  ;;  %v1214_v11 = vrot.slane %v1212_v18, 5  ;;  %v948_v27 = vsel %vm5931_vm9, %v720_v34, %v947_v22  ;;  %v400_v44 = vmax.f32 %v368_v24, 0.0  ;;  %v979_v23 = vld [vmem:[#allocation2 + $0xb0] sm:$0x1] }
  0x77   : > { %v729_v43 = vsel %vm5924_vm8, %v721_v35, %v728_v36  ;;  %v1200_v45 = vrot.slane %v1199_v39, 4  ;;  %949 = vst [vmem:[#allocation2 + $0x78] sm:$0xf] %v948_v27  ;;  %v952_v47 = vsel %vm5860_vm3, %v730_v41, %v951_v38  ;;  %v553_v48 = vpack.c.bf16 %v399_v28, %v399_v28  ;;  %v438_v39 = vld [vmem:[#allocation2 + $0x54] sm:$0x1] }
  0x78   : > { %v1209_v46 = vor.u32 %v1208_v40, %v1204_v62  ;;  %950 = vst.msk [vmem:[#allocation2 + $0x7c] sm:$0xf] %vm405_vm5, %v729_v43  ;;  %v554_v49 = vpack.c.bf16 %v400_v44, %v400_v44  ;;  %v308_v51 = vmul.f32 %v6168_v15, %v5659_v5  ;;  %v343_v52 = vadd.f32 %v6179_v14, %v307_v17 }
  0x79   : > { %v424_v10 = vsel %vm5860_vm3, 0, %v423_v42  ;;  %v1205_v54 = vsel %vm5997_vm13, %v1200_v45, %v1204_v62  ;;  %953 = vst [vmem:[#allocation2 + $0x80] sm:$0x1] %v952_v47  ;;  %v783_v57 = vshrl.u32 %v553_v48, 16  ;;  %v786_v58 = vshll.u32 %v553_v48, 16 }
  0x7a   : > { %v1210_v56 = vrot.slane %v1209_v46, 4  ;;  %v1446_v59 = vunpack.c.l.b16 %v1205_v54  ;;  %v791_v60 = vshrl.u32 %v554_v49, 16  ;;  %v794_v61 = vshll.u32 %v554_v49, 16  ;;  %425 = vst [vmem:[#allocation2 + $0x18] sm:$0x1] %v424_v10 }
  0x7b   : > { %v344_v0 = vadd.f32 %v6179_v14, %v308_v51  ;;  %v785_v4 = vrot.slane %v783_v57, 7  ;;  %v375_v5 = vmax.f32 %v343_v52, 0.0  ;;  %v480_v50 = vsel %vm5869_vm6, 0, %v479_v53 }
  0x7c   : > { %v1215_v3 = vsel %vm5997_vm13, %v1210_v56, %v1214_v11  ;;  %v793_v16 = vrot.slane %v791_v60, 7  ;;  %481 = vst [vmem:[#allocation2 + $0x20] sm:$0x1] %v480_v50  ;;  %v5678_v25 = vunpack.c.l.bf16 %v5721_v1  ;;  %v5679_v42 = vunpack.c.h.bf16 %v5721_v1  ;;  %v494_v11 = vld [vmem:[#allocation2 + $0x5c] sm:$0x1] }
  0x7d   : > { %v1447_v12 = vunpack.c.l.b16 %v1215_v3  ;;  %v376_v19 = vmax.f32 %v344_v0, 0.0  ;;  %v788_v20 = vor.u32 %v786_v58, %v785_v4  ;;  %v789_v21 = vrot.slane %v785_v4, 4 }
  0x7e   : > { %v529_v24 = vpack.c.bf16 %v375_v5, %v375_v5  ;;  %v1016_v55 = vld [vmem:[#allocation2 + $0x78] sm:$0xf]  ;;  %v796_v22 = vor.u32 %v794_v61, %v793_v16  ;;  %v798_v28 = vrot.slane %v793_v16, 4  ;;  %v317_v54 = vmul.f32 %v6168_v15, %v5678_v25 }
  0x7f   : > { %v1472_v9 = vpack.c.b16 %v1447_v12, %v1446_v59  ;;  %v530_v17 = vpack.c.bf16 %v376_v19, %v376_v19  ;;  %v1017_v30 = vld [vmem:[#allocation2 + $0x7c] sm:$0xf]  ;;  %v1289_v31 = vshrl.u32 %v1016_v55, 16  ;;  %v1292_v7 = vshll.u32 %v1016_v55, 16 }
  0x80   : > { %v976_v32 = vsel %vm5931_vm9, %v788_v20, %v975_v13  ;;  %v579_v33 = vshrl.u32 %v529_v24, 16  ;;  %v1039_v18 = vld [vmem:[#allocation2 + $0x80] sm:$0x1]  ;;  %v1298_v34 = vshll.u32 %v1017_v30, 16  ;;  %v1302_v35 = vshrl.u32 %v1017_v30, 16 }
  0x81   : > { %5215 = vmatmul.msk.bf16.gmra.mxu1 %vm1482_vm12, %v1472_v9  ;;  %v797_v36 = vsel %vm5924_vm8, %v789_v21, %v796_v22  ;;  %977 = vst [vmem:[#allocation2 + $0xa8] sm:$0xf] %v976_v32  ;;  %v980_v38 = vsel %vm5860_vm3, %v798_v28, %v979_v23  ;;  %v1291_v62 = vrot.slane %v1289_v31, 4  ;;  %v1294_v40 = vrot.slane %v1292_v7, 5  ;;  %v891_v51 = vld [vmem:[#allocation2 + $0x18] sm:$0xf] }
  0x82   : > { %v1308_v41 = vshll.u32 %v1039_v18, 16  ;;  %978 = vst.msk [vmem:[#allocation2 + $0xac] sm:$0xf] %vm405_vm5, %v797_v36  ;;  %v1300_v43 = vrot.slane %v1298_v34, 5  ;;  %v1304_v27 = vrot.slane %v1302_v35, 4  ;;  %v581_v44 = vrot.slane %v579_v33, 7 }
  0x83   : > { %981 = vst [vmem:[#allocation2 + $0xb0] sm:$0x1] %v980_v38  ;;  %v582_v45 = vshll.u32 %v529_v24, 16  ;;  %v1295_v46 = vor.u32 %v1294_v40, %v1291_v62  ;;  %v587_v48 = vshrl.u32 %v530_v17, 16  ;;  %v590_v49 = vshll.u32 %v530_v17, 16  ;;  %v5725_v7 = vld [vmem:[%s5876_s25 + $0x50] sm:$0xff]  }
  0x84   : > { %v1310_v47 = vrot.slane %v1308_v41, 5  ;;  %v1305_v52 = vor.u32 %v1304_v27, %v1300_v43  ;;  %v585_v53 = vrot.slane %v581_v44, 4  ;;  %v318_v58 = vmul.f32 %v6168_v15, %v5679_v42  ;;  %v895_v0 = vld [vmem:[#allocation2 + $0x20] sm:$0x1]  ;;  %v450_v28 = vld [vmem:[#allocation2 + $0x84] sm:$0x1] }
  0x85   : > { %v584_v10 = vor.u32 %v582_v45, %v581_v44  ;;  %v1296_v56 = vrot.slane %v1295_v46, 4  ;;  %v589_v57 = vrot.slane %v587_v48, 7  ;;  %v439_v59 = vsel %vm5860_vm3, 0, %v438_v39  ;;  %v506_v35 = vld [vmem:[#allocation2 + $0x8c] sm:$0x1] }
  0x86   : > { %v1306_v60 = vrot.slane %v1305_v52, 4  ;;  %v353_v1 = vadd.f32 %v6179_v14, %v317_v54  ;;  %440 = vst [vmem:[#allocation2 + $0x54] sm:$0x1] %v439_v59  ;;  %v495_v3 = vsel %vm5869_vm6, 0, %v494_v11  ;;  %v354_v16 = vadd.f32 %v6179_v14, %v318_v58 }
  0x87   : > { %v892_v61 = vsel %vm5931_vm9, %v584_v10, %v891_v51  ;;  %v1301_v4 = vsel %vm5997_vm13, %v1296_v56, %v1300_v43  ;;  %v592_v50 = vor.u32 %v590_v49, %v589_v57  ;;  %v594_v12 = vrot.slane %v589_v57, 4  ;;  %496 = vst [vmem:[#allocation2 + $0x5c] sm:$0x1] %v495_v3 }
  0x88   : > { %v1024_v5 = vld [vmem:[#allocation2 + $0xa8] sm:$0xf]  ;;  %893 = vst [vmem:[#allocation2 + $0x18] sm:$0xf] %v892_v61  ;;  %v1311_v13 = vsel %vm5997_vm13, %v1306_v60, %v1310_v47  ;;  %v1454_v19 = vunpack.c.l.b16 %v1301_v4  ;;  %v385_v39 = vmax.f32 %v353_v1, 0.0  ;;  %v386_v62 = vmax.f32 %v354_v16, 0.0 }
  0x89   : > { %v1025_v20 = vld [vmem:[#allocation2 + $0xac] sm:$0xf]  ;;  %v1385_v21 = vshrl.u32 %v1024_v5, 16  ;;  %v1388_v23 = vshll.u32 %v1024_v5, 16  ;;  %v1455_v24 = vunpack.c.l.b16 %v1311_v13  ;;  %v593_v22 = vsel %vm5924_vm8, %v585_v53, %v592_v50 }
  0x8a   : > { %v1043_v25 = vld [vmem:[#allocation2 + $0xb0] sm:$0x1]  ;;  %v1394_v9 = vshll.u32 %v1025_v20, 16  ;;  %v1398_v55 = vshrl.u32 %v1025_v20, 16  ;;  %894 = vst.msk [vmem:[#allocation2 + $0x1c] sm:$0xf] %vm405_vm5, %v593_v22  ;;  %v896_v34 = vsel %vm5860_vm3, %v594_v12, %v895_v0  ;;  %v5694_v41 = vunpack.c.l.bf16 %v5725_v7 }
  0x8b   : > { %v1387_v17 = vrot.slane %v1385_v21, 4  ;;  %v1390_v30 = vrot.slane %v1388_v23, 5  ;;  %v1404_v31 = vshll.u32 %v1043_v25, 16  ;;  %v1476_v32 = vpack.c.b16 %v1455_v24, %v1454_v19  ;;  %897 = vst [vmem:[#allocation2 + $0x20] sm:$0x1] %v896_v34 }
  0x8c   : > { %v1396_v33 = vrot.slane %v1394_v9, 5  ;;  %v1400_v18 = vrot.slane %v1398_v55, 4  ;;  %v5695_v42 = vunpack.c.h.bf16 %v5725_v7  ;;  %v451_v11 = vsel %vm5860_vm3, 0, %v450_v28  ;;  %v5729_v7 = vld [vmem:[%s5876_s25 + $0x70] sm:$0xff]  }
  0x8d   : > { %v1391_v36 = vor.u32 %v1390_v30, %v1387_v17  ;;  %v1406_v38 = vrot.slane %v1404_v31, 5  ;;  %5219 = vmatmul.msk.bf16.gmra.mxu2 %vm1482_vm12, %v1476_v32  ;;  %v539_v44 = vpack.c.bf16 %v385_v39, %v385_v39  ;;  %v540_v45 = vpack.c.bf16 %v386_v62, %v386_v62  ;;  %452 = vst [vmem:[#allocation2 + $0x84] sm:$0x1] %v451_v11  ;;  %v926_v23 = vld [vmem:[#allocation2 + $0x54] sm:$0xf] }
  0x8e   : > { %v1401_v40 = vor.u32 %v1400_v18, %v1396_v33  ;;  %v507_v46 = vsel %vm5869_vm6, 0, %v506_v35  ;;  %v325_v51 = vmul.f32 %v6168_v15, %v5694_v41  ;;  %v326_v16 = vmul.f32 %v6168_v15, %v5695_v42  ;;  %v930_v22 = vld [vmem:[#allocation2 + $0x5c] sm:$0x1]  ;;  %v462_v32 = vld [vmem:[#allocation2 + $0xb4] sm:$0x1] }
  0x8f   : > { %v1392_v43 = vrot.slane %v1391_v36, 4  ;;  %v1000_v27 = vld [vmem:[#allocation2 + $0x18] sm:$0xf]  ;;  %v664_v10 = vshrl.u32 %v539_v44, 16  ;;  %v667_v53 = vshll.u32 %v539_v44, 16  ;;  %v672_v54 = vshrl.u32 %v540_v45, 16 }
  0x90   : > { %v1402_v47 = vrot.slane %v1401_v40, 4  ;;  %v1097_v48 = vshrl.u32 %v1000_v27, 16  ;;  %v1100_v49 = vshll.u32 %v1000_v27, 16  ;;  %508 = vst [vmem:[#allocation2 + $0x8c] sm:$0x1] %v507_v46  ;;  %v675_v12 = vshll.u32 %v540_v45, 16 }
  0x91   : > { %v1397_v52 = vsel %vm5997_vm13, %v1392_v43, %v1396_v33  ;;  %v6242_v58 = vld [vmem:[#allocation2 + $0x1c] sm:$0xf]  ;;  %v666_v3 = vrot.slane %v664_v10, 7  ;;  %v674_v50 = vrot.slane %v672_v54, 7  ;;  %v361_v31 = vadd.f32 %v6179_v14, %v325_v51 }
  0x92   : > { %v1407_v56 = vsel %vm5997_vm13, %v1402_v47, %v1406_v38  ;;  %v1462_v57 = vunpack.c.l.b16 %v1397_v52  ;;  %v1099_v59 = vrot.slane %v1097_v48, 4  ;;  %v1102_v60 = vrot.slane %v1100_v49, 5  ;;  %v6246_v4 = vld [vmem:[#allocation2 + $0x20] sm:$0x1]  ;;  %v518_v36 = vld [vmem:[#allocation2 + $0xbc] sm:$0x1] }
  0x93   : > { %v1463_v61 = vunpack.c.l.b16 %v1407_v56  ;;  %v1106_v0 = vshll.u32 %v6242_v58, 16  ;;  %v1110_v1 = vshrl.u32 %v6242_v58, 16  ;;  %v1116_v21 = vshll.u32 %v6246_v4, 16  ;;  %v5717_v38 = vld [vmem:[%s5876_s25 + $0x10] sm:$0xff]  }
  0x94   : > { %v1103_v5 = vor.u32 %v1102_v60, %v1099_v59  ;;  %v669_v25 = vor.u32 %v667_v53, %v666_v3  ;;  %v670_v9 = vrot.slane %v666_v3, 4  ;;  %v677_v55 = vor.u32 %v675_v12, %v674_v50  ;;  %v954_v3 = vld [vmem:[#allocation2 + $0x84] sm:$0xf] }
  0x95   : > { %v1480_v13 = vpack.c.b16 %v1463_v61, %v1462_v57  ;;  %v1108_v19 = vrot.slane %v1106_v0, 5  ;;  %v1112_v20 = vrot.slane %v1110_v1, 4  ;;  %v1118_v17 = vrot.slane %v1116_v21, 5  ;;  %v426_v57 = vld [vmem:[#allocation2 + $0x24] sm:$0x1] }
  0x96   : > { %v1104_v24 = vrot.slane %v1103_v5, 4  ;;  %v679_v30 = vrot.slane %v674_v50, 4  ;;  %v678_v18 = vsel %vm5924_vm8, %v670_v9, %v677_v55  ;;  %v927_v34 = vsel %vm5931_vm9, %v669_v25, %v926_v23  ;;  %v482_v23 = vld [vmem:[#allocation2 + $0x2c] sm:$0x1] }
  0x97   : > { %5223 = vmatmul.msk.bf16.gmra.mxu3 %vm1482_vm12, %v1480_v13  ;;  %v1113_v28 = vor.u32 %v1112_v20, %v1108_v19  ;;  %v362_v35 = vadd.f32 %v6179_v14, %v326_v16  ;;  %928 = vst [vmem:[#allocation2 + $0x54] sm:$0xf] %v927_v34  ;;  %v393_v41 = vmax.f32 %v361_v31, 0.0  ;;  %v5710_v11 = vunpack.c.l.bf16 %v5729_v7  ;;  %v958_v5 = vld [vmem:[#allocation2 + $0x8c] sm:$0x1] }
  0x98   : > { %v1109_v33 = vsel %vm5997_vm13, %v1104_v24, %v1108_v19  ;;  %v931_v40 = vsel %vm5860_vm3, %v679_v30, %v930_v22  ;;  %929 = vst.msk [vmem:[#allocation2 + $0x58] sm:$0xf] %vm405_vm5, %v678_v18  ;;  %v5711_v43 = vunpack.c.h.bf16 %v5729_v7  ;;  %v463_v27 = vsel %vm5860_vm3, 0, %v462_v32 }
  0x99   : > { %v1114_v39 = vrot.slane %v1113_v28, 4  ;;  %v1438_v62 = vunpack.c.l.b16 %v1109_v33  ;;  %v394_v42 = vmax.f32 %v362_v35, 0.0  ;;  %932 = vst [vmem:[#allocation2 + $0x5c] sm:$0x1] %v931_v40  ;;  %v547_v45 = vpack.c.bf16 %v393_v41, %v393_v41 }
  0x9a   : > { %v519_v46 = vsel %vm5869_vm6, 0, %v518_v36  ;;  %v5662_v47 = vunpack.c.l.bf16 %v5717_v38  ;;  %v333_v51 = vmul.f32 %v6168_v15, %v5710_v11  ;;  %v334_v52 = vmul.f32 %v6168_v15, %v5711_v43  ;;  %464 = vst [vmem:[#allocation2 + $0xb4] sm:$0x1] %v463_v27 }
  0x9b   : > { %v1119_v44 = vsel %vm5997_vm13, %v1114_v39, %v1118_v17  ;;  %v548_v49 = vpack.c.bf16 %v394_v42, %v394_v42  ;;  %v732_v10 = vshrl.u32 %v547_v45, 16  ;;  %v735_v53 = vshll.u32 %v547_v45, 16  ;;  %520 = vst [vmem:[#allocation2 + $0xbc] sm:$0x1] %v519_v46 }
  0x9c   : > { %v1439_v48 = vunpack.c.l.b16 %v1119_v44  ;;  %v5663_v54 = vunpack.c.h.bf16 %v5717_v38  ;;  %v309_v56 = vmul.f32 %v6168_v15, %v5662_v47  ;;  %v369_v0 = vadd.f32 %v6179_v14, %v333_v51 }
  0x9d   : > { %v740_v60 = vshrl.u32 %v548_v49, 16  ;;  %v743_v61 = vshll.u32 %v548_v49, 16  ;;  %v734_v1 = vrot.slane %v732_v10, 7  ;;  %v370_v50 = vadd.f32 %v6179_v14, %v334_v52 }
  0x9e   : > { %v1468_v59 = vpack.c.b16 %v1439_v48, %v1438_v62  ;;  %v310_v12 = vmul.f32 %v6168_v15, %v5663_v54  ;;  %v1010_v16 = vld [vmem:[#allocation2 + $0x54] sm:$0xf]  ;;  %v401_v19 = vmax.f32 %v369_v0, 0.0  ;;  %v345_v20 = vadd.f32 %v6179_v14, %v309_v56 }
  0x9f   : > { %v742_v13 = vrot.slane %v740_v60, 7  ;;  %v427_v21 = vsel %vm5860_vm3, 0, %v426_v57  ;;  %v6280_v24 = vld [vmem:[#allocation2 + $0x58] sm:$0xf]  ;;  %v1217_v25 = vshrl.u32 %v1010_v16, 16  ;;  %v1220_v9 = vshll.u32 %v1010_v16, 16 }
  0xa0   : > { %5211 = vmatmul.msk.bf16.gmra.mxu0 %vm1482_vm12, %v1468_v59  ;;  %v737_v55 = vor.u32 %v735_v53, %v734_v1  ;;  %v738_v22 = vrot.slane %v734_v1, 4  ;;  %v6282_v28 = vld [vmem:[#allocation2 + $0x5c] sm:$0x1]  ;;  %v1226_v15 = vshll.u32 %v6280_v24, 16  ;;  %v1230_v17 = vshrl.u32 %v6280_v24, 16 }
  0xa1   : > { %v745_v30 = vor.u32 %v743_v61, %v742_v13  ;;  %v747_v31 = vrot.slane %v742_v13, 4  ;;  %v1219_v7 = vrot.slane %v1217_v25, 4  ;;  %v1222_v32 = vrot.slane %v1220_v9, 5  ;;  %428 = vst [vmem:[#allocation2 + $0x24] sm:$0x1] %v427_v21 }
  0xa2   : > { %v1236_v33 = vshll.u32 %v6282_v28, 16  ;;  %v955_v18 = vsel %vm5931_vm9, %v737_v55, %v954_v3  ;;  %v1228_v34 = vrot.slane %v1226_v15, 5  ;;  %v1232_v35 = vrot.slane %v1230_v17, 4  ;;  %v982_v9 = vld [vmem:[#allocation2 + $0xb4] sm:$0xf] }
  0xa3   : > { %v746_v36 = vsel %vm5924_vm8, %v738_v22, %v745_v30  ;;  %956 = vst [vmem:[#allocation2 + $0x84] sm:$0xf] %v955_v18  ;;  %v959_v38 = vsel %vm5860_vm3, %v747_v31, %v958_v5  ;;  %v1223_v39 = vor.u32 %v1222_v32, %v1219_v7  ;;  %v402_v62 = vmax.f32 %v370_v50, 0.0  ;;  %v986_v17 = vld [vmem:[#allocation2 + $0xbc] sm:$0x1] }
  0xa4   : > { %957 = vst.msk [vmem:[#allocation2 + $0x88] sm:$0xf] %vm405_vm5, %v746_v36  ;;  %v555_v40 = vpack.c.bf16 %v401_v19, %v401_v19  ;;  %v483_v41 = vsel %vm5869_vm6, 0, %v482_v23  ;;  %v1233_v42 = vor.u32 %v1232_v35, %v1228_v34  ;;  %v1238_v11 = vrot.slane %v1236_v33, 5 }
  0xa5   : > { %960 = vst [vmem:[#allocation2 + $0x8c] sm:$0x1] %v959_v38  ;;  %v346_v43 = vadd.f32 %v6179_v14, %v310_v12  ;;  %v377_v27 = vmax.f32 %v345_v20, 0.0  ;;  %v1224_v44 = vrot.slane %v1223_v39, 4  ;;  %v556_v45 = vpack.c.bf16 %v402_v62, %v402_v62 }
  0xa6   : > { %v800_v46 = vshrl.u32 %v555_v40, 16  ;;  %v803_v47 = vshll.u32 %v555_v40, 16  ;;  %v1234_v48 = vrot.slane %v1233_v42, 4  ;;  %484 = vst [vmem:[#allocation2 + $0x2c] sm:$0x1] %v483_v41  ;;  %vm5008_vm2 = vcmask 57344  }
  0xa7   : > { %v378_v49 = vmax.f32 %v346_v43, 0.0  ;;  %v531_v51 = vpack.c.bf16 %v377_v27, %v377_v27  ;;  %v1229_v52 = vsel %vm5997_vm13, %v1224_v44, %v1228_v34  ;;  %v808_v53 = vshrl.u32 %v556_v45, 16  ;;  %v1844_v40 = vld [vmem:[#allocation2] sm:$0xe] }
  0xa8   : > { %v802_v10 = vrot.slane %v800_v46, 7  ;;  %v811_v54 = vshll.u32 %v556_v45, 16  ;;  %v1239_v56 = vsel %vm5997_vm13, %v1234_v48, %v1238_v11  ;;  %v1448_v14 = vunpack.c.l.b16 %v1229_v52  ;;  %v898_v33 = vld [vmem:[#allocation2 + $0x24] sm:$0xf] }
  0xa9   : > { %v532_v57 = vpack.c.bf16 %v378_v49, %v378_v49  ;;  %v596_v59 = vshrl.u32 %v531_v51, 16  ;;  %v1449_v60 = vunpack.c.l.b16 %v1239_v56  ;;  %v810_v3 = vrot.slane %v808_v53, 7  ;;  %v5747_v48 = vld [vmem:[#allocation2 + $0x4] sm:$0xf] }
  0xaa   : > { %v1018_v61 = vld [vmem:[#allocation2 + $0x84] sm:$0xf]  ;;  %v805_v0 = vor.u32 %v803_v47, %v802_v10  ;;  %v806_v1 = vrot.slane %v802_v10, 4  ;;  %v599_v13 = vshll.u32 %v531_v51, 16  ;;  %v5305_v47 = vrot.slane %v1844_v40, 9 }
  0xab   : > { %v1019_v5 = vld [vmem:[#allocation2 + $0x88] sm:$0xf]  ;;  %v1313_v50 = vshrl.u32 %v1018_v61, 16  ;;  %v1316_v12 = vshll.u32 %v1018_v61, 16  ;;  %v598_v16 = vrot.slane %v596_v59, 7  ;;  %v1473_v19 = vpack.c.b16 %v1449_v60, %v1448_v14 }
  0xac   : > { %v1040_v20 = vld [vmem:[#allocation2 + $0x8c] sm:$0x1]  ;;  %v1322_v21 = vshll.u32 %v1019_v5, 16  ;;  %v1326_v23 = vshrl.u32 %v1019_v5, 16  ;;  %v813_v25 = vor.u32 %v811_v54, %v810_v3  ;;  %v815_v32 = vrot.slane %v810_v3, 4 }
  0xad   : > { %v1315_v55 = vrot.slane %v1313_v50, 4  ;;  %v1318_v22 = vrot.slane %v1316_v12, 5  ;;  %v1332_v15 = vshll.u32 %v1040_v20, 16  ;;  %5216 = vmatmul.msk.bf16.gmra.mxu1 %vm1482_vm12, %v1473_v19  ;;  %v983_v34 = vsel %vm5931_vm9, %v805_v0, %v982_v9  ;;  %v902_v46 = vld [vmem:[#allocation2 + $0x2c] sm:$0x1] }
  0xae   : > { %v1324_v30 = vrot.slane %v1322_v21, 5  ;;  %v1328_v31 = vrot.slane %v1326_v23, 4  ;;  %v814_v7 = vsel %vm5924_vm8, %v806_v1, %v813_v25  ;;  %v601_v35 = vor.u32 %v599_v13, %v598_v16  ;;  %984 = vst [vmem:[#allocation2 + $0xb4] sm:$0xf] %v983_v34  ;;  %v5748_v54 = vld [vmem:[#allocation2 + $0x8] sm:$0x1] }
  0xaf   : > { %v1319_v18 = vor.u32 %v1318_v22, %v1315_v55  ;;  %985 = vst.msk [vmem:[#allocation2 + $0xb8] sm:$0xf] %vm405_vm5, %v814_v7  ;;  %v1334_v38 = vrot.slane %v1332_v15, 5  ;;  %v987_v39 = vsel %vm5860_vm3, %v815_v32, %v986_v17  ;;  %v604_v62 = vshrl.u32 %v532_v57, 16  ;;  %v5469_v60 = vld [vmem:[%s7444_s3 + $0xc] sm:$0x3] }
  0xb0   : > { %v1329_v36 = vor.u32 %v1328_v31, %v1324_v30  ;;  %988 = vst [vmem:[#allocation2 + $0xbc] sm:$0x1] %v987_v39  ;;  %v602_v42 = vrot.slane %v598_v16, 4  ;;  %v607_v11 = vshll.u32 %v532_v57, 16  ;;  %v899_v43 = vsel %vm5931_vm9, %v601_v35, %v898_v33  ;;  %v5604_v22 = vld [vmem:[#allocation2] sm:$0xff] }
  0xb1   : > { %v1320_v41 = vrot.slane %v1319_v18, 4  ;;  %v606_v44 = vrot.slane %v604_v62, 7  ;;  %900 = vst [vmem:[#allocation2 + $0x24] sm:$0xf] %v899_v43  ;;  %v1897_v49 = vrot.slane %v5747_v48, 5  ;;  %v1900_v56 = vrot.slane %v5748_v54, 5 }
  0xb2   : > { %v1330_v27 = vrot.slane %v1329_v36, 4  ;;  %v3731_v3 = vsel %vm1531_vm0, %v5469_v60, 0  ;;  %v2515_v32 = vld [vmem:[#allocation2 + $0xc] sm:$0xf]  ;;  %v2516_v34 = vld [vmem:[#allocation2 + $0x10] sm:$0xf] }
  0xb3   : > { %v1325_v45 = vsel %vm5997_vm13, %v1320_v41, %v1324_v30  ;;  %v609_v10 = vor.u32 %v607_v11, %v606_v44  ;;  %v611_v53 = vrot.slane %v606_v44, 4  ;;  %v1899_v59 = vrot.slane %v1897_v49, 4  ;;  %3740 = vmatpush.bf16.msra.mxu2 %v3731_v3 }
  0xb4   : > { %v1335_v51 = vsel %vm5997_vm13, %v1330_v27, %v1334_v38  ;;  %v1456_v52 = vunpack.c.l.b16 %v1325_v45  ;;  %v1898_v21 = vsel %vm6315_vm1, %v5305_v47, %v1897_v49  ;;  %v2564_v41 = vshrl.u32 %v2515_v32, 16 }
  0xb5   : > { %v1457_v14 = vunpack.c.l.b16 %v1335_v51  ;;  %v610_v0 = vsel %vm5924_vm8, %v602_v42, %v609_v10  ;;  %v903_v1 = vsel %vm5860_vm3, %v611_v53, %v902_v46  ;;  %v1026_v50 = vld [vmem:[#allocation2 + $0xb4] sm:$0xf]  ;;  %v1901_v15 = vsel %vm6315_vm1, %v1899_v59, %v1900_v56  ;;  %v5550_v59 = vld [vmem:[%s7444_s3 + $0xe] sm:$0x3] }
  0xb6   : > { %v1027_v61 = vld [vmem:[#allocation2 + $0xb8] sm:$0xf]  ;;  %901 = vst.msk [vmem:[#allocation2 + $0x28] sm:$0xf] %vm405_vm5, %v610_v0  ;;  %v1409_v19 = vshrl.u32 %v1026_v50, 16  ;;  %v1412_v20 = vshll.u32 %v1026_v50, 16  ;;  %v2009_v62 = vunpack.c.l.b16 %v1898_v21  ;;  %v2010_v40 = vunpack.c.l.b16 %v1901_v15 }
  0xb7   : > { %v1477_v5 = vpack.c.b16 %v1457_v14, %v1456_v52  ;;  %v1418_v12 = vshll.u32 %v1027_v61, 16  ;;  %v1422_v16 = vshrl.u32 %v1027_v61, 16  ;;  %v1044_v13 = vld [vmem:[#allocation2 + $0xbc] sm:$0x1]  ;;  %904 = vst [vmem:[#allocation2 + $0x2c] sm:$0x1] %v903_v1 }
  0xb8   : > { %v1428_v9 = vshll.u32 %v1044_v13, 16  ;;  %v1002_v55 = vld [vmem:[#allocation2 + $0x24] sm:$0xf]  ;;  %v1411_v17 = vrot.slane %v1409_v19, 4  ;;  %v1414_v30 = vrot.slane %v1412_v20, 5  ;;  %v2567_v27 = vshll.u32 %v2515_v32, 16 }
  0xb9   : > { %5220 = vmatmul.msk.bf16.gmra.mxu2 %vm1482_vm12, %v1477_v5  ;;  %v1420_v23 = vrot.slane %v1418_v12, 5  ;;  %v1424_v25 = vrot.slane %v1422_v16, 4  ;;  %v1121_v31 = vshrl.u32 %v1002_v55, 16  ;;  %v1124_v7 = vshll.u32 %v1002_v55, 16  ;;  %v5452_v0 = vld [vmem:[%s7444_s3 + $0xa] sm:$0x3] }
  0xba   : > { %v1430_v18 = vrot.slane %v1428_v9, 5  ;;  %v1415_v35 = vor.u32 %v1414_v30, %v1411_v17  ;;  %v2573_v44 = vshll.u32 %v2516_v34, 16  ;;  %v2577_v49 = vshrl.u32 %v2516_v34, 16  ;;  %v5583_v1 = vld [vmem:[%s7444_s3 + $0x10] sm:$0x3] }
  0xbb   : > { %v1425_v33 = vor.u32 %v1424_v25, %v1420_v23  ;;  %v1123_v36 = vrot.slane %v1121_v31, 4  ;;  %v1126_v38 = vrot.slane %v1124_v7, 5  ;;  %v2566_v60 = vrot.slane %v2564_v41, 4  ;;  %v2517_v21 = vld [vmem:[#allocation2 + $0x14] sm:$0x1] }
  0xbc   : > { %v1416_v42 = vrot.slane %v1415_v35, 4  ;;  %v2569_v61 = vrot.slane %v2567_v27, 5  ;;  %v2041_v16 = vpack.c.b16 %v2010_v40, %v2009_v62  ;;  %v2575_v13 = vrot.slane %v2573_v44, 5  ;;  %v1845_v30 = vld [vmem:[#allocation2 + $0xc] sm:$0xe] }
  0xbd   : > { %v1426_v39 = vrot.slane %v1425_v33, 4  ;;  %v6333_v11 = vld [vmem:[#allocation2 + $0x28] sm:$0xf]  ;;  %v1127_v43 = vor.u32 %v1126_v38, %v1123_v36  ;;  %5289 = vmatmul.msk.bf16.vlgmr.msrb.gmra.mxu1 %vm1482_vm12, %v5604_v22  ;;  %v2579_v19 = vrot.slane %v2577_v49, 4  ;;  %v3444_v25 = vsel %vm1531_vm0, %v5452_v0, 0 }
  0xbe   : > { %v6338_v46 = vld [vmem:[#allocation2 + $0x2c] sm:$0x1]  ;;  %v1130_v47 = vshll.u32 %v6333_v11, 16  ;;  %v1134_v48 = vshrl.u32 %v6333_v11, 16  ;;  %v1421_v51 = vsel %vm5997_vm13, %v1416_v42, %v1420_v23  ;;  %v4385_v23 = vsel %vm1531_vm0, %v5550_v59, 0  ;;  %3453 = vmatpush.bf16.msra.mxu1 %v3444_v25 }
  0xbf   : > { %v1431_v45 = vsel %vm5997_vm13, %v1426_v39, %v1430_v18  ;;  %v1128_v10 = vrot.slane %v1127_v43, 4  ;;  %v1140_v53 = vshll.u32 %v6338_v46, 16  ;;  %v1464_v54 = vunpack.c.l.b16 %v1421_v51  ;;  %4394 = vmatpush.bf16.msra.mxu3 %v4385_v23  ;;  %v5605_v18 = vld [vmem:[#allocation2 + $0xc] sm:$0xff]  ;;  %v2518_v39 = vld [vmem:[#allocation2 + $0x18] sm:$0xf] }
  0xc0   : > { %v1465_v52 = vunpack.c.l.b16 %v1431_v45  ;;  %v1132_v56 = vrot.slane %v1130_v47, 5  ;;  %v1136_v14 = vrot.slane %v1134_v48, 4  ;;  %v4783_v9 = vsel %vm1531_vm0, %v5583_v1, 0  ;;  %v1846_v40 = vld [vmem:[#allocation2 + $0x18] sm:$0xe] }
  0xc1   : > { %v1142_v12 = vrot.slane %v1140_v53, 5  ;;  %v1904_v22 = vrot.slane %v6136_v26, 5  ;;  %v2570_v17 = vor.u32 %v2569_v61, %v2566_v60  ;;  %4792 = vmatpush.bf16.msra.mxu0 %v4783_v9  ;;  %v2580_v7 = vor.u32 %v2579_v19, %v2575_v13  ;;  %v2519_v42 = vld [vmem:[#allocation2 + $0x1c] sm:$0xf] }
  0xc2   : > { %v1481_v3 = vpack.c.b16 %v1465_v52, %v1464_v54  ;;  %v1133_v5 = vsel %vm5997_vm13, %v1128_v10, %v1132_v56  ;;  %v1137_v50 = vor.u32 %v1136_v14, %v1132_v56  ;;  %v2583_v32 = vshll.u32 %v2517_v21, 16  ;;  %v5620_v54 = vld [vmem:[#allocation2 + $0xc] sm:$0xff]  ;;  %v5606_v23 = vld [vmem:[#allocation2 + $0x18] sm:$0xff] }
  0xc3   : > { %v1440_v55 = vunpack.c.l.b16 %v1133_v5  ;;  %v5306_v34 = vrot.slane %v1845_v30, 9  ;;  %v1906_v35 = vrot.slane %v1904_v22, 4  ;;  %v1907_v36 = vrot.slane %v6139_v29, 5 }
  0xc4   : > { %5224 = vmatmul.msk.bf16.gmra.mxu3 %vm1482_vm12, %v1481_v3  ;;  %v1138_v20 = vrot.slane %v1137_v50, 4  ;;  %v2571_v38 = vrot.slane %v2570_v17, 4  ;;  %v2581_v26 = vrot.slane %v2580_v7, 4  ;;  %v2585_v62 = vrot.slane %v2583_v32, 5 }
  0xc5   : > { %v1911_v41 = vrot.slane %v6242_v58, 5  ;;  %v5307_v43 = vrot.slane %v1846_v40, 9  ;;  %v1905_v27 = vsel %vm6315_vm1, %v5306_v34, %v1904_v22  ;;  %v1908_v44 = vsel %vm6315_vm1, %v1906_v35, %v1907_v36  ;;  %v2521_v22 = vld [vmem:[#allocation2 + $0x24] sm:$0xf] }
  0xc6   : > { %v1143_v15 = vsel %vm5997_vm13, %v1138_v20, %v1142_v12  ;;  %v1914_v45 = vrot.slane %v6246_v4, 5  ;;  %v2576_v47 = vsel %vm5997_vm13, %v2571_v38, %v2575_v13  ;;  %v2588_v48 = vshrl.u32 %v2518_v39, 16 }
  0xc7   : > { %v1441_v31 = vunpack.c.l.b16 %v1143_v15  ;;  %v1913_v29 = vrot.slane %v1911_v41, 4  ;;  %v2591_v49 = vshll.u32 %v2518_v39, 16  ;;  %v1912_v58 = vsel %vm6315_vm1, %v5307_v43, %v1911_v41  ;;  %v2522_v15 = vld [vmem:[#allocation2 + $0x28] sm:$0xf]  ;;  %v1847_v41 = vld [vmem:[#allocation2 + $0x24] sm:$0xe] }
  0xc8   : > { %v2586_v51 = vsel %vm5997_vm13, %v2581_v26, %v2585_v62  ;;  %v2597_v52 = vshll.u32 %v2519_v42, 16  ;;  %v2013_v53 = vunpack.c.l.b16 %v1912_v58  ;;  %v2011_v56 = vunpack.c.l.b16 %v1905_v27  ;;  %v2523_v62 = vld [vmem:[#allocation2 + $0x2c] sm:$0x1]  ;;  %v2525_v58 = vld [vmem:[#allocation2 + $0x34] sm:$0xf] }
  0xc9   : > { %5322 = vmatmul.msk.bf16.vlgmr.msrb.gmra.mxu2 %vm1482_vm12, %v2041_v16  ;;  %v1469_v33 = vpack.c.b16 %v1441_v31, %v1440_v55  ;;  %v1915_v10 = vsel %vm6315_vm1, %v1913_v29, %v1914_v45  ;;  %v2012_v14 = vunpack.c.l.b16 %v1908_v44  ;;  %v2601_v4 = vshrl.u32 %v2519_v42, 16  ;;  %v2520_v16 = vld [vmem:[#allocation2 + $0x20] sm:$0x1]  ;;  %v5621_v31 = vld [vmem:[#allocation2 + $0x18] sm:$0xff]  ;;  %v5607_v29 = vld [vmem:[#allocation2 + $0x24] sm:$0xff] }
  0xca   : > { %v2014_v59 = vunpack.c.l.b16 %v1915_v10  ;;  %v2949_v61 = vunpack.c.l.b16 %v2576_v47  ;;  %v2950_v0 = vunpack.c.l.b16 %v2586_v51  ;;  %v2590_v1 = vrot.slane %v2588_v48, 4 }
  0xcb   : > { %5212 = vmatmul.msk.bf16.gmra.mxu0 %vm1482_vm12, %v1469_v33  ;;  %v2593_v3 = vrot.slane %v2591_v49, 5  ;;  %v2042_v5 = vpack.c.b16 %v2012_v14, %v2011_v56  ;;  %v2599_v50 = vrot.slane %v2597_v52, 5  ;;  %v2603_v12 = vrot.slane %v2601_v4, 4  ;;  %v2524_v49 = vld [vmem:[#allocation2 + $0x30] sm:$0xf] }
  0xcc   : > { %v2043_v60 = vpack.c.b16 %v2014_v59, %v2013_v53  ;;  %v2981_v13 = vpack.c.b16 %v2950_v0, %v2949_v61  ;;  %v2607_v21 = vshll.u32 %v2520_v16, 16  ;;  %v2612_v30 = vshrl.u32 %v2521_v22, 16 }
  0xcd   : > { %5290 = vmatmul.msk.bf16.gmra.mxu1 %vm1482_vm12, %v5605_v18  ;;  %v2594_v19 = vor.u32 %v2593_v3, %v2590_v1  ;;  %v2604_v20 = vor.u32 %v2603_v12, %v2599_v50  ;;  %v2615_v32 = vshll.u32 %v2521_v22, 16  ;;  %v2621_v33 = vshll.u32 %v2522_v15, 16  ;;  %v6403_v12 = vpop.f32.mrf.mxu1  ;;  %v1848_v22 = vld [vmem:[#allocation2 + $0x30] sm:$0xe] }
  0xce   : > { %v2609_v55 = vrot.slane %v2607_v21, 5  ;;  %v2625_v18 = vshrl.u32 %v2522_v15, 16  ;;  %v2614_v36 = vrot.slane %v2612_v30, 4  ;;  %v1918_v40 = vrot.slane %v6333_v11, 5  ;;  %v5749_v21 = vld [vmem:[#allocation2 + $0x34] sm:$0xf] }
  0xcf   : > { %v2595_v25 = vrot.slane %v2594_v19, 4  ;;  %v2605_v9 = vrot.slane %v2604_v20, 4  ;;  %v2617_v38 = vrot.slane %v2615_v32, 5  ;;  %v2623_v39 = vrot.slane %v2621_v33, 5  ;;  %v2526_v19 = vld [vmem:[#allocation2 + $0x38] sm:$0x1] }
  0xd0   : > { %v2627_v26 = vrot.slane %v2625_v18, 4  ;;  %v2631_v44 = vshll.u32 %v2523_v62, 16  ;;  %v5308_v45 = vrot.slane %v1847_v41, 9  ;;  %v1920_v47 = vrot.slane %v1918_v40, 4 }
  0xd1   : > { %v2600_v17 = vsel %vm5997_vm13, %v2595_v25, %v2599_v50  ;;  %v2610_v7 = vsel %vm5997_vm13, %v2605_v9, %v2609_v55  ;;  %v2618_v43 = vor.u32 %v2617_v38, %v2614_v36  ;;  %v1921_v48 = vrot.slane %v6338_v46, 5  ;;  %v5622_v46 = vld [vmem:[#allocation2 + $0x24] sm:$0xff]  ;;  %v2528_v36 = vld [vmem:[#allocation2 + $0x40] sm:$0xf] }
  0xd2   : > { %v2951_v34 = vunpack.c.l.b16 %v2600_v17  ;;  %v2952_v35 = vunpack.c.l.b16 %v2610_v7  ;;  %v2628_v27 = vor.u32 %v2627_v26, %v2623_v39  ;;  %v2633_v10 = vrot.slane %v2631_v44, 5  ;;  %v5608_v17 = vld [vmem:[#allocation2 + $0x30] sm:$0xff]  ;;  %v5750_v7 = vld [vmem:[#allocation2 + $0x38] sm:$0x1]  ;;  %v6419_v44 = vpop.f32.mrf.mxu2 }
  0xd3   : > { %v2619_v51 = vrot.slane %v2618_v43, 4  ;;  %v1919_v11 = vsel %vm6315_vm1, %v5308_v45, %v1918_v40  ;;  %v1922_v53 = vsel %vm6315_vm1, %v1920_v47, %v1921_v48  ;;  %v2639_v56 = vshll.u32 %v2524_v49, 16 }
  0xd4   : > { %5403 = vmatmul.msk.bf16.vlgmr.msrb.gmra.mxu3 %vm1482_vm12, %v5620_v54  ;;  %v2982_v42 = vpack.c.b16 %v2952_v35, %v2951_v34  ;;  %v2629_v52 = vrot.slane %v2628_v27, 4  ;;  %v2636_v54 = vshrl.u32 %v2524_v49, 16  ;;  %v2645_v14 = vshll.u32 %v2525_v58, 16  ;;  %v2527_v35 = vld [vmem:[#allocation2 + $0x3c] sm:$0xf] }
  0xd5   : > { %v2649_v4 = vshrl.u32 %v2525_v58, 16  ;;  %v2624_v59 = vsel %vm5997_vm13, %v2619_v51, %v2623_v39  ;;  %v2015_v61 = vunpack.c.l.b16 %v1919_v11  ;;  %v2016_v0 = vunpack.c.l.b16 %v1922_v53  ;;  %v6408_v38 = vpop.f32.mrf.mxu1  ;;  %v2529_v53 = vld [vmem:[#allocation2 + $0x44] sm:$0x1] }
  0xd6   : > { %v2638_v1 = vrot.slane %v2636_v54, 4  ;;  %v2641_v3 = vrot.slane %v2639_v56, 5  ;;  %v2953_v16 = vunpack.c.l.b16 %v2624_v59  ;;  %v2655_v55 = vshll.u32 %v2526_v19, 16  ;;  %v5751_v56 = vld [vmem:[#allocation2 + $0x40] sm:$0xf] }
  0xd7   : > { %v2651_v50 = vrot.slane %v2649_v4, 4  ;;  %v2044_v20 = vpack.c.b16 %v2016_v0, %v2015_v61  ;;  %v5309_v30 = vrot.slane %v1848_v22, 9  ;;  %v1928_v32 = vrot.slane %v5750_v7, 5  ;;  %v1849_v4 = vld [vmem:[#allocation2 + $0x3c] sm:$0xe] }
  0xd8   : > { %v2642_v25 = vor.u32 %v2641_v3, %v2638_v1  ;;  %v2657_v34 = vrot.slane %v2655_v55, 5  ;;  %v2660_v41 = vshrl.u32 %v2527_v35, 16  ;;  %v2669_v43 = vshll.u32 %v2528_v36, 16  ;;  %v5609_v1 = vld [vmem:[#allocation2 + $0x3c] sm:$0xff] }
  0xd9   : > { %5323 = vmatmul.msk.bf16.gmra.mxu2 %vm1482_vm12, %v2042_v5  ;;  %v2647_v5 = vrot.slane %v2645_v14, 5  ;;  %v2673_v27 = vshrl.u32 %v2528_v36, 16  ;;  %v1932_v14 = vrot.slane %v5751_v56, 5  ;;  %v2679_v61 = vshll.u32 %v2529_v53, 16  ;;  %v5610_v53 = vld [vmem:[#allocation2 + $0x48] sm:$0xff] }
  0xda   : > { %v2643_v33 = vrot.slane %v2642_v25, 4  ;;  %v2662_v58 = vrot.slane %v2660_v41, 4  ;;  %v6425_v0 = vpop.f32.mrf.mxu2  ;;  %v5310_v3 = vrot.slane %v1849_v4, 9  ;;  %v2530_v25 = vld [vmem:[#allocation2 + $0x48] sm:$0xf]  ;;  %vm4906_vm0 = vcmask 64512  }
  0xdb   : > { %5420 = vmatmul.msk.bf16.vlgmr.msrb.gmra.mxu0 %vm1482_vm12, %v2981_v13  ;;  %v2652_v9 = vor.u32 %v2651_v50, %v2647_v5  ;;  %v5752_v50 = vld [vmem:[#allocation2 + $0x44] sm:$0x1]  ;;  %v2687_v7 = vshll.u32 %v2530_v25, 16  ;;  %v5754_v4 = vld [vmem:[#allocation2 + $0x50] sm:$0x1] }
  0xdc   : > { %v2648_v62 = vsel %vm5997_vm13, %v2643_v33, %v2647_v5  ;;  %v1934_v5 = vrot.slane %v1932_v14, 4  ;;  %v1933_v55 = vsel %vm6315_vm1, %v5310_v3, %v1932_v14 }
  0xdd   : > { %5291 = vmatmul.msk.bf16.gmra.mxu1 %vm1482_vm12, %v5606_v23  ;;  %v1925_v23 = vrot.slane %v5749_v21, 5  ;;  %v2653_v18 = vrot.slane %v2652_v9, 4  ;;  %v2955_v48 = vunpack.c.l.b16 %v2648_v62  ;;  %v6422_v54 = vpop.f32.mrf.mxu1  ;;  %v6428_v21 = vpop.f32.mrf.mxu3  ;;  %v2019_v33 = vunpack.c.l.b16 %v1933_v55 }
  0xde   : > { %v2689_v41 = vrot.slane %v2687_v7, 5 }
  0xdf   : > { %v1926_v39 = vsel %vm6315_vm1, %v5309_v30, %v1925_v23  ;;  %v2658_v40 = vsel %vm5997_vm13, %v2653_v18, %v2657_v34 }
  0xe0   : > { %v2017_v45 = vunpack.c.l.b16 %v1926_v39  ;;  %v2956_v49 = vunpack.c.l.b16 %v2658_v40 }
  0xe4   : > { %5404 = vmatmul.msk.bf16.gmra.mxu3 %vm1482_vm12, %v5621_v31  ;;  %v1927_v31 = vrot.slane %v1925_v23, 4  ;;  %v6430_v23 = vpop.f32.mrf.mxu0  ;;  %v6443_v62 = vpop.f32.mrf.mxu2 }
  0xe5   : > { %v6432_v9 = vpop.f32.mrf.mxu1 }
  0xe6   : > { %v1929_v26 = vsel %vm6315_vm1, %v1927_v31, %v1928_v32  ;;  %v2684_v31 = vshrl.u32 %v2530_v25, 16  ;;  %v5624_v32 = vld [vmem:[#allocation2 + $0x3c] sm:$0xff] }
  0xe7   : > { %v2018_v47 = vunpack.c.l.b16 %v1929_v26 }
  0xe8   : > { %v2686_v26 = vrot.slane %v2684_v31, 4 }
  0xe9   : > { %5324 = vmatmul.msk.bf16.gmra.mxu2 %vm1482_vm12, %v2043_v60  ;;  %v2634_v60 = vsel %vm5997_vm13, %v2629_v52, %v2633_v10  ;;  %v2671_v52 = vrot.slane %v2669_v43, 5  ;;  %v2675_v10 = vrot.slane %v2673_v27, 4  ;;  %v2045_v11 = vpack.c.b16 %v2018_v47, %v2017_v45  ;;  %v6446_v27 = vpop.f32.mrf.mxu3  ;;  %v5753_v45 = vld [vmem:[#allocation2 + $0x4c] sm:$0xf] }
  0xea   : > { %v2954_v13 = vunpack.c.l.b16 %v2634_v60  ;;  %v1939_v47 = vrot.slane %v5753_v45, 5  ;;  %v1851_v45 = vld [vmem:[#allocation2 + $0x54] sm:$0xe] }
  0xeb   : > { %5421 = vmatmul.msk.bf16.gmra.mxu0 %vm1482_vm12, %v2982_v42  ;;  %v2663_v42 = vshll.u32 %v2527_v35, 16  ;;  %v2676_v60 = vor.u32 %v2675_v10, %v2671_v52 }
  0xec   : > { %v2983_v15 = vpack.c.b16 %v2954_v13, %v2953_v16  ;;  %v1935_v16 = vrot.slane %v5752_v50, 5  ;;  %v1941_v14 = vrot.slane %v1939_v47, 4 }
  0xed   : > { %5292 = vmatmul.msk.bf16.gmra.mxu1 %vm1482_vm12, %v5607_v29  ;;  %v5623_v29 = vld [vmem:[#allocation2 + $0x30] sm:$0xff]  ;;  %v2665_v51 = vrot.slane %v2663_v42, 5  ;;  %v2677_v19 = vrot.slane %v2676_v60, 4  ;;  %v2534_v60 = vld [vmem:[#allocation2 + $0x58] sm:$0xf] }
  0xee   : > { %v1936_v22 = vsel %vm6315_vm1, %v1934_v5, %v1935_v16  ;;  %v6454_v5 = vpop.f32.mrf.mxu2  ;;  %v2721_v25 = vshrl.u32 %v2534_v60, 16 }
  0xef   : > { %v2666_v59 = vor.u32 %v2665_v51, %v2662_v58  ;;  %v2020_v18 = vunpack.c.l.b16 %v1936_v22  ;;  %v1850_v58 = vld [vmem:[#allocation2 + $0x48] sm:$0xe] }
  0xf0   : > { %v5311_v56 = vrot.slane %v1850_v58, 9 }
  0xf1   : > { %v2667_v13 = vrot.slane %v2666_v59, 4  ;;  %v2046_v40 = vpack.c.b16 %v2020_v18, %v2019_v33  ;;  %v2533_v59 = vld [vmem:[#allocation2 + $0x54] sm:$0xf]  ;;  %v6461_v55 = vpop.f32.mrf.mxu3 }
  0xf2   : > { %v1940_v50 = vsel %vm6315_vm1, %v5311_v56, %v1939_v47 }
  0xf3   : > { %v2021_v31 = vunpack.c.l.b16 %v1940_v50 }
  0xf4   : > { %5405 = vmatmul.msk.bf16.gmra.mxu3 %vm1482_vm12, %v5622_v46  ;;  %v2984_v46 = vpack.c.b16 %v2956_v49, %v2955_v48  ;;  %v6448_v48 = vpop.f32.mrf.mxu0 }
  0xf9   : > { %5325 = vmatmul.msk.bf16.gmra.mxu2 %vm1482_vm12, %v2044_v20  ;;  %v2681_v20 = vrot.slane %v2679_v61, 5 }
  0xfb   : > { %5422 = vmatmul.msk.bf16.gmra.mxu0 %vm1482_vm12, %v2983_v15  ;;  %v2531_v15 = vld [vmem:[#allocation2 + $0x4c] sm:$0xf]  ;;  %v2682_v30 = vsel %vm5997_vm13, %v2677_v19, %v2681_v20  ;;  %v2711_v19 = vshll.u32 %v2533_v59, 16  ;;  %v2717_v20 = vshll.u32 %v2534_v60, 16  ;;  %v2537_v60 = vld [vmem:[#allocation2 + $0x64] sm:$0xf] }
  0xfc   : > { %v2693_v34 = vshll.u32 %v2531_v15, 16  ;;  %v2697_v35 = vshrl.u32 %v2531_v15, 16  ;;  %v2958_v39 = vunpack.c.l.b16 %v2682_v30  ;;  %v6463_v22 = vpop.f32.mrf.mxu0  ;;  %v5625_v15 = vld [vmem:[#allocation2 + $0x48] sm:$0xff] }
  0xfd   : > { %5293 = vmatmul.msk.bf16.gmra.mxu1 %vm1482_vm12, %v5608_v17  ;;  %v2672_v17 = vsel %vm5997_vm13, %v2667_v13, %v2671_v52  ;;  %v2690_v52 = vor.u32 %v2689_v41, %v2686_v26  ;;  %v2708_v13 = vshrl.u32 %v2533_v59, 16  ;;  %v2713_v18 = vrot.slane %v2711_v19, 5  ;;  %v2535_v26 = vld [vmem:[#allocation2 + $0x5c] sm:$0x1]  ;;  %v2536_v59 = vld [vmem:[#allocation2 + $0x60] sm:$0xf] }
  0xfe   : > { %v2957_v36 = vunpack.c.l.b16 %v2672_v17  ;;  %v2695_v42 = vrot.slane %v2693_v34, 5  ;;  %v2699_v43 = vrot.slane %v2697_v35, 4  ;;  %v6450_v49 = vpop.f32.mrf.mxu1  ;;  %v2719_v34 = vrot.slane %v2717_v20, 5  ;;  %v5626_v20 = vld [vmem:[#allocation2 + $0x54] sm:$0xff] }
  0xff   : > { %v2691_v61 = vrot.slane %v2690_v52, 4  ;;  %v2710_v33 = vrot.slane %v2708_v13, 4  ;;  %v2723_v35 = vrot.slane %v2721_v25, 4  ;;  %v1946_v41 = vrot.slane %v6280_v24, 5  ;;  %v5611_v52 = vld [vmem:[#allocation2 + $0x54] sm:$0xff] }
 0x100   : > { %v2985_v51 = vpack.c.b16 %v2958_v39, %v2957_v36  ;;  %v2700_v10 = vor.u32 %v2699_v43, %v2695_v42  ;;  %v2732_v50 = vshrl.u32 %v2536_v59, 16  ;;  %v2741_v13 = vshll.u32 %v2537_v60, 16 }
 0x101   : > { %v2696_v17 = vsel %vm5997_vm13, %v2691_v61, %v2695_v42  ;;  %v2714_v42 = vor.u32 %v2713_v18, %v2710_v33  ;;  %v2724_v43 = vor.u32 %v2723_v35, %v2719_v34  ;;  %v2745_v19 = vshrl.u32 %v2537_v60, 16 }
 0x102   : > { %v2959_v36 = vunpack.c.l.b16 %v2696_v17  ;;  %v2734_v18 = vrot.slane %v2732_v50, 4  ;;  %v2743_v35 = vrot.slane %v2741_v13, 5 }
 0x103   : > { %v2725_v24 = vrot.slane %v2724_v43, 4  ;;  %v1852_v43 = vld [vmem:[#allocation2 + $0x60] sm:$0xe] }
 0x104   : > { %5406 = vmatmul.msk.bf16.gmra.mxu3 %vm1482_vm12, %v5623_v29  ;;  %v2532_v29 = vld [vmem:[#allocation2 + $0x50] sm:$0x1]  ;;  %v6479_v56 = vpop.f32.mrf.mxu0 }
 0x109   : > { %5326 = vmatmul.msk.bf16.gmra.mxu2 %vm1482_vm12, %v2045_v11  ;;  %v2703_v11 = vshll.u32 %v2532_v29, 16  ;;  %v2727_v29 = vshll.u32 %v2535_v26, 16 }
 0x10b   : > { %5423 = vmatmul.msk.bf16.gmra.mxu0 %vm1482_vm12, %v2984_v46  ;;  %v1942_v46 = vrot.slane %v5754_v4, 5  ;;  %v2705_v3 = vrot.slane %v2703_v11, 5  ;;  %v1948_v11 = vrot.slane %v1946_v41, 4  ;;  %v2729_v4 = vrot.slane %v2727_v29, 5 }
 0x10d   : > { %5294 = vmatmul.msk.bf16.gmra.mxu1 %vm1482_vm12, %v5609_v1  ;;  %v2701_v1 = vrot.slane %v2700_v10, 4  ;;  %v1943_v16 = vsel %vm6315_vm1, %v1941_v14, %v1942_v46  ;;  %v5312_v10 = vrot.slane %v1851_v45, 9  ;;  %v2715_v14 = vrot.slane %v2714_v42, 4 }
 0x10e   : > { %v2022_v7 = vunpack.c.l.b16 %v1943_v16  ;;  %v2735_v16 = vshll.u32 %v2536_v59, 16 }
 0x10f   : > { %v2706_v30 = vsel %vm5997_vm13, %v2701_v1, %v2705_v3  ;;  %v1947_v61 = vsel %vm6315_vm1, %v5312_v10, %v1946_v41  ;;  %v2730_v3 = vsel %vm5997_vm13, %v2725_v24, %v2729_v4  ;;  %v5755_v41 = vld [vmem:[#allocation2 + $0x64] sm:$0xf]  ;;  %v5756_v10 = vld [vmem:[#allocation2 + $0x68] sm:$0x1] }
 0x110   : > { %v2960_v39 = vunpack.c.l.b16 %v2706_v30  ;;  %v6473_v58 = vpop.f32.mrf.mxu2  ;;  %v2023_v25 = vunpack.c.l.b16 %v1947_v61  ;;  %v1953_v42 = vrot.slane %v5755_v41, 5 }
 0x112   : > { %v2986_v47 = vpack.c.b16 %v2960_v39, %v2959_v36  ;;  %v2747_v36 = vrot.slane %v2745_v19, 4  ;;  %v1955_v24 = vrot.slane %v1953_v42, 4  ;;  %v2540_v19 = vld [vmem:[#allocation2 + $0x70] sm:$0xf] }
 0x114   : > { %5407 = vmatmul.msk.bf16.gmra.mxu3 %vm1482_vm12, %v5624_v32  ;;  %v6469_v32 = vpop.f32.mrf.mxu1 }
 0x118   : > { %v6493_v17 = vpop.f32.mrf.mxu2 }
 0x119   : > { %5327 = vmatmul.msk.bf16.gmra.mxu2 %vm1482_vm12, %v2046_v40  ;;  %v2047_v40 = vpack.c.b16 %v2022_v7, %v2021_v31  ;;  %v2962_v31 = vunpack.c.l.b16 %v2730_v3  ;;  %v2539_v3 = vld [vmem:[#allocation2 + $0x6c] sm:$0xf] }
 0x11b   : > { %5424 = vmatmul.msk.bf16.gmra.mxu0 %vm1482_vm12, %v2985_v51  ;;  %v6476_v51 = vpop.f32.mrf.mxu3 }
 0x11d   : > { %5295 = vmatmul.msk.bf16.gmra.mxu1 %vm1482_vm12, %v5610_v53  ;;  %v1949_v53 = vrot.slane %v6282_v28, 5  ;;  %v2720_v28 = vsel %vm5997_vm13, %v2715_v14, %v2719_v34  ;;  %v2737_v34 = vrot.slane %v2735_v16, 5  ;;  %v6499_v39 = vpop.f32.mrf.mxu0  ;;  %v5313_v14 = vrot.slane %v1852_v43, 9 }
 0x11e   : > { %v2961_v30 = vunpack.c.l.b16 %v2720_v28 }
 0x11f   : > { %v1950_v1 = vsel %vm6315_vm1, %v1948_v11, %v1949_v53  ;;  %v2738_v45 = vor.u32 %v2737_v34, %v2734_v18  ;;  %v1956_v11 = vrot.slane %v5756_v10, 5  ;;  %v5612_v53 = vld [vmem:[#allocation2 + $0x60] sm:$0xff]  ;;  %v1954_v16 = vsel %vm6315_vm1, %v5313_v14, %v1953_v42  ;;  %v2541_v10 = vld [vmem:[#allocation2 + $0x74] sm:$0x1]  ;;  %v1853_v14 = vld [vmem:[#allocation2 + $0x6c] sm:$0xe] }
 0x120   : > { %v2987_v29 = vpack.c.b16 %v2962_v31, %v2961_v30  ;;  %v2759_v30 = vshll.u32 %v2539_v3, 16  ;;  %v5627_v31 = vld [vmem:[#allocation2 + $0x60] sm:$0xff]  ;;  %v2025_v18 = vunpack.c.l.b16 %v1954_v16  ;;  %v5758_v16 = vld [vmem:[#allocation2 + $0x74] sm:$0x1] }
 0x121   : > { %v2739_v59 = vrot.slane %v2738_v45, 4  ;;  %v1957_v13 = vsel %vm6315_vm1, %v1955_v24, %v1956_v11  ;;  %v5757_v11 = vld [vmem:[#allocation2 + $0x70] sm:$0xf] }
 0x122   : > { %v2026_v34 = vunpack.c.l.b16 %v1957_v13  ;;  %v1963_v13 = vrot.slane %v5758_v16, 5 }
 0x123   : > { %v6497_v33 = vpop.f32.mrf.mxu3 }
 0x124   : > { %5408 = vmatmul.msk.bf16.gmra.mxu3 %vm1482_vm12, %v5625_v15  ;;  %v2024_v15 = vunpack.c.l.b16 %v1950_v1  ;;  %v2049_v45 = vpack.c.b16 %v2026_v34, %v2025_v18  ;;  %v2542_v18 = vld [vmem:[#allocation2 + $0x78] sm:$0xf] }
 0x126   : > { %v2048_v26 = vpack.c.b16 %v2024_v15, %v2023_v25  ;;  %v2744_v25 = vsel %vm5997_vm13, %v2739_v59, %v2743_v35  ;;  %v2756_v15 = vshrl.u32 %v2539_v3, 16  ;;  %v2775_v3 = vshll.u32 %v2541_v10, 16 }
 0x127   : > { %v2963_v41 = vunpack.c.l.b16 %v2744_v25  ;;  %v5314_v25 = vrot.slane %v1853_v14, 9 }
 0x129   : > { %5328 = vmatmul.msk.bf16.gmra.mxu2 %vm1482_vm12, %v2047_v40  ;;  %v2538_v40 = vld [vmem:[#allocation2 + $0x68] sm:$0x1] }
 0x12a   : > { %v6481_v46 = vpop.f32.mrf.mxu1 }
 0x12b   : > { %5425 = vmatmul.msk.bf16.gmra.mxu0 %vm1482_vm12, %v2986_v47  ;;  %v2748_v47 = vor.u32 %v2747_v36, %v2743_v35  ;;  %v6507_v50 = vpop.f32.mrf.mxu3  ;;  %v2765_v36 = vshll.u32 %v2540_v19, 16  ;;  %v2761_v35 = vrot.slane %v2759_v30, 5 }
 0x12d   : > { %5296 = vmatmul.msk.bf16.gmra.mxu1 %vm1482_vm12, %v5611_v52  ;;  %v2751_v52 = vshll.u32 %v2538_v40, 16  ;;  %v2749_v60 = vrot.slane %v2748_v47, 4  ;;  %v2767_v47 = vrot.slane %v2765_v36, 5 }
 0x12f   : > { %v2753_v61 = vrot.slane %v2751_v52, 5 }
 0x132   : > { %v6495_v7 = vpop.f32.mrf.mxu1 }
 0x134   : > { %5409 = vmatmul.msk.bf16.gmra.mxu3 %vm1482_vm12, %v5626_v20  ;;  %v6514_v20 = vpop.f32.mrf.mxu0 }
 0x139   : > { %5329 = vmatmul.msk.bf16.gmra.mxu2 %vm1482_vm12, %v2048_v26  ;;  %v2769_v26 = vshrl.u32 %v2540_v19, 16  ;;  %v5613_v19 = vld [vmem:[#allocation2 + $0x6c] sm:$0xff] }
 0x13a   : > { %v1764_v4 = vpop.f32.mrf.mxu1 }
 0x13b   : > { %5426 = vmatmul.msk.bf16.gmra.mxu0 %vm1482_vm12, %v2987_v29  ;;  %v1765_v28 = vadd.f32 %v1764_v4, %v6430_v23  ;;  %v2754_v23 = vsel %vm5997_vm13, %v2749_v60, %v2753_v61  ;;  %v2758_v29 = vrot.slane %v2756_v15, 4  ;;  %v2771_v52 = vrot.slane %v2769_v26, 4 }
 0x13c   : > { %v6504_v1 = vpop.f32.mrf.mxu2  ;;  %v2964_v42 = vunpack.c.l.b16 %v2754_v23  ;;  %v2777_v26 = vrot.slane %v2775_v3, 5 }
 0x13d   : > { %5297 = vmatmul.msk.bf16.gmra.mxu1 %vm1482_vm12, %v5612_v53  ;;  %v1960_v53 = vrot.slane %v5757_v11, 5  ;;  %v2762_v60 = vor.u32 %v2761_v35, %v2758_v29  ;;  %v2772_v61 = vor.u32 %v2771_v52, %v2767_v47  ;;  %v2780_v35 = vshrl.u32 %v2542_v18, 16 }
 0x13e   : > { %v2988_v24 = vpack.c.b16 %v2964_v42, %v2963_v41  ;;  %v2543_v42 = vld [vmem:[#allocation2 + $0x7c] sm:$0xf]  ;;  %v2783_v52 = vshll.u32 %v2542_v18, 16 }
 0x13f   : > { %v1962_v23 = vrot.slane %v1960_v53, 4  ;;  %v2763_v34 = vrot.slane %v2762_v60, 4  ;;  %v2773_v36 = vrot.slane %v2772_v61, 4  ;;  %v1961_v29 = vsel %vm6315_vm1, %v5314_v25, %v1960_v53 }
 0x140   : > { %v2789_v11 = vshll.u32 %v2543_v42, 16  ;;  %v2027_v61 = vunpack.c.l.b16 %v1961_v29  ;;  %v2782_v16 = vrot.slane %v2780_v35, 4 }
 0x141   : > { %v2778_v60 = vsel %vm5997_vm13, %v2773_v36, %v2777_v26  ;;  %v1854_v26 = vld [vmem:[#allocation2 + $0x78] sm:$0xe] }
 0x142   : > { %v1766_v40 = vpop.f32.mrf.mxu1 }
 0x143   : > { %v1767_v3 = vadd.f32 %v1766_v40, %v6448_v48 }
 0x144   : > { %v6520_v43 = vpop.f32.mrf.mxu2  ;;  %5410 = vmatmul.msk.bf16.gmra.mxu3 %vm1482_vm12, %v5627_v31 }
 0x147   : > { %v6523_v4 = vpop.f32.mrf.mxu3 }
 0x148   : > { %7459 = vst [vmem:[#allocation3_spill] sm:$0xff] %v6523_v4  ;;  %v6525_v59 = vpop.f32.mrf.mxu0 }
 0x149   : > { %5330 = vmatmul.msk.bf16.gmra.mxu2 %vm1482_vm12, %v2049_v45  ;;  %v1964_v45 = vsel %vm6315_vm1, %v1962_v23, %v1963_v13  ;;  %v2785_v13 = vrot.slane %v2783_v52, 5  ;;  %v2966_v23 = vunpack.c.l.b16 %v2778_v60  ;;  %v5315_v60 = vrot.slane %v1854_v26, 9 }
 0x14a   : > { %v1769_v15 = vpop.f32.mrf.mxu1  ;;  %v2028_v53 = vunpack.c.l.b16 %v1964_v45 }
 0x14b   : > { %5427 = vmatmul.msk.bf16.gmra.mxu0 %vm1482_vm12, %v2988_v24  ;;  %v1770_v31 = vadd.f32 %v1769_v15, %v6463_v22  ;;  %v2793_v22 = vshrl.u32 %v2543_v42, 16  ;;  %v5628_v24 = vld [vmem:[#allocation2 + $0x6c] sm:$0xff]  ;;  %v2786_v36 = vor.u32 %v2785_v13, %v2782_v16 }
 0x14c   : > { %v2117_v30 = vpop.f32.mrf.mxu2 }
 0x14d   : > { %v2197_v41 = vadd.f32 %v2117_v30, %v1765_v28  ;;  %5298 = vmatmul.msk.bf16.gmra.mxu1 %vm1482_vm12, %v5613_v19  ;;  %v2768_v28 = vsel %vm5997_vm13, %v2763_v34, %v2767_v47  ;;  %v2791_v30 = vrot.slane %v2789_v11, 5  ;;  %v2795_v18 = vrot.slane %v2793_v22, 4  ;;  %v2544_v47 = vld [vmem:[#allocation2 + $0x80] sm:$0x1]  ;;  %v5759_v34 = vld [vmem:[#allocation2 + $0x7c] sm:$0xf] }
 0x14e   : > { %v2965_v25 = vunpack.c.l.b16 %v2768_v28  ;;  %v1967_v4 = vrot.slane %v5759_v34, 5  ;;  %v2799_v40 = vshll.u32 %v2544_v47, 16  ;;  %v5760_v28 = vld [vmem:[#allocation2 + $0x80] sm:$0x1]  ;;  %v5614_v22 = vld [vmem:[#allocation2 + $0x78] sm:$0xff] }
 0x14f   : > { %v6535_v10 = vpop.f32.mrf.mxu3  ;;  %v2796_v48 = vor.u32 %v2795_v18, %v2791_v30  ;;  %v1970_v11 = vrot.slane %v5760_v28, 5  ;;  %v2546_v18 = vld [vmem:[#allocation2 + $0x88] sm:$0xf] }
 0x150   : > { %7460 = vst [vmem:[#allocation4_spill] sm:$0xff] %v6535_v10  ;;  %v6537_v14 = vpop.f32.mrf.mxu0  ;;  %v2050_v10 = vpack.c.b16 %v2028_v53, %v2027_v61  ;;  %v2989_v29 = vpack.c.b16 %v2966_v23, %v2965_v25  ;;  %v2801_v13 = vrot.slane %v2799_v40, 5 }
 0x151   : > { %v2797_v16 = vrot.slane %v2796_v48, 4 }
 0x152   : > { %v1771_v19 = vpop.f32.mrf.mxu1 }
 0x154   : > { %v2119_v15 = vpop.f32.mrf.mxu2  ;;  %5411 = vmatmul.msk.bf16.gmra.mxu3 %vm1482_vm12, %v5628_v24  ;;  %v1969_v24 = vrot.slane %v1967_v4, 4 }
 0x155   : > { %v2198_v42 = vadd.f32 %v2119_v15, %v1767_v3  ;;  %v2787_v3 = vrot.slane %v2786_v36, 4  ;;  %v2545_v15 = vld [vmem:[#allocation2 + $0x84] sm:$0xf] }
 0x156   : > { %v1971_v47 = vsel %vm6315_vm1, %v1969_v24, %v1970_v11  ;;  %v2804_v36 = vshrl.u32 %v2545_v15, 16  ;;  %v2807_v26 = vshll.u32 %v2545_v15, 16  ;;  %v1772_v11 = vadd.f32 %v1771_v19, %v6479_v56 }
 0x157   : > { %v2403_v45 = vpop.f32.mrf.mxu3  ;;  %v2792_v34 = vsel %vm5997_vm13, %v2787_v3, %v2791_v30  ;;  %v2030_v28 = vunpack.c.l.b16 %v1971_v47 }
 0x158   : > { %v3057_v35 = vpop.f32.mrf.mxu0  ;;  %v2483_v52 = vadd.f32 %v2403_v45, %v2197_v41  ;;  %v2813_v45 = vshll.u32 %v2546_v18, 16  ;;  %v2809_v24 = vrot.slane %v2807_v26, 5 }
 0x159   : > { %5331 = vmatmul.msk.bf16.gmra.mxu2 %vm1482_vm12, %v2050_v10  ;;  %v1968_v10 = vsel %vm6315_vm1, %v5315_v60, %v1967_v4  ;;  %v2967_v4 = vunpack.c.l.b16 %v2792_v34  ;;  %v2806_v60 = vrot.slane %v2804_v36, 4  ;;  %v1855_v34 = vld [vmem:[#allocation2 + $0x84] sm:$0xe] }
 0x15a   : > { %v1774_v61 = vpop.f32.mrf.mxu1  ;;  %v6546_v53 = vadd.f32 %v3057_v35, %v2483_v52  ;;  %v5629_v35 = vld [vmem:[#allocation2 + $0x78] sm:$0xff]  ;;  %v2029_v52 = vunpack.c.l.b16 %v1968_v10  ;;  %v5761_v10 = vld [vmem:[#allocation2 + $0x88] sm:$0xf] }
 0x15b   : > { %5428 = vmatmul.msk.bf16.gmra.mxu0 %vm1482_vm12, %v2989_v29  ;;  %v1775_v23 = vadd.f32 %v1774_v61, %v6499_v39  ;;  %v2802_v39 = vsel %vm5997_vm13, %v2797_v16, %v2801_v13  ;;  %v2815_v61 = vrot.slane %v2813_v45, 5  ;;  %v1974_v47 = vrot.slane %v5761_v10, 5 }
 0x15c   : > { %v2122_v25 = vpop.f32.mrf.mxu2  ;;  %v2051_v13 = vpack.c.b16 %v2030_v28, %v2029_v52  ;;  %v2810_v19 = vor.u32 %v2809_v24, %v2806_v60 }
 0x15d   : > { %v2199_v41 = vadd.f32 %v2122_v25, %v1770_v31  ;;  %5299 = vmatmul.msk.bf16.gmra.mxu1 %vm1482_vm12, %v5614_v22  ;;  %v2817_v31 = vshrl.u32 %v2546_v18, 16  ;;  %v2968_v22 = vunpack.c.l.b16 %v2802_v39  ;;  %v2547_v18 = vld [vmem:[#allocation2 + $0x8c] sm:$0x1] }
 0x15e   : > { %v2823_v26 = vshll.u32 %v2547_v18, 16  ;;  %v2811_v28 = vrot.slane %v2810_v19, 4 }
 0x15f   : > { %v2405_v29 = vpop.f32.mrf.mxu3  ;;  %v2819_v25 = vrot.slane %v2817_v31, 4 }
 0x160   : > { %v3059_v48 = vpop.f32.mrf.mxu0  ;;  %v2484_v40 = vadd.f32 %v2405_v29, %v2198_v42  ;;  %v2990_v29 = vpack.c.b16 %v2968_v22, %v2967_v4  ;;  %v2825_v22 = vrot.slane %v2823_v26, 5  ;;  %v5630_v26 = vld [vmem:[#allocation2 + $0x84] sm:$0xff] }
 0x161   : > { %v2820_v36 = vor.u32 %v2819_v25, %v2815_v61 }
 0x162   : > { %v1776_v30 = vpop.f32.mrf.mxu1  ;;  %v6561_v16 = vadd.f32 %v3059_v48, %v2484_v40  ;;  %v5615_v48 = vld [vmem:[#allocation2 + $0x84] sm:$0xff]  ;;  %v5316_v40 = vrot.slane %v1855_v34, 9 }
 0x163   : > { %v1777_v15 = vadd.f32 %v1776_v30, %v6514_v20  ;;  %v5762_v20 = vld [vmem:[#allocation2 + $0x8c] sm:$0x1]  ;;  %v2821_v4 = vrot.slane %v2820_v36, 4  ;;  %v2548_v30 = vld [vmem:[#allocation2 + $0x90] sm:$0xf] }
 0x164   : > { %v2124_v3 = vpop.f32.mrf.mxu2  ;;  %5412 = vmatmul.msk.bf16.gmra.mxu3 %vm1482_vm12, %v5629_v35  ;;  %v1977_v31 = vrot.slane %v5762_v20, 5  ;;  %v1976_v35 = vrot.slane %v1974_v47, 4  ;;  %v1975_v25 = vsel %vm6315_vm1, %v5316_v40, %v1974_v47  ;;  %v2828_v18 = vshrl.u32 %v2548_v30, 16 }
 0x165   : > { %v2200_v42 = vadd.f32 %v2124_v3, %v1772_v11  ;;  %v2549_v3 = vld [vmem:[#allocation2 + $0x94] sm:$0xf]  ;;  %v2831_v10 = vshll.u32 %v2548_v30, 16 }
 0x166   : > { %v5763_v30 = vld [vmem:[#allocation2 + $0x94] sm:$0xf] }
 0x167   : > { %v2408_v56 = vpop.f32.mrf.mxu3 }
 0x168   : > { %v3062_v39 = vpop.f32.mrf.mxu0  ;;  %v2485_v45 = vadd.f32 %v2408_v56, %v2199_v41  ;;  %v2837_v56 = vshll.u32 %v2549_v3, 16 }
 0x169   : > { %5332 = vmatmul.msk.bf16.gmra.mxu2 %vm1482_vm12, %v2051_v13  ;;  %v1978_v13 = vsel %vm6315_vm1, %v1976_v35, %v1977_v31  ;;  %v2833_v31 = vrot.slane %v2831_v10, 5 }
 0x16a   : > { %v1779_v11 = vpop.f32.mrf.mxu1  ;;  %v6565_v52 = vadd.f32 %v3062_v39, %v2485_v45  ;;  %v2031_v39 = vunpack.c.l.b16 %v1975_v25  ;;  %v2032_v45 = vunpack.c.l.b16 %v1978_v13  ;;  %v1856_v25 = vld [vmem:[#allocation2 + $0x90] sm:$0xe] }
 0x16b   : > { %5429 = vmatmul.msk.bf16.gmra.mxu0 %vm1482_vm12, %v2990_v29  ;;  %v1780_v24 = vadd.f32 %v1779_v11, %v6525_v59  ;;  %v2816_v29 = vsel %vm5997_vm13, %v2811_v28, %v2815_v61  ;;  %v2826_v59 = vsel %vm5997_vm13, %v2821_v4, %v2825_v22  ;;  %v2839_v11 = vrot.slane %v2837_v56, 5 }
 0x16c   : > { %7461 = vst [vmem:[#allocation5_spill] sm:$0xff] %v6565_v52  ;;  %v2127_v60 = vpop.f32.mrf.mxu2  ;;  %v2969_v47 = vunpack.c.l.b16 %v2816_v29  ;;  %v2970_v20 = vunpack.c.l.b16 %v2826_v59  ;;  %v2052_v22 = vpack.c.b16 %v2032_v45, %v2031_v39  ;;  %v2552_v45 = vld [vmem:[#allocation2 + $0xa0] sm:$0xf] }
 0x16d   : > { %v2201_v41 = vadd.f32 %v2127_v60, %v1775_v23  ;;  %5300 = vmatmul.msk.bf16.gmra.mxu1 %vm1482_vm12, %v5615_v48  ;;  %v2841_v23 = vshrl.u32 %v2549_v3, 16  ;;  %v2830_v48 = vrot.slane %v2828_v18, 4  ;;  %v1981_v3 = vrot.slane %v5763_v30, 5 }
 0x16e   : > { %v2991_v13 = vpack.c.b16 %v2970_v20, %v2969_v47  ;;  %v2861_v30 = vshll.u32 %v2552_v45, 16 }
 0x16f   : > { %v2410_v34 = vpop.f32.mrf.mxu3  ;;  %v2843_v60 = vrot.slane %v2841_v23, 4  ;;  %v2834_v18 = vor.u32 %v2833_v31, %v2830_v48  ;;  %v5764_v23 = vld [vmem:[#allocation2 + $0x98] sm:$0x1] }
 0x170   : > { %v3064_v19 = vpop.f32.mrf.mxu0  ;;  %v2486_v36 = vadd.f32 %v2410_v34, %v2200_v42  ;;  %v2550_v42 = vld [vmem:[#allocation2 + $0x98] sm:$0x1] }
 0x171   : > { %v2844_v10 = vor.u32 %v2843_v60, %v2839_v11  ;;  %v2847_v29 = vshll.u32 %v2550_v42, 16  ;;  %v2835_v47 = vrot.slane %v2834_v18, 4 }
 0x172   : > { %v1781_v40 = vpop.f32.mrf.mxu1  ;;  %v6579_v28 = vadd.f32 %v3064_v19, %v2486_v36  ;;  %v1984_v19 = vrot.slane %v5764_v23, 5  ;;  %v5616_v36 = vld [vmem:[#allocation2 + $0x90] sm:$0xff]  ;;  %v6595_v23 = vrot.slane %v2861_v30, 5  ;;  %v1857_v30 = vld [vmem:[#allocation2 + $0x9c] sm:$0xe] }
 0x173   : > { %v1782_v61 = vadd.f32 %v1781_v40, %v6537_v14  ;;  %v2551_v14 = vld [vmem:[#allocation2 + $0x9c] sm:$0xf]  ;;  %v2845_v20 = vrot.slane %v2844_v10, 4  ;;  %v2849_v48 = vrot.slane %v2847_v29, 5 }
 0x174   : > { %v2129_v35 = vpop.f32.mrf.mxu2  ;;  %7462 = vst [vmem:[#allocation6_spill] sm:$0xff] %v6579_v28  ;;  %5413 = vmatmul.msk.bf16.gmra.mxu3 %vm1482_vm12, %v5630_v26  ;;  %v5317_v26 = vrot.slane %v1856_v25, 9  ;;  %v2855_v60 = vshll.u32 %v2551_v14, 16  ;;  %v2865_v25 = vshrl.u32 %v2552_v45, 16 }
 0x175   : > { %v2202_v4 = vadd.f32 %v2129_v35, %v1777_v15  ;;  %v1983_v15 = vrot.slane %v1981_v3, 4  ;;  %v2852_v35 = vshrl.u32 %v2551_v14, 16  ;;  %v2850_v18 = vsel %vm5997_vm13, %v2845_v20, %v2849_v48 }
 0x176   : > { %v2972_v45 = vunpack.c.l.b16 %v2850_v18 }
 0x177   : > { %v2413_v34 = vpop.f32.mrf.mxu3  ;;  %v1985_v42 = vsel %vm6315_vm1, %v1983_v15, %v1984_v19  ;;  %v2854_v10 = vrot.slane %v2852_v35, 4  ;;  %v2867_v19 = vrot.slane %v2865_v25, 4 }
 0x178   : > { %v3067_v59 = vpop.f32.mrf.mxu0  ;;  %v2487_v56 = vadd.f32 %v2413_v34, %v2201_v41  ;;  %v2034_v14 = vunpack.c.l.b16 %v1985_v42 }
 0x179   : > { %5333 = vmatmul.msk.bf16.gmra.mxu2 %vm1482_vm12, %v2052_v22  ;;  %v1982_v22 = vsel %vm6315_vm1, %v5317_v26, %v1981_v3  ;;  %v2857_v3 = vrot.slane %v2855_v60, 5  ;;  %v2868_v35 = vor.u32 %v2867_v19, %v6595_v23  ;;  %v5617_v19 = vld [vmem:[#allocation2 + $0x9c] sm:$0xff] }
 0x17a   : > { %v1784_v39 = vpop.f32.mrf.mxu1  ;;  %v6583_v40 = vadd.f32 %v3067_v59, %v2487_v56  ;;  %v5631_v59 = vld [vmem:[#allocation2 + $0x90] sm:$0xff]  ;;  %v2033_v56 = vunpack.c.l.b16 %v1982_v22  ;;  %v5765_v22 = vld [vmem:[#allocation2 + $0xa0] sm:$0xf] }
 0x17b   : > { %5430 = vmatmul.msk.bf16.gmra.mxu0 %vm1482_vm12, %v2991_v13  ;;  %v2840_v13 = vsel %vm5997_vm13, %v2835_v47, %v2839_v11  ;;  %v2858_v48 = vor.u32 %v2857_v3, %v2854_v10  ;;  %v1988_v42 = vrot.slane %v5765_v22, 5  ;;  %v5767_v10 = vld [vmem:[%s7442_s1] ss:$0 sm:$0xff]  ;;  %v2555_v22 = vld [vmem:[#allocation2 + $0xac] sm:$0xf] }
 0x17c   : > { %7463 = vst [vmem:[#allocation7_spill] sm:$0xff] %v6583_v40  ;;  %v2132_v31 = vpop.f32.mrf.mxu2  ;;  %v2971_v15 = vunpack.c.l.b16 %v2840_v13  ;;  %v5766_v40 = vld [vmem:[#allocation2 + $0xa4] sm:$0x1] }
 0x17d   : > { %v2203_v41 = vadd.f32 %v2132_v31, %v1780_v24  ;;  %5301 = vmatmul.msk.bf16.gmra.mxu1 %vm1482_vm12, %v5616_v36  ;;  %v2553_v36 = vld [vmem:[#allocation2 + $0xa4] sm:$0x1]  ;;  %v5730_v31 = vld [vmem:[%s5876_s25 + $0x78] sm:$0xff]   ;;  %v1991_v13 = vrot.slane %v5766_v40, 5  ;;  %v1785_v40 = vadd.f32 %v1784_v39, %v6403_v12 }
 0x17e   : > { %v2871_v60 = vshll.u32 %v2553_v36, 16  ;;  %v5714_v25 = vunpack.c.l.bf16 %v5730_v31  ;;  %v2992_v18 = vpack.c.b16 %v2972_v45, %v2971_v15  ;;  %v5318_v36 = vrot.slane %v1857_v30, 9 }
 0x17f   : > { %v2415_v34 = vpop.f32.mrf.mxu3 }
 0x180   : > { %v3069_v24 = vpop.f32.mrf.mxu0  ;;  %v2488_v29 = vadd.f32 %v2415_v34, %v2202_v4  ;;  %v2053_v4 = vpack.c.b16 %v2034_v14, %v2033_v56  ;;  %v5715_v34 = vunpack.c.h.bf16 %v5730_v31  ;;  %v2869_v14 = vrot.slane %v2868_v35, 4  ;;  %v2554_v31 = vld [vmem:[#allocation2 + $0xa8] sm:$0xf]  ;;  %v465_v35 = vld [vmem:[#allocation2 + $0xc0] sm:$0x1] }
 0x181   : > { %v2873_v3 = vrot.slane %v2871_v60, 5  ;;  %v466_v12 = vsel %vm5860_vm3, 0, %v465_v35 }
 0x182   : > { %v6597_v26 = vpop.f32.mrf.mxu1  ;;  %v6599_v47 = vadd.f32 %v3069_v24, %v2488_v29  ;;  %v336_v56 = vmul.f32 %v5767_v10, %v5715_v34  ;;  %467 = vst [vmem:[#allocation2 + $0xc0] sm:$0x1] %v466_v12 }
 0x184   : > { %v2134_v11 = vpop.f32.mrf.mxu2  ;;  %7464 = vst [vmem:[#allocation8_spill] sm:$0xff] %v6599_v47  ;;  %5414 = vmatmul.msk.bf16.gmra.mxu3 %vm1482_vm12, %v5631_v59  ;;  %v335_v59 = vmul.f32 %v5767_v10, %v5714_v25  ;;  %v1989_v25 = vsel %vm6315_vm1, %v5318_v36, %v1988_v42 }
 0x185   : > { %v2204_v20 = vadd.f32 %v2134_v11, %v1782_v61  ;;  %v2859_v61 = vrot.slane %v2858_v48, 4  ;;  %v1990_v11 = vrot.slane %v1988_v42, 4 }
 0x187   : > { %v2418_v28 = vpop.f32.mrf.mxu3  ;;  %v2864_v39 = vsel %vm5997_vm13, %v2859_v61, %v6595_v23  ;;  %v1992_v34 = vsel %vm6315_vm1, %v1990_v11, %v1991_v13  ;;  %v1787_v13 = vadd.f32 %v6597_v26, %v6408_v38 }
 0x188   : > { %v3072_v24 = vpop.f32.mrf.mxu0  ;;  %v2489_v29 = vadd.f32 %v2418_v28, %v2203_v41  ;;  %v5768_v28 = vld [vmem:[%s7443_s2] ss:$0 sm:$0xff]  ;;  %v2973_v42 = vunpack.c.l.b16 %v2864_v39 }
 0x189   : > { %5334 = vmatmul.msk.bf16.gmra.mxu2 %vm1482_vm12, %v2053_v4  ;;  %v371_v41 = vadd.f32 %v5768_v28, %v335_v59  ;;  %v372_v45 = vadd.f32 %v5768_v28, %v336_v56  ;;  %v2885_v56 = vshll.u32 %v2555_v22, 16  ;;  %v989_v52 = vld [vmem:[#allocation2 + $0xc0] sm:$0xf] }
 0x18a   : > { %v6609_v15 = vpop.f32.mrf.mxu1  ;;  %v6614_v4 = vadd.f32 %v3072_v24, %v2489_v29  ;;  %v2876_v24 = vshrl.u32 %v2554_v31, 16  ;;  %v2879_v29 = vshll.u32 %v2554_v31, 16 }
 0x18b   : > { %5431 = vmatmul.msk.bf16.gmra.mxu0 %vm1482_vm12, %v2992_v18  ;;  %v403_v30 = vmax.f32 %v371_v41, 0.0  ;;  %v2874_v18 = vsel %vm5997_vm13, %v2869_v14, %v2873_v3  ;;  %v404_v10 = vmax.f32 %v372_v45, 0.0  ;;  %v2035_v41 = vunpack.c.l.b16 %v1989_v25  ;;  %v2556_v25 = vld [vmem:[#allocation2 + $0xb0] sm:$0x1] }
 0x18c   : > { %7465 = vst [vmem:[#allocation9_spill] sm:$0xff] %v6614_v4  ;;  %v2137_v48 = vpop.f32.mrf.mxu2  ;;  %v2974_v36 = vunpack.c.l.b16 %v2874_v18  ;;  %v2878_v11 = vrot.slane %v2876_v24, 4  ;;  %v2881_v35 = vrot.slane %v2879_v29, 5  ;;  %v6633_v31 = vrot.slane %v2885_v56, 5  ;;  %v1858_v18 = vld [vmem:[#allocation2 + $0xa8] sm:$0xe] }
 0x18d   : > { %v2205_v60 = vadd.f32 %v2137_v48, %v1785_v40  ;;  %5302 = vmatmul.msk.bf16.gmra.mxu1 %vm1482_vm12, %v5617_v19  ;;  %v2889_v40 = vshrl.u32 %v2555_v22, 16  ;;  %v557_v28 = vpack.c.bf16 %v403_v30, %v403_v30  ;;  %v5632_v19 = vld [vmem:[#allocation2 + $0x9c] sm:$0xff]  ;;  %v2036_v48 = vunpack.c.l.b16 %v1992_v34  ;;  %v521_v34 = vld [vmem:[#allocation2 + $0xc8] sm:$0x1] }
 0x18e   : > { %v558_v3 = vpack.c.bf16 %v404_v10, %v404_v10  ;;  %v2993_v26 = vpack.c.b16 %v2974_v36, %v2973_v42  ;;  %v2882_v24 = vor.u32 %v2881_v35, %v2878_v11  ;;  %v2895_v47 = vshll.u32 %v2556_v25, 16  ;;  %v5618_v36 = vld [vmem:[#allocation2 + $0xa8] sm:$0xff]  ;;  %v2557_v35 = vld [vmem:[#allocation2 + $0xb4] sm:$0xf] }
 0x18f   : > { %v2420_v59 = vpop.f32.mrf.mxu3  ;;  %v2891_v22 = vrot.slane %v2889_v40, 4  ;;  %v817_v30 = vshrl.u32 %v557_v28, 16  ;;  %v2054_v12 = vpack.c.b16 %v2036_v48, %v2035_v41  ;;  %v820_v39 = vshll.u32 %v557_v28, 16  ;;  %v5770_v41 = vld [vmem:[#allocation2 + $0xb0] sm:$0x1] }
 0x190   : > { %v3074_v23 = vpop.f32.mrf.mxu0  ;;  %v2490_v61 = vadd.f32 %v2420_v59, %v2204_v20  ;;  %v5769_v59 = vld [vmem:[#allocation2 + $0xac] sm:$0xf]  ;;  %v825_v4 = vshrl.u32 %v558_v3, 16  ;;  %v828_v40 = vshll.u32 %v558_v3, 16  ;;  %v1998_v48 = vrot.slane %v5770_v41, 5 }
 0x191   : > { %v1995_v38 = vrot.slane %v5769_v59, 5  ;;  %v819_v29 = vrot.slane %v817_v30, 7  ;;  %v2892_v56 = vor.u32 %v2891_v22, %v6633_v31  ;;  %v1790_v3 = vadd.f32 %v6609_v15, %v6422_v54 }
 0x192   : > { %v6631_v14 = vpop.f32.mrf.mxu1  ;;  %v827_v22 = vrot.slane %v825_v4, 7  ;;  %v6640_v25 = vadd.f32 %v3074_v23, %v2490_v61  ;;  %v2900_v61 = vshrl.u32 %v2557_v35, 16 }
 0x193   : > { %v822_v42 = vor.u32 %v820_v39, %v819_v29  ;;  %v1997_v11 = vrot.slane %v1995_v38, 4  ;;  %v823_v30 = vrot.slane %v819_v29, 4  ;;  %v2893_v39 = vrot.slane %v2892_v56, 4  ;;  %v2558_v29 = vld [vmem:[#allocation2 + $0xb8] sm:$0xf] }
 0x194   : > { %v2139_v45 = vpop.f32.mrf.mxu2  ;;  %5415 = vmatmul.msk.bf16.gmra.mxu3 %vm1482_vm12, %v5632_v19  ;;  %v522_v19 = vsel %vm5869_vm6, 0, %v521_v34  ;;  %v2883_v34 = vrot.slane %v2882_v24, 4  ;;  %v830_v4 = vor.u32 %v828_v40, %v827_v22 }
 0x195   : > { %v2206_v20 = vadd.f32 %v2139_v45, %v1787_v13  ;;  %v5319_v45 = vrot.slane %v1858_v18, 9  ;;  %523 = vst [vmem:[#allocation2 + $0xc8] sm:$0x1] %v522_v19  ;;  %v2897_v18 = vrot.slane %v2895_v47, 5  ;;  %v832_v19 = vrot.slane %v827_v22, 4 }
 0x196   : > { %v1999_v8 = vsel %vm6315_vm1, %v1997_v11, %v1998_v48  ;;  %v831_v15 = vsel %vm5924_vm8, %v823_v30, %v830_v4  ;;  %v2909_v47 = vshll.u32 %v2558_v29, 16  ;;  %v2888_v56 = vsel %vm5997_vm13, %v2883_v34, %v6633_v31  ;;  %v5633_v48 = vld [vmem:[#allocation2 + $0xa8] sm:$0xff] }
 0x197   : > { %v2423_v10 = vpop.f32.mrf.mxu3  ;;  %v1996_v54 = vsel %vm6315_vm1, %v5319_v45, %v1995_v38  ;;  %992 = vst.msk [vmem:[#allocation2 + $0xc4] sm:$0xf] %vm405_vm5, %v831_v15  ;;  %v2898_v40 = vsel %vm5997_vm13, %v2893_v39, %v2897_v18  ;;  %v2038_v45 = vunpack.c.l.b16 %v1999_v8  ;;  %v1792_v11 = vadd.f32 %v6631_v14, %v6432_v9  ;;  %v5772_v8 = vld [vmem:[#allocation2 + $0xbc] sm:$0x1] }
 0x198   : > { %v3077_v28 = vpop.f32.mrf.mxu0  ;;  %v2491_v13 = vadd.f32 %v2423_v10, %v2205_v60  ;;  %v990_v60 = vsel %vm5931_vm9, %v822_v42, %v989_v52  ;;  %v2903_v52 = vshll.u32 %v2557_v35, 16  ;;  %v2902_v42 = vrot.slane %v2900_v61, 4  ;;  %v1859_v61 = vld [vmem:[#allocation2 + $0xb4] sm:$0xe] }
 0x199   : > { %5335 = vmatmul.msk.bf16.gmra.mxu2 %vm1482_vm12, %v2054_v12  ;;  %991 = vst [vmem:[#allocation2 + $0xc0] sm:$0xf] %v990_v60  ;;  %v2911_v35 = vrot.slane %v2909_v47, 5  ;;  %v2976_v34 = vunpack.c.l.b16 %v2898_v40  ;;  %v2559_v60 = vld [vmem:[#allocation2 + $0xbc] sm:$0x1]  ;;  %v5619_v40 = vld [vmem:[#allocation2 + $0xb4] sm:$0xff] }
 0x19a   : > { %v6644_v59 = vpop.f32.mrf.mxu1  ;;  %v6648_v12 = vadd.f32 %v3077_v28, %v2491_v13  ;;  %v2037_v13 = vunpack.c.l.b16 %v1996_v54  ;;  %v2919_v54 = vshll.u32 %v2559_v60, 16 }
 0x19b   : > { %5432 = vmatmul.msk.bf16.gmra.mxu0 %vm1482_vm12, %v2993_v26  ;;  %v2913_v26 = vshrl.u32 %v2558_v29, 16 }
 0x19c   : > { %v2142_v10 = vpop.f32.mrf.mxu2  ;;  %v993_v38 = vld [vmem:[#allocation2 + $0xc8] sm:$0x1]  ;;  %v2055_v18 = vpack.c.b16 %v2038_v45, %v2037_v13 }
 0x19d   : > { %v2207_v23 = vadd.f32 %v2142_v10, %v1790_v3  ;;  %5303 = vmatmul.msk.bf16.gmra.mxu1 %vm1482_vm12, %v5618_v36  ;;  %v994_v63 = vsel %vm5860_vm3, %v832_v19, %v993_v38  ;;  %v2905_v36 = vrot.slane %v2903_v52, 5  ;;  %v2915_v31 = vrot.slane %v2913_v26, 4  ;;  %v5771_v10 = vld [vmem:[#allocation2 + $0xb8] sm:$0xf] }
 0x19e   : > { %995 = vst [vmem:[#allocation2 + $0xc8] sm:$0x1] %v994_v63  ;;  %v2975_v3 = vunpack.c.l.b16 %v2888_v56  ;;  %v2002_v29 = vrot.slane %v5771_v10, 5  ;;  %v2005_v52 = vrot.slane %v5772_v8, 5  ;;  %v5320_v26 = vrot.slane %v1859_v61, 9 }
 0x19f   : > { %v2425_v24 = vpop.f32.mrf.mxu3  ;;  %v2906_v4 = vor.u32 %v2905_v36, %v2902_v42  ;;  %v2916_v19 = vor.u32 %v2915_v31, %v2911_v35  ;;  %v1795_v38 = vadd.f32 %v6644_v59, %v6450_v49  ;;  %v5773_v42 = vld [vmem:[#allocation2 + $0x10] sm:$0xf] }
 0x1a0   : > { %v3079_v41 = vpop.f32.mrf.mxu0  ;;  %v2492_v28 = vadd.f32 %v2425_v24, %v2206_v20  ;;  %v2994_v9 = vpack.c.b16 %v2976_v34, %v2975_v3  ;;  %v2004_v24 = vrot.slane %v2002_v29, 4  ;;  %v2560_v63 = vld [vmem:[#allocation2 + $0xc0] sm:$0xf]  ;;  %v2561_v3 = vld [vmem:[#allocation2 + $0xc4] sm:$0xf] }
 0x1a1   : > { %v2907_v56 = vrot.slane %v2906_v4, 4  ;;  %v2924_v34 = vshrl.u32 %v2560_v63, 16  ;;  %v2933_v4 = vshll.u32 %v2561_v3, 16  ;;  %v2937_v8 = vshrl.u32 %v2561_v3, 16 }
 0x1a2   : > { %v1796_v30 = vpop.f32.mrf.mxu1  ;;  %v6668_v22 = vadd.f32 %v3079_v41, %v2492_v28  ;;  %v2917_v41 = vrot.slane %v2916_v19, 4  ;;  %v2921_v28 = vrot.slane %v2919_v54, 5  ;;  %v2006_v31 = vsel %vm6315_vm1, %v2004_v24, %v2005_v52 }
 0x1a3   : > { %v2912_v49 = vsel %vm5997_vm13, %v2907_v56, %v2911_v35  ;;  %v2040_v10 = vunpack.c.l.b16 %v2006_v31  ;;  %v1797_v35 = vadd.f32 %v1796_v30, %v6469_v32  ;;  %v3854_v30 = vld [vmem:[#allocation2 + $0x18] sm:$0xf] }
 0x1a4   : > { %v2144_v20 = vpop.f32.mrf.mxu2  ;;  %5416 = vmatmul.msk.bf16.gmra.mxu3 %vm1482_vm12, %v5633_v48  ;;  %v2922_v59 = vsel %vm5997_vm13, %v2917_v41, %v2921_v28  ;;  %v2977_v52 = vunpack.c.l.b16 %v2912_v49  ;;  %v6694_v49 = vld [vmem:[#allocation2 + $0x1c] sm:$0xf] }
 0x1a5   : > { %v2208_v39 = vadd.f32 %v2144_v20, %v1792_v11  ;;  %v2003_v11 = vsel %vm6315_vm1, %v5320_v26, %v2002_v29  ;;  %v2927_v20 = vshll.u32 %v2560_v63, 16  ;;  %v5774_v29 = vld [vmem:[#allocation2 + $0x14] sm:$0x1]  ;;  %v2926_v26 = vrot.slane %v2924_v34, 4 }
 0x1a6   : > { %v3238_v19 = vrot.slane %v5774_v29, 5 }
 0x1a7   : > { %v2428_v14 = vpop.f32.mrf.mxu3  ;;  %v2929_v24 = vrot.slane %v2927_v20, 5 }
 0x1a8   : > { %v3082_v15 = vpop.f32.mrf.mxu0  ;;  %v2493_v47 = vadd.f32 %v2428_v14, %v2207_v23  ;;  %v3235_v23 = vrot.slane %v5773_v42, 5  ;;  %v5634_v14 = vld [vmem:[#allocation2 + $0xb4] sm:$0xff]  ;;  %v2939_v42 = vrot.slane %v2937_v8, 4 }
 0x1a9   : > { %5336 = vmatmul.msk.bf16.gmra.mxu2 %vm1482_vm12, %v2055_v18  ;;  %v2039_v18 = vunpack.c.l.b16 %v2003_v11  ;;  %v2930_v34 = vor.u32 %v2929_v24, %v2926_v26 }
 0x1aa   : > { %v1799_v48 = vpop.f32.mrf.mxu1  ;;  %v6674_v13 = vadd.f32 %v3082_v15, %v2493_v47  ;;  %v3237_v61 = vrot.slane %v3235_v23, 4  ;;  %v2978_v15 = vunpack.c.l.b16 %v2922_v59  ;;  %v3169_v47 = vld [vmem:[#allocation2 + $0xc] sm:$0xe] }
 0x1ab   : > { %5433 = vmatmul.msk.bf16.gmra.mxu0 %vm1482_vm12, %v2994_v9  ;;  %v2056_v28 = vpack.c.b16 %v2040_v10, %v2039_v18  ;;  %v3903_v10 = vshrl.u32 %v3854_v30, 16 }
 0x1ac   : > { %v2147_v45 = vpop.f32.mrf.mxu2  ;;  %v3239_v32 = vsel %vm6315_vm1, %v3237_v61, %v3238_v19  ;;  %v2995_v59 = vpack.c.b16 %v2978_v15, %v2977_v52  ;;  %v3916_v61 = vshrl.u32 %v6694_v49, 16  ;;  %v1800_v19 = vadd.f32 %v1799_v48, %v6481_v46 }
 0x1ad   : > { %v2209_v36 = vadd.f32 %v2147_v45, %v1795_v38  ;;  %5304 = vmatmul.msk.bf16.gmra.mxu1 %vm1482_vm12, %v5619_v40  ;;  %v5436_v40 = vrot.slane %v3169_v47, 9  ;;  %v2935_v45 = vrot.slane %v2933_v4, 5  ;;  %v3348_v3 = vunpack.c.l.b16 %v3239_v32 }
 0x1ae   : > { %v3906_v4 = vshll.u32 %v3854_v30, 16  ;;  %v2931_v52 = vrot.slane %v2930_v34, 4  ;;  %v3905_v47 = vrot.slane %v3903_v10, 4  ;;  %v3170_v10 = vld [vmem:[#allocation2 + $0x18] sm:$0xe] }
 0x1af   : > { %v2430_v60 = vpop.f32.mrf.mxu3  ;;  %v3236_v11 = vsel %vm6315_vm1, %v5436_v40, %v3235_v23  ;;  %v2940_v23 = vor.u32 %v2939_v42, %v2935_v45  ;;  %v6703_v40 = vld [vmem:[#allocation2 + $0x20] sm:$0x1] }
 0x1b0   : > { %v3084_v54 = vpop.f32.mrf.mxu0  ;;  %v2494_v9 = vadd.f32 %v2430_v60, %v2208_v39  ;;  %v2562_v39 = vld [vmem:[#allocation2 + $0xc8] sm:$0x1]  ;;  %v3347_v31 = vunpack.c.l.b16 %v3236_v11  ;;  %v3908_v26 = vrot.slane %v3906_v4, 5  ;;  %v2936_v42 = vsel %vm5997_vm13, %v2931_v52, %v2935_v45 }
 0x1b1   : > { %v2943_v60 = vshll.u32 %v2562_v39, 16  ;;  %v5775_v39 = vld [vmem:[#allocation2 + $0x20] sm:$0x1]  ;;  %v3922_v32 = vshll.u32 %v6703_v40, 16 }
 0x1b2   : > { %v1801_v56 = vpop.f32.mrf.mxu1  ;;  %v6687_v38 = vadd.f32 %v3084_v54, %v2494_v9  ;;  %v3379_v18 = vpack.c.b16 %v3348_v3, %v3347_v31  ;;  %v3912_v9 = vshll.u32 %v6694_v49, 16  ;;  %v3245_v46 = vrot.slane %v5775_v39, 5  ;;  %v5635_v3 = vld [vmem:[#allocation2 + $0xc0] sm:$0xff] }
 0x1b3   : > { %v2945_v15 = vrot.slane %v2943_v60, 5  ;;  %v3909_v11 = vor.u32 %v3908_v26, %v3905_v47  ;;  %v1802_v4 = vadd.f32 %v1801_v56, %v6495_v7 }
 0x1b4   : > { %v2149_v41 = vpop.f32.mrf.mxu2  ;;  %5417 = vmatmul.msk.bf16.gmra.mxu3 %vm1482_vm12, %v5634_v14 }
 0x1b5   : > { %v2210_v63 = vadd.f32 %v2149_v41, %v1797_v35  ;;  %v3914_v41 = vrot.slane %v3912_v9, 5 }
 0x1b7   : > { %v2433_v20 = vpop.f32.mrf.mxu3 }
 0x1b8   : > { %v3087_v29 = vpop.f32.mrf.mxu0  ;;  %v2495_v54 = vadd.f32 %v2433_v20, %v2209_v36  ;;  %v2941_v36 = vrot.slane %v2940_v23, 4  ;;  %v5776_v20 = vld [vmem:[#allocation2 + $0x1c] sm:$0xf] }
 0x1b9   : > { %5337 = vmatmul.msk.bf16.gmra.mxu2 %vm1482_vm12, %v2056_v28  ;;  %v3918_v28 = vrot.slane %v3916_v61, 4  ;;  %v3242_v60 = vrot.slane %v5776_v20, 5  ;;  %v3910_v61 = vrot.slane %v3909_v11, 4  ;;  %v4574_v11 = vrot.slane %v6694_v49, 5 }
 0x1ba   : > { %v1804_v14 = vpop.f32.mrf.mxu1  ;;  %v6700_v8 = vadd.f32 %v3087_v29, %v2495_v54  ;;  %v5437_v54 = vrot.slane %v3170_v10, 9 }
 0x1bb   : > { %5434 = vmatmul.msk.bf16.gmra.mxu0 %vm1482_vm12, %v2995_v59  ;;  %v2946_v59 = vsel %vm5997_vm13, %v2941_v36, %v2945_v15  ;;  %v3919_v34 = vor.u32 %v3918_v28, %v3914_v41  ;;  %v3244_v45 = vrot.slane %v3242_v60, 4  ;;  %v5636_v15 = vld [vmem:[#allocation2 + $0x18] sm:$0xff]  ;;  %v3857_v36 = vld [vmem:[#allocation2 + $0x24] sm:$0xf]  ;;  %v6721_v28 = vld [vmem:[#allocation2 + $0x28] sm:$0xf]  ;;  %v1805_v10 = vadd.f32 %v1804_v14, %v6419_v44 }
 0x1bc   : > { %v2152_v35 = vpop.f32.mrf.mxu2  ;;  %v2980_v23 = vunpack.c.l.b16 %v2946_v59  ;;  %v3243_v47 = vsel %vm6315_vm1, %v5437_v54, %v3242_v60  ;;  %v3930_v59 = vshll.u32 %v3857_v36, 16  ;;  %v3936_v20 = vshll.u32 %v6721_v28, 16  ;;  %v6739_v14 = vld [vmem:[#allocation2 + $0x2c] sm:$0x1] }
 0x1bd   : > { %v2211_v24 = vadd.f32 %v2152_v35, %v1800_v19  ;;  %5453 = vmatmul.msk.bf16.vlgmr.msra.gmra.mxu1 %vm1482_vm12, %v3379_v18  ;;  %v2979_v18 = vunpack.c.l.b16 %v2936_v42  ;;  %v3924_v19 = vrot.slane %v3922_v32, 5  ;;  %v3920_v35 = vrot.slane %v3919_v34, 4 }
 0x1be   : > { %v3246_v7 = vsel %vm6315_vm1, %v3244_v45, %v3245_v46  ;;  %v3349_v56 = vunpack.c.l.b16 %v3243_v47  ;;  %v3915_v42 = vsel %vm5997_vm13, %v3910_v61, %v3914_v41  ;;  %v4508_v46 = vld [vmem:[#allocation2 + $0x18] sm:$0xe]  ;;  %v3940_v60 = vshrl.u32 %v6721_v28, 16 }
 0x1bf   : > { %v2435_v48 = vpop.f32.mrf.mxu3  ;;  %v3350_v26 = vunpack.c.l.b16 %v3246_v7  ;;  %v2996_v39 = vpack.c.b16 %v2980_v23, %v2979_v18  ;;  %v4576_v54 = vrot.slane %v4574_v11, 4  ;;  %v4577_v23 = vrot.slane %v6703_v40, 5 }
 0x1c0   : > { %v3089_v30 = vpop.f32.mrf.mxu0  ;;  %v2496_v31 = vadd.f32 %v2435_v48, %v2210_v63  ;;  %v3942_v44 = vrot.slane %v3940_v60, 4 }
 0x1c1   : > { %v3380_v34 = vpack.c.b16 %v3350_v26, %v3349_v56  ;;  %v4578_v40 = vsel %vm6315_vm1, %v4576_v54, %v4577_v23 }
 0x1c2   : > { %v6712_v29 = vpop.f32.mrf.mxu1  ;;  %v6714_v63 = vadd.f32 %v3089_v30, %v2496_v31  ;;  %v3925_v31 = vsel %vm5997_vm13, %v3920_v35, %v3924_v19  ;;  %v3932_v19 = vrot.slane %v3930_v59, 5  ;;  %v5777_v35 = vld [vmem:[#allocation2 + $0x2c] sm:$0x1]  ;;  %v4687_v60 = vunpack.c.l.b16 %v4578_v40 }
 0x1c3   : > { %v4289_v18 = vunpack.c.l.b16 %v3925_v31  ;;  %v3252_v47 = vrot.slane %v5777_v35, 5  ;;  %v3946_v31 = vshll.u32 %v6739_v14, 16 }
 0x1c4   : > { %v2154_v9 = vpop.f32.mrf.mxu2  ;;  %5418 = vmatmul.msk.bf16.gmra.mxu3 %vm1482_vm12, %v5635_v3  ;;  %v3927_v3 = vshrl.u32 %v3857_v36, 16 }
 0x1c5   : > { %v2212_v52 = vadd.f32 %v2154_v9, %v1802_v4  ;;  %v5567_v4 = vrot.slane %v4508_v46, 9  ;;  %v3171_v46 = vld [vmem:[#allocation2 + $0x24] sm:$0xe] }
 0x1c6   : > { %v3929_v61 = vrot.slane %v3927_v3, 4  ;;  %v1807_v3 = vadd.f32 %v6712_v29, %v6425_v0 }
 0x1c7   : > { %v2438_v48 = vpop.f32.mrf.mxu3  ;;  %v4575_v26 = vsel %vm6315_vm1, %v5567_v4, %v4574_v11 }
 0x1c8   : > { %v3092_v32 = vpop.f32.mrf.mxu0  ;;  %v2497_v30 = vadd.f32 %v2438_v48, %v2211_v24  ;;  %v4288_v24 = vunpack.c.l.b16 %v3915_v42  ;;  %v3933_v48 = vor.u32 %v3932_v19, %v3929_v61  ;;  %v5778_v42 = vld [vmem:[#allocation2 + $0x28] sm:$0xf]  ;;  %v4686_v11 = vunpack.c.l.b16 %v4575_v26  ;;  %v3860_v19 = vld [vmem:[#allocation2 + $0x30] sm:$0xf]  ;;  %v4509_v26 = vld [vmem:[#allocation2 + $0x24] sm:$0xe] }
 0x1c9   : > { %5534 = vmatmul.msk.bf16.vlgmr.msra.gmra.mxu2 %vm1482_vm12, %v5636_v15  ;;  %v3938_v15 = vrot.slane %v3936_v20, 5 }
 0x1ca   : > { %v6732_v41 = vpop.f32.mrf.mxu1  ;;  %v6734_v49 = vadd.f32 %v3092_v32, %v2497_v30  ;;  %v4320_v56 = vpack.c.b16 %v4289_v18, %v4288_v24  ;;  %v3249_v32 = vrot.slane %v5778_v42, 5  ;;  %v5637_v18 = vld [vmem:[#allocation2 + $0x24] sm:$0xff]  ;;  %v3934_v4 = vrot.slane %v3933_v48, 4 }
 0x1cb   : > { %5435 = vmatmul.msk.bf16.gmra.mxu0 %vm1482_vm12, %v2996_v39  ;;  %v3943_v30 = vor.u32 %v3942_v44, %v3938_v15  ;;  %v6757_v44 = vld [vmem:[#allocation2 + $0x34] sm:$0xf]  ;;  %v4718_v35 = vpack.c.b16 %v4687_v60, %v4686_v11  ;;  %v3954_v48 = vshll.u32 %v3860_v19, 16 }
 0x1cc   : > { %v2157_v45 = vpop.f32.mrf.mxu2  ;;  %v3251_v20 = vrot.slane %v3249_v32, 4  ;;  %v3939_v40 = vsel %vm5997_vm13, %v3934_v4, %v3938_v15 }
 0x1cd   : > { %v2213_v9 = vadd.f32 %v2157_v45, %v1805_v10  ;;  %5454 = vmatmul.msk.bf16.gmra.mxu1 %vm1482_vm12, %v3380_v34  ;;  %v5438_v34 = vrot.slane %v3171_v46, 9  ;;  %v3944_v29 = vrot.slane %v3943_v30, 4  ;;  %v3948_v45 = vrot.slane %v3946_v31, 5 }
 0x1ce   : > { %v3253_v0 = vsel %vm6315_vm1, %v3251_v20, %v3252_v47  ;;  %v3951_v47 = vshrl.u32 %v3860_v19, 16  ;;  %v3960_v30 = vshll.u32 %v6757_v44, 16  ;;  %v3964_v31 = vshrl.u32 %v6757_v44, 16 }
 0x1cf   : > { %v2440_v7 = vpop.f32.mrf.mxu3  ;;  %v3250_v54 = vsel %vm6315_vm1, %v5438_v34, %v3249_v32  ;;  %v3352_v61 = vunpack.c.l.b16 %v3253_v0  ;;  %v3949_v42 = vsel %vm5997_vm13, %v3944_v29, %v3948_v45  ;;  %v5568_v46 = vrot.slane %v4509_v26, 9  ;;  %v6780_v0 = vld [vmem:[#allocation2 + $0x38] sm:$0x1]  ;;  %v5780_v26 = vld [vmem:[#allocation2 + $0x34] sm:$0xf] }
 0x1d0   : > { %v3094_v36 = vpop.f32.mrf.mxu0  ;;  %v2498_v39 = vadd.f32 %v2440_v7, %v2212_v52  ;;  %v3351_v23 = vunpack.c.l.b16 %v3250_v54  ;;  %v4290_v15 = vunpack.c.l.b16 %v3939_v40  ;;  %v4584_v20 = vrot.slane %v6739_v14, 5  ;;  %v5779_v29 = vld [vmem:[#allocation2 + $0x38] sm:$0x1] }
 0x1d1   : > { %v4291_v60 = vunpack.c.l.b16 %v3949_v42  ;;  %v3956_v4 = vrot.slane %v3954_v48, 5  ;;  %v6776_v54 = vrot.slane %v3960_v30, 5  ;;  %v3259_v45 = vrot.slane %v5779_v29, 5  ;;  %v4510_v29 = vld [vmem:[#allocation2 + $0x30] sm:$0xe] }
 0x1d2   : > { %v6748_v59 = vpop.f32.mrf.mxu1  ;;  %v6750_v10 = vadd.f32 %v3094_v36, %v2498_v39  ;;  %v3381_v32 = vpack.c.b16 %v3352_v61, %v3351_v23 }
 0x1d3   : > { %v1812_v42 = vadd.f32 %v6748_v59, %v6454_v5  ;;  %v6797_v5 = vld [vmem:[#allocation2 + $0x40] sm:$0xf] }
 0x1d4   : > { %v2159_v52 = vpop.f32.mrf.mxu2  ;;  %5551 = vmatmul.msk.bf16.vlgmr.msra.gmra.mxu3 %vm1482_vm12, %v4320_v56  ;;  %v4581_v56 = vrot.slane %v6721_v28, 5  ;;  %v1810_v28 = vadd.f32 %v6732_v41, %v6443_v62  ;;  %v3966_v62 = vrot.slane %v3964_v31, 4 }
 0x1d5   : > { %v2214_v24 = vadd.f32 %v2159_v52, %v1807_v3 }
 0x1d6   : > { %v4583_v34 = vrot.slane %v4581_v56, 4  ;;  %v4582_v41 = vsel %vm6315_vm1, %v5568_v46, %v4581_v56  ;;  %v3967_v40 = vor.u32 %v3966_v62, %v6776_v54  ;;  %v3172_v56 = vld [vmem:[#allocation2 + $0x30] sm:$0xe] }
 0x1d7   : > { %v2443_v7 = vpop.f32.mrf.mxu3  ;;  %v5439_v30 = vrot.slane %v3172_v56, 9 }
 0x1d8   : > { %v3097_v36 = vpop.f32.mrf.mxu0  ;;  %v2499_v39 = vadd.f32 %v2443_v7, %v2213_v9  ;;  %v4585_v14 = vsel %vm6315_vm1, %v4583_v34, %v4584_v20  ;;  %v3968_v59 = vrot.slane %v3967_v40, 4  ;;  %v5569_v40 = vrot.slane %v4510_v29, 9 }
 0x1d9   : > { %5535 = vmatmul.msk.bf16.gmra.mxu2 %vm1482_vm12, %v5637_v18  ;;  %v3953_v18 = vrot.slane %v3951_v47, 4  ;;  %v3970_v47 = vshll.u32 %v6780_v0, 16  ;;  %v4689_v48 = vunpack.c.l.b16 %v4585_v14 }
 0x1da   : > { %v6769_v9 = vpop.f32.mrf.mxu1  ;;  %v6771_v3 = vadd.f32 %v3097_v36, %v2499_v39  ;;  %v3256_v36 = vrot.slane %v5780_v26, 5  ;;  %v4688_v39 = vunpack.c.l.b16 %v4582_v41 }
 0x1db   : > { %5584 = vmatmul.msk.bf16.vlgmr.msra.gmra.mxu0 %vm1482_vm12, %v4718_v35  ;;  %v4321_v35 = vpack.c.b16 %v4291_v60, %v4290_v15  ;;  %v3957_v7 = vor.u32 %v3956_v4, %v3953_v18  ;;  %v5638_v15 = vld [vmem:[#allocation2 + $0x30] sm:$0xff]  ;;  %v3863_v60 = vld [vmem:[#allocation2 + $0x3c] sm:$0xf]  ;;  %v3972_v18 = vrot.slane %v3970_v47, 5  ;;  %v1815_v47 = vadd.f32 %v6769_v9, %v6473_v58 }
 0x1dc   : > { %v2162_v11 = vpop.f32.mrf.mxu2  ;;  %v3258_v31 = vrot.slane %v3256_v36, 4  ;;  %v3257_v20 = vsel %vm6315_vm1, %v5439_v30, %v3256_v36  ;;  %v4719_v41 = vpack.c.b16 %v4689_v48, %v4688_v39  ;;  %v4591_v48 = vrot.slane %v6780_v0, 5 }
 0x1dd   : > { %v2215_v52 = vadd.f32 %v2162_v11, %v1810_v28  ;;  %5455 = vmatmul.msk.bf16.gmra.mxu1 %vm1482_vm12, %v3381_v32  ;;  %v3958_v34 = vrot.slane %v3957_v7, 4  ;;  %v3353_v4 = vunpack.c.l.b16 %v3257_v20  ;;  %v3988_v7 = vshrl.u32 %v6797_v5, 16 }
 0x1de   : > { %v3260_v11 = vsel %vm6315_vm1, %v3258_v31, %v3259_v45  ;;  %v3973_v39 = vsel %vm5997_vm13, %v3968_v59, %v3972_v18 }
 0x1df   : > { %v2445_v23 = vpop.f32.mrf.mxu3  ;;  %v3354_v62 = vunpack.c.l.b16 %v3260_v11  ;;  %v3963_v36 = vsel %vm5997_vm13, %v3958_v34, %v6776_v54  ;;  %v4293_v20 = vunpack.c.l.b16 %v3973_v39 }
 0x1e0   : > { %v3099_v61 = vpop.f32.mrf.mxu0  ;;  %v2500_v19 = vadd.f32 %v2445_v23, %v2214_v24  ;;  %v4588_v23 = vrot.slane %v6757_v44, 5  ;;  %v4292_v34 = vunpack.c.l.b16 %v3963_v36 }
 0x1e1   : > { %v3382_v44 = vpack.c.b16 %v3354_v62, %v3353_v4  ;;  %v5781_v62 = vld [vmem:[#allocation2 + $0x44] sm:$0x1] }
 0x1e2   : > { %v6788_v32 = vpop.f32.mrf.mxu1  ;;  %v6790_v24 = vadd.f32 %v3099_v61, %v2500_v19  ;;  %v3975_v61 = vshrl.u32 %v3863_v60, 16  ;;  %v3978_v19 = vshll.u32 %v3863_v60, 16  ;;  %v4590_v56 = vrot.slane %v4588_v23, 4  ;;  %v6814_v60 = vld [vmem:[#allocation2 + $0x44] sm:$0x1] }
 0x1e3   : > { %v4589_v58 = vsel %vm6315_vm1, %v5569_v40, %v4588_v23  ;;  %v3994_v4 = vshll.u32 %v6814_v60, 16  ;;  %v1817_v23 = vadd.f32 %v6788_v32, %v6493_v17  ;;  %v3866_v32 = vld [vmem:[#allocation2 + $0x48] sm:$0xf] }
 0x1e4   : > { %v2164_v28 = vpop.f32.mrf.mxu2  ;;  %5552 = vmatmul.msk.bf16.gmra.mxu3 %vm1482_vm12, %v4321_v35  ;;  %v3984_v35 = vshll.u32 %v6797_v5, 16  ;;  %v3977_v31 = vrot.slane %v3975_v61, 4  ;;  %v4592_v0 = vsel %vm6315_vm1, %v4590_v56, %v4591_v48  ;;  %v4322_v61 = vpack.c.b16 %v4293_v20, %v4292_v34  ;;  %v6833_v20 = vld [vmem:[#allocation2 + $0x4c] sm:$0xf] }
 0x1e5   : > { %v2216_v46 = vadd.f32 %v2164_v28, %v1812_v42  ;;  %v3980_v28 = vrot.slane %v3978_v19, 5  ;;  %v5782_v19 = vld [vmem:[#allocation2 + $0x40] sm:$0xf]  ;;  %v3996_v48 = vrot.slane %v3994_v4, 5  ;;  %v3999_v4 = vshrl.u32 %v3866_v32, 16 }
 0x1e6   : > { %v3986_v54 = vrot.slane %v3984_v35, 5  ;;  %v3263_v35 = vrot.slane %v5782_v19, 5  ;;  %v4012_v19 = vshrl.u32 %v6833_v20, 16 }
 0x1e7   : > { %v2448_v14 = vpop.f32.mrf.mxu3  ;;  %v3981_v59 = vor.u32 %v3980_v28, %v3977_v31  ;;  %v5639_v31 = vld [vmem:[#allocation2 + $0x3c] sm:$0xff] }
 0x1e8   : > { %v3102_v26 = vpop.f32.mrf.mxu0  ;;  %v2501_v45 = vadd.f32 %v2448_v14, %v2215_v52  ;;  %v3265_v40 = vrot.slane %v3263_v35, 4 }
 0x1e9   : > { %5536 = vmatmul.msk.bf16.gmra.mxu2 %vm1482_vm12, %v5638_v15  ;;  %v3990_v15 = vrot.slane %v3988_v7, 4  ;;  %v4690_v7 = vunpack.c.l.b16 %v4589_v58 }
 0x1ea   : > { %v1819_v42 = vpop.f32.mrf.mxu1  ;;  %v6811_v30 = vadd.f32 %v3102_v26, %v2501_v45  ;;  %v3173_v26 = vld [vmem:[#allocation2 + $0x3c] sm:$0xe]  ;;  %v4691_v45 = vunpack.c.l.b16 %v4592_v0 }
 0x1eb   : > { %5585 = vmatmul.msk.bf16.gmra.mxu0 %vm1482_vm12, %v4719_v41  ;;  %v3991_v18 = vor.u32 %v3990_v15, %v3986_v54  ;;  %v3266_v41 = vrot.slane %v5781_v62, 5  ;;  %v5440_v39 = vrot.slane %v3173_v26, 9  ;;  %v4002_v62 = vshll.u32 %v3866_v32, 16 }
 0x1ec   : > { %v2167_v52 = vpop.f32.mrf.mxu2  ;;  %v4720_v58 = vpack.c.b16 %v4691_v45, %v4690_v7 }
 0x1ed   : > { %v2217_v11 = vadd.f32 %v2167_v52, %v1815_v47  ;;  %5456 = vmatmul.msk.bf16.gmra.mxu1 %vm1482_vm12, %v3382_v44  ;;  %v3982_v47 = vrot.slane %v3981_v59, 4  ;;  %v3992_v56 = vrot.slane %v3991_v18, 4  ;;  %v3264_v28 = vsel %vm6315_vm1, %v5440_v39, %v3263_v35 }
 0x1ee   : > { %v3267_v17 = vsel %vm6315_vm1, %v3265_v40, %v3266_v41  ;;  %v3355_v15 = vunpack.c.l.b16 %v3264_v28  ;;  %v4511_v41 = vld [vmem:[#allocation2 + $0x3c] sm:$0xe]  ;;  %v4001_v40 = vrot.slane %v3999_v4, 4  ;;  %v4014_v28 = vrot.slane %v4012_v19, 4  ;;  %v5784_v4 = vld [vmem:[#allocation2 + $0x4c] sm:$0xf] }
 0x1ef   : > { %v2450_v9 = vpop.f32.mrf.mxu3  ;;  %v3356_v34 = vunpack.c.l.b16 %v3267_v17  ;;  %v3987_v59 = vsel %vm5997_vm13, %v3982_v47, %v3986_v54  ;;  %v3997_v18 = vsel %vm5997_vm13, %v3992_v56, %v3996_v48  ;;  %v4598_v47 = vrot.slane %v6814_v60, 5  ;;  %v6848_v48 = vld [vmem:[#allocation2 + $0x50] sm:$0x1] }
 0x1f0   : > { %v3104_v29 = vpop.f32.mrf.mxu0  ;;  %v2502_v14 = vadd.f32 %v2450_v9, %v2216_v46  ;;  %v4595_v9 = vrot.slane %v6797_v5, 5  ;;  %v1820_v5 = vadd.f32 %v1819_v42, %v6504_v1  ;;  %v4294_v7 = vunpack.c.l.b16 %v3987_v59  ;;  %v5783_v1 = vld [vmem:[#allocation2 + $0x50] sm:$0x1] }
 0x1f1   : > { %v3383_v35 = vpack.c.b16 %v3356_v34, %v3355_v15  ;;  %v4295_v26 = vunpack.c.l.b16 %v3997_v18  ;;  %v3273_v42 = vrot.slane %v5783_v1, 5 }
 0x1f2   : > { %v6824_v36 = vpop.f32.mrf.mxu1  ;;  %v6826_v52 = vadd.f32 %v3104_v29, %v2502_v14  ;;  %v4597_v39 = vrot.slane %v4595_v9, 4 }
 0x1f3   : > { %v4323_v32 = vpack.c.b16 %v4295_v26, %v4294_v7 }
 0x1f4   : > { %v2169_v44 = vpop.f32.mrf.mxu2  ;;  %5553 = vmatmul.msk.bf16.gmra.mxu3 %vm1482_vm12, %v4322_v61  ;;  %v4008_v61 = vshll.u32 %v6833_v20, 16  ;;  %v4599_v60 = vsel %vm6315_vm1, %v4597_v39, %v4598_v47  ;;  %v5640_v39 = vld [vmem:[#allocation2 + $0x48] sm:$0xff]  ;;  %v3869_v47 = vld [vmem:[#allocation2 + $0x54] sm:$0xf] }
 0x1f5   : > { %v2218_v46 = vadd.f32 %v2169_v44, %v1817_v23  ;;  %v5570_v23 = vrot.slane %v4511_v41, 9  ;;  %v4004_v44 = vrot.slane %v4002_v62, 5  ;;  %v3270_v62 = vrot.slane %v5784_v4, 5 }
 0x1f6   : > { %v1822_v41 = vadd.f32 %v6824_v36, %v6520_v43 }
 0x1f7   : > { %v2453_v0 = vpop.f32.mrf.mxu3  ;;  %v4596_v15 = vsel %vm6315_vm1, %v5570_v23, %v4595_v9  ;;  %v4005_v34 = vor.u32 %v4004_v44, %v4001_v40  ;;  %v3272_v9 = vrot.slane %v3270_v62, 4 }
 0x1f8   : > { %v3107_v29 = vpop.f32.mrf.mxu0  ;;  %v2503_v14 = vadd.f32 %v2453_v0, %v2217_v11 }
 0x1f9   : > { %5537 = vmatmul.msk.bf16.gmra.mxu2 %vm1482_vm12, %v5639_v31  ;;  %v4010_v31 = vrot.slane %v4008_v61, 5  ;;  %v4006_v7 = vrot.slane %v4005_v34, 4  ;;  %v3274_v43 = vsel %vm6315_vm1, %v3272_v9, %v3273_v42  ;;  %v4512_v42 = vld [vmem:[#allocation2 + $0x48] sm:$0xe] }
 0x1fa   : > { %v1824_v54 = vpop.f32.mrf.mxu1  ;;  %v6844_v45 = vadd.f32 %v3107_v29, %v2503_v14  ;;  %v3174_v29 = vld [vmem:[#allocation2 + $0x48] sm:$0xe]  ;;  %v4692_v14 = vunpack.c.l.b16 %v4596_v15  ;;  %v3358_v44 = vunpack.c.l.b16 %v3274_v43 }
 0x1fb   : > { %5586 = vmatmul.msk.bf16.gmra.mxu0 %vm1482_vm12, %v4720_v58  ;;  %v4018_v58 = vshll.u32 %v6848_v48, 16  ;;  %v4015_v18 = vor.u32 %v4014_v28, %v4010_v31  ;;  %v5441_v19 = vrot.slane %v3174_v29, 9  ;;  %v6867_v28 = vld [vmem:[#allocation2 + $0x58] sm:$0xf]  ;;  %v4011_v15 = vsel %vm5997_vm13, %v4006_v7, %v4010_v31 }
 0x1fc   : > { %v2172_v11 = vpop.f32.mrf.mxu2  ;;  %v4032_v4 = vshll.u32 %v6867_v28, 16  ;;  %v1825_v29 = vadd.f32 %v1824_v54, %v6428_v21  ;;  %v6885_v54 = vld [vmem:[#allocation2 + $0x5c] sm:$0x1] }
 0x1fd   : > { %v2219_v56 = vadd.f32 %v2172_v11, %v1820_v5  ;;  %5457 = vmatmul.msk.bf16.gmra.mxu1 %vm1482_vm12, %v3383_v35  ;;  %v4693_v35 = vunpack.c.l.b16 %v4599_v60  ;;  %v4020_v26 = vrot.slane %v4018_v58, 5  ;;  %v4016_v11 = vrot.slane %v4015_v18, 4 }
 0x1fe   : > { %v3271_v40 = vsel %vm6315_vm1, %v5441_v19, %v3270_v62  ;;  %v4026_v60 = vshll.u32 %v3869_v47, 16  ;;  %v4036_v62 = vshrl.u32 %v6867_v28, 16 }
 0x1ff   : > { %v2455_v17 = vpop.f32.mrf.mxu3  ;;  %v3357_v36 = vunpack.c.l.b16 %v3271_v40  ;;  %v4721_v1 = vpack.c.b16 %v4693_v35, %v4692_v14  ;;  %v4605_v35 = vrot.slane %v6848_v48, 5 }
 0x200   : > { %v3109_v0 = vpop.f32.mrf.mxu0  ;;  %v2504_v59 = vadd.f32 %v2455_v17, %v2218_v46  ;;  %v4038_v21 = vrot.slane %v4036_v62, 4 }
 0x201   : > { %v3384_v18 = vpack.c.b16 %v3358_v44, %v3357_v36 }
 0x202   : > { %v6858_v61 = vpop.f32.mrf.mxu1  ;;  %v6860_v46 = vadd.f32 %v3109_v0, %v2504_v59  ;;  %v4021_v0 = vsel %vm5997_vm13, %v4016_v11, %v4020_v26  ;;  %v4023_v59 = vshrl.u32 %v3869_v47, 16  ;;  %v4028_v26 = vrot.slane %v4026_v60, 5  ;;  %v5785_v11 = vld [vmem:[#allocation2 + $0x5c] sm:$0x1] }
 0x203   : > { %v4297_v14 = vunpack.c.l.b16 %v4021_v0  ;;  %v3280_v40 = vrot.slane %v5785_v11, 5  ;;  %v4042_v0 = vshll.u32 %v6885_v54, 16 }
 0x204   : > { %v2174_v5 = vpop.f32.mrf.mxu2  ;;  %5554 = vmatmul.msk.bf16.gmra.mxu3 %vm1482_vm12, %v4323_v32  ;;  %v4602_v32 = vrot.slane %v6833_v20, 5  ;;  %v4025_v7 = vrot.slane %v4023_v59, 4  ;;  %v1827_v59 = vadd.f32 %v6858_v61, %v6446_v27 }
 0x205   : > { %v2220_v23 = vadd.f32 %v2174_v5, %v1822_v41  ;;  %v5571_v41 = vrot.slane %v4512_v42, 9  ;;  %v3175_v42 = vld [vmem:[#allocation2 + $0x54] sm:$0xe] }
 0x206   : > { %v4604_v19 = vrot.slane %v4602_v32, 4 }
 0x207   : > { %v2458_v17 = vpop.f32.mrf.mxu3  ;;  %v4603_v44 = vsel %vm6315_vm1, %v5571_v41, %v4602_v32 }
 0x208   : > { %v3112_v34 = vpop.f32.mrf.mxu0  ;;  %v2505_v58 = vadd.f32 %v2458_v17, %v2219_v56  ;;  %v4296_v56 = vunpack.c.l.b16 %v4011_v15  ;;  %v4606_v48 = vsel %vm6315_vm1, %v4604_v19, %v4605_v35  ;;  %v4029_v17 = vor.u32 %v4028_v26, %v4025_v7  ;;  %v5786_v15 = vld [vmem:[#allocation2 + $0x58] sm:$0xf]  ;;  %v3872_v26 = vld [vmem:[#allocation2 + $0x60] sm:$0xf] }
 0x209   : > { %5538 = vmatmul.msk.bf16.gmra.mxu2 %vm1482_vm12, %v5640_v39  ;;  %v4034_v39 = vrot.slane %v4032_v4, 5  ;;  %v4694_v32 = vunpack.c.l.b16 %v4603_v44  ;;  %v4695_v62 = vunpack.c.l.b16 %v4606_v48  ;;  %v4513_v44 = vld [vmem:[#allocation2 + $0x54] sm:$0xe] }
 0x20a   : > { %v6878_v31 = vpop.f32.mrf.mxu1  ;;  %v6880_v20 = vadd.f32 %v3112_v34, %v2505_v58  ;;  %v4324_v36 = vpack.c.b16 %v4297_v14, %v4296_v56  ;;  %v3277_v34 = vrot.slane %v5786_v15, 5  ;;  %v5641_v14 = vld [vmem:[#allocation2 + $0x54] sm:$0xff]  ;;  %v4030_v41 = vrot.slane %v4029_v17, 4 }
 0x20b   : > { %5587 = vmatmul.msk.bf16.gmra.mxu0 %vm1482_vm12, %v4721_v1  ;;  %v4039_v58 = vor.u32 %v4038_v21, %v4034_v39  ;;  %v6903_v21 = vld [vmem:[#allocation2 + $0x64] sm:$0xf]  ;;  %v4722_v11 = vpack.c.b16 %v4695_v62, %v4694_v32  ;;  %v4050_v17 = vshll.u32 %v3872_v26, 16 }
 0x20c   : > { %v2177_v9 = vpop.f32.mrf.mxu2  ;;  %v3279_v4 = vrot.slane %v3277_v34, 4  ;;  %v4035_v48 = vsel %vm5997_vm13, %v4030_v41, %v4034_v39 }
 0x20d   : > { %v2221_v5 = vadd.f32 %v2177_v9, %v1825_v29  ;;  %5458 = vmatmul.msk.bf16.gmra.mxu1 %vm1482_vm12, %v3384_v18  ;;  %v5442_v18 = vrot.slane %v3175_v42, 9  ;;  %v4040_v61 = vrot.slane %v4039_v58, 4  ;;  %v4044_v9 = vrot.slane %v4042_v0, 5 }
 0x20e   : > { %v3281_v27 = vsel %vm6315_vm1, %v3279_v4, %v3280_v40  ;;  %v4047_v40 = vshrl.u32 %v3872_v26, 16  ;;  %v4056_v58 = vshll.u32 %v6903_v21, 16  ;;  %v4060_v0 = vshrl.u32 %v6903_v21, 16 }
 0x20f   : > { %v2460_v43 = vpop.f32.mrf.mxu3  ;;  %v3278_v19 = vsel %vm6315_vm1, %v5442_v18, %v3277_v34  ;;  %v3360_v7 = vunpack.c.l.b16 %v3281_v27  ;;  %v4045_v15 = vsel %vm5997_vm13, %v4040_v61, %v4044_v9  ;;  %v5572_v42 = vrot.slane %v4513_v44, 9  ;;  %v6926_v27 = vld [vmem:[#allocation2 + $0x68] sm:$0x1]  ;;  %v5788_v44 = vld [vmem:[#allocation2 + $0x64] sm:$0xf] }
 0x210   : > { %v3114_v47 = vpop.f32.mrf.mxu0  ;;  %v2506_v1 = vadd.f32 %v2460_v43, %v2220_v23  ;;  %v3359_v35 = vunpack.c.l.b16 %v3278_v19  ;;  %v4298_v39 = vunpack.c.l.b16 %v4035_v48  ;;  %v4612_v4 = vrot.slane %v6885_v54, 5  ;;  %v5787_v61 = vld [vmem:[#allocation2 + $0x68] sm:$0x1] }
 0x211   : > { %v4299_v62 = vunpack.c.l.b16 %v4045_v15  ;;  %v4052_v41 = vrot.slane %v4050_v17, 5  ;;  %v6922_v19 = vrot.slane %v4056_v58, 5  ;;  %v3287_v9 = vrot.slane %v5787_v61, 5  ;;  %v4514_v61 = vld [vmem:[#allocation2 + $0x60] sm:$0xe] }
 0x212   : > { %v6894_v60 = vpop.f32.mrf.mxu1  ;;  %v6896_v29 = vadd.f32 %v3114_v47, %v2506_v1  ;;  %v3385_v34 = vpack.c.b16 %v3360_v7, %v3359_v35 }
 0x213   : > { %v1832_v15 = vadd.f32 %v6894_v60, %v6476_v51  ;;  %v6943_v51 = vld [vmem:[#allocation2 + $0x70] sm:$0xf] }
 0x214   : > { %v2179_v23 = vpop.f32.mrf.mxu2  ;;  %5555 = vmatmul.msk.bf16.gmra.mxu3 %vm1482_vm12, %v4324_v36  ;;  %v4609_v36 = vrot.slane %v6867_v28, 5  ;;  %v1830_v28 = vadd.f32 %v6878_v31, %v6461_v55  ;;  %v4062_v55 = vrot.slane %v4060_v0, 4 }
 0x215   : > { %v2222_v56 = vadd.f32 %v2179_v23, %v1827_v59 }
 0x216   : > { %v4611_v18 = vrot.slane %v4609_v36, 4  ;;  %v4610_v31 = vsel %vm6315_vm1, %v5572_v42, %v4609_v36  ;;  %v4063_v48 = vor.u32 %v4062_v55, %v6922_v19  ;;  %v3176_v36 = vld [vmem:[#allocation2 + $0x60] sm:$0xe] }
 0x217   : > { %v2463_v43 = vpop.f32.mrf.mxu3  ;;  %v5443_v58 = vrot.slane %v3176_v36, 9 }
 0x218   : > { %v3117_v47 = vpop.f32.mrf.mxu0  ;;  %v2507_v1 = vadd.f32 %v2463_v43, %v2221_v5  ;;  %v4613_v54 = vsel %vm6315_vm1, %v4611_v18, %v4612_v4  ;;  %v4064_v60 = vrot.slane %v4063_v48, 4  ;;  %v5573_v48 = vrot.slane %v4514_v61, 9 }
 0x219   : > { %5539 = vmatmul.msk.bf16.gmra.mxu2 %vm1482_vm12, %v5641_v14  ;;  %v4049_v14 = vrot.slane %v4047_v40, 4  ;;  %v4066_v40 = vshll.u32 %v6926_v27, 16  ;;  %v4697_v17 = vunpack.c.l.b16 %v4613_v54 }
 0x21a   : > { %v6915_v5 = vpop.f32.mrf.mxu1  ;;  %v6917_v59 = vadd.f32 %v3117_v47, %v2507_v1  ;;  %v3284_v47 = vrot.slane %v5788_v44, 5  ;;  %v4696_v1 = vunpack.c.l.b16 %v4610_v31 }
 0x21b   : > { %5588 = vmatmul.msk.bf16.gmra.mxu0 %vm1482_vm12, %v4722_v11  ;;  %v4325_v11 = vpack.c.b16 %v4299_v62, %v4298_v39  ;;  %v4053_v43 = vor.u32 %v4052_v41, %v4049_v14  ;;  %v5642_v39 = vld [vmem:[#allocation2 + $0x60] sm:$0xff]  ;;  %v3875_v62 = vld [vmem:[#allocation2 + $0x6c] sm:$0xf]  ;;  %v4068_v14 = vrot.slane %v4066_v40, 5  ;;  %v1835_v40 = vadd.f32 %v6915_v5, %v6497_v33 }
 0x21c   : > { %v2182_v32 = vpop.f32.mrf.mxu2  ;;  %v3286_v0 = vrot.slane %v3284_v47, 4  ;;  %v3285_v4 = vsel %vm6315_vm1, %v5443_v58, %v3284_v47  ;;  %v4723_v31 = vpack.c.b16 %v4697_v17, %v4696_v1  ;;  %v4619_v17 = vrot.slane %v6926_v27, 5 }
 0x21d   : > { %v2223_v23 = vadd.f32 %v2182_v32, %v1830_v28  ;;  %5459 = vmatmul.msk.bf16.gmra.mxu1 %vm1482_vm12, %v3385_v34  ;;  %v4054_v18 = vrot.slane %v4053_v43, 4  ;;  %v3361_v41 = vunpack.c.l.b16 %v3285_v4  ;;  %v4084_v43 = vshrl.u32 %v6943_v51, 16 }
 0x21e   : > { %v3288_v32 = vsel %vm6315_vm1, %v3286_v0, %v3287_v9  ;;  %v4069_v1 = vsel %vm5997_vm13, %v4064_v60, %v4068_v14 }
 0x21f   : > { %v2465_v35 = vpop.f32.mrf.mxu3  ;;  %v3362_v55 = vunpack.c.l.b16 %v3288_v32  ;;  %v4059_v47 = vsel %vm5997_vm13, %v4054_v18, %v6922_v19  ;;  %v4301_v4 = vunpack.c.l.b16 %v4069_v1 }
 0x220   : > { %v3119_v7 = vpop.f32.mrf.mxu0  ;;  %v2508_v26 = vadd.f32 %v2465_v35, %v2222_v56  ;;  %v4616_v35 = vrot.slane %v6903_v21, 5  ;;  %v4300_v18 = vunpack.c.l.b16 %v4059_v47 }
 0x221   : > { %v3386_v21 = vpack.c.b16 %v3362_v55, %v3361_v41 }
 0x222   : > { %v6934_v34 = vpop.f32.mrf.mxu1  ;;  %v6936_v56 = vadd.f32 %v3119_v7, %v2508_v26  ;;  %v4071_v7 = vshrl.u32 %v3875_v62, 16  ;;  %v4074_v26 = vshll.u32 %v3875_v62, 16  ;;  %v4618_v36 = vrot.slane %v4616_v35, 4  ;;  %v6964_v62 = vld [vmem:[#allocation2 + $0x74] sm:$0x1] }
 0x223   : > { %v4617_v33 = vsel %vm6315_vm1, %v5573_v48, %v4616_v35  ;;  %v4090_v41 = vshll.u32 %v6964_v62, 16  ;;  %v4326_v61 = vpack.c.b16 %v4301_v4, %v4300_v18  ;;  %v1837_v35 = vadd.f32 %v6934_v34, %v6507_v50  ;;  %v5790_v48 = vld [vmem:[#allocation2 + $0x74] sm:$0x1]  ;;  %v4515_v4 = vld [vmem:[#allocation2 + $0x6c] sm:$0xe] }
 0x224   : > { %v2184_v28 = vpop.f32.mrf.mxu2  ;;  %5556 = vmatmul.msk.bf16.gmra.mxu3 %vm1482_vm12, %v4325_v11  ;;  %v4080_v11 = vshll.u32 %v6943_v51, 16  ;;  %v4073_v0 = vrot.slane %v4071_v7, 4  ;;  %v4076_v19 = vrot.slane %v4074_v26, 5  ;;  %v4620_v5 = vsel %vm6315_vm1, %v4618_v36, %v4619_v17  ;;  %v3878_v26 = vld [vmem:[#allocation2 + $0x78] sm:$0xf] }
 0x225   : > { %v2224_v42 = vadd.f32 %v2184_v28, %v1832_v15  ;;  %v4098_v34 = vshll.u32 %v3878_v26, 16 }
 0x226   : > { %v6962_v28 = vrot.slane %v4080_v11, 5  ;;  %v4077_v60 = vor.u32 %v4076_v19, %v4073_v0  ;;  %v4698_v11 = vunpack.c.l.b16 %v4617_v33  ;;  %v4095_v0 = vshrl.u32 %v3878_v26, 16 }
 0x227   : > { %v2468_v54 = vpop.f32.mrf.mxu3 }
 0x228   : > { %v3122_v44 = vpop.f32.mrf.mxu0  ;;  %v2509_v9 = vadd.f32 %v2468_v54, %v2223_v23  ;;  %v5789_v54 = vld [vmem:[#allocation2 + $0x70] sm:$0xf]  ;;  %v4078_v17 = vrot.slane %v4077_v60, 4 }
 0x229   : > { %5540 = vmatmul.msk.bf16.gmra.mxu2 %vm1482_vm12, %v5642_v39  ;;  %v4086_v39 = vrot.slane %v4084_v43, 4  ;;  %v3291_v7 = vrot.slane %v5789_v54, 5  ;;  %v4699_v43 = vunpack.c.l.b16 %v4620_v5 }
 0x22a   : > { %v6957_v15 = vpop.f32.mrf.mxu1  ;;  %v6959_v23 = vadd.f32 %v3122_v44, %v2509_v9  ;;  %v3177_v44 = vld [vmem:[#allocation2 + $0x6c] sm:$0xe]  ;;  %v4083_v54 = vsel %vm5997_vm13, %v4078_v17, %v6962_v28  ;;  %v7001_v17 = vld [vmem:[#allocation2 + $0x80] sm:$0x1] }
 0x22b   : > { %5589 = vmatmul.msk.bf16.gmra.mxu0 %vm1482_vm12, %v4723_v31  ;;  %v4087_v14 = vor.u32 %v4086_v39, %v6962_v28  ;;  %v5444_v47 = vrot.slane %v3177_v44, 9  ;;  %v3293_v1 = vrot.slane %v3291_v7, 4  ;;  %v5643_v39 = vld [vmem:[#allocation2 + $0x6c] sm:$0xff]  ;;  %v4626_v28 = vrot.slane %v6964_v62, 5 }
 0x22c   : > { %v2187_v58 = vpop.f32.mrf.mxu2 }
 0x22d   : > { %v2225_v32 = vadd.f32 %v2187_v58, %v1835_v40  ;;  %5460 = vmatmul.msk.bf16.gmra.mxu1 %vm1482_vm12, %v3386_v21  ;;  %v3294_v21 = vrot.slane %v5790_v48, 5  ;;  %v6975_v40 = vld [vmem:[#allocation2 + $0x7c] sm:$0xf]  ;;  %v4092_v58 = vrot.slane %v4090_v41, 5  ;;  %v3292_v18 = vsel %vm6315_vm1, %v5444_v47, %v3291_v7 }
 0x22e   : > { %v3363_v33 = vunpack.c.l.b16 %v3292_v18  ;;  %v4108_v60 = vshrl.u32 %v6975_v40, 16  ;;  %v4724_v41 = vpack.c.b16 %v4699_v43, %v4698_v11  ;;  %v5574_v47 = vrot.slane %v4515_v4, 9  ;;  %v7466_v43 = vld [vmem:[#allocation3_spill] sm:$0xff] }
 0x22f   : > { %v2470_v27 = vpop.f32.mrf.mxu3  ;;  %v3295_v50 = vsel %vm6315_vm1, %v3293_v1, %v3294_v21  ;;  %v4097_v1 = vrot.slane %v4095_v0, 4  ;;  %v4100_v21 = vrot.slane %v4098_v34, 5  ;;  %v4114_v34 = vshll.u32 %v7001_v17, 16 }
 0x230   : > { %v3124_v55 = vpop.f32.mrf.mxu0  ;;  %v2510_v31 = vadd.f32 %v2470_v27, %v2224_v42  ;;  %v4088_v42 = vrot.slane %v4087_v14, 4  ;;  %v3364_v5 = vunpack.c.l.b16 %v3295_v50  ;;  %v4104_v27 = vshll.u32 %v6975_v40, 16 }
 0x231   : > { %v4623_v14 = vrot.slane %v6943_v51, 5  ;;  %v4110_v11 = vrot.slane %v4108_v60, 4 }
 0x232   : > { %v1841_v9 = vpop.f32.mrf.mxu1  ;;  %v6988_v7 = vadd.f32 %v3124_v55, %v2510_v31  ;;  %v4093_v26 = vsel %vm5997_vm13, %v4088_v42, %v4092_v58  ;;  %v3387_v48 = vpack.c.b16 %v3364_v5, %v3363_v33  ;;  %v4106_v51 = vrot.slane %v4104_v27, 5 }
 0x233   : > { %v4625_v18 = vrot.slane %v4623_v14, 4  ;;  %v4302_v42 = vunpack.c.l.b16 %v4083_v54  ;;  %v4303_v58 = vunpack.c.l.b16 %v4093_v26 }
 0x234   : > { %v2189_v36 = vpop.f32.mrf.mxu2  ;;  %5557 = vmatmul.msk.bf16.gmra.mxu3 %vm1482_vm12, %v4326_v61  ;;  %v4111_v50 = vor.u32 %v4110_v11, %v4106_v51 }
 0x235   : > { %v2226_v19 = vadd.f32 %v2189_v36, %v1837_v35  ;;  %v1840_v36 = vadd.f32 %v6957_v15, %v7466_v43  ;;  %v4101_v15 = vor.u32 %v4100_v21, %v4097_v1  ;;  %v4627_v62 = vsel %vm6315_vm1, %v4625_v18, %v4626_v28  ;;  %v5792_v43 = vld [vmem:[#allocation2 + $0x80] sm:$0x1]  ;;  %v3881_v28 = vld [vmem:[#allocation2 + $0x84] sm:$0xf] }
 0x236   : > { %v4327_v27 = vpack.c.b16 %v4303_v58, %v4302_v42  ;;  %v4701_v54 = vunpack.c.l.b16 %v4627_v62  ;;  %v4112_v26 = vrot.slane %v4111_v50, 4  ;;  %v4116_v1 = vrot.slane %v4114_v34, 5  ;;  %v7017_v58 = vld [vmem:[#allocation2 + $0x88] sm:$0xf] }
 0x237   : > { %v2473_v61 = vpop.f32.mrf.mxu3 }
 0x238   : > { %v3127_v44 = vpop.f32.mrf.mxu0  ;;  %v2511_v35 = vadd.f32 %v2473_v61, %v2225_v32  ;;  %v4117_v34 = vsel %vm5997_vm13, %v4112_v26, %v4116_v1 }
 0x239   : > { %5541 = vmatmul.msk.bf16.gmra.mxu2 %vm1482_vm12, %v5643_v39  ;;  %v4624_v39 = vsel %vm6315_vm1, %v5574_v47, %v4623_v14  ;;  %v4102_v14 = vrot.slane %v4101_v15, 4  ;;  %v3178_v47 = vld [vmem:[#allocation2 + $0x78] sm:$0xe] }
 0x23a   : > { %v6996_v55 = vpop.f32.mrf.mxu1  ;;  %v6998_v32 = vadd.f32 %v3127_v44, %v2511_v35  ;;  %v4700_v60 = vunpack.c.l.b16 %v4624_v39  ;;  %v7467_v44 = vld [vmem:[#allocation4_spill] sm:$0xff]  ;;  %v5445_v21 = vrot.slane %v3178_v47, 9 }
 0x23b   : > { %5590 = vmatmul.msk.bf16.gmra.mxu0 %vm1482_vm12, %v4724_v41  ;;  %v5791_v41 = vld [vmem:[#allocation2 + $0x7c] sm:$0xf]  ;;  %v1842_v35 = vadd.f32 %v1841_v9, %v7467_v44  ;;  %v4107_v62 = vsel %vm5997_vm13, %v4102_v14, %v4106_v51  ;;  %v4122_v44 = vshll.u32 %v3881_v28, 16  ;;  %v4305_v14 = vunpack.c.l.b16 %v4117_v34 }
 0x23c   : > { %v2192_v31 = vpop.f32.mrf.mxu2  ;;  %v3298_v61 = vrot.slane %v5791_v41, 5  ;;  %v4725_v50 = vpack.c.b16 %v4701_v54, %v4700_v60  ;;  %v4516_v41 = vld [vmem:[#allocation2 + $0x78] sm:$0xe]  ;;  %v4630_v60 = vrot.slane %v6975_v40, 5  ;;  %v4304_v54 = vunpack.c.l.b16 %v4107_v62  ;;  %v3883_v40 = vld [vmem:[#allocation2 + $0x8c] sm:$0x1] }
 0x23d   : > { %v2227_v0 = vadd.f32 %v2192_v31, %v1840_v36  ;;  %5461 = vmatmul.msk.bf16.gmra.mxu1 %vm1482_vm12, %v3387_v48  ;;  %v3301_v36 = vrot.slane %v5792_v43, 5  ;;  %v5644_v31 = vld [vmem:[#allocation2 + $0x78] sm:$0xff]  ;;  %v5575_v26 = vrot.slane %v4516_v41, 9  ;;  %v5793_v41 = vld [vmem:[#allocation2 + $0x88] sm:$0xf] }
 0x23e   : > { %v3300_v11 = vrot.slane %v3298_v61, 4  ;;  %v3299_v42 = vsel %vm6315_vm1, %v5445_v21, %v3298_v61  ;;  %v4128_v61 = vshll.u32 %v7017_v58, 16 }
 0x23f   : > { %v2475_v4 = vpop.f32.mrf.mxu3  ;;  %v3365_v39 = vunpack.c.l.b16 %v3299_v42 }
 0x240   : > { %v3129_v33 = vpop.f32.mrf.mxu0  ;;  %v2512_v5 = vadd.f32 %v2475_v4, %v2226_v19  ;;  %v3302_v9 = vsel %vm6315_vm1, %v3300_v11, %v3301_v36  ;;  %v4119_v4 = vshrl.u32 %v3881_v28, 16  ;;  %v4632_v28 = vrot.slane %v4630_v60, 4 }
 0x241   : > { %v3366_v15 = vunpack.c.l.b16 %v3302_v9  ;;  %v4328_v9 = vpack.c.b16 %v4305_v14, %v4304_v54  ;;  %v3884_v14 = vld [vmem:[#allocation2 + $0x90] sm:$0xf] }
 0x242   : > { %v7010_v48 = vpop.f32.mrf.mxu1  ;;  %v7025_v47 = vadd.f32 %v3129_v33, %v2512_v5  ;;  %v4124_v33 = vrot.slane %v4122_v44, 5  ;;  %v7034_v5 = vrot.slane %v4128_v61, 5  ;;  %v3305_v44 = vrot.slane %v5793_v41, 5  ;;  %v3179_v61 = vld [vmem:[#allocation2 + $0x84] sm:$0xe] }
 0x243   : > { %v3388_v51 = vpack.c.b16 %v3366_v15, %v3365_v39  ;;  %v4631_v39 = vsel %vm6315_vm1, %v5575_v26, %v4630_v60  ;;  %v7053_v41 = vld [vmem:[#allocation2 + $0x94] sm:$0xf] }
 0x244   : > { %v2194_v18 = vpop.f32.mrf.mxu2  ;;  %5558 = vmatmul.msk.bf16.gmra.mxu3 %vm1482_vm12, %v4327_v27  ;;  %7468 = vst [vmem:[#allocation3_spill] sm:$0xff] %v7025_v47  ;;  %v3307_v60 = vrot.slane %v3305_v44, 4 }
 0x245   : > { %v2228_v19 = vadd.f32 %v2194_v18, %v1842_v35  ;;  %v4132_v35 = vshrl.u32 %v7017_v58, 16  ;;  %v4121_v18 = vrot.slane %v4119_v4, 4 }
 0x247   : > { %v2478_v27 = vpop.f32.mrf.mxu3  ;;  %v4125_v15 = vor.u32 %v4124_v33, %v4121_v18 }
 0x248   : > { %v3132_v21 = vpop.f32.mrf.mxu0  ;;  %v2513_v11 = vadd.f32 %v2478_v27, %v2227_v0  ;;  %v4134_v0 = vrot.slane %v4132_v35, 4  ;;  %v4138_v27 = vshll.u32 %v3883_v40, 16  ;;  %v4637_v35 = vrot.slane %v7017_v58, 5 }
 0x249   : > { %5542 = vmatmul.msk.bf16.gmra.mxu2 %vm1482_vm12, %v5644_v31  ;;  %v4633_v31 = vrot.slane %v7001_v17, 5  ;;  %v3535_v17 = vadd.f32 %v6996_v55, %v6546_v53  ;;  %v4126_v33 = vrot.slane %v4125_v15, 4  ;;  %v5645_v55 = vld [vmem:[#allocation2 + $0x84] sm:$0xff] }
 0x24a   : > { %v7029_v1 = vpop.f32.mrf.mxu1  ;;  %v7031_v43 = vadd.f32 %v3132_v21, %v2513_v11  ;;  %v5446_v11 = vrot.slane %v3179_v61, 9  ;;  %v4143_v61 = vshrl.u32 %v3884_v14, 16 }
 0x24b   : > { %5591 = vmatmul.msk.bf16.gmra.mxu0 %vm1482_vm12, %v4725_v50  ;;  %v4135_v50 = vor.u32 %v4134_v0, %v7034_v5  ;;  %v4634_v4 = vsel %vm6315_vm1, %v4632_v28, %v4633_v31  ;;  %v4517_v28 = vld [vmem:[#allocation2 + $0x84] sm:$0xe]  ;;  %v4140_v31 = vrot.slane %v4138_v27, 5  ;;  %v4152_v27 = vshll.u32 %v7053_v41, 16 }
 0x24c   : > { %7469 = vst [vmem:[#allocation4_spill] sm:$0xff] %v7031_v43  ;;  %v3742_v36 = vpop.f32.mrf.mxu2  ;;  %v4703_v26 = vunpack.c.l.b16 %v4634_v4  ;;  %v3306_v58 = vsel %vm6315_vm1, %v5446_v11, %v3305_v44  ;;  %v5576_v15 = vrot.slane %v4517_v28, 9  ;;  %v4640_v43 = vrot.slane %v3883_v40, 5 }
 0x24d   : > { %5462 = vmatmul.msk.bf16.gmra.mxu1 %vm1482_vm12, %v3388_v51  ;;  %v5794_v51 = vld [vmem:[#allocation2 + $0x8c] sm:$0x1]  ;;  %v4136_v0 = vrot.slane %v4135_v50, 4  ;;  %v3822_v53 = vadd.f32 %v3742_v36, %v3535_v17  ;;  %v4639_v50 = vrot.slane %v4637_v35, 4  ;;  %v4156_v17 = vshrl.u32 %v7053_v41, 16 }
 0x24e   : > { %v3308_v54 = vrot.slane %v5794_v51, 5  ;;  %v4146_v51 = vshll.u32 %v3884_v14, 16  ;;  %v4638_v28 = vsel %vm6315_vm1, %v5576_v15, %v4637_v35 }
 0x24f   : > { %v2480_v42 = vpop.f32.mrf.mxu3  ;;  %v4141_v40 = vsel %vm5997_vm13, %v4136_v0, %v4140_v31  ;;  %v4158_v0 = vrot.slane %v4156_v17, 4 }
 0x250   : > { %v3134_v62 = vpop.f32.mrf.mxu0  ;;  %v2514_v34 = vadd.f32 %v2480_v42, %v2228_v19  ;;  %v4702_v19 = vunpack.c.l.b16 %v4631_v39  ;;  %v3309_v42 = vsel %vm6315_vm1, %v3307_v60, %v3308_v54  ;;  %v3367_v39 = vunpack.c.l.b16 %v3306_v58 }
 0x251   : > { %v3368_v4 = vunpack.c.l.b16 %v3309_v42  ;;  %v4131_v54 = vsel %vm5997_vm13, %v4126_v33, %v7034_v5  ;;  %v4148_v14 = vrot.slane %v4146_v51, 5  ;;  %v4641_v5 = vsel %vm6315_vm1, %v4639_v50, %v4640_v43 }
 0x252   : > { %v7046_v21 = vpop.f32.mrf.mxu1  ;;  %v7058_v44 = vadd.f32 %v3134_v62, %v2514_v34  ;;  %v4145_v34 = vrot.slane %v4143_v61, 4  ;;  %v4306_v58 = vunpack.c.l.b16 %v4131_v54  ;;  %v4307_v42 = vunpack.c.l.b16 %v4141_v40  ;;  %v3180_v54 = vld [vmem:[#allocation2 + $0x90] sm:$0xe] }
 0x253   : > { %v3389_v62 = vpack.c.b16 %v3368_v4, %v3367_v39  ;;  %v4705_v35 = vunpack.c.l.b16 %v4641_v5 }
 0x254   : > { %v3744_v18 = vpop.f32.mrf.mxu2  ;;  %5559 = vmatmul.msk.bf16.gmra.mxu3 %vm1482_vm12, %v4328_v9  ;;  %v4726_v9 = vpack.c.b16 %v4703_v26, %v4702_v19  ;;  %7470 = vst [vmem:[#allocation10_spill] sm:$0xff] %v7058_v44  ;;  %v3536_v26 = vadd.f32 %v7010_v48, %v6561_v16  ;;  %v7084_v16 = vld [vmem:[#allocation2 + $0x98] sm:$0x1]  ;;  %v4704_v48 = vunpack.c.l.b16 %v4638_v28  ;;  %v4149_v43 = vor.u32 %v4148_v14, %v4145_v34 }
 0x255   : > { %v4162_v61 = vshll.u32 %v7084_v16, 16  ;;  %v4329_v50 = vpack.c.b16 %v4307_v42, %v4306_v58  ;;  %v5447_v34 = vrot.slane %v3180_v54, 9  ;;  %v4644_v42 = vrot.slane %v7053_v41, 5 }
 0x256   : > { %v3823_v31 = vadd.f32 %v3744_v18, %v3536_v26  ;;  %v5796_v26 = vld [vmem:[#allocation2 + $0x98] sm:$0x1] }
 0x257   : > { %v4396_v36 = vpop.f32.mrf.mxu3  ;;  %v3315_v28 = vrot.slane %v5796_v26, 5  ;;  %v4164_v58 = vrot.slane %v4162_v61, 5 }
 0x258   : > { %v4794_v11 = vpop.f32.mrf.mxu0  ;;  %v4476_v60 = vadd.f32 %v4396_v36, %v3822_v53 }
 0x259   : > { %5543 = vmatmul.msk.bf16.gmra.mxu2 %vm1482_vm12, %v5645_v55  ;;  %v7080_v55 = vrot.slane %v4152_v27, 5  ;;  %v7471_v27 = vld [vmem:[#allocation5_spill] sm:$0xff] }
 0x25a   : > { %v4874_v19 = vadd.f32 %v4794_v11, %v4476_v60  ;;  %v7077_v33 = vpop.f32.mrf.mxu1  ;;  %v3537_v17 = vadd.f32 %v7029_v1, %v7471_v27  ;;  %v4727_v11 = vpack.c.b16 %v4705_v35, %v4704_v48  ;;  %v4150_v60 = vrot.slane %v4149_v43, 4  ;;  %v5646_v43 = vld [vmem:[#allocation2 + $0x90] sm:$0xff] }
 0x25b   : > { %5592 = vmatmul.msk.bf16.gmra.mxu0 %vm1482_vm12, %v4726_v9  ;;  %v4159_v4 = vor.u32 %v4158_v0, %v7080_v55  ;;  %v5795_v9 = vld [vmem:[#allocation2 + $0x94] sm:$0xf] }
 0x25c   : > { %v3747_v53 = vpop.f32.mrf.mxu2  ;;  %4907 = vst.msk [vmem:[%s7067_s9] sm:$0xff] %vm4906_vm0, %v4874_v19  ;;  %v3312_v36 = vrot.slane %v5795_v9, 5  ;;  %v5010_v18 = vmul.f32 %v4874_v19, %v4874_v19  ;;  %v4939_v5 = vsel %vm4906_vm0, %v4874_v19, 0.0  ;;  %v4155_v41 = vsel %vm5997_vm13, %v4150_v60, %v7080_v55  ;;  %v7472_v60 = vld [vmem:[#allocation6_spill] sm:$0xff] }
 0x25d   : > { %5463 = vmatmul.msk.bf16.gmra.mxu1 %vm1482_vm12, %v3389_v62  ;;  %v3824_v35 = vadd.f32 %v3747_v53, %v3537_v17 }
 0x25e   : > { %v3314_v14 = vrot.slane %v3312_v36, 4  ;;  %v5042_v9 = vsel %vm4906_vm0, %v5010_v18, 0.0  ;;  %v3538_v18 = vadd.f32 %v7046_v21, %v7472_v60 }
 0x25f   : > { %v4398_v39 = vpop.f32.mrf.mxu3 }
 0x260   : > { %v4796_v51 = vpop.f32.mrf.mxu0  ;;  %v4477_v15 = vadd.f32 %v4398_v39, %v3823_v31  ;;  %v4160_v31 = vrot.slane %v4159_v4, 4  ;;  %v3887_v39 = vld [vmem:[#allocation2 + $0x9c] sm:$0xf]  ;;  %v3316_v4 = vsel %vm6315_vm1, %v3314_v14, %v3315_v28  ;;  %v4308_v28 = vunpack.c.l.b16 %v4155_v41 }
 0x261   : > { %v3370_v53 = vunpack.c.l.b16 %v3316_v4  ;;  %v4167_v27 = vshrl.u32 %v3887_v39, 16  ;;  %v4647_v4 = vrot.slane %v7084_v16, 5 }
 0x262   : > { %v4875_v40 = vadd.f32 %v4796_v51, %v4477_v15  ;;  %v7091_v62 = vpop.f32.mrf.mxu1  ;;  %v3313_v51 = vsel %vm6315_vm1, %v5447_v34, %v3312_v36  ;;  %v7101_v15 = vld [vmem:[#allocation2 + $0xa0] sm:$0xf]  ;;  %v4518_v36 = vld [vmem:[#allocation2 + $0x90] sm:$0xe]  ;;  %v4165_v14 = vsel %vm5997_vm13, %v4160_v31, %v4164_v58 }
 0x263   : > { %v3369_v61 = vunpack.c.l.b16 %v3313_v51  ;;  %v4176_v34 = vshll.u32 %v7101_v15, 16  ;;  %v4180_v26 = vshrl.u32 %v7101_v15, 16  ;;  %v5577_v51 = vrot.slane %v4518_v36, 9 }
 0x264   : > { %v3749_v0 = vpop.f32.mrf.mxu2  ;;  %4908 = vst.msk [vmem:[%s7067_s9 + $0x8] sm:$0xff] %vm4906_vm0, %v4875_v40  ;;  %v4940_v1 = vsel %vm4906_vm0, %v4875_v40, 0.0  ;;  %v5011_v48 = vmul.f32 %v4875_v40, %v4875_v40  ;;  %5560 = vmatmul.msk.bf16.gmra.mxu3 %vm1482_vm12, %v4329_v50  ;;  %v4170_v40 = vshll.u32 %v3887_v39, 16  ;;  %v4646_v39 = vrot.slane %v4644_v42, 4 }
 0x265   : > { %v4941_v19 = vadd.f32 %v4940_v1, %v4939_v5  ;;  %v3390_v1 = vpack.c.b16 %v3370_v53, %v3369_v61  ;;  %v4182_v21 = vrot.slane %v4180_v26, 4  ;;  %v3825_v41 = vadd.f32 %v3749_v0, %v3538_v18  ;;  %v7126_v53 = vld [vmem:[#allocation2 + $0xa4] sm:$0x1]  ;;  %v5797_v18 = vld [vmem:[#allocation2 + $0xa0] sm:$0xf] }
 0x266   : > { %v5043_v50 = vsel %vm4906_vm0, %v5011_v48, 0.0  ;;  %v4309_v61 = vunpack.c.l.b16 %v4165_v14  ;;  %v4648_v36 = vsel %vm6315_vm1, %v4646_v39, %v4647_v4  ;;  %v4186_v0 = vshll.u32 %v7126_v53, 16  ;;  %v3890_v39 = vld [vmem:[#allocation2 + $0xa8] sm:$0xf] }
 0x267   : > { %v5044_v17 = vadd.f32 %v5043_v50, %v5042_v9  ;;  %v4401_v54 = vpop.f32.mrf.mxu3  ;;  %v4172_v50 = vrot.slane %v4170_v40, 5  ;;  %v3319_v14 = vrot.slane %v5797_v18, 5  ;;  %v4191_v18 = vshrl.u32 %v3890_v39, 16 }
 0x268   : > { %v4799_v5 = vpop.f32.mrf.mxu0  ;;  %v4478_v55 = vadd.f32 %v4401_v54, %v3824_v35  ;;  %v7121_v54 = vrot.slane %v4176_v34, 5 }
 0x269   : > { %5544 = vmatmul.msk.bf16.gmra.mxu2 %vm1482_vm12, %v5646_v43  ;;  %v4169_v43 = vrot.slane %v4167_v27, 4  ;;  %v4645_v27 = vsel %vm6315_vm1, %v5577_v51, %v4644_v42  ;;  %v4707_v51 = vunpack.c.l.b16 %v4648_v36  ;;  %v5647_v36 = vld [vmem:[#allocation2 + $0x9c] sm:$0xff] }
 0x26a   : > { %v4876_v48 = vadd.f32 %v4799_v5, %v4478_v55  ;;  %v7118_v9 = vpop.f32.mrf.mxu1  ;;  %v4183_v5 = vor.u32 %v4182_v21, %v7121_v54  ;;  %v4706_v42 = vunpack.c.l.b16 %v4645_v27  ;;  %v5798_v21 = vld [vmem:[#allocation2 + $0xa4] sm:$0x1] }
 0x26b   : > { %5593 = vmatmul.msk.bf16.gmra.mxu0 %vm1482_vm12, %v4727_v11  ;;  %v4173_v26 = vor.u32 %v4172_v50, %v4169_v43  ;;  %v3321_v50 = vrot.slane %v3319_v14, 4 }
 0x26c   : > { %v3752_v35 = vpop.f32.mrf.mxu2  ;;  %4909 = vst.msk [vmem:[%s7067_s9 + $0x10] sm:$0xff] %vm4906_vm0, %v4876_v48  ;;  %v4942_v31 = vsel %vm4906_vm0, %v4876_v48, 0.0  ;;  %v5012_v58 = vmul.f32 %v4876_v48, %v4876_v48 }
 0x26d   : > { %v4943_v16 = vadd.f32 %v4942_v31, %v4941_v19  ;;  %5464 = vmatmul.msk.bf16.gmra.mxu1 %vm1482_vm12, %v3390_v1  ;;  %v4330_v19 = vpack.c.b16 %v4309_v61, %v4308_v28  ;;  %v7473_v1 = vld [vmem:[#allocation7_spill] sm:$0xff]  ;;  %v4174_v28 = vrot.slane %v4173_v26, 4  ;;  %v4184_v61 = vrot.slane %v4183_v5, 4 }
 0x26e   : > { %v5045_v11 = vsel %vm4906_vm0, %v5012_v58, 0.0  ;;  %v3539_v48 = vadd.f32 %v7077_v33, %v7473_v1  ;;  %v3181_v31 = vld [vmem:[#allocation2 + $0x9c] sm:$0xe]  ;;  %v3322_v58 = vrot.slane %v5798_v21, 5  ;;  %v4194_v5 = vshll.u32 %v3890_v39, 16 }
 0x26f   : > { %v5046_v40 = vadd.f32 %v5045_v11, %v5044_v17  ;;  %v4403_v34 = vpop.f32.mrf.mxu3  ;;  %v5448_v43 = vrot.slane %v3181_v31, 9  ;;  %v4651_v31 = vrot.slane %v7101_v15, 5  ;;  %v4728_v21 = vpack.c.b16 %v4707_v51, %v4706_v42 }
 0x270   : > { %v4801_v55 = vpop.f32.mrf.mxu0  ;;  %v4479_v60 = vadd.f32 %v4403_v34, %v3825_v41  ;;  %v3826_v11 = vadd.f32 %v3752_v35, %v3539_v48  ;;  %v4188_v34 = vrot.slane %v4186_v0, 5  ;;  %v3323_v35 = vsel %vm6315_vm1, %v3321_v50, %v3322_v58  ;;  %v4519_v48 = vld [vmem:[#allocation2 + $0x9c] sm:$0xe] }
 0x271   : > { %v4179_v39 = vsel %vm5997_vm13, %v4174_v28, %v7121_v54  ;;  %v5578_v15 = vrot.slane %v4519_v48, 9  ;;  %v4193_v42 = vrot.slane %v4191_v18, 4  ;;  %v4196_v51 = vrot.slane %v4194_v5, 5 }
 0x272   : > { %v4877_v17 = vadd.f32 %v4801_v55, %v4479_v60  ;;  %v7138_v4 = vpop.f32.mrf.mxu1  ;;  %v3320_v55 = vsel %vm6315_vm1, %v5448_v43, %v3319_v14  ;;  %v7146_v60 = vld [vmem:[#allocation2 + $0xac] sm:$0xf]  ;;  %v4189_v50 = vsel %vm5997_vm13, %v4184_v61, %v4188_v34  ;;  %v4310_v54 = vunpack.c.l.b16 %v4179_v39 }
 0x273   : > { %v3371_v26 = vunpack.c.l.b16 %v3320_v55  ;;  %v4200_v14 = vshll.u32 %v7146_v60, 16  ;;  %v4204_v43 = vshrl.u32 %v7146_v60, 16  ;;  %v4653_v55 = vrot.slane %v4651_v31, 4 }
 0x274   : > { %v3754_v41 = vpop.f32.mrf.mxu2  ;;  %4910 = vst.msk [vmem:[%s7067_s9 + $0x18] sm:$0xff] %vm4906_vm0, %v4877_v17  ;;  %v4944_v33 = vsel %vm4906_vm0, %v4877_v17, 0.0  ;;  %v5013_v27 = vmul.f32 %v4877_v17, %v4877_v17  ;;  %5561 = vmatmul.msk.bf16.gmra.mxu3 %vm1482_vm12, %v4330_v19  ;;  %v3372_v17 = vunpack.c.l.b16 %v3323_v35  ;;  %v4311_v35 = vunpack.c.l.b16 %v4189_v50  ;;  %v5799_v50 = vld [vmem:[#allocation2 + $0xac] sm:$0xf] }
 0x275   : > { %v4945_v1 = vadd.f32 %v4944_v33, %v4943_v16  ;;  %v7474_v33 = vld [vmem:[#allocation8_spill] sm:$0xff]  ;;  %v7168_v61 = vrot.slane %v4200_v14, 5  ;;  %v4206_v34 = vrot.slane %v4204_v43, 4  ;;  %v4197_v5 = vor.u32 %v4196_v51, %v4193_v42 }
 0x276   : > { %v5047_v0 = vsel %vm4906_vm0, %v5013_v27, 0.0  ;;  %v3540_v27 = vadd.f32 %v7091_v62, %v7474_v33 }
 0x277   : > { %v5048_v19 = vadd.f32 %v5047_v0, %v5046_v40  ;;  %v4406_v44 = vpop.f32.mrf.mxu3  ;;  %v3391_v40 = vpack.c.b16 %v3372_v17, %v3371_v26  ;;  %v4207_v43 = vor.u32 %v4206_v34, %v7168_v61 }
 0x278   : > { %v4804_v47 = vpop.f32.mrf.mxu0  ;;  %v4480_v16 = vadd.f32 %v4406_v44, %v3826_v11  ;;  %v4654_v44 = vrot.slane %v7126_v53, 5  ;;  %v3827_v62 = vadd.f32 %v3754_v41, %v3540_v27  ;;  %v4652_v53 = vsel %vm6315_vm1, %v5578_v15, %v4651_v31  ;;  %v3893_v15 = vld [vmem:[#allocation2 + $0xb4] sm:$0xf]  ;;  %v3182_v27 = vld [vmem:[#allocation2 + $0xa8] sm:$0xe] }
 0x279   : > { %5545 = vmatmul.msk.bf16.gmra.mxu2 %vm1482_vm12, %v5647_v36  ;;  %v7165_v36 = vld [vmem:[#allocation2 + $0xb0] sm:$0x1]  ;;  %v4708_v39 = vunpack.c.l.b16 %v4652_v53  ;;  %v3326_v31 = vrot.slane %v5799_v50, 5  ;;  %v4215_v53 = vshrl.u32 %v3893_v15, 16 }
 0x27a   : > { %v4878_v58 = vadd.f32 %v4804_v47, %v4480_v16  ;;  %v7163_v11 = vpop.f32.mrf.mxu1  ;;  %v4210_v0 = vshll.u32 %v7165_v36, 16  ;;  %v4655_v17 = vsel %vm6315_vm1, %v4653_v55, %v4654_v44  ;;  %v5449_v44 = vrot.slane %v3182_v27, 9 }
 0x27b   : > { %5594 = vmatmul.msk.bf16.gmra.mxu0 %vm1482_vm12, %v4728_v21  ;;  %v4709_v51 = vunpack.c.l.b16 %v4655_v17  ;;  %v3328_v34 = vrot.slane %v3326_v31, 4  ;;  %v5648_v17 = vld [vmem:[#allocation2 + $0xa8] sm:$0xff] }
 0x27c   : > { %v3757_v28 = vpop.f32.mrf.mxu2  ;;  %4911 = vst.msk [vmem:[%s7067_s9 + $0x20] sm:$0xff] %vm4906_vm0, %v4878_v58  ;;  %v4946_v47 = vsel %vm4906_vm0, %v4878_v58, 0.0  ;;  %v5014_v18 = vmul.f32 %v4878_v58, %v4878_v58  ;;  %v4198_v58 = vrot.slane %v4197_v5, 4  ;;  %v4212_v33 = vrot.slane %v4210_v0, 5 }
 0x27d   : > { %v4947_v26 = vadd.f32 %v4946_v47, %v4945_v1  ;;  %5465 = vmatmul.msk.bf16.gmra.mxu1 %vm1482_vm12, %v3391_v40  ;;  %v4331_v1 = vpack.c.b16 %v4311_v35, %v4310_v54  ;;  %v7475_v40 = vld [vmem:[#allocation9_spill] sm:$0xff]  ;;  %v5800_v47 = vld [vmem:[#allocation2 + $0xb0] sm:$0x1]  ;;  %v4658_v35 = vrot.slane %v7146_v60, 5 }
 0x27e   : > { %v5049_v48 = vsel %vm4906_vm0, %v5014_v18, 0.0  ;;  %v3541_v42 = vadd.f32 %v7118_v9, %v7475_v40  ;;  %v3329_v18 = vrot.slane %v5800_v47, 5  ;;  %v4203_v40 = vsel %vm5997_vm13, %v4198_v58, %v7168_v61 }
 0x27f   : > { %v5050_v21 = vadd.f32 %v5049_v48, %v5048_v19  ;;  %v4408_v14 = vpop.f32.mrf.mxu3  ;;  %v4218_v48 = vshll.u32 %v3893_v15, 16  ;;  %v4729_v15 = vpack.c.b16 %v4709_v51, %v4708_v39  ;;  %v4217_v47 = vrot.slane %v4215_v53, 4 }
 0x280   : > { %v4806_v41 = vpop.f32.mrf.mxu0  ;;  %v4481_v16 = vadd.f32 %v4408_v14, %v3827_v62  ;;  %v4208_v62 = vrot.slane %v4207_v43, 4  ;;  %v3828_v0 = vadd.f32 %v3757_v28, %v3541_v42  ;;  %v4520_v14 = vld [vmem:[#allocation2 + $0xa8] sm:$0xe]  ;;  %v3330_v43 = vsel %vm6315_vm1, %v3328_v34, %v3329_v18 }
 0x281   : > { %v3374_v27 = vunpack.c.l.b16 %v3330_v43  ;;  %v4660_v51 = vrot.slane %v4658_v35, 4  ;;  %v4661_v34 = vrot.slane %v7165_v36, 5  ;;  %v3542_v53 = vadd.f32 %v7138_v4, %v6640_v25  ;;  %v7218_v4 = vld [vmem:[#allocation2 + $0xbc] sm:$0x1] }
 0x282   : > { %v4879_v55 = vadd.f32 %v4806_v41, %v4481_v16  ;;  %v7183_v19 = vpop.f32.mrf.mxu1  ;;  %v3327_v41 = vsel %vm6315_vm1, %v5449_v44, %v3326_v31  ;;  %v4220_v31 = vrot.slane %v4218_v48, 5  ;;  %v4213_v39 = vsel %vm5997_vm13, %v4208_v62, %v4212_v33 }
 0x283   : > { %v3373_v60 = vunpack.c.l.b16 %v3327_v41  ;;  %v4662_v25 = vsel %vm6315_vm1, %v4660_v51, %v4661_v34  ;;  %v3183_v51 = vld [vmem:[#allocation2 + $0xb4] sm:$0xe] }
 0x284   : > { %v3759_v54 = vpop.f32.mrf.mxu2  ;;  %4912 = vst.msk [vmem:[%s7067_s9 + $0x28] sm:$0xff] %vm4906_vm0, %v4879_v55  ;;  %v4948_v9 = vsel %vm4906_vm0, %v4879_v55, 0.0  ;;  %v5015_v5 = vmul.f32 %v4879_v55, %v4879_v55  ;;  %5562 = vmatmul.msk.bf16.gmra.mxu3 %vm1482_vm12, %v4331_v1  ;;  %v7198_v1 = vld [vmem:[#allocation2 + $0xb8] sm:$0xf]  ;;  %v5579_v55 = vrot.slane %v4520_v14, 9  ;;  %v4221_v36 = vor.u32 %v4220_v31, %v4217_v47 }
 0x285   : > { %v4949_v16 = vadd.f32 %v4948_v9, %v4947_v26  ;;  %v3392_v61 = vpack.c.b16 %v3374_v27, %v3373_v60  ;;  %v4224_v58 = vshll.u32 %v7198_v1, 16  ;;  %v4312_v9 = vunpack.c.l.b16 %v4203_v40 }
 0x286   : > { %v5051_v50 = vsel %vm4906_vm0, %v5015_v5, 0.0  ;;  %v4313_v5 = vunpack.c.l.b16 %v4213_v39  ;;  %v4659_v33 = vsel %vm6315_vm1, %v5579_v55, %v4658_v35  ;;  %v3829_v14 = vadd.f32 %v3759_v54, %v3542_v53 }
 0x287   : > { %v5052_v28 = vadd.f32 %v5051_v50, %v5050_v21  ;;  %v4411_v42 = vpop.f32.mrf.mxu3  ;;  %v4228_v21 = vshrl.u32 %v7198_v1, 16  ;;  %v4226_v43 = vrot.slane %v4224_v58, 5  ;;  %v4710_v50 = vunpack.c.l.b16 %v4659_v33 }
 0x288   : > { %v4809_v26 = vpop.f32.mrf.mxu0  ;;  %v4482_v44 = vadd.f32 %v4411_v42, %v3828_v0  ;;  %v4711_v27 = vunpack.c.l.b16 %v4662_v25  ;;  %v4222_v42 = vrot.slane %v4221_v36, 4  ;;  %v4234_v55 = vshll.u32 %v7218_v4, 16  ;;  %v3896_v36 = vld [vmem:[#allocation2 + $0xc0] sm:$0xf]  ;;  %v7235_v25 = vld [vmem:[#allocation2 + $0xc4] sm:$0xf] }
 0x289   : > { %5546 = vmatmul.msk.bf16.gmra.mxu2 %vm1482_vm12, %v5648_v17  ;;  %v4230_v60 = vrot.slane %v4228_v21, 4  ;;  %v4332_v31 = vpack.c.b16 %v4313_v5, %v4312_v9  ;;  %v5802_v21 = vld [vmem:[#allocation2 + $0xbc] sm:$0x1] }
 0x28a   : > { %v4880_v18 = vadd.f32 %v4809_v26, %v4482_v44  ;;  %v7208_v48 = vpop.f32.mrf.mxu1  ;;  %v5801_v26 = vld [vmem:[#allocation2 + $0xb8] sm:$0xf]  ;;  %v4730_v53 = vpack.c.b16 %v4711_v27, %v4710_v50  ;;  %v4227_v9 = vsel %vm5997_vm13, %v4222_v42, %v4226_v43  ;;  %v4236_v5 = vrot.slane %v4234_v55, 5 }
 0x28b   : > { %5595 = vmatmul.msk.bf16.gmra.mxu0 %vm1482_vm12, %v4729_v15  ;;  %v3333_v44 = vrot.slane %v5801_v26, 5  ;;  %v4231_v39 = vor.u32 %v4230_v60, %v4226_v43  ;;  %v4665_v42 = vrot.slane %v7198_v1, 5  ;;  %v4521_v26 = vld [vmem:[#allocation2 + $0xb4] sm:$0xe] }
 0x28c   : > { %v3762_v62 = vpop.f32.mrf.mxu2  ;;  %4913 = vst.msk [vmem:[%s7067_s9 + $0x30] sm:$0xff] %vm4906_vm0, %v4880_v18  ;;  %v4950_v0 = vsel %vm4906_vm0, %v4880_v18, 0.0  ;;  %v5016_v17 = vmul.f32 %v4880_v18, %v4880_v18  ;;  %v3336_v18 = vrot.slane %v5802_v21, 5 }
 0x28d   : > { %v4951_v41 = vadd.f32 %v4950_v0, %v4949_v16  ;;  %5466 = vmatmul.msk.bf16.gmra.mxu1 %vm1482_vm12, %v3392_v61  ;;  %v3543_v16 = vadd.f32 %v7163_v11, %v6648_v12  ;;  %v3335_v58 = vrot.slane %v3333_v44, 4 }
 0x28e   : > { %v5053_v35 = vsel %vm4906_vm0, %v5016_v17, 0.0  ;;  %v5649_v17 = vld [vmem:[#allocation2 + $0xb4] sm:$0xff] }
 0x28f   : > { %v5054_v15 = vadd.f32 %v5053_v35, %v5052_v28  ;;  %v4413_v40 = vpop.f32.mrf.mxu3  ;;  %v5450_v28 = vrot.slane %v3183_v51, 9  ;;  %v3830_v0 = vadd.f32 %v3762_v62, %v3543_v16  ;;  %v4232_v35 = vrot.slane %v4231_v39, 4  ;;  %v524_v62 = vld [vmem:[#allocation2 + $0xd4] sm:$0x1] }
 0x290   : > { %v4811_v54 = vpop.f32.mrf.mxu0  ;;  %v4483_v47 = vadd.f32 %v4413_v40, %v3829_v14  ;;  %v3337_v43 = vsel %vm6315_vm1, %v3335_v58, %v3336_v18  ;;  %v468_v40 = vld [vmem:[#allocation2 + $0xcc] sm:$0x1]  ;;  %v4248_v16 = vshll.u32 %v7235_v25, 16  ;;  %v525_v21 = vsel %vm5869_vm6, 0, %v524_v62 }
 0x291   : > { %v3334_v14 = vsel %vm6315_vm1, %v5450_v28, %v3333_v44  ;;  %v3376_v55 = vunpack.c.l.b16 %v3337_v43  ;;  %v4242_v44 = vshll.u32 %v3896_v36, 16  ;;  %v469_v1 = vsel %vm5860_vm3, 0, %v468_v40  ;;  %526 = vst [vmem:[#allocation2 + $0xd4] sm:$0x1] %v525_v21  ;;  %v7261_v43 = vld [vmem:[#allocation2 + $0xc8] sm:$0x1] }
 0x292   : > { %v4881_v34 = vadd.f32 %v4811_v54, %v4483_v47  ;;  %v7225_v61 = vpop.f32.mrf.mxu1  ;;  %v3375_v50 = vunpack.c.l.b16 %v3334_v14  ;;  %v4239_v54 = vshrl.u32 %v3896_v36, 16  ;;  %v4314_v28 = vunpack.c.l.b16 %v4227_v9  ;;  %470 = vst [vmem:[#allocation2 + $0xcc] sm:$0x1] %v469_v1 }
 0x293   : > { %v5580_v36 = vrot.slane %v4521_v26, 9  ;;  %v7256_v9 = vrot.slane %v4248_v16, 5 }
 0x294   : > { %v3764_v33 = vpop.f32.mrf.mxu2  ;;  %4914 = vst.msk [vmem:[%s7067_s9 + $0x38] sm:$0xff] %vm4906_vm0, %v4881_v34  ;;  %v4952_v12 = vsel %vm4906_vm0, %v4881_v34, 0.0  ;;  %v5017_v11 = vmul.f32 %v4881_v34, %v4881_v34  ;;  %5563 = vmatmul.msk.bf16.gmra.mxu3 %vm1482_vm12, %v4332_v31  ;;  %v3544_v34 = vadd.f32 %v7183_v19, %v6668_v22  ;;  %v3393_v58 = vpack.c.b16 %v3376_v55, %v3375_v50 }
 0x295   : > { %v4953_v60 = vadd.f32 %v4952_v12, %v4951_v41  ;;  %v4252_v41 = vshrl.u32 %v7235_v25, 16  ;;  %v4667_v12 = vrot.slane %v4665_v42, 4  ;;  %v4668_v22 = vrot.slane %v7218_v4, 5 }
 0x296   : > { %v5055_v27 = vsel %vm4906_vm0, %v5017_v11, 0.0  ;;  %v4241_v11 = vrot.slane %v4239_v54, 4  ;;  %v3831_v14 = vadd.f32 %v3764_v33, %v3544_v34  ;;  %v4666_v50 = vsel %vm6315_vm1, %v5580_v36, %v4665_v42 }
 0x297   : > { %v5056_v47 = vadd.f32 %v5055_v27, %v5054_v15  ;;  %v4416_v31 = vpop.f32.mrf.mxu3  ;;  %v4237_v15 = vsel %vm5997_vm13, %v4232_v35, %v4236_v5  ;;  %v4244_v5 = vrot.slane %v4242_v44, 5  ;;  %v4669_v40 = vsel %vm6315_vm1, %v4667_v12, %v4668_v22  ;;  %v5803_v44 = vld [vmem:[#allocation2 + $0xc4] sm:$0xf] }
 0x298   : > { %v4814_v39 = vpop.f32.mrf.mxu0  ;;  %v4484_v51 = vadd.f32 %v4416_v31, %v3830_v0  ;;  %v4254_v0 = vrot.slane %v4252_v41, 4  ;;  %v4315_v35 = vunpack.c.l.b16 %v4237_v15  ;;  %v4258_v33 = vshll.u32 %v7261_v43, 16 }
 0x299   : > { %5547 = vmatmul.msk.bf16.gmra.mxu2 %vm1482_vm12, %v5649_v17  ;;  %v4245_v54 = vor.u32 %v4244_v5, %v4241_v11  ;;  %v3340_v16 = vrot.slane %v5803_v44, 5  ;;  %v3545_v41 = vadd.f32 %v7208_v48, %v6674_v13  ;;  %v4712_v42 = vunpack.c.l.b16 %v4666_v50  ;;  %v5650_v48 = vld [vmem:[#allocation2 + $0xc0] sm:$0xff] }
 0x29a   : > { %v4882_v18 = vadd.f32 %v4814_v39, %v4484_v51  ;;  %v7253_v19 = vpop.f32.mrf.mxu1  ;;  %v4255_v62 = vor.u32 %v4254_v0, %v7256_v9  ;;  %v4713_v39 = vunpack.c.l.b16 %v4669_v40  ;;  %v3184_v51 = vld [vmem:[#allocation2 + $0xc0] sm:$0xe]  ;;  %v3899_v0 = vld [vmem:[#allocation2 + $0xcc] sm:$0xf]  ;;  %v7284_v40 = vld [vmem:[#allocation2 + $0xd0] sm:$0xf] }
 0x29b   : > { %5596 = vmatmul.msk.bf16.gmra.mxu0 %vm1482_vm12, %v4730_v53  ;;  %v5451_v1 = vrot.slane %v3184_v51, 9  ;;  %v3342_v15 = vrot.slane %v3340_v16, 4  ;;  %v4246_v36 = vrot.slane %v4245_v54, 4  ;;  %v4266_v44 = vshll.u32 %v3899_v0, 16 }
 0x29c   : > { %v3767_v2 = vpop.f32.mrf.mxu2  ;;  %4915 = vst.msk [vmem:[%s7067_s9 + $0x40] sm:$0xff] %vm4906_vm0, %v4882_v18  ;;  %v4954_v6 = vsel %vm4906_vm0, %v4882_v18, 0.0  ;;  %v5018_v17 = vmul.f32 %v4882_v18, %v4882_v18  ;;  %v4256_v12 = vrot.slane %v4255_v62, 4  ;;  %v4522_v62 = vld [vmem:[#allocation2 + $0xc0] sm:$0xe] }
 0x29d   : > { %v4955_v4 = vadd.f32 %v4954_v6, %v4953_v60  ;;  %5467 = vmatmul.msk.bf16.gmra.mxu1 %vm1482_vm12, %v3393_v58  ;;  %v4333_v60 = vpack.c.b16 %v4315_v35, %v4314_v28  ;;  %v5804_v58 = vld [vmem:[#allocation2 + $0xc8] sm:$0x1]  ;;  %v4260_v28 = vrot.slane %v4258_v33, 5  ;;  %v3832_v13 = vadd.f32 %v3767_v2, %v3545_v41 }
 0x29e   : > { %v5057_v53 = vsel %vm4906_vm0, %v5018_v17, 0.0  ;;  %v3343_v21 = vrot.slane %v5804_v58, 5  ;;  %v3341_v5 = vsel %vm6315_vm1, %v5451_v1, %v3340_v16  ;;  %v4251_v2 = vsel %vm5997_vm13, %v4246_v36, %v7256_v9 }
 0x29f   : > { %v5058_v27 = vadd.f32 %v5057_v53, %v5056_v47  ;;  %v4418_v55 = vpop.f32.mrf.mxu3  ;;  %v4731_v53 = vpack.c.b16 %v4713_v39, %v4712_v42  ;;  %v4672_v33 = vrot.slane %v7235_v25, 5  ;;  %v4276_v41 = vshrl.u32 %v7284_v40, 16 }
 0x2a0   : > { %v4816_v31 = vpop.f32.mrf.mxu0  ;;  %v4485_v26 = vadd.f32 %v4418_v55, %v3831_v14  ;;  %v3344_v17 = vsel %vm6315_vm1, %v3342_v15, %v3343_v21  ;;  %v3377_v14 = vunpack.c.l.b16 %v3341_v5  ;;  %v3546_v9 = vadd.f32 %v7225_v61, %v6687_v38 }
 0x2a1   : > { %v3378_v50 = vunpack.c.l.b16 %v3344_v17  ;;  %v4316_v25 = vunpack.c.l.b16 %v4251_v2  ;;  %v5581_v39 = vrot.slane %v4522_v62, 9  ;;  %v4674_v1 = vrot.slane %v4672_v33, 4 }
 0x2a2   : > { %v4883_v34 = vadd.f32 %v4816_v31, %v4485_v26  ;;  %v7273_v47 = vpop.f32.mrf.mxu1  ;;  %v4675_v15 = vrot.slane %v7261_v43, 5  ;;  %v3547_v2 = vadd.f32 %v7253_v19, %v6700_v8 }
 0x2a3   : > { %v3394_v16 = vpack.c.b16 %v3378_v50, %v3377_v14 }
 0x2a4   : > { %v3769_v18 = vpop.f32.mrf.mxu2  ;;  %4916 = vst.msk [vmem:[%s7067_s9 + $0x48] sm:$0xff] %vm4906_vm0, %v4883_v34  ;;  %v4956_v22 = vsel %vm4906_vm0, %v4883_v34, 0.0  ;;  %v5019_v11 = vmul.f32 %v4883_v34, %v4883_v34  ;;  %5564 = vmatmul.msk.bf16.gmra.mxu3 %vm1482_vm12, %v4333_v60  ;;  %v4261_v60 = vsel %vm5997_vm13, %v4256_v12, %v4260_v28 }
 0x2a5   : > { %v4957_v6 = vadd.f32 %v4956_v22, %v4955_v4  ;;  %v4263_v4 = vshrl.u32 %v3899_v0, 16  ;;  %v4317_v34 = vunpack.c.l.b16 %v4261_v60  ;;  %v3833_v28 = vadd.f32 %v3769_v18, %v3546_v9 }
 0x2a6   : > { %v5059_v35 = vsel %vm4906_vm0, %v5019_v11, 0.0  ;;  %v4268_v22 = vrot.slane %v4266_v44, 5  ;;  %v4278_v11 = vrot.slane %v4276_v41, 4  ;;  %v4673_v0 = vsel %vm6315_vm1, %v5581_v39, %v4672_v33  ;;  %v5651_v44 = vld [vmem:[#allocation2 + $0xcc] sm:$0xff] }
 0x2a7   : > { %v5060_v55 = vadd.f32 %v5059_v35, %v5058_v27  ;;  %v4421_v54 = vpop.f32.mrf.mxu3  ;;  %v4272_v27 = vshll.u32 %v7284_v40, 16  ;;  %v4265_v21 = vrot.slane %v4263_v4, 4  ;;  %v4334_v35 = vpack.c.b16 %v4317_v34, %v4316_v25 }
 0x2a8   : > { %v4819_v31 = vpop.f32.mrf.mxu0  ;;  %v4486_v26 = vadd.f32 %v4421_v54, %v3832_v13  ;;  %v4676_v18 = vsel %vm6315_vm1, %v4674_v1, %v4675_v15  ;;  %v4679_v39 = vrot.slane %v7284_v40, 5 }
 0x2a9   : > { %5548 = vmatmul.msk.bf16.gmra.mxu2 %vm1482_vm12, %v5650_v48  ;;  %v4274_v61 = vrot.slane %v4272_v27, 5  ;;  %v3901_v48 = vld [vmem:[#allocation2 + $0xd4] sm:$0x1]  ;;  %v4715_v4 = vunpack.c.l.b16 %v4676_v18 }
 0x2aa   : > { %v4884_v42 = vadd.f32 %v4819_v31, %v4486_v26  ;;  %v7297_v51 = vpop.f32.mrf.mxu1  ;;  %v4282_v50 = vshll.u32 %v3901_v48, 16 }
 0x2ab   : > { %5597 = vmatmul.msk.bf16.gmra.mxu0 %vm1482_vm12, %v4731_v53  ;;  %v4279_v53 = vor.u32 %v4278_v11, %v4274_v61  ;;  %v4682_v11 = vrot.slane %v3901_v48, 5 }
 0x2ac   : > { %v3772_v58 = vpop.f32.mrf.mxu2  ;;  %4917 = vst.msk [vmem:[%s7067_s9 + $0x50] sm:$0xff] %vm4906_vm0, %v4884_v42  ;;  %v4958_v36 = vsel %vm4906_vm0, %v4884_v42, 0.0  ;;  %v5020_v12 = vmul.f32 %v4884_v42, %v4884_v42  ;;  %v4284_v42 = vrot.slane %v4282_v50, 5  ;;  %v3549_v50 = vadd.f32 %v7297_v51, %v6734_v49 }
 0x2ad   : > { %v4959_v38 = vadd.f32 %v4958_v36, %v4957_v6  ;;  %5468 = vmatmul.msk.bf16.gmra.mxu1 %vm1482_vm12, %v3394_v16  ;;  %v4269_v6 = vor.u32 %v4268_v22, %v4265_v21  ;;  %v3834_v60 = vadd.f32 %v3772_v58, %v3547_v2  ;;  %v4280_v41 = vrot.slane %v4279_v53, 4  ;;  %v4523_v58 = vld [vmem:[#allocation2 + $0xcc] sm:$0xe] }
 0x2ae   : > { %v5061_v13 = vsel %vm4906_vm0, %v5020_v12, 0.0  ;;  %v3548_v12 = vadd.f32 %v7273_v47, %v6714_v63  ;;  %v5582_v22 = vrot.slane %v4523_v58, 9 }
 0x2af   : > { %v5062_v5 = vadd.f32 %v5061_v13, %v5060_v55  ;;  %v4423_v43 = vpop.f32.mrf.mxu3  ;;  %v4714_v55 = vunpack.c.l.b16 %v4673_v0  ;;  %v4270_v16 = vrot.slane %v4269_v6, 4  ;;  %v4285_v21 = vsel %vm5997_vm13, %v4280_v41, %v4284_v42 }
 0x2b0   : > { %v4821_v17 = vpop.f32.mrf.mxu0  ;;  %v4487_v14 = vadd.f32 %v4423_v43, %v3833_v28  ;;  %v4319_v37 = vunpack.c.l.b16 %v4285_v21  ;;  %v4680_v48 = vsel %vm6315_vm1, %v5582_v22, %v4679_v39 }
 0x2b1   : > { %v4732_v9 = vpack.c.b16 %v4715_v4, %v4714_v55  ;;  %v4275_v15 = vsel %vm5997_vm13, %v4270_v16, %v4274_v61  ;;  %v4716_v2 = vunpack.c.l.b16 %v4680_v48 }
 0x2b2   : > { %v4885_v54 = vadd.f32 %v4821_v17, %v4487_v14  ;;  %v7312_v62 = vpop.f32.mrf.mxu1  ;;  %v4318_v40 = vunpack.c.l.b16 %v4275_v15 }
 0x2b3   : > { %v3550_v42 = vadd.f32 %v7312_v62, %v6750_v10 }
 0x2b4   : > { %v3774_v31 = vpop.f32.mrf.mxu2  ;;  %4918 = vst.msk [vmem:[%s7067_s9 + $0x58] sm:$0xff] %vm4906_vm0, %v4885_v54  ;;  %v4960_v33 = vsel %vm4906_vm0, %v4885_v54, 0.0  ;;  %v5021_v26 = vmul.f32 %v4885_v54, %v4885_v54  ;;  %5565 = vmatmul.msk.bf16.gmra.mxu3 %vm1482_vm12, %v4334_v35  ;;  %v4335_v18 = vpack.c.b16 %v4319_v37, %v4318_v40 }
 0x2b5   : > { %v4961_v27 = vadd.f32 %v4960_v33, %v4959_v38  ;;  %v4681_v38 = vrot.slane %v4679_v39, 4  ;;  %v3835_v43 = vadd.f32 %v3774_v31, %v3548_v12 }
 0x2b6   : > { %v5063_v8 = vsel %vm4906_vm0, %v5021_v26, 0.0 }
 0x2b7   : > { %v5064_v19 = vadd.f32 %v5063_v8, %v5062_v5  ;;  %v4426_v25 = vpop.f32.mrf.mxu3  ;;  %v4683_v6 = vsel %vm6315_vm1, %v4681_v38, %v4682_v11 }
 0x2b8   : > { %v4824_v34 = vpop.f32.mrf.mxu0  ;;  %v4488_v1 = vadd.f32 %v4426_v25, %v3834_v60  ;;  %v4717_v55 = vunpack.c.l.b16 %v4683_v6 }
 0x2b9   : > { %5549 = vmatmul.msk.bf16.gmra.mxu2 %vm1482_vm12, %v5651_v44 }
 0x2ba   : > { %v4886_v36 = vadd.f32 %v4824_v34, %v4488_v1  ;;  %v3495_v28 = vpop.f32.mrf.mxu1  ;;  %v4733_v16 = vpack.c.b16 %v4717_v55, %v4716_v2 }
 0x2bb   : > { %5598 = vmatmul.msk.bf16.gmra.mxu0 %vm1482_vm12, %v4732_v9  ;;  %v3551_v10 = vadd.f32 %v3495_v28, %v6771_v3 }
 0x2bc   : > { %v3777_v13 = vpop.f32.mrf.mxu2  ;;  %4919 = vst.msk [vmem:[%s7067_s9 + $0x60] sm:$0xff] %vm4906_vm0, %v4886_v36  ;;  %v4962_v61 = vsel %vm4906_vm0, %v4886_v36, 0.0  ;;  %v5022_v5 = vmul.f32 %v4886_v36, %v4886_v36 }
 0x2bd   : > { %v4963_v0 = vadd.f32 %v4962_v61, %v4961_v27  ;;  %v3836_v26 = vadd.f32 %v3777_v13, %v3549_v50 }
 0x2be   : > { %v5065_v17 = vsel %vm4906_vm0, %v5022_v5, 0.0 }
 0x2bf   : > { %v5066_v63 = vadd.f32 %v5065_v17, %v5064_v19  ;;  %v4428_v47 = vpop.f32.mrf.mxu3 }
 0x2c0   : > { %v4826_v14 = vpop.f32.mrf.mxu0  ;;  %v4489_v35 = vadd.f32 %v4428_v47, %v3835_v43 }
 0x2c2   : > { %v4887_v53 = vadd.f32 %v4826_v14, %v4489_v35  ;;  %v3497_v54 = vpop.f32.mrf.mxu1 }
 0x2c4   : > { %v3779_v4 = vpop.f32.mrf.mxu2  ;;  %4920 = vst.msk [vmem:[%s7067_s9 + $0x68] sm:$0xff] %vm4906_vm0, %v4887_v53  ;;  %v4964_v31 = vsel %vm4906_vm0, %v4887_v53, 0.0  ;;  %v5023_v33 = vmul.f32 %v4887_v53, %v4887_v53  ;;  %5566 = vmatmul.msk.bf16.gmra.mxu3 %vm1482_vm12, %v4335_v18 }
 0x2c5   : > { %v4965_v60 = vadd.f32 %v4964_v31, %v4963_v0  ;;  %v3837_v39 = vadd.f32 %v3779_v4, %v3550_v42 }
 0x2c6   : > { %v5067_v57 = vsel %vm4906_vm0, %v5023_v33, 0.0 }
 0x2c7   : > { %v5068_v44 = vadd.f32 %v5067_v57, %v5066_v63  ;;  %v4431_v27 = vpop.f32.mrf.mxu3  ;;  %v3552_v63 = vadd.f32 %v3497_v54, %v6790_v24 }
 0x2c8   : > { %v4829_v49 = vpop.f32.mrf.mxu0  ;;  %v4490_v51 = vadd.f32 %v4431_v27, %v3836_v26 }
 0x2ca   : > { %v4888_v41 = vadd.f32 %v4829_v49, %v4490_v51  ;;  %v3500_v8 = vpop.f32.mrf.mxu1 }
 0x2cb   : > { %5599 = vmatmul.msk.bf16.gmra.mxu0 %vm1482_vm12, %v4733_v16  ;;  %v3553_v4 = vadd.f32 %v3500_v8, %v6811_v30 }
 0x2cc   : > { %v3782_v19 = vpop.f32.mrf.mxu2  ;;  %4921 = vst.msk [vmem:[%s7067_s9 + $0x70] sm:$0xff] %vm4906_vm0, %v4888_v41  ;;  %v4966_v9 = vsel %vm4906_vm0, %v4888_v41, 0.0  ;;  %v5024_v25 = vmul.f32 %v4888_v41, %v4888_v41 }
 0x2cd   : > { %v4967_v34 = vadd.f32 %v4966_v9, %v4965_v60  ;;  %v3838_v11 = vadd.f32 %v3782_v19, %v3551_v10 }
 0x2ce   : > { %v5069_v1 = vsel %vm4906_vm0, %v5024_v25, 0.0 }
 0x2cf   : > { %v5070_v15 = vadd.f32 %v5069_v1, %v5068_v44  ;;  %v4433_v58 = vpop.f32.mrf.mxu3 }
 0x2d0   : > { %v4831_v21 = vpop.f32.mrf.mxu0  ;;  %v4491_v36 = vadd.f32 %v4433_v58, %v3837_v39 }
 0x2d2   : > { %v4889_v12 = vadd.f32 %v4831_v21, %v4491_v36  ;;  %v3502_v62 = vpop.f32.mrf.mxu1 }
 0x2d3   : > { %v3554_v41 = vadd.f32 %v3502_v62, %v6826_v52 }
 0x2d4   : > { %v3784_v40 = vpop.f32.mrf.mxu2  ;;  %4922 = vst.msk [vmem:[%s7067_s9 + $0x78] sm:$0xff] %vm4906_vm0, %v4889_v12  ;;  %v4968_v22 = vsel %vm4906_vm0, %v4889_v12, 0.0  ;;  %v5025_v38 = vmul.f32 %v4889_v12, %v4889_v12 }
 0x2d5   : > { %v4969_v13 = vadd.f32 %v4968_v22, %v4967_v34  ;;  %v3839_v35 = vadd.f32 %v3784_v40, %v3552_v63 }
 0x2d6   : > { %v5071_v61 = vsel %vm4906_vm0, %v5025_v38, 0.0 }
 0x2d7   : > { %v5072_v5 = vadd.f32 %v5071_v61, %v5070_v15  ;;  %v4436_v43 = vpop.f32.mrf.mxu3 }
 0x2d8   : > { %v4834_v37 = vpop.f32.mrf.mxu0  ;;  %v4492_v0 = vadd.f32 %v4436_v43, %v3838_v11 }
 0x2da   : > { %v4890_v17 = vadd.f32 %v4834_v37, %v4492_v0  ;;  %v3505_v3 = vpop.f32.mrf.mxu1 }
 0x2db   : > { %v3555_v36 = vadd.f32 %v3505_v3, %v6844_v45 }
 0x2dc   : > { %v3787_v28 = vpop.f32.mrf.mxu2  ;;  %4923 = vst.msk [vmem:[%s7067_s9 + $0x80] sm:$0xff] %vm4906_vm0, %v4890_v17  ;;  %v4970_v47 = vsel %vm4906_vm0, %v4890_v17, 0.0  ;;  %v5026_v14 = vmul.f32 %v4890_v17, %v4890_v17 }
 0x2dd   : > { %v4971_v18 = vadd.f32 %v4970_v47, %v4969_v13  ;;  %v3840_v26 = vadd.f32 %v3787_v28, %v3553_v4 }
 0x2de   : > { %v5073_v48 = vsel %vm4906_vm0, %v5026_v14, 0.0 }
 0x2df   : > { %v5074_v6 = vadd.f32 %v5073_v48, %v5072_v5  ;;  %v4438_v53 = vpop.f32.mrf.mxu3 }
 0x2e0   : > { %v4836_v50 = vpop.f32.mrf.mxu0  ;;  %v4493_v2 = vadd.f32 %v4438_v53, %v3839_v35 }
 0x2e2   : > { %v4891_v55 = vadd.f32 %v4836_v50, %v4493_v2  ;;  %v3507_v54 = vpop.f32.mrf.mxu1 }
 0x2e3   : > { %v3556_v37 = vadd.f32 %v3507_v54, %v6860_v46 }
 0x2e4   : > { %v3789_v24 = vpop.f32.mrf.mxu2  ;;  %4924 = vst.msk [vmem:[%s7067_s9 + $0x88] sm:$0xff] %vm4906_vm0, %v4891_v55  ;;  %v4972_v31 = vsel %vm4906_vm0, %v4891_v55, 0.0  ;;  %v5027_v33 = vmul.f32 %v4891_v55, %v4891_v55 }
 0x2e5   : > { %v4973_v60 = vadd.f32 %v4972_v31, %v4971_v18  ;;  %v3841_v19 = vadd.f32 %v3789_v24, %v3554_v41 }
 0x2e6   : > { %v5075_v57 = vsel %vm4906_vm0, %v5027_v33, 0.0 }
 0x2e7   : > { %v5076_v44 = vadd.f32 %v5075_v57, %v5074_v6  ;;  %v4441_v16 = vpop.f32.mrf.mxu3 }
 0x2e8   : > { %v4839_v27 = vpop.f32.mrf.mxu0  ;;  %v4494_v49 = vadd.f32 %v4441_v16, %v3840_v26 }
 0x2ea   : > { %v4892_v51 = vadd.f32 %v4839_v27, %v4494_v49  ;;  %v3510_v25 = vpop.f32.mrf.mxu1 }
 0x2eb   : > { %v3557_v53 = vadd.f32 %v3510_v25, %v6880_v20 }
 0x2ec   : > { %v3792_v30 = vpop.f32.mrf.mxu2  ;;  %4925 = vst.msk [vmem:[%s7067_s9 + $0x90] sm:$0xff] %vm4906_vm0, %v4892_v51  ;;  %v4974_v42 = vsel %vm4906_vm0, %v4892_v51, 0.0  ;;  %v5028_v8 = vmul.f32 %v4892_v51, %v4892_v51 }
 0x2ed   : > { %v4975_v9 = vadd.f32 %v4974_v42, %v4973_v60  ;;  %v3842_v62 = vadd.f32 %v3792_v30, %v3555_v36 }
 0x2ee   : > { %v5077_v39 = vsel %vm4906_vm0, %v5028_v8, 0.0 }
 0x2ef   : > { %v5078_v34 = vadd.f32 %v5077_v39, %v5076_v44  ;;  %v4443_v1 = vpop.f32.mrf.mxu3 }
 0x2f0   : > { %v4841_v15 = vpop.f32.mrf.mxu0  ;;  %v4495_v58 = vadd.f32 %v4443_v1, %v3841_v19 }
 0x2f2   : > { %v4893_v21 = vadd.f32 %v4841_v15, %v4495_v58  ;;  %v3512_v13 = vpop.f32.mrf.mxu1 }
 0x2f3   : > { %v3558_v57 = vadd.f32 %v3512_v13, %v6896_v29 }
 0x2f4   : > { %v3794_v52 = vpop.f32.mrf.mxu2  ;;  %4926 = vst.msk [vmem:[%s7067_s9 + $0x98] sm:$0xff] %vm4906_vm0, %v4893_v21  ;;  %v4976_v12 = vsel %vm4906_vm0, %v4893_v21, 0.0  ;;  %v5029_v10 = vmul.f32 %v4893_v21, %v4893_v21 }
 0x2f5   : > { %v4977_v40 = vadd.f32 %v4976_v12, %v4975_v9  ;;  %v3843_v63 = vadd.f32 %v3794_v52, %v3556_v37 }
 0x2f6   : > { %v5079_v22 = vsel %vm4906_vm0, %v5029_v10, 0.0 }
 0x2f7   : > { %v5080_v38 = vadd.f32 %v5079_v22, %v5078_v34  ;;  %v4446_v11 = vpop.f32.mrf.mxu3 }
 0x2f8   : > { %v4844_v61 = vpop.f32.mrf.mxu0  ;;  %v4496_v5 = vadd.f32 %v4446_v11, %v3842_v62 }
 0x2fa   : > { %v4894_v43 = vadd.f32 %v4844_v61, %v4496_v5  ;;  %v3515_v48 = vpop.f32.mrf.mxu1 }
 0x2fb   : > { %v3559_v25 = vadd.f32 %v3515_v48, %v6917_v59 }
 0x2fc   : > { %v3797_v45 = vpop.f32.mrf.mxu2  ;;  %4927 = vst.msk [vmem:[%s7067_s9 + $0xa0] sm:$0xff] %vm4906_vm0, %v4894_v43  ;;  %v4978_v0 = vsel %vm4906_vm0, %v4894_v43, 0.0  ;;  %v5030_v17 = vmul.f32 %v4894_v43, %v4894_v43 }
 0x2fd   : > { %v4979_v3 = vadd.f32 %v4978_v0, %v4977_v40  ;;  %v3844_v55 = vadd.f32 %v3797_v45, %v3557_v53 }
 0x2fe   : > { %v5081_v28 = vsel %vm4906_vm0, %v5030_v17, 0.0 }
 0x2ff   : > { %v5082_v47 = vadd.f32 %v5081_v28, %v5080_v38  ;;  %v4448_v14 = vpop.f32.mrf.mxu3 }
 0x300   : > { %v4846_v35 = vpop.f32.mrf.mxu0  ;;  %v4497_v18 = vadd.f32 %v4448_v14, %v3843_v63 }
 0x302   : > { %v4895_v6 = vadd.f32 %v4846_v35, %v4497_v18  ;;  %v3517_v44 = vpop.f32.mrf.mxu1 }
 0x303   : > { %v3560_v40 = vadd.f32 %v3517_v44, %v6936_v56 }
 0x304   : > { %v3799_v46 = vpop.f32.mrf.mxu2  ;;  %4928 = vst.msk [vmem:[%s7067_s9 + $0xa8] sm:$0xff] %vm4906_vm0, %v4895_v6  ;;  %v4980_v50 = vsel %vm4906_vm0, %v4895_v6, 0.0  ;;  %v5031_v2 = vmul.f32 %v4895_v6, %v4895_v6 }
 0x305   : > { %v4981_v4 = vadd.f32 %v4980_v50, %v4979_v3  ;;  %v3845_v49 = vadd.f32 %v3799_v46, %v3558_v57 }
 0x306   : > { %v5083_v24 = vsel %vm4906_vm0, %v5031_v2, 0.0 }
 0x307   : > { %v5084_v54 = vadd.f32 %v5083_v24, %v5082_v47  ;;  %v4451_v31 = vpop.f32.mrf.mxu3 }
 0x308   : > { %v4849_v33 = vpop.f32.mrf.mxu0  ;;  %v4498_v26 = vadd.f32 %v4451_v31, %v3844_v55 }
 0x30a   : > { %v4896_v60 = vadd.f32 %v4849_v33, %v4498_v26  ;;  %v3520_v58 = vpop.f32.mrf.mxu1 }
 0x30b   : > { %v3561_v63 = vadd.f32 %v3520_v58, %v6959_v23 }
 0x30c   : > { %v3802_v20 = vpop.f32.mrf.mxu2  ;;  %4929 = vst.msk [vmem:[%s7067_s9 + $0xb0] sm:$0xff] %vm4906_vm0, %v4896_v60  ;;  %v4982_v16 = vsel %vm4906_vm0, %v4896_v60, 0.0  ;;  %v5032_v27 = vmul.f32 %v4896_v60, %v4896_v60 }
 0x30d   : > { %v4983_v51 = vadd.f32 %v4982_v16, %v4981_v4  ;;  %v3846_v1 = vadd.f32 %v3802_v20, %v3559_v25 }
 0x30e   : > { %v5085_v41 = vsel %vm4906_vm0, %v5032_v27, 0.0 }
 0x30f   : > { %v5086_v30 = vadd.f32 %v5085_v41, %v5084_v54  ;;  %v4453_v42 = vpop.f32.mrf.mxu3 }
 0x310   : > { %v4851_v8 = vpop.f32.mrf.mxu0  ;;  %v4499_v19 = vadd.f32 %v4453_v42, %v3845_v49 }
 0x312   : > { %v4897_v9 = vadd.f32 %v4851_v8, %v4499_v19  ;;  %v3522_v37 = vpop.f32.mrf.mxu1 }
 0x313   : > { %v3562_v23 = vadd.f32 %v3522_v37, %v6988_v7 }
 0x314   : > { %v3804_v29 = vpop.f32.mrf.mxu2  ;;  %4930 = vst.msk [vmem:[%s7067_s9 + $0xb8] sm:$0xff] %vm4906_vm0, %v4897_v9  ;;  %v4984_v39 = vsel %vm4906_vm0, %v4897_v9, 0.0  ;;  %v5033_v34 = vmul.f32 %v4897_v9, %v4897_v9 }
 0x315   : > { %v4985_v15 = vadd.f32 %v4984_v39, %v4983_v51  ;;  %v3847_v11 = vadd.f32 %v3804_v29, %v3560_v40  ;;  %v7476_v29 = vld [vmem:[#allocation3_spill] sm:$0xff] }
 0x316   : > { %v5087_v21 = vsel %vm4906_vm0, %v5033_v34, 0.0 }
 0x317   : > { %v5088_v36 = vadd.f32 %v5087_v21, %v5086_v30  ;;  %v4456_v52 = vpop.f32.mrf.mxu3 }
 0x318   : > { %v4854_v12 = vpop.f32.mrf.mxu0  ;;  %v4500_v10 = vadd.f32 %v4456_v52, %v3846_v1 }
 0x31a   : > { %v4898_v62 = vadd.f32 %v4854_v12, %v4500_v10  ;;  %v3525_v46 = vpop.f32.mrf.mxu1 }
 0x31b   : > { %v3563_v44 = vadd.f32 %v3525_v46, %v6998_v32 }
 0x31c   : > { %v3807_v59 = vpop.f32.mrf.mxu2  ;;  %4931 = vst.msk [vmem:[%s7067_s9 + $0xc0] sm:$0xff] %vm4906_vm0, %v4898_v62  ;;  %v4986_v22 = vsel %vm4906_vm0, %v4898_v62, 0.0  ;;  %v5034_v38 = vmul.f32 %v4898_v62, %v4898_v62 }
 0x31d   : > { %v4987_v13 = vadd.f32 %v4986_v22, %v4985_v15  ;;  %v3848_v47 = vadd.f32 %v3807_v59, %v3561_v63  ;;  %v7477_v59 = vld [vmem:[#allocation4_spill] sm:$0xff] }
 0x31e   : > { %v5089_v61 = vsel %vm4906_vm0, %v5034_v38, 0.0 }
 0x31f   : > { %v5090_v5 = vadd.f32 %v5089_v61, %v5088_v36  ;;  %v4458_v43 = vpop.f32.mrf.mxu3 }
 0x320   : > { %v4856_v45 = vpop.f32.mrf.mxu0  ;;  %v4501_v0 = vadd.f32 %v4458_v43, %v3847_v11 }
 0x322   : > { %v4899_v17 = vadd.f32 %v4856_v45, %v4501_v0  ;;  %v3527_v16 = vpop.f32.mrf.mxu1 }
 0x323   : > { %v3564_v39 = vadd.f32 %v3527_v16, %v7476_v29 }
 0x324   : > { %v3809_v56 = vpop.f32.mrf.mxu2  ;;  %4932 = vst.msk [vmem:[%s7067_s9 + $0xc8] sm:$0xff] %vm4906_vm0, %v4899_v17  ;;  %v4988_v3 = vsel %vm4906_vm0, %v4899_v17, 0.0  ;;  %v5035_v28 = vmul.f32 %v4899_v17, %v4899_v17 }
 0x325   : > { %v4989_v14 = vadd.f32 %v4988_v3, %v4987_v13  ;;  %v3849_v24 = vadd.f32 %v3809_v56, %v3562_v23  ;;  %v7478_v3 = vld [vmem:[#allocation10_spill] sm:$0xff] }
 0x326   : > { %v5091_v35 = vsel %vm4906_vm0, %v5035_v28, 0.0 }
 0x327   : > { %v5092_v18 = vadd.f32 %v5091_v35, %v5090_v5  ;;  %v4461_v48 = vpop.f32.mrf.mxu3 }
 0x328   : > { %v4859_v6 = vpop.f32.mrf.mxu0  ;;  %v4502_v53 = vadd.f32 %v4461_v48, %v3848_v47 }
 0x32a   : > { %v4900_v50 = vadd.f32 %v4859_v6, %v4502_v53  ;;  %v3530_v58 = vpop.f32.mrf.mxu1 }
 0x32b   : > { %v3565_v22 = vadd.f32 %v3530_v58, %v7477_v59 }
 0x32c   : > { %v3812_v2 = vpop.f32.mrf.mxu2  ;;  %4933 = vst.msk [vmem:[%s7067_s9 + $0xd0] sm:$0xff] %vm4906_vm0, %v4900_v50  ;;  %v4990_v55 = vsel %vm4906_vm0, %v4900_v50, 0.0  ;;  %v5036_v4 = vmul.f32 %v4900_v50, %v4900_v50 }
 0x32d   : > { %v4991_v54 = vadd.f32 %v4990_v55, %v4989_v14  ;;  %v3850_v49 = vadd.f32 %v3812_v2, %v3563_v44 }
 0x32e   : > { %v5093_v31 = vsel %vm4906_vm0, %v5036_v4, 0.0 }
 0x32f   : > { %v5094_v33 = vadd.f32 %v5093_v31, %v5092_v18  ;;  %v4463_v26 = vpop.f32.mrf.mxu3 }
 0x330   : > { %v4861_v60 = vpop.f32.mrf.mxu0  ;;  %v4503_v57 = vadd.f32 %v4463_v26, %v3849_v24 }
 0x332   : > { %v4901_v20 = vadd.f32 %v4861_v60, %v4503_v57  ;;  %v3532_v45 = vpop.f32.mrf.mxu1 }
 0x333   : > { %v3566_v28 = vadd.f32 %v3532_v45, %v7478_v3 }
 0x334   : > { %4934 = vst.msk [vmem:[%s7067_s9 + $0xd8] sm:$0xff] %vm4906_vm0, %v4901_v20  ;;  %v4992_v7 = vsel %vm4906_vm0, %v4901_v20, 0.0  ;;  %v5037_v27 = vmul.f32 %v4901_v20, %v4901_v20  ;;  %v3814_v41 = vpop.f32.mrf.mxu2 }
 0x335   : > { %v4993_v51 = vadd.f32 %v4992_v7, %v4991_v54  ;;  %v3851_v1 = vadd.f32 %v3814_v41, %v3564_v39 }
 0x336   : > { %v5095_v30 = vsel %vm4906_vm0, %v5037_v27, 0.0 }
 0x337   : > { %v5096_v42 = vadd.f32 %v5095_v30, %v5094_v33  ;;  %v4466_v8 = vpop.f32.mrf.mxu3 }
 0x338   : > { %v4864_v19 = vpop.f32.mrf.mxu0  ;;  %v4504_v9 = vadd.f32 %v4466_v8, %v3850_v49 }
 0x33a   : > { %v4902_v25 = vadd.f32 %v4864_v19, %v4504_v9 }
 0x33c   : > { %4935 = vst.msk [vmem:[%s7067_s9 + $0xe0] sm:$0xff] %vm4906_vm0, %v4902_v25  ;;  %v4994_v32 = vsel %vm4906_vm0, %v4902_v25, 0.0  ;;  %v5038_v34 = vmul.f32 %v4902_v25, %v4902_v25  ;;  %v3817_v12 = vpop.f32.mrf.mxu2 }
 0x33d   : > { %v4995_v15 = vadd.f32 %v4994_v32, %v4993_v51  ;;  %v3852_v13 = vadd.f32 %v3817_v12, %v3565_v22 }
 0x33e   : > { %v5097_v21 = vsel %vm4906_vm0, %v5038_v34, 0.0 }
 0x33f   : > { %v5098_v36 = vadd.f32 %v5097_v21, %v5096_v42  ;;  %v4468_v52 = vpop.f32.mrf.mxu3 }
 0x340   : > { %v4866_v10 = vpop.f32.mrf.mxu0  ;;  %v4505_v62 = vadd.f32 %v4468_v52, %v3851_v1 }
 0x342   : > { %v4903_v40 = vadd.f32 %v4866_v10, %v4505_v62 }
 0x344   : > { %4936 = vst.msk [vmem:[%s7067_s9 + $0xe8] sm:$0xff] %vm4906_vm0, %v4903_v40  ;;  %v4996_v38 = vsel %vm4906_vm0, %v4903_v40, 0.0  ;;  %v5039_v11 = vmul.f32 %v4903_v40, %v4903_v40  ;;  %v3819_v63 = vpop.f32.mrf.mxu2 }
 0x345   : > { %v4997_v61 = vadd.f32 %v4996_v38, %v4995_v15  ;;  %v3853_v35 = vadd.f32 %v3819_v63, %v3566_v28 }
 0x346   : > { %v5099_v5 = vsel %vm4906_vm0, %v5039_v11, 0.0 }
 0x347   : > { %v5100_v43 = vadd.f32 %v5099_v5, %v5098_v36  ;;  %v4471_v37 = vpop.f32.mrf.mxu3 }
 0x348   : > { %v4869_v0 = vpop.f32.mrf.mxu0  ;;  %v4506_v17 = vadd.f32 %v4471_v37, %v3852_v13 }
 0x34a   : > { %v4904_v56 = vadd.f32 %v4869_v0, %v4506_v17 }
 0x34c   : > { %4937 = vst.msk [vmem:[%s7067_s9 + $0xf0] sm:$0xff] %vm4906_vm0, %v4904_v56  ;;  %v4998_v47 = vsel %vm4906_vm0, %v4904_v56, 0.0  ;;  %v5040_v14 = vmul.f32 %v4904_v56, %v4904_v56 }
 0x34d   : > { %v4999_v18 = vadd.f32 %v4998_v47, %v4997_v61 }
 0x34e   : > { %v5101_v48 = vsel %vm4906_vm0, %v5040_v14, 0.0 }
 0x34f   : > { %v5102_v6 = vadd.f32 %v5101_v48, %v5100_v43  ;;  %v4473_v53 = vpop.f32.mrf.mxu3 }
 0x350   : > { %v4507_v46 = vadd.f32 %v4473_v53, %v3853_v35  ;;  %v4871_v50 = vpop.f32.mrf.mxu0 }
 0x352   : > { %v4905_v23 = vadd.f32 %v4871_v50, %v4507_v46 }
 0x354   : > { %4938 = vst.msk [vmem:[%s7067_s9 + $0xf8] sm:$0xff] %vm4906_vm0, %v4905_v23  ;;  %v5000_v2 = vsel %vm4906_vm0, %v4905_v23, 0.0  ;;  %v5041_v55 = vmul.f32 %v4905_v23, %v4905_v23 }
 0x355   : > { %v5001_v4 = vadd.f32 %v5000_v2, %v4999_v18 }
 0x356   : > { %v5103_v24 = vsel %vm4906_vm0, %v5041_v55, 0.0 }
 0x357   : > { %v5002_v54 = vrot.slane %v5001_v4, 4  ;;  %v5104_v31 = vadd.f32 %v5103_v24, %v5102_v6 }
 0x359   : > { %v5003_v33 = vadd.f32 %v5002_v54, %v5001_v4  ;;  %v5105_v26 = vrot.slane %v5104_v31, 4 }
 0x35b   : > { %v5004_v60 = vrot.slane %v5003_v33, 2  ;;  %v5106_v57 = vadd.f32 %v5105_v26, %v5104_v31 }
 0x35d   : > { %v5005_v20 = vadd.f32 %v5004_v60, %v5003_v33  ;;  %v5107_v44 = vrot.slane %v5106_v57, 2 }
 0x35f   : > { %v5006_v16 = vrot.slane %v5005_v20, 1  ;;  %v5108_v7 = vadd.f32 %v5107_v44, %v5106_v57 }
 0x361   : > { %v5007_v27 = vadd.f32 %v5006_v16, %v5005_v20  ;;  %v5109_v49 = vrot.slane %v5108_v7, 1 }
 0x363   : > { %5009 = vst.msk [vmem:[%s235_s13] sm:$0x1] %vm5008_vm2, %v5007_v27  ;;  %v5110_v51 = vadd.f32 %v5109_v49, %v5108_v7 }
 0x365   : > { %5111 = vst.msk [vmem:[%s235_s13 + $0x1] sm:$0x1] %vm5008_vm2, %v5110_v51 }
 0x366 PF: > { %s16_s18 = sadd.s32 1, %s5811_s18  }
 0x367   : > { %p13_p4 = scmp.ge.s32.totalorder %s16_s18, 4  }
 0x369   :  { %15 = sbr.rel (!%p13_p4) target bundleno = 1 (0x1), region = 89 }

// kernel: up_forward.3
= control target key start
LH: loop header
LB: loop body
LE: loop exit
PB: predicated region body
PF: predicated region fallthrough
CT: control target
= control target key end

     0   :  { %s6627_s18 = smov 0   ;;  %s8781_s0 = inlined_call_operand.vmem [shape: bf16[2,64,4], index: 0, kind: input, shape index: {}]   ;;  %s8782_s1 = inlined_call_operand.vmem [shape: bf16[2,16,16,4], index: 1, kind: input, shape index: {}]   ;;  %s8783_s2 = inlined_call_operand.vmem [shape: bf16[256,64], index: 2, kind: input, shape index: {}]   ;;  %s8784_s3 = inlined_call_operand.vmem [shape: bf16[9,8,4], index: 3, kind: input, shape index: {}]   ;;  %s8785_s4 = inlined_call_operand.vmem [shape: bf16[2,256,4], index: 4, kind: output, shape index: {0}]   ;;  %s8786_s5 = inlined_call_operand.vmem [shape: f32[2,2,4], index: 5, kind: output, shape index: {1}]  }
   0x1 LB: > { %s5944_s19 = sadd.s32 4294967295, %s6593_s18   ;;  %p5948_p0 = scmp.ge.s32.totalorder %s6593_s18, 1  ;;  %s6593_s18 = sphi %s6627_s18, %s16_s18  }
   0x2   : > { %p200_p1 = scmp.lt.s32.totalorder %s6593_s18, 3 }
   0x4   : > { %p201_p2 = pnand %p5948_p0, %p200_p1 }
   0x6   : > { %204 = sbr.rel (%p201_p2) target bundleno = 1216 (0x4c0), region = 36 }
   0xb   : > { %p237_p3 = scmp.lt.s32.totalorder %s5944_s19, 1  ;;  %v6449_v4 = vld [vmem:[%s8783_s2] sm:$0xff]  ;;  %vm995_vm0 = vcmask 523264   ;;  %v6450_v5 = vld [vmem:[%s8783_s2 + $0x8] sm:$0xff]  ;;  %v6451_v6 = vld [vmem:[%s8783_s2 + $0x10] sm:$0xff]  ;;  %s6595_s17 = smov 4  }
   0xc   : > { %v6452_v7 = vld [vmem:[%s8783_s2 + $0x18] sm:$0xff]  ;;  %v6453_v8 = vld [vmem:[%s8783_s2 + $0x20] sm:$0xff]  ;;  %v6454_v9 = vld [vmem:[%s8783_s2 + $0x28] sm:$0xff]  ;;  %vm267_vm1 = vsmask.f32 256  ;;  %vm260_vm4 = vcmask 57344  }
   0xd   : > { %s8917_s19 = smov (!%p237_p3, %s5944_s19), 1  ;;  %v6455_v10 = vld [vmem:[%s8783_s2 + $0x30] sm:$0xff]  ;;  %v6456_v11 = vld [vmem:[%s8783_s2 + $0x38] sm:$0xff]  ;;  %v6457_v12 = vld [vmem:[%s8783_s2 + $0x40] sm:$0xff]  ;;  %vm411_vm2 = vsmask.f32 4368 }
   0xe   : > { %s6446_s20 = sshll.u32 %s8917_s19, 5  ;;  %vm6679_vm3 = vmor %vm267_vm1, %vm411_vm2  ;;  %v6458_v28 = vld [vmem:[%s8783_s2 + $0x48] sm:$0xff]  ;;  %v6459_v41 = vld [vmem:[%s8783_s2 + $0x50] sm:$0xff]  ;;  %s6447_s26 = sshll.u32 %s8917_s19, 7  ;;  %vm323_vm5 = vsmask.f32 7938 }
   0xf   : > { %s241_s23 = scalar_lea.vmem %s8781_s0, %s6446_s20  ;;  %v6460_v54 = vld [vmem:[%s8783_s2 + $0x58] sm:$0xff]  ;;  %s6734_s29 = scalar_lea.vmem %s8782_s1, %s6447_s26  ;;  %vm6738_vm6 = vmand %vm260_vm4, %vm323_vm5  ;;  %v328_v62 = vld [vmem:[#allocation2 + $0x14] sm:$0x1]  ;;  %vm741_vm7 = vcmask 24576   ;;  %vm257_vm10 = vcmask 60416   ;;  %vm734_vm11 = vcmask 27648  }
  0x10   : > { %v6468_v0 = vld [vmem:[%s241_s23 + $0x18] sm:$0xff]  ;;  %v6467_v1 = vld [vmem:[%s241_s23 + $0x10] sm:$0xff]  ;;  %v6466_v2 = vld [vmem:[%s241_s23 + $0x8] sm:$0xff]  ;;  %v329_v63 = vsel %vm6738_vm6, 0, %v328_v62  ;;  %vm2233_vm13 = vcmask 1043456   ;;  %s8352_s11 = scalar_lea.vmem %s8785_s4, %s6447_s26  ;;  %s5955_s26 = sshll.u32 %s8917_s19, 1 }
  0x11   : > { %1048 = vmatpush.bf16.msra.mxu0 %v6468_v0  ;;  %v6465_v3 = vld [vmem:[%s241_s23] sm:$0xff]  ;;  %330 = vst [vmem:[#allocation2 + $0x14] sm:$0x1] %v329_v63  ;;  %vm6766_vm8 = vmand %vm741_vm7, %vm267_vm1  ;;  %vm1747_vm14 = vsmask.f32 3328  ;;  %s255_s14 = scalar_lea.vmem %s8786_s5, %s5955_s26 }
  0x12   : > { %vm6778_vm9 = vmand %vm260_vm4, %vm267_vm1  ;;  %vm1748_vm15 = vsmask.f32 7440 }
  0x13   : > { %vm6805_vm12 = vmand %vm734_vm11, %vm323_vm5 }
  0x14   : > { %vm6846_vm2 = vmor %vm1747_vm14, %vm1748_vm15  ;;  %vm2184_vm14 = vcmask 64512  }
  0x15   : > { %1049 = vmatpush.bf16.msra.mxu0 %v6467_v1 }
  0x19   : > { %1050 = vmatpush.bf16.msra.mxu0 %v6466_v2  ;;  %v6747_v2 = vld [vmem:[%s6734_s29 + $0x4] sm:$0xf] }
  0x1d   : > { %1051 = vmatpush.bf16.msra.mxu0 %v6465_v3 }
  0x20   : > { %6036 = vmatmul.msk.bf16.vlgmr.msra.gmra.mxu0 %vm995_vm0, %v6449_v4 }
  0x30   : > { %6037 = vmatmul.msk.bf16.gmra.mxu0 %vm995_vm0, %v6450_v5  ;;  %v422_v5 = vshrl.u32 %v6747_v2, 16 }
  0x40   : > { %6038 = vmatmul.msk.bf16.gmra.mxu0 %vm995_vm0, %v6451_v6 }
  0x50   : > { %6039 = vmatmul.msk.bf16.gmra.mxu0 %vm995_vm0, %v6452_v7 }
  0x60   : > { %6040 = vmatmul.msk.bf16.gmra.mxu0 %vm995_vm0, %v6453_v8  ;;  %v6461_v8 = vld [vmem:[%s8783_s2 + $0x60] sm:$0xff] }
  0x70   : > { %6041 = vmatmul.msk.bf16.gmra.mxu0 %vm995_vm0, %v6454_v9  ;;  %v6757_v9 = vrot.slane %v422_v5, 7 }
  0x80   : > { %6042 = vmatmul.msk.bf16.gmra.mxu0 %vm995_vm0, %v6455_v10 }
  0x90   : > { %6043 = vmatmul.msk.bf16.gmra.mxu0 %vm995_vm0, %v6456_v11  ;;  %v429_v11 = vrot.slane %v6757_v9, 4 }
  0x9d   : > { %v1053_v13 = vpop.f32.mrf.mxu0 }
  0x9e   : > { %v1133_v14 = vpack.c.bf16 %v1053_v13, %v1053_v13 }
  0xa0   : > { %v1166_v15 = vshrl.u32 %v1133_v14, 16  ;;  %6044 = vmatmul.msk.bf16.gmra.mxu0 %vm995_vm0, %v6457_v12  ;;  %v1169_v17 = vshll.u32 %v1133_v14, 16  ;;  %v743_v14 = vld [vmem:[#allocation2 + $0x14] sm:$0x1] }
  0xa2   : > { %v1168_v16 = vrot.slane %v1166_v15, 7 }
  0xa4   : > { %v1171_v18 = vor.u32 %v1169_v17, %v1168_v16  ;;  %v1172_v25 = vrot.slane %v1168_v16, 4  ;;  %v744_v16 = vsel %vm6766_vm8, %v429_v11, %v743_v14  ;;  %v6463_v14 = vld [vmem:[%s8783_s2 + $0x70] sm:$0xff] }
  0xa5   : > { %v1055_v19 = vpop.f32.mrf.mxu0  ;;  %745 = vst [vmem:[#allocation2 + $0x14] sm:$0x1] %v744_v16 }
  0xa6   : > { %v1134_v20 = vpack.c.bf16 %v1055_v19, %v1055_v19  ;;  %1437 = vrot.lane.b32.xlu1 %v1171_v18, %s6595_s17 }
  0xa8   : > { %v1174_v21 = vshrl.u32 %v1134_v20, 16  ;;  %v1177_v22 = vshll.u32 %v1134_v20, 16  ;;  %v8794_v20 = vmov 0 }
  0xa9   : > { %v8795_v20 = vsel %vm6778_vm9, 4294967295, %v8794_v20 }
  0xaa   : > { %v1176_v23 = vrot.slane %v1174_v21, 7  ;;  %8796 = vst [vmem:[#allocation3_spill] sm:$0xff] %v8795_v20  ;;  %v272_v21 = vld [vmem:[#allocation2 + $0xc] sm:$0x1] }
  0xac   : > { %v1181_v26 = vrot.slane %v1176_v23, 4  ;;  %v1179_v27 = vor.u32 %v1177_v22, %v1176_v23  ;;  %v273_v22 = vsel %vm6778_vm9, 0, %v272_v21 }
  0xad   : > { %v1058_v29 = vpop.f32.mrf.mxu0  ;;  %274 = vst [vmem:[#allocation2 + $0xc] sm:$0x1] %v273_v22 }
  0xae   : > { %1441 = vrot.lane.b32.xlu2 %v1181_v26, %s6595_s17  ;;  %v1180_v30 = vsel %vm6679_vm3, %v1172_v25, %v1179_v27  ;;  %v6690_v31 = vpack.c.bf16 %v1058_v29, %v1058_v29  ;;  %v379_v26 = vld [vmem:[%s6734_s29] sm:$0xf] }
  0xaf   : > { %1439 = vrot.lane.b32.xlu1 %v1180_v30, %s6595_s17  ;;  %v414_v29 = vshrl.u32 %v379_v26, 16  ;;  %v6596_v30 = vmov 0  }
  0xb0   : > { %6045 = vmatmul.msk.bf16.gmra.mxu0 %vm995_vm0, %v6458_v28  ;;  %v1183_v32 = vshrl.u32 %v6690_v31, 16  ;;  %258 = vst.msk [vmem:[#allocation2] sm:$0xf] %vm257_vm10, %v6596_v30 }
  0xb1   : > { %259 = vst.msk [vmem:[#allocation2 + $0x4] sm:$0xf] %vm257_vm10, %v6596_v30 }
  0xb2   : > { %v6694_v35 = vrot.slane %v1183_v32, 7  ;;  %261 = vst.msk [vmem:[#allocation2 + $0x8] sm:$0x1] %vm260_vm4, %v6596_v30 }
  0xb3   : > { %263 = vst.msk [vmem:[#allocation2 + $0xcc] sm:$0xf] %vm257_vm10, %v6596_v30 }
  0xb4   : > { %v1189_v39 = vrot.slane %v6694_v35, 4  ;;  %264 = vst.msk [vmem:[#allocation2 + $0xd0] sm:$0xf] %vm257_vm10, %v6596_v30 }
  0xb5   : > { %v1060_v33 = vpop.f32.mrf.mxu0  ;;  %265 = vst.msk [vmem:[#allocation2 + $0xd4] sm:$0x1] %vm260_vm4, %v6596_v30  ;;  %vm1588_vm4 = vcmask 57376  }
  0xb6   : > { %v1136_v34 = vpack.c.bf16 %v1060_v33, %v1060_v33  ;;  %vm6857_vm10 = vmand %vm1588_vm4, %vm267_vm1  ;;  %vm1581_vm1 = vcmask 60448  }
  0xb7   : > { %vm6876_vm15 = vmand %vm1581_vm1, %vm323_vm5  ;;  %vm2595_vm5 = vcmask 1046532  }
  0xb8   : > { %v1191_v36 = vshrl.u32 %v1136_v34, 16  ;;  %v1194_v38 = vshll.u32 %v1136_v34, 16  ;;  %v6462_v34 = vld [vmem:[%s8783_s2 + $0x68] sm:$0xff]  ;;  %v1699_v62 = vld [vmem:[#allocation2 + $0x4] sm:$0xf] }
  0xb9   : > { %v1760_v5 = vshll.u32 %v1699_v62, 16 }
  0xba   : > { %v6696_v37 = vrot.slane %v1191_v36, 7  ;;  %v416_v36 = vrot.slane %v414_v29, 7  ;;  %v320_v61 = vld [vmem:[#allocation2 + $0xcc] sm:$0x1] }
  0xbc   : > { %v1196_v40 = vor.u32 %v1194_v38, %v6696_v37  ;;  %v417_v38 = vshll.u32 %v379_v26, 16  ;;  %v420_v30 = vrot.slane %v416_v36, 4 }
  0xbd   : > { %v1063_v42 = vpop.f32.mrf.mxu0 }
  0xbe   : > { %v6705_v43 = vsel %vm6679_vm3, %v1189_v39, %v1196_v40  ;;  %v6707_v44 = vpack.c.bf16 %v1063_v42, %v1063_v42  ;;  %v419_v40 = vor.u32 %v417_v38, %v416_v36 }
  0xc0   : > { %6046 = vmatmul.msk.bf16.gmra.mxu0 %vm995_vm0, %v6459_v41  ;;  %v1200_v45 = vshrl.u32 %v6707_v44, 16 }
  0xc2   : > { %v6711_v48 = vrot.slane %v1200_v45, 7  ;;  %v736_v45 = vld [vmem:[#allocation2 + $0xc] sm:$0xf] }
  0xc4   : > { %v1206_v52 = vrot.slane %v6711_v48, 4 }
  0xc5   : > { %v1065_v46 = vpop.f32.mrf.mxu0 }
  0xc6   : > { %v1138_v47 = vpack.c.bf16 %v1065_v46, %v1065_v46  ;;  %v737_v46 = vsel %vm6805_vm12, %v419_v40, %v736_v45 }
  0xc7   : > { %738 = vst [vmem:[#allocation2 + $0xc] sm:$0xf] %v737_v46 }
  0xc8   : > { %v1208_v49 = vshrl.u32 %v1138_v47, 16  ;;  %v1211_v51 = vshll.u32 %v1138_v47, 16 }
  0xca   : > { %v6713_v50 = vrot.slane %v1208_v49, 7  ;;  %v269_v49 = vld [vmem:[#allocation2] sm:$0x1] }
  0xcc   : > { %v1213_v53 = vor.u32 %v1211_v51, %v6713_v50  ;;  %v270_v51 = vsel %vm6778_vm9, 0, %v269_v49  ;;  %v6052_v49 = vld [vmem:[%s8784_s3 + $0x4] sm:$0xf] }
  0xcd   : > { %v1068_v55 = vpop.f32.mrf.mxu0  ;;  %271 = vst [vmem:[#allocation2] sm:$0x1] %v270_v51 }
  0xce   : > { %v6722_v56 = vsel %vm6679_vm3, %v1206_v52, %v1213_v53  ;;  %v6724_v57 = vpack.c.bf16 %v1068_v55, %v1068_v55  ;;  %v325_v52 = vld [vmem:[#allocation2 + $0x8] sm:$0x1] }
  0xcf   : > { %v326_v55 = vsel %vm6738_vm6, 0, %v325_v52 }
  0xd0   : > { %6047 = vmatmul.msk.bf16.gmra.mxu0 %vm995_vm0, %v6460_v54  ;;  %v1217_v58 = vshrl.u32 %v6724_v57, 16  ;;  %327 = vst [vmem:[#allocation2 + $0x8] sm:$0x1] %v326_v55 }
  0xd2   : > { %v6744_v0 = vrot.slane %v1217_v58, 7 }
  0xd4   : > { %v1223_v6 = vrot.slane %v6744_v0, 4 }
  0xd5   : > { %v1070_v59 = vpop.f32.mrf.mxu0 }
  0xd6   : > { %v1140_v60 = vpack.c.bf16 %v1070_v59, %v1070_v59 }
  0xd7   : > { %v1731_v22 = vld [vmem:[#allocation2 + $0x8] sm:$0x1] }
  0xd8   : > { %v1225_v1 = vshrl.u32 %v1140_v60, 16  ;;  %v1228_v4 = vshll.u32 %v1140_v60, 16 }
  0xda   : > { %v6749_v3 = vrot.slane %v1225_v1, 7 }
  0xdc   : > { %v1230_v7 = vor.u32 %v1228_v4, %v6749_v3  ;;  %v1698_v4 = vld [vmem:[#allocation2] sm:$0xf] }
  0xdd   : > { %v1073_v10 = vpop.f32.mrf.mxu0 }
  0xde   : > { %v6762_v12 = vsel %vm6679_vm3, %v1223_v6, %v1230_v7  ;;  %v6770_v15 = vpack.c.bf16 %v1073_v10, %v1073_v10  ;;  %v1764_v6 = vshrl.u32 %v1699_v62, 16  ;;  %v1730_v7 = vld [vmem:[%s8784_s3] sm:$0xf]  ;;  %v1754_v10 = vshll.u32 %v1698_v4, 16 }
  0xdf   : > { %v2455_v16 = vsel %vm2233_vm13, %v1730_v7, 0 }
  0xe0   : > { %6048 = vmatmul.msk.bf16.gmra.mxu0 %vm995_vm0, %v6461_v8  ;;  %v1234_v17 = vshrl.u32 %v6770_v15, 16  ;;  %v1751_v8 = vshrl.u32 %v1698_v4, 16  ;;  %v1756_v26 = vrot.slane %v1754_v10, 5  ;;  %6518 = vmatpush.bf16.msra.mxu2 %v2455_v16 }
  0xe1   : > { %2464 = vmatpush.bf16.msrb.mxu0 %v2455_v16 }
  0xe2   : > { %v6784_v23 = vrot.slane %v1234_v17, 7  ;;  %v425_v17 = vshll.u32 %v6747_v2, 16 }
  0xe4   : > { %v1240_v32 = vrot.slane %v6784_v23, 4 }
  0xe5   : > { %v1075_v18 = vpop.f32.mrf.mxu0 }
  0xe6   : > { %v1142_v19 = vpack.c.bf16 %v1075_v18, %v1075_v18  ;;  %v1762_v18 = vrot.slane %v1760_v5, 5 }
  0xe8   : > { %v1242_v25 = vshrl.u32 %v1142_v19, 16  ;;  %v1245_v28 = vshll.u32 %v1142_v19, 16 }
  0xea   : > { %v6787_v27 = vrot.slane %v1242_v25, 7  ;;  %v1753_v25 = vrot.slane %v1751_v8, 4 }
  0xec   : > { %v1247_v33 = vor.u32 %v1245_v28, %v6787_v27  ;;  %v1766_v28 = vrot.slane %v1764_v6, 4  ;;  %v1590_v6 = vld [vmem:[#allocation2 + $0x14] sm:$0x1] }
  0xed   : > { %v1078_v39 = vpop.f32.mrf.mxu0 }
  0xee   : > { %v6801_v41 = vsel %vm6679_vm3, %v1240_v32, %v1247_v33  ;;  %v6813_v47 = vpack.c.bf16 %v1078_v39, %v1078_v39  ;;  %v427_v32 = vor.u32 %v425_v17, %v6757_v9  ;;  %v1770_v33 = vshll.u32 %v1731_v22, 16 }
  0xef   : > { %v1767_v38 = vor.u32 %v1766_v28, %v1762_v18 }
  0xf0   : > { %6049 = vmatmul.msk.bf16.gmra.mxu0 %vm995_vm0, %v6462_v34  ;;  %v1251_v53 = vshrl.u32 %v6813_v47, 16  ;;  %v1757_v34 = vor.u32 %v1756_v26, %v1753_v25  ;;  %v428_v40 = vsel %vm6679_vm3, %v420_v30, %v427_v32  ;;  %v1772_v52 = vrot.slane %v1770_v33, 5 }
  0xf1   : > { %740 = vst.msk [vmem:[#allocation2 + $0x10] sm:$0xf] %vm734_vm11, %v428_v40  ;;  %v1768_v45 = vrot.slane %v1767_v38, 4  ;;  %v6469_v40 = vld [vmem:[#allocation2] sm:$0xff] }
  0xf2   : > { %v6820_v60 = vrot.slane %v1251_v53, 7  ;;  %v1758_v36 = vrot.slane %v1757_v34, 4  ;;  %v2235_v53 = vsel %vm2233_vm13, %v6052_v49, 0  ;;  %v1583_v34 = vld [vmem:[#allocation2 + $0xc] sm:$0xf] }
  0xf3   : > { %2244 = vmatpush.bf16.msra.mxu1 %v2235_v53  ;;  %6517 = vmatpush.bf16.msra.mxu3 %v2235_v53 }
  0xf4   : > { %v1257_v19 = vrot.slane %v6820_v60, 4 }
  0xf5   : > { %v1080_v54 = vpop.f32.mrf.mxu0 }
  0xf6   : > { %v1144_v58 = vpack.c.bf16 %v1080_v54, %v1080_v54  ;;  %v1763_v54 = vsel %vm6846_vm2, %v1758_v36, %v1762_v18 }
  0xf8   : > { %v1259_v59 = vshrl.u32 %v1144_v58, 16  ;;  %v1262_v1 = vshll.u32 %v1144_v58, 16  ;;  %v1773_v58 = vsel %vm6846_vm2, %v1768_v45, %v1772_v52 }
  0xfa   : > { %v6822_v63 = vrot.slane %v1259_v59, 7  ;;  %v2136_v59 = vunpack.c.l.b16 %v1763_v54 }
  0xfc   : > { %v1264_v11 = vor.u32 %v1262_v1, %v6822_v63  ;;  %v2137_v1 = vunpack.c.l.b16 %v1773_v58 }
  0xfd   : > { %v1083_v21 = vpop.f32.mrf.mxu0 }
  0xfe   : > { %v1145_v29 = vpack.c.bf16 %v1083_v21, %v1083_v21  ;;  %v6837_v2 = vsel %vm6679_vm3, %v1257_v19, %v1264_v11  ;;  %v2168_v7 = vpack.c.b16 %v2137_v1, %v2136_v59  ;;  %v6464_v19 = vld [vmem:[%s8783_s2 + $0x78] sm:$0xff] }
 0x100   : > { %v1268_v39 = vshrl.u32 %v1145_v29, 16  ;;  %6050 = vmatmul.msk.bf16.gmra.mxu0 %vm995_vm0, %v6463_v14  ;;  %v1271_v46 = vshll.u32 %v1145_v29, 16  ;;  %6053 = vmatmul.msk.bf16.vlgmr.msra.gmra.mxu1 %vm2184_vm14, %v2168_v7 }
 0x102   : > { %v1270_v9 = vrot.slane %v1268_v39, 7 }
 0x104   : > { %v1273_v55 = vor.u32 %v1271_v46, %v1270_v9  ;;  %v1274_v17 = vrot.slane %v1270_v9, 4 }
 0x105   : > { %v1085_v62 = vpop.f32.mrf.mxu0 }
 0x106   : > { %v1146_v4 = vpack.c.bf16 %v1085_v62, %v1085_v62  ;;  %1473 = vrot.lane.b32.xlu0 %v1273_v55, %s6595_s17 }
 0x108   : > { %v1276_v8 = vshrl.u32 %v1146_v4, 16  ;;  %v1442_v10 = vpop.permute.xlu2 %1441  ;;  %v1279_v16 = vshll.u32 %v1146_v4, 16 }
 0x109   : > { %v1591_v11 = vsel %vm6857_vm10, %v1442_v10, %v1590_v6 }
 0x10a   : > { %v6864_v14 = vrot.slane %v1276_v8, 7  ;;  %1592 = vst [vmem:[#allocation2 + $0x14] sm:$0x1] %v1591_v11 }
 0x10c   : > { %v1281_v18 = vor.u32 %v1279_v16, %v6864_v14 }
 0x10d   : > { %v1088_v21 = vpop.f32.mrf.mxu0 }
 0x10e   : > { %v1147_v22 = vpack.c.bf16 %v1088_v21, %v1088_v21  ;;  %v1282_v25 = vsel %vm6679_vm3, %v1274_v17, %v1281_v18 }
 0x10f   : > { %1475 = vrot.lane.b32.xlu0 %v1282_v25, %s6595_s17 }
 0x110   : > { %v1285_v26 = vshrl.u32 %v1147_v22, 16  ;;  %6051 = vmatmul.msk.bf16.gmra.mxu0 %vm995_vm0, %v6464_v19  ;;  %v1288_v29 = vshll.u32 %v1147_v22, 16  ;;  %vm2594_vm0 = vcmask 1042432  }
 0x111   : > { %v1732_v21 = vld [vmem:[#allocation2 + $0x14] sm:$0x1]  ;;  %vm7599_vm4 = vmor %vm2594_vm0, %vm2595_vm5 }
 0x112   : > { %v1287_v28 = vrot.slane %v1285_v26, 7 }
 0x114   : > { %v1290_v30 = vor.u32 %v1288_v29, %v1287_v28  ;;  %v1291_v26 = vrot.slane %v1287_v28, 4 }
 0x115   : > { %v1090_v32 = vpop.f32.mrf.mxu0 }
 0x116   : > { %v1148_v36 = vpack.c.bf16 %v1090_v32, %v1090_v32 }
 0x117   : > { %1479 = vrot.lane.b32.xlu0 %v1290_v30, %s6595_s17 }
 0x118   : > { %v1438_v38 = vpop.permute.xlu1 %1437  ;;  %v1293_v49 = vshrl.u32 %v1148_v36, 16  ;;  %v1296_v7 = vshll.u32 %v1148_v36, 16 }
 0x119   : > { %v1584_v39 = vsel %vm6876_vm15, %v1438_v38, %v1583_v34 }
 0x11a   : > { %1585 = vst [vmem:[#allocation2 + $0xc] sm:$0xf] %v1584_v39  ;;  %v6885_v1 = vrot.slane %v1293_v49, 7 }
 0x11c   : > { %v1298_v16 = vor.u32 %v1296_v7, %v6885_v1 }
 0x11d   : > { %v1093_v45 = vpop.f32.mrf.mxu0 }
 0x11e   : > { %v1149_v9 = vpack.c.bf16 %v1093_v45, %v1093_v45  ;;  %v1299_v36 = vsel %vm6679_vm3, %v1291_v26, %v1298_v16  ;;  %v1794_v45 = vshll.u32 %v1732_v21, 16 }
 0x120   : > { %v1302_v46 = vshrl.u32 %v1149_v9, 16  ;;  %6133 = vmatmul.msk.bf16.vlgmr.msrb.gmra.mxu0 %vm2184_vm14, %v6469_v40  ;;  %v1305_v55 = vshll.u32 %v1149_v9, 16 }
 0x121   : > { %v1440_v52 = vpop.permute.xlu1 %1439  ;;  %v1700_v53 = vld [vmem:[#allocation2 + $0xc] sm:$0xf] }
 0x122   : > { %v1304_v54 = vrot.slane %v1302_v46, 7  ;;  %1587 = vst.msk [vmem:[#allocation2 + $0x10] sm:$0xf] %vm1581_vm1, %v1440_v52  ;;  %v1775_v58 = vshrl.u32 %v1700_v53, 16  ;;  %v1778_v59 = vshll.u32 %v1700_v53, 16 }
 0x124   : > { %v1307_v62 = vor.u32 %v1305_v55, %v1304_v54  ;;  %v1777_v8 = vrot.slane %v1775_v58, 4  ;;  %v1780_v10 = vrot.slane %v1778_v59, 5  ;;  %v1308_v29 = vrot.slane %v1304_v54, 4 }
 0x125   : > { %v1095_v4 = vpop.f32.mrf.mxu0  ;;  %v1796_v55 = vrot.slane %v1794_v45, 5  ;;  %v1186_v58 = vshll.u32 %v6690_v31, 16 }
 0x126   : > { %v1150_v6 = vpack.c.bf16 %v1095_v4, %v1095_v4  ;;  %1485 = vrot.lane.b32.xlu2 %v1307_v62, %s6595_s17  ;;  %v1781_v30 = vor.u32 %v1780_v10, %v1777_v8  ;;  %v1198_v4 = vrot.slane %v6696_v37, 4 }
 0x127   : > { %v1188_v10 = vor.u32 %v1186_v58, %v6694_v35 }
 0x128   : > { %v1310_v11 = vshrl.u32 %v1150_v6, 16  ;;  %v1313_v19 = vshll.u32 %v1150_v6, 16  ;;  %v1782_v28 = vrot.slane %v1781_v30, 4  ;;  %v1203_v30 = vshll.u32 %v6707_v44, 16 }
 0x129   : > { %v1701_v17 = vld [vmem:[#allocation2 + $0x10] sm:$0xf] }
 0x12a   : > { %v1312_v18 = vrot.slane %v1310_v11, 7  ;;  %v1784_v22 = vshll.u32 %v1701_v17, 16  ;;  %v1788_v25 = vshrl.u32 %v1701_v17, 16  ;;  %v6470_v46 = vld [vmem:[#allocation2 + $0xc] sm:$0xff] }
 0x12c   : > { %v1315_v32 = vor.u32 %v1313_v19, %v1312_v18  ;;  %v1317_v34 = vrot.slane %v1312_v18, 4  ;;  %v1786_v38 = vrot.slane %v1784_v22, 5  ;;  %v1790_v39 = vrot.slane %v1788_v25, 4 }
 0x12d   : > { %v1098_v40 = vpop.f32.mrf.mxu0 }
 0x12e   : > { %1481 = vrot.lane.b32.xlu2 %v1299_v36, %s6595_s17  ;;  %1489 = vrot.lane.b32.xlu0 %v1317_v34, %s6595_s17  ;;  %v1316_v9 = vsel %vm6679_vm3, %v1308_v29, %v1315_v32  ;;  %v1791_v49 = vor.u32 %v1790_v39, %v1786_v38  ;;  %v1151_v52 = vpack.c.bf16 %v1098_v40, %v1098_v40  ;;  %v1215_v34 = vrot.slane %v6713_v50, 4  ;;  %v290_v36 = vld [vmem:[#allocation2 + $0x54] sm:$0x1] }
 0x12f   : > { %1487 = vrot.lane.b32.xlu1 %v1316_v9, %s6595_s17  ;;  %v1787_v53 = vsel %vm6846_vm2, %v1782_v28, %v1786_v38  ;;  %v1205_v39 = vor.u32 %v1203_v30, %v6711_v48  ;;  %v291_v44 = vsel %vm6778_vm9, 0, %v290_v36  ;;  %v393_v36 = vld [vmem:[%s6734_s29 + $0x38] sm:$0xf] }
 0x130   : > { %6134 = vmatmul.msk.bf16.gmra.mxu0 %vm2184_vm14, %v6470_v46  ;;  %v1792_v54 = vrot.slane %v1791_v49, 4  ;;  %v1319_v62 = vshrl.u32 %v1151_v52, 16  ;;  %v2138_v6 = vunpack.c.l.b16 %v1787_v53  ;;  %v1322_v18 = vshll.u32 %v1151_v52, 16  ;;  %292 = vst [vmem:[#allocation2 + $0x54] sm:$0x1] %v291_v44 }
 0x131   : > { %v391_v49 = vld [vmem:[%s6734_s29 + $0x30] sm:$0xf]  ;;  %v533_v44 = vshrl.u32 %v393_v36, 16 }
 0x132   : > { %v1797_v59 = vsel %vm6846_vm2, %v1792_v54, %v1796_v55  ;;  %v1321_v31 = vrot.slane %v1319_v62, 7  ;;  %v516_v48 = vshrl.u32 %v391_v49, 16 }
 0x133   : > { %v2139_v7 = vunpack.c.l.b16 %v1797_v59 }
 0x134   : > { %v1325_v21 = vrot.slane %v1321_v31, 4  ;;  %v1324_v26 = vor.u32 %v1322_v18, %v1321_v31  ;;  %v518_v59 = vrot.slane %v516_v48, 7  ;;  %v1220_v31 = vshll.u32 %v6724_v57, 16 }
 0x135   : > { %v1100_v8 = vpop.f32.mrf.mxu0  ;;  %v2169_v16 = vpack.c.b16 %v2139_v7, %v2138_v6  ;;  %v296_v6 = vld [vmem:[#allocation2 + $0x6c] sm:$0x1] }
 0x136   : > { %v1152_v11 = vpack.c.bf16 %v1100_v8, %v1100_v8  ;;  %1445 = vrot.lane.b32.xlu2 %v6705_v43, %s6595_s17  ;;  %1447 = vrot.lane.b32.xlu0 %v1198_v4, %s6595_s17 }
 0x137   : > { %1443 = vrot.lane.b32.xlu1 %v1188_v10, %s6595_s17  ;;  %6054 = vmatmul.msk.bf16.gmra.mxu1 %vm2184_vm14, %v2169_v16  ;;  %v781_v8 = vld [vmem:[#allocation2 + $0x54] sm:$0xf]  ;;  %v297_v10 = vsel %vm6778_vm9, 0, %v296_v6  ;;  %v395_v16 = vld [vmem:[%s6734_s29 + $0x40] sm:$0xf] }
 0x138   : > { %v1327_v17 = vshrl.u32 %v1152_v11, 16  ;;  %v1330_v19 = vshll.u32 %v1152_v11, 16  ;;  %298 = vst [vmem:[#allocation2 + $0x6c] sm:$0x1] %v297_v10 }
 0x13a   : > { %v1329_v37 = vrot.slane %v1327_v17, 7  ;;  %v550_v17 = vshrl.u32 %v395_v16, 16 }
 0x13c   : > { %v1332_v22 = vor.u32 %v1330_v19, %v1329_v37  ;;  %v1334_v25 = vrot.slane %v1329_v37, 4  ;;  %v1232_v37 = vrot.slane %v6749_v3, 4 }
 0x13d   : > { %v1103_v35 = vpop.f32.mrf.mxu0 }
 0x13e   : > { %1495 = vrot.lane.b32.xlu0 %v1334_v25, %s6595_s17  ;;  %v1333_v43 = vsel %vm6679_vm3, %v1325_v21, %v1332_v22  ;;  %v1153_v29 = vpack.c.bf16 %v1103_v35, %v1103_v35  ;;  %v1222_v21 = vor.u32 %v1220_v31, %v6744_v0  ;;  %v6937_v22 = vrot.slane %v550_v17, 7 }
 0x13f   : > { %1491 = vrot.lane.b32.xlu1 %v1324_v26, %s6595_s17  ;;  %1493 = vrot.lane.b32.xlu2 %v1333_v43, %s6595_s17  ;;  %v553_v25 = vshll.u32 %v395_v16, 16  ;;  %v795_v43 = vld [vmem:[#allocation2 + $0x6c] sm:$0xf] }
 0x140   : > { %v1336_v32 = vshrl.u32 %v1153_v29, 16  ;;  %v1339_v46 = vshll.u32 %v1153_v29, 16  ;;  %v293_v29 = vld [vmem:[#allocation2 + $0x60] sm:$0x1] }
 0x141   : > { %v555_v57 = vor.u32 %v553_v25, %v6937_v22 }
 0x142   : > { %v1338_v45 = vrot.slane %v1336_v32, 7  ;;  %v294_v32 = vsel %vm6778_vm9, 0, %v293_v29 }
 0x143   : > { %v796_v30 = vsel %vm6805_vm12, %v555_v57, %v795_v43  ;;  %295 = vst [vmem:[#allocation2 + $0x60] sm:$0x1] %v294_v32  ;;  %v6977_v57 = vld [vmem:[%s6734_s29 + $0x8] sm:$0xf] }
 0x144   : > { %v1342_v52 = vrot.slane %v1338_v45, 4  ;;  %v1341_v58 = vor.u32 %v1339_v46, %v1338_v45  ;;  %797 = vst [vmem:[#allocation2 + $0x6c] sm:$0xf] %v796_v30  ;;  %v431_v43 = vshrl.u32 %v6977_v57, 16 }
 0x145   : > { %v1105_v38 = vpop.f32.mrf.mxu0 }
 0x146   : > { %v1154_v40 = vpack.c.bf16 %v1105_v38, %v1105_v38  ;;  %1453 = vrot.lane.b32.xlu0 %v1215_v34, %s6595_s17  ;;  %v6982_v32 = vrot.slane %v431_v43, 7 }
 0x147   : > { %1449 = vrot.lane.b32.xlu1 %v1205_v39, %s6595_s17  ;;  %1451 = vrot.lane.b32.xlu2 %v6722_v56, %s6595_s17  ;;  %v519_v56 = vshll.u32 %v391_v49, 16  ;;  %v392_v39 = vld [vmem:[%s6734_s29 + $0x34] sm:$0xf] }
 0x148   : > { %v1344_v9 = vshrl.u32 %v1154_v40, 16  ;;  %v1347_v28 = vshll.u32 %v1154_v40, 16  ;;  %v524_v40 = vshrl.u32 %v392_v39, 16  ;;  %v527_v49 = vshll.u32 %v392_v39, 16 }
 0x149   : > { %v521_v4 = vor.u32 %v519_v56, %v518_v59 }
 0x14a   : > { %v1346_v50 = vrot.slane %v1344_v9, 7 }
 0x14b   : > { %v782_v11 = vsel %vm6805_vm12, %v521_v4, %v781_v8  ;;  %v394_v4 = vld [vmem:[%s6734_s29 + $0x3c] sm:$0xf]  ;;  %v1237_v8 = vshll.u32 %v6770_v15, 16 }
 0x14c   : > { %v1349_v53 = vor.u32 %v1347_v28, %v1346_v50  ;;  %v1351_v54 = vrot.slane %v1346_v50, 4  ;;  %783 = vst [vmem:[#allocation2 + $0x54] sm:$0xf] %v782_v11  ;;  %v6950_v28 = vrot.slane %v524_v40, 7  ;;  %v541_v6 = vshrl.u32 %v394_v4, 16 }
 0x14d   : > { %v1108_v55 = vpop.f32.mrf.mxu0  ;;  %v1239_v17 = vor.u32 %v1237_v8, %v6784_v23  ;;  %v382_v23 = vld [vmem:[%s6734_s29 + $0xc] sm:$0xf] }
 0x14e   : > { %1501 = vrot.lane.b32.xlu0 %v1351_v54, %s6595_s17  ;;  %v1350_v62 = vsel %vm6679_vm3, %v1342_v52, %v1349_v53  ;;  %v1155_v7 = vpack.c.bf16 %v1108_v55, %v1108_v55  ;;  %v535_v52 = vrot.slane %v533_v44, 7  ;;  %v536_v53 = vshll.u32 %v393_v36, 16 }
 0x14f   : > { %1497 = vrot.lane.b32.xlu1 %v1341_v58, %s6595_s17  ;;  %1499 = vrot.lane.b32.xlu2 %v1350_v62, %s6595_s17  ;;  %v522_v54 = vrot.slane %v518_v59, 4  ;;  %v529_v55 = vor.u32 %v527_v49, %v6950_v28  ;;  %v1249_v59 = vrot.slane %v6787_v27, 4  ;;  %v6966_v16 = vrot.slane %v541_v6, 7 }
 0x150   : > { %v1353_v18 = vshrl.u32 %v1155_v7, 16  ;;  %v1356_v0 = vshll.u32 %v1155_v7, 16  ;;  %v538_v56 = vor.u32 %v536_v53, %v535_v52  ;;  %v788_v7 = vld [vmem:[#allocation2 + $0x60] sm:$0xf]  ;;  %v439_v29 = vshrl.u32 %v382_v23, 16 }
 0x151   : > { %v530_v62 = vsel %vm6679_vm3, %v522_v54, %v529_v55  ;;  %v442_v40 = vshll.u32 %v382_v23, 16  ;;  %v1254_v49 = vshll.u32 %v6813_v47, 16  ;;  %v396_v54 = vld [vmem:[%s6734_s29 + $0x44] sm:$0xf] }
 0x152   : > { %v1355_v26 = vrot.slane %v1353_v18, 7  ;;  %784 = vst.msk [vmem:[#allocation2 + $0x58] sm:$0xf] %vm734_vm11, %v530_v62  ;;  %v789_v10 = vsel %vm6805_vm12, %v538_v56, %v788_v7  ;;  %v544_v18 = vshll.u32 %v394_v4, 16  ;;  %v6984_v39 = vrot.slane %v439_v29, 7 }
 0x153   : > { %790 = vst [vmem:[#allocation2 + $0x60] sm:$0xf] %v789_v10  ;;  %v1256_v56 = vor.u32 %v1254_v49, %v6820_v60  ;;  %v558_v8 = vshrl.u32 %v396_v54, 16  ;;  %v1628_v10 = vld [vmem:[#allocation2 + $0x54] sm:$0xf]  ;;  %v434_v49 = vshll.u32 %v6977_v57, 16 }
 0x154   : > { %v1358_v50 = vor.u32 %v1356_v0, %v1355_v26  ;;  %v546_v15 = vor.u32 %v544_v18, %v6966_v16 }
 0x155   : > { %v1110_v19 = vpop.f32.mrf.mxu0 }
 0x156   : > { %v1156_v35 = vpack.c.bf16 %v1110_v19, %v1110_v19  ;;  %1459 = vrot.lane.b32.xlu0 %v1232_v37, %s6595_s17  ;;  %v539_v19 = vrot.slane %v535_v52, 4  ;;  %v398_v52 = vld [vmem:[%s6734_s29 + $0x4c] sm:$0xf] }
 0x157   : > { %1455 = vrot.lane.b32.xlu1 %v1222_v21, %s6595_s17  ;;  %1457 = vrot.lane.b32.xlu2 %v6762_v12, %s6595_s17  ;;  %v1359_v12 = vrot.slane %v1355_v26, 4  ;;  %v575_v6 = vshrl.u32 %v398_v52, 16  ;;  %v578_v7 = vshll.u32 %v398_v52, 16 }
 0x158   : > { %v1361_v3 = vshrl.u32 %v1156_v35, 16  ;;  %v1364_v38 = vshll.u32 %v1156_v35, 16  ;;  %v547_v35 = vsel %vm6679_vm3, %v539_v19, %v546_v15  ;;  %v331_v19 = vld [vmem:[#allocation2 + $0x20] sm:$0x1] }
 0x159   : > { %791 = vst.msk [vmem:[#allocation2 + $0x64] sm:$0xf] %vm734_vm11, %v547_v35  ;;  %v7014_v60 = vrot.slane %v575_v6, 7 }
 0x15a   : > { %v1363_v34 = vrot.slane %v1361_v3, 7 }
 0x15c   : > { %v1366_v45 = vor.u32 %v1364_v38, %v1363_v34  ;;  %v1368_v9 = vrot.slane %v1363_v34, 4 }
 0x15d   : > { %v1113_v46 = vpop.f32.mrf.mxu0 }
 0x15e   : > { %1507 = vrot.lane.b32.xlu0 %v1368_v9, %s6595_s17  ;;  %v1367_v48 = vsel %vm6679_vm3, %v1359_v12, %v1366_v45  ;;  %v1157_v58 = vpack.c.bf16 %v1113_v46, %v1113_v46  ;;  %v437_v12 = vrot.slane %v6982_v32, 4  ;;  %v444_v45 = vor.u32 %v442_v40, %v6984_v39  ;;  %v352_v9 = vld [vmem:[#allocation2 + $0x74] sm:$0x1] }
 0x15f   : > { %1503 = vrot.lane.b32.xlu1 %v1358_v50, %s6595_s17  ;;  %1505 = vrot.lane.b32.xlu2 %v1367_v48, %s6595_s17  ;;  %v353_v46 = vsel %vm6738_vm6, 0, %v352_v9  ;;  %v7000_v48 = vld [vmem:[%s6734_s29 + $0x48] sm:$0xf] }
 0x160   : > { %v1370_v11 = vshrl.u32 %v1157_v58, 16  ;;  %v1373_v25 = vshll.u32 %v1157_v58, 16  ;;  %v445_v50 = vsel %vm6679_vm3, %v437_v12, %v444_v45  ;;  %354 = vst [vmem:[#allocation2 + $0x74] sm:$0x1] %v353_v46  ;;  %v567_v53 = vshrl.u32 %v7000_v48, 16 }
 0x161   : > { %749 = vst.msk [vmem:[#allocation2 + $0x1c] sm:$0xf] %vm734_vm11, %v445_v50  ;;  %v1266_v58 = vrot.slane %v6822_v63, 4  ;;  %v6263_v12 = vld [vmem:[%s8784_s3 + $0x10] sm:$0xf]  ;;  %v561_v45 = vshll.u32 %v396_v54, 16 }
 0x162   : > { %v1372_v27 = vrot.slane %v1370_v11, 7  ;;  %v7007_v4 = vrot.slane %v567_v53, 7  ;;  %v1642_v50 = vld [vmem:[#allocation2 + $0x6c] sm:$0xf]  ;;  %v3748_v52 = vsel %vm2233_vm13, %v6263_v12, 0  ;;  %v446_v53 = vrot.slane %v6984_v39, 4 }
 0x163   : > { %v556_v54 = vrot.slane %v6937_v22, 4  ;;  %3757 = vmatpush.bf16.msrb.mxu2 %v3748_v52  ;;  %v355_v22 = vld [vmem:[#allocation2 + $0x80] sm:$0x1]  ;;  %v570_v52 = vshll.u32 %v7000_v48, 16  ;;  %v1300_v48 = vrot.slane %v6885_v1, 4 }
 0x164   : > { %v1376_v0 = vrot.slane %v1372_v27, 4  ;;  %v1375_v38 = vor.u32 %v1373_v25, %v1372_v27  ;;  %v573_v63 = vrot.slane %v7007_v4, 4  ;;  %v580_v27 = vor.u32 %v578_v7, %v7014_v60  ;;  %v275_v25 = vld [vmem:[#allocation2 + $0x18] sm:$0x1] }
 0x165   : > { %v1115_v31 = vpop.f32.mrf.mxu0 }
 0x166   : > { %v1158_v37 = vpack.c.bf16 %v1115_v31, %v1115_v31  ;;  %1465 = vrot.lane.b32.xlu0 %v1249_v59, %s6595_s17  ;;  %v560_v59 = vrot.slane %v558_v8, 7 }
 0x167   : > { %1461 = vrot.lane.b32.xlu1 %v1239_v17, %s6595_s17  ;;  %1463 = vrot.lane.b32.xlu2 %v6801_v41, %s6595_s17 }
 0x168   : > { %v1378_v21 = vshrl.u32 %v1158_v37, 16  ;;  %v1381_v3 = vshll.u32 %v1158_v37, 16  ;;  %v799_v37 = vld [vmem:[#allocation2 + $0x74] sm:$0x1] }
 0x16a   : > { %v1380_v26 = vrot.slane %v1378_v21, 7  ;;  %v565_v21 = vrot.slane %v560_v59, 4 }
 0x16c   : > { %v1383_v41 = vor.u32 %v1381_v3, %v1380_v26  ;;  %v1385_v30 = vrot.slane %v1380_v26, 4  ;;  %v7022_v26 = vld [vmem:[%s6734_s29 + $0x10] sm:$0xf]  ;;  %v581_v3 = vsel %vm6679_vm3, %v573_v63, %v580_v27  ;;  %v800_v43 = vsel %vm6766_vm8, %v565_v21, %v799_v37  ;;  %v299_v27 = vld [vmem:[#allocation2 + $0x78] sm:$0x1] }
 0x16d   : > { %v1118_v34 = vpop.f32.mrf.mxu0  ;;  %v448_v29 = vshrl.u32 %v7022_v26, 16  ;;  %805 = vst.msk [vmem:[#allocation2 + $0x7c] sm:$0xf] %vm734_vm11, %v581_v3  ;;  %v436_v63 = vor.u32 %v434_v49, %v6982_v32  ;;  %v7063_v37 = vld [vmem:[%s6734_s29 + $0x50] sm:$0xf]  ;;  %v356_v32 = vsel %vm6738_vm6, 0, %v355_v22  ;;  %v572_v22 = vor.u32 %v570_v52, %v7007_v4 }
 0x16e   : > { %1513 = vrot.lane.b32.xlu0 %v1385_v30, %s6595_s17  ;;  %v1384_v36 = vsel %vm6679_vm3, %v1376_v0, %v1383_v41  ;;  %v1159_v44 = vpack.c.bf16 %v1118_v34, %v1118_v34  ;;  %v276_v0 = vsel %vm6778_vm9, 0, %v275_v25  ;;  %801 = vst [vmem:[#allocation2 + $0x74] sm:$0x1] %v800_v43  ;;  %v6182_v25 = vld [vmem:[%s8784_s3 + $0xc] sm:$0xf] }
 0x16f   : > { %1509 = vrot.lane.b32.xlu1 %v1375_v38, %s6595_s17  ;;  %1511 = vrot.lane.b32.xlu2 %v1384_v36, %s6595_s17  ;;  %v384_v38 = vld [vmem:[%s6734_s29 + $0x14] sm:$0xf]  ;;  %v7036_v9 = vrot.slane %v448_v29, 7  ;;  %277 = vst [vmem:[#allocation2 + $0x18] sm:$0x1] %v276_v0  ;;  %v3094_v3 = vsel %vm2233_vm13, %v6182_v25, 0 }
 0x170   : > { %v1387_v55 = vshrl.u32 %v1159_v44, 16  ;;  %v1390_v11 = vshll.u32 %v1159_v44, 16  ;;  %v459_v7 = vshll.u32 %v384_v38, 16  ;;  %v400_v29 = vld [vmem:[%s6734_s29 + $0x54] sm:$0xf]  ;;  %3103 = vmatpush.bf16.msrb.mxu1 %v3094_v3 }
 0x171   : > { %357 = vst [vmem:[#allocation2 + $0x80] sm:$0x1] %v356_v32 }
 0x172   : > { %v1389_v31 = vrot.slane %v1387_v55, 7  ;;  %v563_v55 = vor.u32 %v561_v45, %v560_v59 }
 0x174   : > { %v1393_v41 = vrot.slane %v1389_v31, 4  ;;  %v1392_v36 = vor.u32 %v1390_v11, %v1389_v31  ;;  %v1283_v31 = vrot.slane %v6864_v14, 4  ;;  %v1635_v14 = vld [vmem:[#allocation2 + $0x60] sm:$0xf] }
 0x175   : > { %v1120_v62 = vpop.f32.mrf.mxu0 }
 0x176   : > { %v1160_v47 = vpack.c.bf16 %v1120_v62, %v1120_v62  ;;  %1471 = vrot.lane.b32.xlu0 %v1266_v58, %s6595_s17  ;;  %v456_v58 = vshrl.u32 %v384_v38, 16 }
 0x177   : > { %1467 = vrot.lane.b32.xlu1 %v1256_v56, %s6595_s17  ;;  %1469 = vrot.lane.b32.xlu2 %v6837_v2, %s6595_s17  ;;  %v332_v2 = vsel %vm6738_vm6, 0, %v331_v19 }
 0x178   : > { %v1395_v17 = vshrl.u32 %v1160_v47, 16  ;;  %v1474_v18 = vpop.permute.xlu0 %1473  ;;  %v1398_v23 = vshll.u32 %v1160_v47, 16  ;;  %333 = vst [vmem:[#allocation2 + $0x20] sm:$0x1] %v332_v2  ;;  %v564_v47 = vsel %vm6679_vm3, %v556_v54, %v563_v55  ;;  %v7052_v39 = vrot.slane %v456_v58, 7 }
 0x179   : > { %v1629_v15 = vsel %vm6876_vm15, %v1474_v18, %v1628_v10  ;;  %v454_v10 = vrot.slane %v7036_v9, 4  ;;  %798 = vst.msk [vmem:[#allocation2 + $0x70] sm:$0xf] %vm734_vm11, %v564_v47  ;;  %v7096_v55 = vld [vmem:[%s6734_s29 + $0x18] sm:$0xf] }
 0x17a   : > { %v1397_v35 = vrot.slane %v1395_v17, 7  ;;  %1630 = vst [vmem:[#allocation2 + $0x54] sm:$0xf] %v1629_v15  ;;  %v461_v17 = vor.u32 %v459_v7, %v7052_v39  ;;  %v584_v15 = vshrl.u32 %v7063_v37, 16  ;;  %v465_v7 = vshrl.u32 %v7096_v55, 16 }
 0x17b   : > { %v334_v47 = vld [vmem:[#allocation2 + $0x2c] sm:$0x1]  ;;  %v806_v1 = vld [vmem:[#allocation2 + $0x80] sm:$0x1] }
 0x17c   : > { %v1400_v30 = vor.u32 %v1398_v23, %v1397_v35  ;;  %v1402_v34 = vrot.slane %v1397_v35, 4  ;;  %v462_v2 = vsel %vm6679_vm3, %v454_v10, %v461_v17  ;;  %v746_v35 = vld [vmem:[#allocation2 + $0x18] sm:$0xf]  ;;  %v7080_v0 = vrot.slane %v584_v15, 7  ;;  %v278_v17 = vld [vmem:[#allocation2 + $0x24] sm:$0x1] }
 0x17d   : > { %v1123_v40 = vpop.f32.mrf.mxu0  ;;  %756 = vst.msk [vmem:[#allocation2 + $0x28] sm:$0xf] %vm734_vm11, %v462_v2  ;;  %v747_v43 = vsel %vm6805_vm12, %v436_v63, %v746_v35  ;;  %v463_v35 = vrot.slane %v7052_v39, 4  ;;  %v6165_v39 = vld [vmem:[%s8784_s3 + $0x8] sm:$0xf] }
 0x17e   : > { %v1161_v44 = vpack.c.bf16 %v1123_v40, %v1123_v40  ;;  %1519 = vrot.lane.b32.xlu0 %v1402_v34, %s6595_s17  ;;  %v1401_v46 = vsel %vm6679_vm3, %v1393_v41, %v1400_v30  ;;  %748 = vst [vmem:[#allocation2 + $0x18] sm:$0xf] %v747_v43  ;;  %v592_v41 = vshrl.u32 %v400_v29, 16  ;;  %v595_v30 = vshll.u32 %v400_v29, 16  ;;  %v402_v29 = vld [vmem:[%s6734_s29 + $0x5c] sm:$0xf] }
 0x17f   : > { %1515 = vrot.lane.b32.xlu1 %v1392_v36, %s6595_s17  ;;  %1517 = vrot.lane.b32.xlu2 %v1401_v46, %s6595_s17  ;;  %v750_v59 = vld [vmem:[#allocation2 + $0x20] sm:$0x1]  ;;  %v300_v34 = vsel %vm6778_vm9, 0, %v299_v27  ;;  %v590_v12 = vrot.slane %v7080_v0, 4  ;;  %v358_v27 = vld [vmem:[#allocation2 + $0x8c] sm:$0x1] }
 0x180   : > { %v1404_v56 = vshrl.u32 %v1161_v44, 16  ;;  %v1407_v62 = vshll.u32 %v1161_v44, 16  ;;  %v1486_v6 = vpop.permute.xlu2 %1485  ;;  %v751_v18 = vsel %vm6766_vm8, %v446_v53, %v750_v59  ;;  %v7088_v45 = vrot.slane %v592_v41, 7  ;;  %301 = vst [vmem:[#allocation2 + $0x78] sm:$0x1] %v300_v34 }
 0x181   : > { %v1643_v57 = vsel %vm6876_vm15, %v1486_v6, %v1642_v50  ;;  %v1476_v8 = vpop.permute.xlu0 %1475  ;;  %752 = vst [vmem:[#allocation2 + $0x20] sm:$0x1] %v751_v18  ;;  %v582_v53 = vrot.slane %v7014_v60, 4  ;;  %v386_v6 = vld [vmem:[%s6734_s29 + $0x1c] sm:$0xf]  ;;  %v359_v25 = vsel %vm6738_vm6, 0, %v358_v27 }
 0x182   : > { %v7054_v11 = vrot.slane %v1404_v56, 7  ;;  %1644 = vst [vmem:[#allocation2 + $0x6c] sm:$0xf] %v1643_v57  ;;  %v597_v54 = vor.u32 %v595_v30, %v7088_v45  ;;  %v476_v63 = vshll.u32 %v386_v6, 16  ;;  %v451_v43 = vshll.u32 %v7022_v26, 16 }
 0x183   : > { %1631 = vst.msk [vmem:[#allocation2 + $0x58] sm:$0xf] %vm1581_vm1, %v1476_v8  ;;  %v473_v8 = vshrl.u32 %v386_v6, 16  ;;  %v807_v4 = vsel %vm6766_vm8, %v582_v53, %v806_v1  ;;  %v609_v30 = vshrl.u32 %v402_v29, 16  ;;  %v302_v34 = vld [vmem:[#allocation2 + $0x84] sm:$0x1] }
 0x184   : > { %v1409_v19 = vor.u32 %v1407_v62, %v7054_v11  ;;  %v1410_v58 = vrot.slane %v7054_v11, 4  ;;  %v598_v60 = vsel %vm6679_vm3, %v590_v12, %v597_v54  ;;  %v7111_v11 = vrot.slane %v465_v7, 7  ;;  %808 = vst [vmem:[#allocation2 + $0x80] sm:$0x1] %v807_v4  ;;  %v337_v4 = vld [vmem:[#allocation2 + $0x38] sm:$0x1] }
 0x185   : > { %v1125_v21 = vpop.f32.mrf.mxu0  ;;  %812 = vst.msk [vmem:[#allocation2 + $0x88] sm:$0xf] %vm734_vm11, %v598_v60  ;;  %v7115_v59 = vrot.slane %v473_v8, 7  ;;  %v303_v26 = vsel %vm6778_vm9, 0, %v302_v34  ;;  %v2808_v52 = vsel %vm2233_vm13, %v6165_v39, 0  ;;  %v338_v27 = vsel %vm6738_vm6, 0, %v337_v4 }
 0x186   : > { %v1162_v23 = vpack.c.bf16 %v1125_v21, %v1125_v21  ;;  %360 = vst [vmem:[#allocation2 + $0x8c] sm:$0x1] %v359_v25  ;;  %2817 = vmatpush.bf16.msrb.mxu3 %v2808_v52  ;;  %v531_v34 = vrot.slane %v6950_v28, 4 }
 0x187   : > { %1477 = vrot.lane.b32.xlu1 %v1283_v31, %s6595_s17  ;;  %1521 = vrot.lane.b32.xlu2 %v1409_v19, %s6595_s17  ;;  %v335_v31 = vsel %vm6738_vm6, 0, %v334_v47  ;;  %v471_v19 = vrot.slane %v7111_v11, 4  ;;  %v802_v15 = vld [vmem:[#allocation2 + $0x78] sm:$0xf]  ;;  %v478_v32 = vor.u32 %v476_v63, %v7115_v59  ;;  %304 = vst [vmem:[#allocation2 + $0x84] sm:$0x1] %v303_v26 }
 0x188   : > { %v1412_v38 = vshrl.u32 %v1162_v23, 16  ;;  %v1482_v40 = vpop.permute.xlu2 %1481  ;;  %v1415_v46 = vshll.u32 %v1162_v23, 16  ;;  %336 = vst [vmem:[#allocation2 + $0x2c] sm:$0x1] %v335_v31  ;;  %v803_v21 = vsel %vm6805_vm12, %v572_v22, %v802_v15  ;;  %v7136_v23 = vld [vmem:[%s6734_s29 + $0x58] sm:$0xf] }
 0x189   : > { %1638 = vst.msk [vmem:[#allocation2 + $0x64] sm:$0xf] %vm1581_vm1, %v1482_v40  ;;  %v1480_v36 = vpop.permute.xlu0 %1479  ;;  %v479_v2 = vsel %vm6679_vm3, %v471_v19, %v478_v32  ;;  %v601_v41 = vshrl.u32 %v7136_v23, 16  ;;  %v7165_v47 = vld [vmem:[%s6734_s29 + $0x20] sm:$0xf] }
 0x18a   : > { %v1414_v44 = vrot.slane %v1412_v38, 7  ;;  %v1636_v50 = vsel %vm6876_vm15, %v1480_v36, %v1635_v14  ;;  %v6476_v49 = vld [vmem:[#allocation2 + $0x54] sm:$0xff]  ;;  %v279_v14 = vsel %vm6778_vm9, 0, %v278_v17  ;;  %804 = vst [vmem:[#allocation2 + $0x78] sm:$0xf] %v803_v21  ;;  %v612_v36 = vshll.u32 %v402_v29, 16 }
 0x18b   : > { %1637 = vst [vmem:[#allocation2 + $0x60] sm:$0xf] %v1636_v50  ;;  %6140 = vmatmul.msk.bf16.vlgmr.msra.gmra.mxu2 %vm2184_vm14, %v6476_v49  ;;  %v7143_v40 = vrot.slane %v601_v41, 7  ;;  %v453_v50 = vor.u32 %v451_v43, %v7036_v9  ;;  %v1716_v49 = vld [vmem:[#allocation2 + $0x6c] sm:$0xf]  ;;  %v482_v19 = vshrl.u32 %v7165_v47, 16 }
 0x18c   : > { %v1417_v56 = vor.u32 %v1415_v46, %v1414_v44  ;;  %v1419_v62 = vrot.slane %v1414_v44, 4  ;;  %763 = vst.msk [vmem:[#allocation2 + $0x34] sm:$0xf] %vm734_vm11, %v479_v2  ;;  %v7150_v44 = vrot.slane %v609_v30, 7  ;;  %v1646_v9 = vld [vmem:[#allocation2 + $0x74] sm:$0x1] }
 0x18d   : > { %v7102_v57 = vpop.f32.mrf.mxu0  ;;  %280 = vst [vmem:[#allocation2 + $0x24] sm:$0x1] %v279_v14  ;;  %v607_v53 = vrot.slane %v7143_v40, 4  ;;  %v1967_v7 = vshrl.u32 %v1716_v49, 16  ;;  %v813_v22 = vld [vmem:[#allocation2 + $0x8c] sm:$0x1] }
 0x18e   : > { %v1418_v10 = vsel %vm6679_vm3, %v1410_v58, %v1417_v56  ;;  %v587_v58 = vshll.u32 %v7063_v37, 16  ;;  %v599_v56 = vrot.slane %v7088_v45, 4  ;;  %v388_v63 = vld [vmem:[%s6734_s29 + $0x24] sm:$0xf]  ;;  %339 = vst [vmem:[#allocation2 + $0x38] sm:$0x1] %v338_v27 }
 0x18f   : > { %1483 = vrot.lane.b32.xlu2 %v1300_v48, %s6595_s17  ;;  %1525 = vrot.lane.b32.xlu1 %v1419_v62, %s6595_s17  ;;  %v757_v38 = vld [vmem:[#allocation2 + $0x2c] sm:$0x1]  ;;  %v614_v62 = vor.u32 %v612_v36, %v7150_v44  ;;  %v1970_v48 = vshll.u32 %v1716_v49, 16  ;;  %v490_v15 = vshrl.u32 %v388_v63, 16  ;;  %v493_v32 = vshll.u32 %v388_v63, 16 }
 0x190   : > { %1523 = vrot.lane.b32.xlu0 %v1418_v10, %s6595_s17  ;;  %v1446_v18 = vpop.permute.xlu2 %1445  ;;  %v758_v12 = vsel %vm6766_vm8, %v463_v35, %v757_v38  ;;  %v2246_v10 = vpop.f32.mrf.mxu1  ;;  %v589_v31 = vor.u32 %v587_v58, %v7080_v0  ;;  %v1969_v14 = vrot.slane %v1967_v7, 4  ;;  %v7181_v29 = vrot.slane %v482_v19, 7  ;;  %v281_v30 = vld [vmem:[#allocation2 + $0x30] sm:$0x1]  ;;  %v809_v36 = vld [vmem:[#allocation2 + $0x84] sm:$0xf] }
 0x191   : > { %1596 = vst.msk [vmem:[#allocation2 + $0x1c] sm:$0xf] %vm1581_vm1, %v1446_v18  ;;  %v615_v8 = vsel %vm6679_vm3, %v607_v53, %v614_v62  ;;  %v814_v18 = vsel %vm6766_vm8, %v599_v56, %v813_v22  ;;  %v1972_v2 = vrot.slane %v1970_v48, 5  ;;  %v7183_v41 = vrot.slane %v490_v15, 7  ;;  %v1597_v49 = vld [vmem:[#allocation2 + $0x20] sm:$0x1] }
 0x192   : > { %759 = vst [vmem:[#allocation2 + $0x2c] sm:$0x1] %v758_v12  ;;  %v6477_v54 = vld [vmem:[#allocation2 + $0x60] sm:$0xff]  ;;  %v480_v38 = vrot.slane %v7115_v59, 4  ;;  %v810_v12 = vsel %vm6805_vm12, %v589_v31, %v809_v36  ;;  %v488_v26 = vrot.slane %v7181_v29, 4  ;;  %v548_v58 = vrot.slane %v6966_v16, 4 }
 0x193   : > { %819 = vst.msk [vmem:[#allocation2 + $0x94] sm:$0xf] %vm734_vm11, %v615_v8  ;;  %v1973_v52 = vor.u32 %v1972_v2, %v1969_v14  ;;  %v7203_v62 = vld [vmem:[%s6734_s29 + $0x60] sm:$0xf]  ;;  %v468_v7 = vshll.u32 %v7096_v55, 16 }
 0x194   : > { %v753_v60 = vld [vmem:[#allocation2 + $0x24] sm:$0xf]  ;;  %815 = vst [vmem:[#allocation2 + $0x8c] sm:$0x1] %v814_v18  ;;  %v618_v48 = vshrl.u32 %v7203_v62, 16 }
 0x195   : > { %v7138_v3 = vpop.f32.mrf.mxu0  ;;  %v754_v45 = vsel %vm6805_vm12, %v453_v50, %v753_v60  ;;  %v361_v50 = vld [vmem:[#allocation2 + $0x98] sm:$0x1]  ;;  %811 = vst [vmem:[#allocation2 + $0x84] sm:$0xf] %v810_v12  ;;  %v404_v8 = vld [vmem:[%s6734_s29 + $0x64] sm:$0xf] }
 0x196   : > { %755 = vst [vmem:[#allocation2 + $0x24] sm:$0xf] %v754_v45  ;;  %v764_v60 = vld [vmem:[#allocation2 + $0x38] sm:$0x1]  ;;  %v305_v31 = vld [vmem:[#allocation2 + $0x90] sm:$0x1] }
 0x197   : > { %v765_v63 = vsel %vm6766_vm8, %v480_v38, %v764_v60  ;;  %v7219_v19 = vrot.slane %v618_v48, 7  ;;  %v626_v15 = vshrl.u32 %v404_v8, 16  ;;  %v306_v38 = vsel %vm6778_vm9, 0, %v305_v31  ;;  %v1653_v36 = vld [vmem:[#allocation2 + $0x80] sm:$0x1] }
 0x198   : > { %v1703_v6 = vld [vmem:[#allocation2 + $0x1c] sm:$0xf]  ;;  %766 = vst [vmem:[#allocation2 + $0x38] sm:$0x1] %v765_v63  ;;  %v616_v12 = vrot.slane %v7150_v44, 4 }
 0x199   : > { %v1494_v46 = vpop.permute.xlu2 %1493  ;;  %v1808_v17 = vshll.u32 %v1703_v6, 16  ;;  %v1812_v25 = vshrl.u32 %v1703_v6, 16  ;;  %v362_v6 = vsel %vm6738_vm6, 0, %v361_v50  ;;  %307 = vst [vmem:[#allocation2 + $0x90] sm:$0x1] %v306_v38 }
 0x19a   : > { %1652 = vst.msk [vmem:[#allocation2 + $0x7c] sm:$0xf] %vm1581_vm1, %v1494_v46  ;;  %v495_v46 = vor.u32 %v493_v32, %v7183_v41 }
 0x19b   : > { %6141 = vmatmul.msk.bf16.gmra.mxu2 %vm2184_vm14, %v6477_v54  ;;  %v7188_v39 = vrot.slane %v1808_v17, 5  ;;  %v1814_v59 = vrot.slane %v1812_v25, 4  ;;  %v282_v54 = vsel %vm6778_vm9, 0, %v281_v30  ;;  %363 = vst [vmem:[#allocation2 + $0x98] sm:$0x1] %v362_v6  ;;  %v629_v30 = vshll.u32 %v404_v8, 16 }
 0x19c   : > { %v496_v56 = vsel %vm6679_vm3, %v488_v26, %v495_v46  ;;  %283 = vst [vmem:[#allocation2 + $0x30] sm:$0x1] %v282_v54 }
 0x19d   : > { %v2466_v37 = vpop.f32.mrf.mxu0  ;;  %770 = vst.msk [vmem:[#allocation2 + $0x40] sm:$0xf] %vm734_vm11, %v496_v56  ;;  %v1815_v45 = vor.u32 %v1814_v59, %v7188_v39  ;;  %v7239_v59 = vrot.slane %v626_v15, 7 }
 0x19e   : > { %v7171_v1 = vadd.f32 %v2466_v37, %v2246_v10  ;;  %v7211_v10 = vrot.slane %v1973_v52, 4 }
 0x19f   : > { %v7234_v26 = vrot.slane %v1815_v45, 4  ;;  %v631_v48 = vor.u32 %v629_v30, %v7239_v59  ;;  %v7248_v45 = vld [vmem:[%s6734_s29 + $0x28] sm:$0xf] }
 0x1a0   : > { %v1490_v21 = vpop.permute.xlu0 %1489 }
 0x1a1   : > { %v1647_v0 = vsel %vm6857_vm10, %v1490_v21, %v1646_v9  ;;  %v1488_v35 = vpop.permute.xlu1 %1487  ;;  %v1452_v43 = vpop.permute.xlu2 %1451  ;;  %v7195_v53 = vld [vmem:[#allocation2 + $0x7c] sm:$0xf]  ;;  %v1593_v9 = vld [vmem:[#allocation2 + $0x18] sm:$0xf]  ;;  %v470_v21 = vor.u32 %v468_v7, %v7111_v11  ;;  %v604_v11 = vshll.u32 %v7136_v23, 16 }
 0x1a2   : > { %1648 = vst [vmem:[#allocation2 + $0x74] sm:$0x1] %v1647_v0  ;;  %v2000_v22 = vshll.u32 %v7195_v53, 16  ;;  %v7226_v0 = vpop.f32.mrf.mxu1  ;;  %v2004_v52 = vshrl.u32 %v7195_v53, 16  ;;  %v1649_v23 = vld [vmem:[#allocation2 + $0x78] sm:$0xf] }
 0x1a3   : > { %1645 = vst.msk [vmem:[#allocation2 + $0x70] sm:$0xf] %vm1581_vm1, %v1488_v35  ;;  %v760_v6 = vld [vmem:[#allocation2 + $0x30] sm:$0xf]  ;;  %v820_v8 = vld [vmem:[#allocation2 + $0x98] sm:$0x1] }
 0x1a4   : > { %1603 = vst.msk [vmem:[#allocation2 + $0x28] sm:$0xf] %vm1581_vm1, %v1452_v43  ;;  %v7236_v46 = vrot.slane %v2000_v22, 5  ;;  %v761_v7 = vsel %vm6805_vm12, %v470_v21, %v760_v6  ;;  %v7251_v22 = vld [vmem:[%s6734_s29 + $0x2c] sm:$0xf]  ;;  %v606_v21 = vor.u32 %v604_v11, %v7143_v40  ;;  %v7265_v38 = vrot.slane %v2004_v52, 4 }
 0x1a5   : > { %v7224_v25 = vpop.f32.mrf.mxu0  ;;  %762 = vst [vmem:[#allocation2 + $0x30] sm:$0xf] %v761_v7  ;;  %v499_v11 = vshrl.u32 %v7248_v45, 16  ;;  %v507_v52 = vshrl.u32 %v7251_v22, 16 }
 0x1a8   : > { %v1448_v37 = vpop.permute.xlu0 %1447 }
 0x1a9   : > { %v1598_v55 = vsel %vm6857_vm10, %v1448_v37, %v1597_v49  ;;  %v1444_v17 = vpop.permute.xlu1 %1443  ;;  %v1500_v18 = vpop.permute.xlu2 %1499  ;;  %v1740_v4 = vld [vmem:[#allocation2 + $0x74] sm:$0x1]  ;;  %v821_v37 = vsel %vm6766_vm8, %v616_v12, %v820_v8  ;;  %v7276_v8 = vrot.slane %v499_v11, 7 }
 0x1aa   : > { %1599 = vst [vmem:[#allocation2 + $0x20] sm:$0x1] %v1598_v55  ;;  %v1594_v32 = vsel %vm6876_vm15, %v1444_v17, %v1593_v9  ;;  %v6478_v27 = vld [vmem:[#allocation2 + $0x6c] sm:$0xff]  ;;  %v1986_v2 = vshll.u32 %v1740_v4, 16  ;;  %v624_v9 = vrot.slane %v7219_v19, 4 }
 0x1ab   : > { %v1717_v14 = vld [vmem:[#allocation2 + $0x70] sm:$0xf]  ;;  %1595 = vst [vmem:[#allocation2 + $0x18] sm:$0xf] %v1594_v32  ;;  %6142 = vmatmul.msk.bf16.gmra.mxu2 %vm2184_vm14, %v6478_v27  ;;  %v1705_v54 = vld [vmem:[#allocation2 + $0x28] sm:$0xf] }
 0x1ac   : > { %v1976_v35 = vshll.u32 %v1717_v14, 16  ;;  %v1980_v43 = vshrl.u32 %v1717_v14, 16  ;;  %1659 = vst.msk [vmem:[#allocation2 + $0x88] sm:$0xf] %vm1581_vm1, %v1500_v18  ;;  %v1988_v56 = vrot.slane %v1986_v2, 5  ;;  %v1832_v60 = vshll.u32 %v1705_v54, 16 }
 0x1ad   : > { %v1836_v15 = vshrl.u32 %v1705_v54, 16  ;;  %822 = vst [vmem:[#allocation2 + $0x98] sm:$0x1] %v821_v37 }
 0x1ae   : > { %v1978_v50 = vrot.slane %v1976_v35, 5  ;;  %v1982_v49 = vrot.slane %v1980_v43, 4  ;;  %v632_v35 = vsel %vm6679_vm3, %v624_v9, %v631_v48  ;;  %v816_v48 = vld [vmem:[#allocation2 + $0x90] sm:$0xf] }
 0x1af   : > { %826 = vst.msk [vmem:[#allocation2 + $0xa0] sm:$0xf] %vm734_vm11, %v632_v35  ;;  %v1838_v7 = vrot.slane %v1836_v15, 4 }
 0x1b0   : > { %v1983_v44 = vor.u32 %v1982_v49, %v1978_v50  ;;  %v1496_v53 = vpop.permute.xlu0 %1495  ;;  %v1979_v17 = vsel %vm6846_vm2, %v7211_v10, %v1978_v50  ;;  %v2471_v50 = vpop.f32.mrf.mxu0 }
 0x1b1   : > { %v1654_v63 = vsel %vm6857_vm10, %v1496_v53, %v1653_v36  ;;  %v1492_v31 = vpop.permute.xlu1 %1491  ;;  %v1458_v55 = vpop.permute.xlu2 %1457  ;;  %v1733_v4 = vld [vmem:[#allocation2 + $0x20] sm:$0x1]  ;;  %v2154_v36 = vunpack.c.l.b16 %v1979_v17  ;;  %v1600_v53 = vld [vmem:[#allocation2 + $0x24] sm:$0xf] }
 0x1b2   : > { %v1984_v18 = vrot.slane %v1983_v44, 4  ;;  %1655 = vst [vmem:[#allocation2 + $0x80] sm:$0x1] %v1654_v63  ;;  %v1650_v32 = vsel %vm6876_vm15, %v1492_v31, %v1649_v23  ;;  %v6471_v27 = vld [vmem:[#allocation2 + $0x18] sm:$0xff]  ;;  %v1818_v2 = vshll.u32 %v1733_v4, 16  ;;  %v485_v63 = vshll.u32 %v7165_v47, 16 }
 0x1b3   : > { %v1702_v14 = vld [vmem:[#allocation2 + $0x18] sm:$0xf]  ;;  %1651 = vst [vmem:[#allocation2 + $0x78] sm:$0xf] %v1650_v32  ;;  %6135 = vmatmul.msk.bf16.gmra.mxu0 %vm2184_vm14, %v6471_v27  ;;  %v1604_v44 = vld [vmem:[#allocation2 + $0x2c] sm:$0x1]  ;;  %v817_v31 = vsel %vm6805_vm12, %v606_v21, %v816_v48 }
 0x1b4   : > { %v1989_v10 = vsel %vm6846_vm2, %v1984_v18, %v1988_v56  ;;  %v1799_v43 = vshrl.u32 %v1702_v14, 16  ;;  %v1802_v30 = vshll.u32 %v1702_v14, 16  ;;  %1610 = vst.msk [vmem:[#allocation2 + $0x34] sm:$0xf] %vm1581_vm1, %v1458_v55  ;;  %v1820_v40 = vrot.slane %v1818_v2, 5  ;;  %v2251_v49 = vpop.f32.mrf.mxu1 }
 0x1b5   : > { %v2155_v12 = vunpack.c.l.b16 %v1989_v10  ;;  %v7271_v56 = vrot.slane %v1832_v60, 5  ;;  %v7274_v9 = vadd.f32 %v2471_v50, %v2251_v49  ;;  %v7281_v55 = vrot.slane %v507_v52, 7  ;;  %818 = vst [vmem:[#allocation2 + $0x90] sm:$0xf] %v817_v31  ;;  %v1721_v15 = vld [vmem:[#allocation2 + $0x88] sm:$0xf] }
 0x1b6   : > { %v1801_v54 = vrot.slane %v1799_v43, 4  ;;  %v1804_v6 = vrot.slane %v1802_v30, 5  ;;  %v1821_v17 = vsel %vm6846_vm2, %v7234_v26, %v1820_v40  ;;  %v505_v18 = vrot.slane %v7276_v8, 4  ;;  %v340_v43 = vld [vmem:[#allocation2 + $0x44] sm:$0x1] }
 0x1b7   : > { %v2177_v23 = vpack.c.b16 %v2155_v12, %v2154_v36  ;;  %v510_v4 = vshll.u32 %v7251_v22, 16  ;;  %v497_v2 = vrot.slane %v7183_v41, 4  ;;  %v2007_v10 = vor.u32 %v7265_v38, %v7236_v46  ;;  %v1660_v52 = vld [vmem:[#allocation2 + $0x8c] sm:$0x1]  ;;  %v7306_v48 = vld [vmem:[%s6734_s29 + $0x68] sm:$0xf] }
 0x1b8   : > { %v1805_v37 = vor.u32 %v1804_v6, %v1801_v54  ;;  %v1454_v60 = vpop.permute.xlu0 %1453  ;;  %v1839_v12 = vor.u32 %v1838_v7, %v7271_v56  ;;  %v2141_v50 = vunpack.c.l.b16 %v1821_v17  ;;  %v284_v54 = vld [vmem:[#allocation2 + $0x3c] sm:$0x1]  ;;  %v2024_v7 = vshll.u32 %v1721_v15, 16 }
 0x1b9   : > { %6062 = vmatmul.msk.bf16.vlgmr.msra.gmra.mxu3 %vm2184_vm14, %v2177_v23  ;;  %v1605_v32 = vsel %vm6857_vm10, %v1454_v60, %v1604_v44  ;;  %v1450_v27 = vpop.permute.xlu1 %1449  ;;  %v1506_v21 = vpop.permute.xlu2 %1505  ;;  %v1741_v35 = vld [vmem:[#allocation2 + $0x80] sm:$0x1]  ;;  %v512_v40 = vor.u32 %v510_v4, %v7281_v55  ;;  %v341_v31 = vsel %vm6738_vm6, 0, %v340_v43  ;;  %v2008_v17 = vrot.slane %v2007_v10, 4  ;;  %v308_v41 = vld [vmem:[#allocation2 + $0x9c] sm:$0x1] }
 0x1ba   : > { %v1806_v14 = vrot.slane %v1805_v37, 4  ;;  %1606 = vst [vmem:[#allocation2 + $0x2c] sm:$0x1] %v1605_v32  ;;  %v1601_v26 = vsel %vm6876_vm15, %v1450_v27, %v1600_v53  ;;  %v6479_v30 = vld [vmem:[#allocation2 + $0x78] sm:$0xff]  ;;  %v2010_v36 = vshll.u32 %v1741_v35, 16  ;;  %v2028_v37 = vshrl.u32 %v1721_v15, 16 }
 0x1bb   : > { %v1718_v22 = vld [vmem:[#allocation2 + $0x78] sm:$0xf]  ;;  %1602 = vst [vmem:[#allocation2 + $0x24] sm:$0xf] %v1601_v26  ;;  %6143 = vmatmul.msk.bf16.gmra.mxu2 %vm2184_vm14, %v6479_v30  ;;  %v513_v44 = vsel %vm6679_vm3, %v505_v18, %v512_v40  ;;  %v285_v4 = vsel %vm6778_vm9, 0, %v284_v54  ;;  %v7317_v35 = vrot.slane %v1839_v12, 4  ;;  %v487_v54 = vor.u32 %v485_v63, %v7181_v29 }
 0x1bc   : > { %v1811_v11 = vsel %vm6846_vm2, %v1806_v14, %v7188_v39  ;;  %v1991_v38 = vshrl.u32 %v1718_v22, 16  ;;  %v1994_v49 = vshll.u32 %v1718_v22, 16  ;;  %1666 = vst.msk [vmem:[#allocation2 + $0x94] sm:$0xf] %vm1581_vm1, %v1506_v21  ;;  %v2012_v23 = vrot.slane %v2010_v36, 5 }
 0x1bd   : > { %v2140_v6 = vunpack.c.l.b16 %v1811_v11  ;;  %777 = vst.msk [vmem:[#allocation2 + $0x4c] sm:$0xf] %vm734_vm11, %v513_v44  ;;  %v406_v32 = vld [vmem:[%s6734_s29 + $0x6c] sm:$0xf]  ;;  %v1656_v27 = vld [vmem:[#allocation2 + $0x84] sm:$0xf] }
 0x1be   : > { %v1993_v53 = vrot.slane %v1991_v38, 4  ;;  %v1996_v39 = vrot.slane %v1994_v49, 5  ;;  %342 = vst [vmem:[#allocation2 + $0x44] sm:$0x1] %v341_v31  ;;  %v621_v21 = vshll.u32 %v7203_v62, 16  ;;  %v635_v14 = vshrl.u32 %v7306_v48, 16 }
 0x1bf   : > { %v2170_v60 = vpack.c.b16 %v2141_v50, %v2140_v6  ;;  %286 = vst [vmem:[#allocation2 + $0x3c] sm:$0x1] %v285_v4  ;;  %v7319_v43 = vrot.slane %v2024_v7, 5  ;;  %v2030_v10 = vrot.slane %v2028_v37, 4  ;;  %v643_v26 = vshrl.u32 %v406_v32, 16 }
 0x1c0   : > { %v1997_v18 = vor.u32 %v1996_v39, %v1993_v53  ;;  %v1502_v15 = vpop.permute.xlu0 %1501  ;;  %v2013_v11 = vsel %vm6846_vm2, %v2008_v17, %v2012_v23  ;;  %v7325_v38 = vrot.slane %v635_v14, 7  ;;  %v1707_v49 = vld [vmem:[#allocation2 + $0x34] sm:$0xf]  ;;  %v646_v39 = vshll.u32 %v406_v32, 16  ;;  %v364_v63 = vld [vmem:[#allocation2 + $0xa4] sm:$0x1] }
 0x1c1   : > { %6055 = vmatmul.msk.bf16.gmra.mxu1 %vm2184_vm14, %v2170_v60  ;;  %v1661_v30 = vsel %vm6857_vm10, %v1502_v15, %v1660_v52  ;;  %v1498_v22 = vpop.permute.xlu1 %1497  ;;  %v1464_v36 = vpop.permute.xlu2 %1463  ;;  %v1734_v50 = vld [vmem:[#allocation2 + $0x2c] sm:$0x1]  ;;  %v2157_v31 = vunpack.c.l.b16 %v2013_v11  ;;  %v1611_v60 = vld [vmem:[#allocation2 + $0x38] sm:$0x1]  ;;  %v2031_v29 = vor.u32 %v2030_v10, %v7319_v43  ;;  %v1607_v15 = vld [vmem:[#allocation2 + $0x30] sm:$0xf] }
 0x1c2   : > { %v1998_v40 = vrot.slane %v1997_v18, 4  ;;  %1662 = vst [vmem:[#allocation2 + $0x8c] sm:$0x1] %v1661_v30  ;;  %v1657_v12 = vsel %vm6876_vm15, %v1498_v22, %v1656_v27  ;;  %v6472_v6 = vld [vmem:[#allocation2 + $0x24] sm:$0xff]  ;;  %v1842_v44 = vshll.u32 %v1734_v50, 16  ;;  %v7338_v18 = vrot.slane %v643_v26, 7 }
 0x1c3   : > { %v1704_v52 = vld [vmem:[#allocation2 + $0x24] sm:$0xf]  ;;  %1658 = vst [vmem:[#allocation2 + $0x84] sm:$0xf] %v1657_v12  ;;  %6136 = vmatmul.msk.bf16.gmra.mxu0 %vm2184_vm14, %v6472_v6  ;;  %v641_v22 = vrot.slane %v7325_v38, 4  ;;  %v633_v12 = vrot.slane %v7239_v59, 4 }
 0x1c4   : > { %v2003_v23 = vsel %vm6846_vm2, %v1998_v40, %v7236_v46  ;;  %v1823_v7 = vshrl.u32 %v1704_v52, 16  ;;  %v1826_v53 = vshll.u32 %v1704_v52, 16  ;;  %1617 = vst.msk [vmem:[#allocation2 + $0x40] sm:$0xf] %vm1581_vm1, %v1464_v36  ;;  %v1844_v47 = vrot.slane %v1842_v44, 5 }
 0x1c5   : > { %v2156_v37 = vunpack.c.l.b16 %v2003_v23  ;;  %v771_v27 = vld [vmem:[#allocation2 + $0x44] sm:$0x1]  ;;  %v1856_v46 = vshll.u32 %v1707_v49, 16  ;;  %v1860_v36 = vshrl.u32 %v1707_v49, 16  ;;  %v648_v11 = vor.u32 %v646_v39, %v7338_v18  ;;  %v314_v50 = vld [vmem:[#allocation2 + $0xb4] sm:$0x1] }
 0x1c6   : > { %v1825_v17 = vrot.slane %v1823_v7, 4  ;;  %v1828_v4 = vrot.slane %v1826_v53, 5  ;;  %v772_v32 = vsel %vm6766_vm8, %v497_v2, %v771_v27  ;;  %v767_v30 = vld [vmem:[#allocation2 + $0x3c] sm:$0xf]  ;;  %v1845_v40 = vsel %vm6846_vm2, %v7317_v35, %v1844_v47  ;;  %v7358_v52 = vld [vmem:[%s6734_s29 + $0x70] sm:$0xf] }
 0x1c7   : > { %v2178_v14 = vpack.c.b16 %v2157_v31, %v2156_v37  ;;  %773 = vst [vmem:[#allocation2 + $0x44] sm:$0x1] %v772_v32  ;;  %v768_v26 = vsel %vm6805_vm12, %v487_v54, %v767_v30  ;;  %v7353_v49 = vrot.slane %v1856_v46, 5  ;;  %v1862_v6 = vrot.slane %v1860_v36, 4  ;;  %v7362_v37 = vld [vmem:[#allocation2 + $0x94] sm:$0xf] }
 0x1c8   : > { %v1829_v10 = vor.u32 %v1828_v4, %v1825_v17  ;;  %v1460_v2 = vpop.permute.xlu0 %1459  ;;  %769 = vst [vmem:[#allocation2 + $0x3c] sm:$0xf] %v768_v26  ;;  %v365_v35 = vsel %vm6738_vm6, 0, %v364_v63  ;;  %v2032_v39 = vrot.slane %v2031_v29, 4  ;;  %v2143_v17 = vunpack.c.l.b16 %v1845_v40  ;;  %v287_v62 = vld [vmem:[#allocation2 + $0x48] sm:$0x1] }
 0x1c9   : > { %6063 = vmatmul.msk.bf16.gmra.mxu3 %vm2184_vm14, %v2178_v14  ;;  %v1612_v54 = vsel %vm6857_vm10, %v1460_v2, %v1611_v60  ;;  %v1456_v44 = vpop.permute.xlu1 %1455  ;;  %v1512_v23 = vpop.permute.xlu2 %1511  ;;  %v1742_v53 = vld [vmem:[#allocation2 + $0x8c] sm:$0x1]  ;;  %366 = vst [vmem:[#allocation2 + $0xa4] sm:$0x1] %v365_v35  ;;  %v649_v27 = vsel %vm6679_vm3, %v641_v22, %v648_v11  ;;  %v309_v14 = vsel %vm6778_vm9, 0, %v308_v41  ;;  %v1863_v30 = vor.u32 %v1862_v6, %v7353_v49 }
 0x1ca   : > { %v1830_v7 = vrot.slane %v1829_v10, 4  ;;  %1613 = vst [vmem:[#allocation2 + $0x38] sm:$0x1] %v1612_v54  ;;  %v1608_v31 = vsel %vm6876_vm15, %v1456_v44, %v1607_v15  ;;  %v6480_v47 = vld [vmem:[#allocation2 + $0x84] sm:$0xff]  ;;  %v2034_v4 = vshll.u32 %v1742_v53, 16  ;;  %v315_v22 = vsel %vm6778_vm9, 0, %v314_v50 }
 0x1cb   : > { %v1720_v63 = vld [vmem:[#allocation2 + $0x84] sm:$0xf]  ;;  %1609 = vst [vmem:[#allocation2 + $0x30] sm:$0xf] %v1608_v31  ;;  %6144 = vmatmul.msk.bf16.gmra.mxu2 %vm2184_vm14, %v6480_v47  ;;  %v502_v36 = vshll.u32 %v7248_v45, 16  ;;  %v652_v40 = vshrl.u32 %v7358_v52, 16 }
 0x1cc   : > { %v1835_v60 = vsel %vm6846_vm2, %v1830_v7, %v7271_v56  ;;  %v2015_v29 = vshrl.u32 %v1720_v63, 16  ;;  %v2018_v46 = vshll.u32 %v1720_v63, 16  ;;  %1673 = vst.msk [vmem:[#allocation2 + $0xa0] sm:$0xf] %vm1581_vm1, %v1512_v23  ;;  %v2036_v32 = vrot.slane %v2034_v4, 5 }
 0x1cd   : > { %v2142_v15 = vunpack.c.l.b16 %v1835_v60  ;;  %833 = vst.msk [vmem:[#allocation2 + $0xac] sm:$0xf] %vm734_vm11, %v649_v27  ;;  %v1667_v11 = vld [vmem:[#allocation2 + $0x98] sm:$0x1]  ;;  %v655_v2 = vshll.u32 %v7358_v52, 16  ;;  %v2048_v6 = vshll.u32 %v7362_v37, 16  ;;  %v623_v23 = vor.u32 %v621_v21, %v7219_v19 }
 0x1ce   : > { %v2017_v10 = vrot.slane %v2015_v29, 4  ;;  %v2020_v56 = vrot.slane %v2018_v46, 5  ;;  %v2037_v41 = vsel %vm6846_vm2, %v2032_v39, %v2036_v32  ;;  %310 = vst [vmem:[#allocation2 + $0x9c] sm:$0x1] %v309_v14  ;;  %v1663_v35 = vld [vmem:[#allocation2 + $0x90] sm:$0xf] }
 0x1cf   : > { %v2171_v26 = vpack.c.b16 %v2143_v17, %v2142_v15  ;;  %v514_v50 = vrot.slane %v7281_v55, 4  ;;  %316 = vst [vmem:[#allocation2 + $0xb4] sm:$0x1] %v315_v22  ;;  %v7386_v44 = vrot.slane %v652_v40, 7  ;;  %v7392_v53 = vrot.slane %v1863_v30, 4 }
 0x1d0   : > { %v2021_v54 = vor.u32 %v2020_v56, %v2017_v10  ;;  %v1508_v7 = vpop.permute.xlu0 %1507  ;;  %v827_v39 = vld [vmem:[#allocation2 + $0xa4] sm:$0x1]  ;;  %v2052_v52 = vshrl.u32 %v7362_v37, 16  ;;  %v343_v31 = vld [vmem:[#allocation2 + $0x50] sm:$0x1]  ;;  %v2159_v27 = vunpack.c.l.b16 %v2037_v41  ;;  %v7397_v29 = vrot.slane %v2048_v6, 5 }
 0x1d1   : > { %6056 = vmatmul.msk.bf16.gmra.mxu1 %vm2184_vm14, %v2171_v26  ;;  %v1668_v47 = vsel %vm6857_vm10, %v1508_v7, %v1667_v11  ;;  %v1504_v17 = vpop.permute.xlu1 %1503  ;;  %v1470_v63 = vpop.permute.xlu2 %1469  ;;  %v1735_v60 = vld [vmem:[#allocation2 + $0x38] sm:$0x1]  ;;  %v828_v37 = vsel %vm6766_vm8, %v633_v12, %v827_v39  ;;  %v657_v15 = vor.u32 %v655_v2, %v7386_v44  ;;  %v344_v10 = vsel %vm6738_vm6, 0, %v343_v31  ;;  %v1618_v56 = vld [vmem:[#allocation2 + $0x44] sm:$0x1] }
 0x1d2   : > { %v2022_v4 = vrot.slane %v2021_v54, 4  ;;  %1669 = vst [vmem:[#allocation2 + $0x98] sm:$0x1] %v1668_v47  ;;  %v1664_v19 = vsel %vm6876_vm15, %v1504_v17, %v1663_v35  ;;  %v6473_v21 = vld [vmem:[#allocation2 + $0x30] sm:$0xff]  ;;  %v1866_v14 = vshll.u32 %v1735_v60, 16  ;;  %v2054_v12 = vrot.slane %v2052_v52, 4 }
 0x1d3   : > { %v1706_v46 = vld [vmem:[#allocation2 + $0x30] sm:$0xf]  ;;  %1665 = vst [vmem:[#allocation2 + $0x90] sm:$0xf] %v1664_v19  ;;  %6137 = vmatmul.msk.bf16.gmra.mxu0 %vm2184_vm14, %v6473_v21  ;;  %v288_v26 = vsel %vm6778_vm9, 0, %v287_v62  ;;  %v638_v45 = vshll.u32 %v7306_v48, 16 }
 0x1d4   : > { %v2027_v32 = vsel %vm6846_vm2, %v2022_v4, %v7319_v43  ;;  %v1847_v30 = vshrl.u32 %v1706_v46, 16  ;;  %v1850_v22 = vshll.u32 %v1706_v46, 16  ;;  %1624 = vst.msk [vmem:[#allocation2 + $0x4c] sm:$0xf] %vm1581_vm1, %v1470_v63  ;;  %v1868_v40 = vrot.slane %v1866_v14, 5 }
 0x1d5   : > { %v2158_v59 = vunpack.c.l.b16 %v2027_v32  ;;  %829 = vst [vmem:[#allocation2 + $0xa4] sm:$0x1] %v828_v37  ;;  %v823_v43 = vld [vmem:[#allocation2 + $0x9c] sm:$0xf]  ;;  %v349_v54 = vld [vmem:[#allocation2 + $0x68] sm:$0x1]  ;;  %v2055_v32 = vor.u32 %v2054_v12, %v7397_v29 }
 0x1d6   : > { %v1849_v11 = vrot.slane %v1847_v30, 4  ;;  %v1852_v41 = vrot.slane %v1850_v22, 5  ;;  %v824_v6 = vsel %vm6805_vm12, %v623_v23, %v823_v43  ;;  %v837_v35 = vld [vmem:[#allocation2 + $0xb4] sm:$0xf]  ;;  %345 = vst [vmem:[#allocation2 + $0x50] sm:$0x1] %v344_v10  ;;  %v1869_v19 = vsel %vm6846_vm2, %v7392_v53, %v1868_v40 }
 0x1d7   : > { %v2179_v2 = vpack.c.b16 %v2159_v27, %v2158_v59  ;;  %v1614_v7 = vld [vmem:[#allocation2 + $0x3c] sm:$0xf]  ;;  %825 = vst [vmem:[#allocation2 + $0x9c] sm:$0xf] %v824_v6  ;;  %v838_v52 = vsel %vm6805_vm12, %v657_v15, %v837_v35  ;;  %v1709_v31 = vld [vmem:[#allocation2 + $0x40] sm:$0xf]  ;;  %v2145_v40 = vunpack.c.l.b16 %v1869_v19 }
 0x1d8   : > { %v1853_v39 = vor.u32 %v1852_v41, %v1849_v11  ;;  %v1466_v47 = vpop.permute.xlu0 %1465  ;;  %839 = vst [vmem:[#allocation2 + $0xb4] sm:$0xf] %v838_v52  ;;  %v350_v17 = vsel %vm6738_vm6, 0, %v349_v54  ;;  %v1880_v63 = vshll.u32 %v1709_v31, 16  ;;  %v367_v4 = vld [vmem:[#allocation2 + $0xb0] sm:$0x1]  ;;  %v504_v41 = vor.u32 %v502_v36, %v7276_v8 }
 0x1d9   : > { %6064 = vmatmul.msk.bf16.gmra.mxu3 %vm2184_vm14, %v2179_v2  ;;  %v1619_v23 = vsel %vm6857_vm10, %v1466_v47, %v1618_v56  ;;  %v1462_v27 = vpop.permute.xlu1 %1461  ;;  %v1518_v60 = vpop.permute.xlu2 %1517  ;;  %v1743_v21 = vld [vmem:[#allocation2 + $0x98] sm:$0x1]  ;;  %289 = vst [vmem:[#allocation2 + $0x48] sm:$0x1] %v288_v26  ;;  %v1884_v46 = vshrl.u32 %v1709_v31, 16  ;;  %v368_v53 = vsel %vm6738_vm6, 0, %v367_v4 }
 0x1da   : > { %v1854_v62 = vrot.slane %v1853_v39, 4  ;;  %1620 = vst [vmem:[#allocation2 + $0x44] sm:$0x1] %v1619_v23  ;;  %v1615_v14 = vsel %vm6876_vm15, %v1462_v27, %v1614_v7  ;;  %v6481_v37 = vld [vmem:[#allocation2 + $0x90] sm:$0xff]  ;;  %v2058_v30 = vshll.u32 %v1743_v21, 16  ;;  %v7437_v12 = vrot.slane %v1880_v63, 5 }
 0x1db   : > { %v1722_v15 = vld [vmem:[#allocation2 + $0x90] sm:$0xf]  ;;  %1616 = vst [vmem:[#allocation2 + $0x3c] sm:$0xf] %v1615_v14  ;;  %6145 = vmatmul.msk.bf16.gmra.mxu2 %vm2184_vm14, %v6481_v37  ;;  %v2056_v54 = vrot.slane %v2055_v32, 4  ;;  %v1886_v39 = vrot.slane %v1884_v46, 4 }
 0x1dc   : > { %v1859_v22 = vsel %vm6846_vm2, %v1854_v62, %v7353_v49  ;;  %v2039_v10 = vshrl.u32 %v1722_v15, 16  ;;  %v2042_v59 = vshll.u32 %v1722_v15, 16  ;;  %1680 = vst.msk [vmem:[#allocation2 + $0xac] sm:$0xf] %vm1581_vm1, %v1518_v60  ;;  %v1674_v26 = vld [vmem:[#allocation2 + $0xa4] sm:$0x1] }
 0x1dd   : > { %v2144_v56 = vunpack.c.l.b16 %v1859_v22  ;;  %v2060_v11 = vrot.slane %v2058_v30, 5  ;;  %v778_v2 = vld [vmem:[#allocation2 + $0x50] sm:$0x1]  ;;  %351 = vst [vmem:[#allocation2 + $0x68] sm:$0x1] %v350_v17  ;;  %v1887_v17 = vor.u32 %v1886_v39, %v7437_v12 }
 0x1de   : > { %v2041_v49 = vrot.slane %v2039_v10, 4  ;;  %v2044_v43 = vrot.slane %v2042_v59, 5  ;;  %v1670_v35 = vld [vmem:[#allocation2 + $0x9c] sm:$0xf]  ;;  %v779_v7 = vsel %vm6766_vm8, %v514_v50, %v778_v2  ;;  %369 = vst [vmem:[#allocation2 + $0xb0] sm:$0x1] %v368_v53  ;;  %v640_v10 = vor.u32 %v638_v45, %v7325_v38 }
 0x1df   : > { %v2172_v6 = vpack.c.b16 %v2145_v40, %v2144_v56  ;;  %v1684_v52 = vld [vmem:[#allocation2 + $0xb4] sm:$0xf]  ;;  %780 = vst [vmem:[#allocation2 + $0x50] sm:$0x1] %v779_v7  ;;  %v311_v47 = vld [vmem:[#allocation2 + $0xa8] sm:$0x1]  ;;  %v2061_v48 = vsel %vm6846_vm2, %v2056_v54, %v2060_v11 }
 0x1e0   : > { %v2045_v31 = vor.u32 %v2044_v43, %v2041_v49  ;;  %v1514_v8 = vpop.permute.xlu0 %1513  ;;  %v774_v36 = vld [vmem:[#allocation2 + $0x48] sm:$0xf]  ;;  %v312_v55 = vsel %vm6778_vm9, 0, %v311_v47  ;;  %v1725_v63 = vld [vmem:[#allocation2 + $0xa0] sm:$0xf]  ;;  %v650_v50 = vrot.slane %v7338_v18, 4  ;;  %v2161_v53 = vunpack.c.l.b16 %v2061_v48 }
 0x1e1   : > { %6057 = vmatmul.msk.bf16.gmra.mxu1 %vm2184_vm14, %v2172_v6  ;;  %v1675_v4 = vsel %vm6857_vm10, %v1514_v8, %v1674_v26  ;;  %v1510_v23 = vpop.permute.xlu1 %1509  ;;  %v1522_v27 = vpop.permute.xlu2 %1521  ;;  %v1736_v62 = vld [vmem:[#allocation2 + $0x44] sm:$0x1]  ;;  %313 = vst [vmem:[#allocation2 + $0xa8] sm:$0x1] %v312_v55  ;;  %v775_v18 = vsel %vm6805_vm12, %v504_v41, %v774_v36  ;;  %v2072_v37 = vshll.u32 %v1725_v63, 16  ;;  %v1888_v40 = vrot.slane %v1887_v17, 4 }
 0x1e2   : > { %v2046_v60 = vrot.slane %v2045_v31, 4  ;;  %1676 = vst [vmem:[#allocation2 + $0xa4] sm:$0x1] %v1675_v4  ;;  %v1671_v19 = vsel %vm6876_vm15, %v1510_v23, %v1670_v35  ;;  %v1685_v21 = vsel %vm6876_vm15, %v1522_v27, %v1684_v52  ;;  %v6474_v46 = vld [vmem:[#allocation2 + $0x3c] sm:$0xff]  ;;  %v1890_v22 = vshll.u32 %v1736_v62, 16 }
 0x1e3   : > { %v1708_v14 = vld [vmem:[#allocation2 + $0x3c] sm:$0xf]  ;;  %1672 = vst [vmem:[#allocation2 + $0x9c] sm:$0xf] %v1671_v19  ;;  %6138 = vmatmul.msk.bf16.gmra.mxu0 %vm2184_vm14, %v6474_v46  ;;  %v7473_v35 = vrot.slane %v2072_v37, 5  ;;  %v2076_v54 = vshrl.u32 %v1725_v63, 16 }
 0x1e4   : > { %v2051_v15 = vsel %vm6846_vm2, %v2046_v60, %v7397_v29  ;;  %v1871_v32 = vshrl.u32 %v1708_v14, 16  ;;  %v1874_v30 = vshll.u32 %v1708_v14, 16  ;;  %1686 = vst [vmem:[#allocation2 + $0xb4] sm:$0xf] %v1685_v21  ;;  %v792_v56 = vld [vmem:[#allocation2 + $0x68] sm:$0x1] }
 0x1e5   : > { %v2160_v59 = vunpack.c.l.b16 %v2051_v15  ;;  %776 = vst [vmem:[#allocation2 + $0x48] sm:$0xf] %v775_v18  ;;  %v793_v26 = vsel %vm6766_vm8, %v548_v58, %v792_v56  ;;  %v1892_v41 = vrot.slane %v1890_v22, 5  ;;  %v834_v38 = vld [vmem:[#allocation2 + $0xb0] sm:$0x1]  ;;  %v2078_v63 = vrot.slane %v2076_v54, 4 }
 0x1e6   : > { %v1873_v11 = vrot.slane %v1871_v32, 4  ;;  %v1876_v29 = vrot.slane %v1874_v30, 5  ;;  %v1625_v43 = vld [vmem:[#allocation2 + $0x50] sm:$0x1]  ;;  %794 = vst [vmem:[#allocation2 + $0x68] sm:$0x1] %v793_v26  ;;  %v835_v6 = vsel %vm6766_vm8, %v650_v50, %v834_v38 }
 0x1e7   : > { %v2180_v49 = vpack.c.b16 %v2161_v53, %v2160_v59  ;;  %v346_v7 = vld [vmem:[#allocation2 + $0x5c] sm:$0x1]  ;;  %v1711_v39 = vld [vmem:[#allocation2 + $0x4c] sm:$0xf]  ;;  %v1893_v58 = vsel %vm6846_vm2, %v1888_v40, %v1892_v41  ;;  %836 = vst [vmem:[#allocation2 + $0xb0] sm:$0x1] %v835_v6  ;;  %v2079_v19 = vor.u32 %v2078_v63, %v7473_v35 }
 0x1e8   : > { %v1877_v2 = vor.u32 %v1876_v29, %v1873_v11  ;;  %v1472_v16 = vpop.permute.xlu0 %1471  ;;  %v830_v52 = vld [vmem:[#allocation2 + $0xa8] sm:$0xf]  ;;  %v347_v31 = vsel %vm6738_vm6, 0, %v346_v7  ;;  %v1904_v47 = vshll.u32 %v1711_v39, 16  ;;  %v370_v21 = vld [vmem:[#allocation2 + $0xbc] sm:$0x1]  ;;  %v2147_v14 = vunpack.c.l.b16 %v1893_v58 }
 0x1e9   : > { %6065 = vmatmul.msk.bf16.gmra.mxu3 %vm2184_vm14, %v2180_v49  ;;  %v1626_v45 = vsel %vm6857_vm10, %v1472_v16, %v1625_v43  ;;  %v1468_v8 = vpop.permute.xlu1 %1467  ;;  %v831_v17 = vsel %vm6805_vm12, %v640_v10, %v830_v52  ;;  %v1744_v55 = vld [vmem:[#allocation2 + $0xa4] sm:$0x1]  ;;  %348 = vst [vmem:[#allocation2 + $0x5c] sm:$0x1] %v347_v31  ;;  %v1484_v27 = vpop.permute.xlu2 %1483  ;;  %v2080_v10 = vrot.slane %v2079_v19, 4  ;;  %v1908_v56 = vshrl.u32 %v1711_v39, 16 }
 0x1ea   : > { %v1878_v36 = vrot.slane %v1877_v2, 4  ;;  %1627 = vst [vmem:[#allocation2 + $0x50] sm:$0x1] %v1626_v45  ;;  %v6482_v50 = vld [vmem:[#allocation2 + $0x9c] sm:$0xff]  ;;  %v2082_v23 = vshll.u32 %v1744_v55, 16  ;;  %v7489_v15 = vrot.slane %v1904_v47, 5 }
 0x1eb   : > { %v1724_v4 = vld [vmem:[#allocation2 + $0x9c] sm:$0xf]  ;;  %832 = vst [vmem:[#allocation2 + $0xa8] sm:$0xf] %v831_v17  ;;  %6146 = vmatmul.msk.bf16.gmra.mxu2 %vm2184_vm14, %v6482_v50  ;;  %v371_v40 = vsel %vm6738_vm6, 0, %v370_v21  ;;  %v658_v49 = vrot.slane %v7386_v44, 4 }
 0x1ec   : > { %v1883_v60 = vsel %vm6846_vm2, %v1878_v36, %v7437_v12  ;;  %v2063_v48 = vshrl.u32 %v1724_v4, 16  ;;  %v2066_v62 = vshll.u32 %v1724_v4, 16  ;;  %v1621_v46 = vld [vmem:[#allocation2 + $0x48] sm:$0xf]  ;;  %v2084_v37 = vrot.slane %v2082_v23, 5 }
 0x1ed   : > { %v2146_v18 = vunpack.c.l.b16 %v1883_v60  ;;  %v1622_v32 = vsel %vm6876_vm15, %v1468_v8, %v1621_v46  ;;  %v1639_v30 = vld [vmem:[#allocation2 + $0x68] sm:$0x1]  ;;  %v408_v26 = vld [vmem:[%s6734_s29 + $0x74] sm:$0xf]  ;;  %v1910_v6 = vrot.slane %v1908_v56, 4 }
 0x1ee   : > { %v2065_v12 = vrot.slane %v2063_v48, 4  ;;  %v2068_v22 = vrot.slane %v2066_v62, 5  ;;  %1623 = vst [vmem:[#allocation2 + $0x48] sm:$0xf] %v1622_v32  ;;  %v1640_v59 = vsel %vm6857_vm10, %v1484_v27, %v1639_v30  ;;  %v1681_v11 = vld [vmem:[#allocation2 + $0xb0] sm:$0x1]  ;;  %v2085_v38 = vsel %vm6846_vm2, %v2080_v10, %v2084_v37 }
 0x1ef   : > { %v2173_v53 = vpack.c.b16 %v2147_v14, %v2146_v18  ;;  %1641 = vst [vmem:[#allocation2 + $0x68] sm:$0x1] %v1640_v59  ;;  %v660_v41 = vshrl.u32 %v408_v26, 16  ;;  %v663_v54 = vshll.u32 %v408_v26, 16  ;;  %v6313_v31 = vld [vmem:[%s8784_s3 + $0x18] sm:$0xf]  ;;  %v2163_v55 = vunpack.c.l.b16 %v2085_v38 }
 0x1f0   : > { %v2069_v29 = vor.u32 %v2068_v22, %v2065_v12  ;;  %v1520_v43 = vpop.permute.xlu0 %1519  ;;  %v785_v2 = vld [vmem:[#allocation2 + $0x5c] sm:$0x1]  ;;  %372 = vst [vmem:[#allocation2 + $0xbc] sm:$0x1] %v371_v40  ;;  %v1727_v36 = vld [vmem:[#allocation2 + $0xac] sm:$0xf]  ;;  %v1911_v27 = vor.u32 %v1910_v6, %v7489_v15 }
 0x1f1   : > { %6058 = vmatmul.msk.bf16.gmra.mxu1 %vm2184_vm14, %v2173_v53  ;;  %v1682_v7 = vsel %vm6857_vm10, %v1520_v43, %v1681_v11  ;;  %v1516_v39 = vpop.permute.xlu1 %1515  ;;  %v786_v44 = vsel %vm6766_vm8, %v531_v34, %v785_v2  ;;  %v7508_v58 = vld [vmem:[#allocation2 + $0x50] sm:$0x1]  ;;  %v662_v52 = vrot.slane %v660_v41, 7  ;;  %v4433_v50 = vsel %vm2233_vm13, %v6313_v31, 0  ;;  %v3217_v46 = vld [vmem:[#allocation2 + $0xc] sm:$0xf] }
 0x1f2   : > { %v2070_v16 = vrot.slane %v2069_v29, 4  ;;  %1683 = vst [vmem:[#allocation2 + $0xb0] sm:$0x1] %v1682_v7  ;;  %v1677_v47 = vld [vmem:[#allocation2 + $0xa8] sm:$0xf]  ;;  %v1914_v28 = vshll.u32 %v7508_v58, 16  ;;  %4442 = vmatpush.bf16.msra.mxu0 %v4433_v50 }
 0x1f3   : > { %v1678_v45 = vsel %vm6876_vm15, %v1516_v39, %v1677_v47  ;;  %787 = vst [vmem:[#allocation2 + $0x5c] sm:$0x1] %v786_v44  ;;  %v665_v34 = vor.u32 %v663_v54, %v662_v52  ;;  %v667_v63 = vrot.slane %v662_v52, 4  ;;  %v2100_v48 = vshrl.u32 %v1727_v36, 16  ;;  %v1713_v10 = vld [vmem:[#allocation2 + $0x58] sm:$0xf] }
 0x1f4   : > { %v2075_v8 = vsel %vm6846_vm2, %v2070_v16, %v7473_v35  ;;  %1679 = vst [vmem:[#allocation2 + $0xa8] sm:$0xf] %v1678_v45  ;;  %v2096_v35 = vshll.u32 %v1727_v36, 16  ;;  %v1916_v18 = vrot.slane %v1914_v28, 5  ;;  %v1912_v53 = vrot.slane %v1911_v27, 4 }
 0x1f5   : > { %v2162_v17 = vunpack.c.l.b16 %v2075_v8  ;;  %v6475_v4 = vld [vmem:[#allocation2 + $0x48] sm:$0xff]  ;;  %v666_v60 = vsel %vm6679_vm3, %v658_v49, %v665_v34  ;;  %v2102_v32 = vrot.slane %v2100_v48, 4  ;;  %v3266_v40 = vshrl.u32 %v3217_v46, 16  ;;  %v1712_v41 = vld [vmem:[#allocation2 + $0x54] sm:$0xf] }
 0x1f6   : > { %v1710_v23 = vld [vmem:[#allocation2 + $0x48] sm:$0xf]  ;;  %840 = vst.msk [vmem:[#allocation2 + $0xb8] sm:$0xf] %vm734_vm11, %v666_v60  ;;  %6139 = vmatmul.msk.bf16.gmra.mxu0 %vm2184_vm14, %v6475_v4  ;;  %v7525_v37 = vrot.slane %v2096_v35, 5  ;;  %v3269_v49 = vshll.u32 %v3217_v46, 16  ;;  %v1917_v2 = vsel %vm6846_vm2, %v1912_v53, %v1916_v18 }
 0x1f7   : > { %v2181_v62 = vpack.c.b16 %v2163_v55, %v2162_v17  ;;  %v1895_v19 = vshrl.u32 %v1710_v23, 16  ;;  %v1898_v21 = vshll.u32 %v1710_v23, 16  ;;  %v841_v14 = vld [vmem:[#allocation2 + $0xbc] sm:$0x1]  ;;  %v1928_v7 = vshll.u32 %v1713_v10, 16 }
 0x1f8   : > { %v842_v22 = vsel %vm6766_vm8, %v667_v63, %v841_v14  ;;  %v2103_v54 = vor.u32 %v2102_v32, %v7525_v37  ;;  %v7535_v39 = vld [vmem:[#allocation2 + $0x10] sm:$0xf]  ;;  %v1932_v31 = vshrl.u32 %v1713_v10, 16  ;;  %v1919_v47 = vshrl.u32 %v1712_v41, 16  ;;  %v1728_v50 = vld [vmem:[#allocation2 + $0xb4] sm:$0xf] }
 0x1f9   : > { %6066 = vmatmul.msk.bf16.gmra.mxu3 %vm2184_vm14, %v2181_v62  ;;  %v1897_v30 = vrot.slane %v1895_v19, 4  ;;  %v1900_v12 = vrot.slane %v1898_v21, 5  ;;  %v1478_v59 = vpop.permute.xlu1 %1477  ;;  %843 = vst [vmem:[#allocation2 + $0xbc] sm:$0x1] %v842_v22  ;;  %v1745_v56 = vld [vmem:[#allocation2 + $0xb0] sm:$0x1]  ;;  %v2149_v63 = vunpack.c.l.b16 %v1917_v2 }
 0x1fa   : > { %v1632_v26 = vld [vmem:[#allocation2 + $0x5c] sm:$0x1]  ;;  %v2106_v29 = vshll.u32 %v1745_v56, 16  ;;  %v1922_v45 = vshll.u32 %v1712_v41, 16  ;;  %v3268_v8 = vrot.slane %v3266_v40, 4  ;;  %v3271_v23 = vrot.slane %v3269_v49, 5 }
 0x1fb   : > { %v1901_v11 = vor.u32 %v1900_v12, %v1897_v30  ;;  %v1633_v43 = vsel %vm6857_vm10, %v1478_v59, %v1632_v26  ;;  %v6483_v38 = vld [vmem:[#allocation2 + $0xa8] sm:$0xff]  ;;  %v7541_v4 = vld [vmem:[#allocation2 + $0x14] sm:$0x1]  ;;  %v3275_v27 = vshll.u32 %v7535_v39, 16  ;;  %v2104_v48 = vrot.slane %v2103_v54, 4  ;;  %v6501_v49 = vld [vmem:[#allocation2 + $0x18] sm:$0xff] }
 0x1fc   : > { %v1726_v6 = vld [vmem:[#allocation2 + $0xa8] sm:$0xf]  ;;  %1634 = vst [vmem:[#allocation2 + $0x5c] sm:$0x1] %v1633_v43  ;;  %6147 = vmatmul.msk.bf16.gmra.mxu2 %vm2184_vm14, %v6483_v38  ;;  %v2108_v17 = vrot.slane %v2106_v29, 5  ;;  %v7544_v62 = vrot.slane %v1928_v7, 5  ;;  %v3272_v56 = vor.u32 %v3271_v23, %v3268_v8 }
 0x1fd   : > { %v1902_v16 = vrot.slane %v1901_v11, 4  ;;  %v2087_v44 = vshrl.u32 %v1726_v6, 16  ;;  %v2090_v52 = vshll.u32 %v1726_v6, 16  ;;  %v1934_v19 = vrot.slane %v1932_v31, 4  ;;  %v3258_v33 = vld [vmem:[#allocation2 + $0xb0] sm:$0x1] }
 0x1fe   : > { %v1924_v18 = vrot.slane %v1922_v45, 5  ;;  %v3279_v14 = vshrl.u32 %v7535_v39, 16  ;;  %v2109_v22 = vsel %vm6846_vm2, %v2104_v48, %v2108_v17  ;;  %v3285_v10 = vshll.u32 %v7541_v4, 16 }
 0x1ff   : > { %v1907_v28 = vsel %vm6846_vm2, %v1902_v16, %v7489_v15  ;;  %v2089_v34 = vrot.slane %v2087_v44, 4  ;;  %v2092_v36 = vrot.slane %v2090_v52, 5  ;;  %v1921_v15 = vrot.slane %v1919_v47, 4  ;;  %v1714_v16 = vld [vmem:[#allocation2 + $0x60] sm:$0xf] }
 0x200   : > { %v2148_v55 = vunpack.c.l.b16 %v1907_v28  ;;  %v1688_v60 = vld [vmem:[#allocation2 + $0xbc] sm:$0x1]  ;;  %v2111_v53 = vshrl.u32 %v1728_v50, 16  ;;  %v7555_v40 = vrot.slane %v3275_v27, 5  ;;  %v1935_v11 = vor.u32 %v1934_v19, %v7544_v62  ;;  %v7565_v47 = vld [vmem:[#allocation2 + $0x64] sm:$0xf] }
 0x201   : > { %v2093_v35 = vor.u32 %v2092_v36, %v2089_v34  ;;  %v1526_v46 = vpop.permute.xlu1 %1525  ;;  %v2114_v41 = vshll.u32 %v1728_v50, 16  ;;  %v2165_v38 = vunpack.c.l.b16 %v2109_v22  ;;  %v1925_v2 = vor.u32 %v1924_v18, %v1921_v15  ;;  %v6296_v36 = vld [vmem:[%s8784_s3 + $0x14] sm:$0xf] }
 0x202   : > { %v2174_v21 = vpack.c.b16 %v2149_v63, %v2148_v55  ;;  %v1689_v32 = vsel %vm6857_vm10, %v1526_v46, %v1688_v60  ;;  %v1524_v30 = vpop.permute.xlu0 %1523  ;;  %v3281_v6 = vrot.slane %v3279_v14, 4  ;;  %v1936_v44 = vrot.slane %v1935_v11, 4 }
 0x203   : > { %v2094_v12 = vrot.slane %v2093_v35, 4  ;;  %1690 = vst [vmem:[#allocation2 + $0xbc] sm:$0x1] %v1689_v32  ;;  %v7553_v59 = vld [vmem:[#allocation2 + $0x5c] sm:$0x1]  ;;  %v2113_v52 = vrot.slane %v2111_v53, 4 }
 0x204   : > { %6059 = vmatmul.msk.bf16.gmra.mxu1 %vm2184_vm14, %v2174_v21  ;;  %1687 = vst.msk [vmem:[#allocation2 + $0xb8] sm:$0xf] %vm1581_vm1, %v1524_v30  ;;  %v1938_v29 = vshll.u32 %v7553_v59, 16  ;;  %v2116_v31 = vrot.slane %v2114_v41, 5  ;;  %v1926_v45 = vrot.slane %v1925_v2, 4  ;;  %v7568_v8 = vrot.slane %v3272_v56, 4 }
 0x205   : > { %v2099_v26 = vsel %vm6846_vm2, %v2094_v12, %v7525_v37  ;;  %v3940_v37 = vrot.slane %v7541_v4, 5  ;;  %v3282_v28 = vor.u32 %v3281_v6, %v7555_v40  ;;  %v3287_v34 = vrot.slane %v3285_v10, 5  ;;  %v7587_v10 = vld [vmem:[#allocation2 + $0x68] sm:$0x1]  ;;  %v3871_v41 = vld [vmem:[#allocation2 + $0xc] sm:$0xe] }
 0x206   : > { %v2164_v43 = vunpack.c.l.b16 %v2099_v26  ;;  %v1940_v54 = vrot.slane %v1938_v29, 5  ;;  %6378 = vmatmul.msk.bf16.vlgmr.msra.gmra.mxu0 %vm2184_vm14, %v6501_v49  ;;  %v1943_v55 = vshrl.u32 %v1714_v16, 16  ;;  %v1946_v63 = vshll.u32 %v1714_v16, 16 }
 0x207   : > { %v4146_v50 = vsel %vm2233_vm13, %v6296_v36, 0  ;;  %v1931_v27 = vsel %vm6846_vm2, %v1926_v45, %v7544_v62  ;;  %v1952_v48 = vshll.u32 %v7565_v47, 16  ;;  %v2117_v19 = vor.u32 %v2116_v31, %v2113_v52  ;;  %v6427_v62 = vld [vmem:[%s8784_s3 + $0x20] sm:$0xf] }
 0x208   : > { %v2182_v7 = vpack.c.b16 %v2165_v38, %v2164_v43  ;;  %v1941_v17 = vsel %vm6846_vm2, %v1936_v44, %v1940_v54  ;;  %4155 = vmatpush.bf16.msra.mxu3 %v4146_v50  ;;  %v1956_v15 = vshrl.u32 %v7565_v47, 16  ;;  %v3283_v14 = vrot.slane %v3282_v28, 4  ;;  %v3220_v38 = vld [vmem:[#allocation2 + $0x18] sm:$0xf] }
 0x209   : > { %v2151_v18 = vunpack.c.l.b16 %v1941_v17  ;;  %v3937_v32 = vrot.slane %v7535_v39, 5  ;;  %v2150_v56 = vunpack.c.l.b16 %v1931_v27  ;;  %v1945_v26 = vrot.slane %v1943_v55, 4 }
 0x20a   : > { %6067 = vmatmul.msk.bf16.gmra.mxu3 %vm2184_vm14, %v2182_v7  ;;  %v1746_v35 = vld [vmem:[#allocation2 + $0xbc] sm:$0x1]  ;;  %v1948_v11 = vrot.slane %v1946_v63, 5  ;;  %v7591_v29 = vrot.slane %v1952_v48, 5  ;;  %v2118_v39 = vrot.slane %v2117_v19, 4  ;;  %v1958_v43 = vrot.slane %v1956_v15, 4 }
 0x20b   : > { %v6484_v23 = vld [vmem:[#allocation2 + $0xb4] sm:$0xff]  ;;  %v2130_v22 = vshll.u32 %v1746_v35, 16  ;;  %v5485_v2 = vsel %vm2233_vm13, %v6427_v62, 0  ;;  %v2175_v6 = vpack.c.b16 %v2151_v18, %v2150_v56  ;;  %v3288_v54 = vsel %vm6846_vm2, %v3283_v14, %v3287_v34  ;;  %v6394_v63 = vld [vmem:[%s8784_s3 + $0x1c] sm:$0xf]  ;;  %v6502_v35 = vld [vmem:[#allocation2 + $0x24] sm:$0xff] }
 0x20c   : > { %v1729_v60 = vld [vmem:[#allocation2 + $0xb8] sm:$0xf]  ;;  %6148 = vmatmul.msk.bf16.gmra.mxu2 %vm2184_vm14, %v6484_v23  ;;  %v3939_v7 = vrot.slane %v3937_v32, 4  ;;  %v1962_v16 = vshll.u32 %v7587_v10, 16  ;;  %v6280_v28 = vrot.slane %v3871_v41, 9  ;;  %v3278_v34 = vsel %vm6846_vm2, %v7568_v8, %v7555_v40 }
 0x20d   : > { %v2120_v21 = vshll.u32 %v1729_v60, 16  ;;  %v2124_v46 = vshrl.u32 %v1729_v60, 16  ;;  %5494 = vmatpush.bf16.msra.mxu2 %v5485_v2  ;;  %v2132_v45 = vrot.slane %v2130_v22, 5  ;;  %v1949_v36 = vor.u32 %v1948_v11, %v1945_v26  ;;  %v3221_v19 = vld [vmem:[#allocation2 + $0x1c] sm:$0xf] }
 0x20e   : > { %v7589_v53 = vpop.f32.mrf.mxu2  ;;  %v3290_v17 = vshrl.u32 %v3220_v38, 16  ;;  %v3293_v55 = vshll.u32 %v3220_v38, 16  ;;  %v1959_v23 = vor.u32 %v1958_v43, %v7591_v29  ;;  %v5087_v27 = vsel %vm2233_vm13, %v6394_v63, 0  ;;  %v6529_v15 = vld [vmem:[#allocation2 + $0x4] sm:$0xf] }
 0x20f   : > { %v2122_v30 = vrot.slane %v2120_v21, 5  ;;  %v2126_v12 = vrot.slane %v2124_v46, 4  ;;  %v3938_v60 = vsel %vm7599_vm4, %v6280_v28, %v3937_v32  ;;  %v3652_v8 = vunpack.c.l.b16 %v3288_v54  ;;  %5096 = vmatpush.bf16.msra.mxu1 %v5087_v27  ;;  %v2546_v22 = vld [vmem:[#allocation2] sm:$0xe] }
 0x210   : > { %v3941_v21 = vsel %vm7599_vm4, %v3939_v7, %v3940_v37  ;;  %v1964_v46 = vrot.slane %v1962_v16, 5  ;;  %v2599_v18 = vrot.slane %v6529_v15, 5  ;;  %v4049_v14 = vunpack.c.l.b16 %v3938_v60  ;;  %v3222_v7 = vld [vmem:[#allocation2 + $0x20] sm:$0x1] }
 0x211   : > { %v2127_v49 = vor.u32 %v2126_v12, %v2122_v30  ;;  %v2123_v52 = vsel %vm6846_vm2, %v2118_v39, %v2122_v30  ;;  %v4050_v62 = vunpack.c.l.b16 %v3941_v21  ;;  %v1950_v12 = vrot.slane %v1949_v36, 4 }
 0x212   : > { %v2166_v48 = vunpack.c.l.b16 %v2123_v52  ;;  %v3292_v56 = vrot.slane %v3290_v17, 4  ;;  %v3295_v26 = vrot.slane %v3293_v55, 5  ;;  %v1960_v11 = vrot.slane %v1959_v23, 4 }
 0x213   : > { %v2128_v31 = vrot.slane %v2127_v49, 4  ;;  %v3299_v41 = vshll.u32 %v3221_v19, 16  ;;  %v3303_v4 = vshrl.u32 %v3221_v19, 16  ;;  %v7626_v39 = vpack.c.b16 %v4050_v62, %v4049_v14  ;;  %v6530_v49 = vld [vmem:[#allocation2 + $0x8] sm:$0x1] }
 0x214   : > { %6060 = vmatmul.msk.bf16.gmra.mxu1 %vm2184_vm14, %v2175_v6  ;;  %v3651_v37 = vunpack.c.l.b16 %v3278_v34  ;;  %v2602_v43 = vrot.slane %v6530_v49, 5  ;;  %v1965_v38 = vsel %vm6846_vm2, %v1960_v11, %v1964_v46  ;;  %v6149_v2 = vrot.slane %v2546_v22, 9  ;;  %v6503_v46 = vld [vmem:[#allocation2 + $0x30] sm:$0xff] }
 0x215   : > { %v2133_v50 = vsel %vm6846_vm2, %v2128_v31, %v2132_v45  ;;  %v2601_v6 = vrot.slane %v2599_v18, 4  ;;  %v1955_v16 = vsel %vm6846_vm2, %v1950_v12, %v7591_v29  ;;  %v3296_v52 = vor.u32 %v3295_v26, %v3292_v56  ;;  %v6531_v12 = vld [vmem:[#allocation2 + $0x10] sm:$0xf] }
 0x216   : > { %v2167_v40 = vunpack.c.l.b16 %v2133_v50  ;;  %6379 = vmatmul.msk.bf16.gmra.mxu0 %vm2184_vm14, %v6502_v35  ;;  %v7624_v30 = vpop.f32.mrf.mxu2  ;;  %v3683_v54 = vpack.c.b16 %v3652_v8, %v3651_v37  ;;  %v3301_v31 = vrot.slane %v3299_v41, 5  ;;  %v3305_v45 = vrot.slane %v3303_v4, 4  ;;  %v3223_v35 = vld [vmem:[#allocation2 + $0x24] sm:$0xf]  ;;  %v7649_v4 = vpop.f32.mrf.mxu0 }
 0x217   : > { %v2153_v28 = vunpack.c.l.b16 %v1965_v38  ;;  %v2600_v34 = vsel %vm7599_vm4, %v6149_v2, %v2599_v18  ;;  %v2603_v36 = vsel %vm7599_vm4, %v2601_v6, %v2602_v43  ;;  %v3309_v17 = vshll.u32 %v3222_v7, 16  ;;  %v3224_v18 = vld [vmem:[#allocation2 + $0x28] sm:$0xf]  ;;  %v3225_v43 = vld [vmem:[#allocation2 + $0x2c] sm:$0x1] }
 0x218   : > { %v2183_v32 = vpack.c.b16 %v2167_v40, %v2166_v48  ;;  %v2152_v63 = vunpack.c.l.b16 %v1955_v16  ;;  %v3297_v50 = vrot.slane %v3296_v52, 4  ;;  %v3306_v23 = vor.u32 %v3305_v45, %v3301_v31  ;;  %v2547_v7 = vld [vmem:[#allocation2 + $0xc] sm:$0xe]  ;;  %v6532_v16 = vld [vmem:[#allocation2 + $0x14] sm:$0x1] }
 0x219   : > { %v2711_v29 = vunpack.c.l.b16 %v2600_v34  ;;  %v2712_v60 = vunpack.c.l.b16 %v2603_v36  ;;  %v3311_v48 = vrot.slane %v3309_v17, 5  ;;  %v3314_v19 = vshrl.u32 %v3223_v35, 16 }
 0x21a   : > { %6068 = vmatmul.msk.bf16.gmra.mxu3 %vm2184_vm14, %v2183_v32  ;;  %v2176_v27 = vpack.c.b16 %v2153_v28, %v2152_v63  ;;  %v3302_v40 = vsel %vm6846_vm2, %v3297_v50, %v3301_v31  ;;  %v3307_v8 = vrot.slane %v3306_v23, 4  ;;  %v3317_v21 = vshll.u32 %v3223_v35, 16  ;;  %v3226_v63 = vld [vmem:[#allocation2 + $0x30] sm:$0xf] }
 0x21b   : > { %v2743_v15 = vpack.c.b16 %v2712_v60, %v2711_v29  ;;  %v3653_v32 = vunpack.c.l.b16 %v3302_v40  ;;  %v2606_v22 = vrot.slane %v6531_v12, 5  ;;  %v3316_v56 = vrot.slane %v3314_v19, 4  ;;  %v6485_v50 = vld [vmem:[#allocation2 + $0xc] sm:$0xff]  ;;  %v7660_v19 = vpop.f32.mrf.mxu1 }
 0x21c   : > { %6264 = vmatmul.msk.bf16.vlgmr.msrb.gmra.mxu2 %vm2184_vm14, %v3683_v54  ;;  %v3312_v14 = vsel %vm6846_vm2, %v3307_v8, %v3311_v48  ;;  %v3319_v26 = vrot.slane %v3317_v21, 5  ;;  %v3323_v11 = vshll.u32 %v3224_v18, 16  ;;  %v3327_v41 = vshrl.u32 %v3224_v18, 16  ;;  %v6504_v21 = vld [vmem:[#allocation2 + $0x3c] sm:$0xff] }
 0x21d   : > { %v3654_v37 = vunpack.c.l.b16 %v3312_v14  ;;  %v2608_v38 = vrot.slane %v2606_v22, 4  ;;  %v2609_v52 = vrot.slane %v6532_v16, 5  ;;  %v3333_v31 = vshll.u32 %v3225_v43, 16  ;;  %v6533_v43 = vld [vmem:[#allocation2 + $0x1c] sm:$0xf] }
 0x21e   : > { %v7639_v55 = vpop.f32.mrf.mxu2  ;;  %v3320_v2 = vor.u32 %v3319_v26, %v3316_v56  ;;  %v3325_v6 = vrot.slane %v3323_v11, 5  ;;  %v3329_v54 = vrot.slane %v3327_v41, 4  ;;  %v6150_v28 = vrot.slane %v2547_v7, 9  ;;  %v2548_v26 = vld [vmem:[#allocation2 + $0x18] sm:$0xe] }
 0x21f   : > { %v3684_v49 = vpack.c.b16 %v3654_v37, %v3653_v32  ;;  %v2610_v34 = vsel %vm7599_vm4, %v2608_v38, %v2609_v52  ;;  %v3335_v29 = vrot.slane %v3333_v31, 5  ;;  %v3338_v35 = vshrl.u32 %v3226_v63, 16  ;;  %v6534_v7 = vld [vmem:[#allocation2 + $0x20] sm:$0x1]  ;;  %v3228_v52 = vld [vmem:[#allocation2 + $0x38] sm:$0x1] }
 0x220   : > { %v3321_v36 = vrot.slane %v3320_v2, 4  ;;  %v3330_v17 = vor.u32 %v3329_v54, %v3325_v6  ;;  %v2714_v60 = vunpack.c.l.b16 %v2610_v34  ;;  %v3341_v48 = vshll.u32 %v3226_v63, 16 }
 0x221   : > { %v2613_v38 = vrot.slane %v6533_v43, 5  ;;  %v6151_v54 = vrot.slane %v2548_v26, 9  ;;  %v2616_v16 = vrot.slane %v6534_v7, 5  ;;  %v1164_v26 = vpack.c.bf16 %v7138_v3, %v7138_v3 }
 0x222   : > { %v3326_v40 = vsel %vm6846_vm2, %v3321_v36, %v3325_v6  ;;  %v3331_v8 = vrot.slane %v3330_v17, 4  ;;  %v3343_v56 = vrot.slane %v3341_v48, 5 }
 0x223   : > { %v3655_v12 = vunpack.c.l.b16 %v3326_v40  ;;  %v2615_v63 = vrot.slane %v2613_v38, 4 }
 0x224   : > { %6061 = vmatmul.msk.bf16.gmra.mxu1 %vm2184_vm14, %v2176_v27  ;;  %v2607_v27 = vsel %vm7599_vm4, %v6150_v28, %v2606_v22  ;;  %v3336_v18 = vsel %vm6846_vm2, %v3331_v8, %v3335_v29  ;;  %v3340_v22 = vrot.slane %v3338_v35, 4  ;;  %v7677_v8 = vpack.c.bf16 %v7102_v57, %v7102_v57 }
 0x225   : > { %v2617_v35 = vsel %vm7599_vm4, %v2615_v63, %v2616_v16 }
 0x226   : > { %6380 = vmatmul.msk.bf16.gmra.mxu0 %vm2184_vm14, %v6503_v46  ;;  %v7647_v62 = vpop.f32.mrf.mxu2  ;;  %v2713_v46 = vunpack.c.l.b16 %v2607_v27  ;;  %v3344_v31 = vor.u32 %v3343_v56, %v3340_v22  ;;  %v3357_v27 = vshll.u32 %v3228_v52, 16  ;;  %v2549_v52 = vld [vmem:[#allocation2 + $0x24] sm:$0xe] }
 0x228   : > { %v2744_v32 = vpack.c.b16 %v2714_v60, %v2713_v46  ;;  %v2614_v60 = vsel %vm7599_vm4, %v6151_v54, %v2613_v38  ;;  %v3345_v48 = vrot.slane %v3344_v31, 4  ;;  %v6505_v38 = vld [vmem:[#allocation2 + $0x48] sm:$0xff] }
 0x22a   : > { %6166 = vmatmul.msk.bf16.vlgmr.msrb.gmra.mxu3 %vm2184_vm14, %v2743_v15  ;;  %v3227_v15 = vld [vmem:[#allocation2 + $0x34] sm:$0xf] }
 0x22b   : > { %v3347_v11 = vshll.u32 %v3227_v15, 16  ;;  %v3351_v41 = vshrl.u32 %v3227_v15, 16  ;;  %v2715_v15 = vunpack.c.l.b16 %v2614_v60 }
 0x22c   : > { %6265 = vmatmul.msk.bf16.gmra.mxu2 %vm2184_vm14, %v3684_v49  ;;  %v3656_v49 = vunpack.c.l.b16 %v3336_v18  ;;  %v3359_v18 = vrot.slane %v3357_v27, 5  ;;  %v6535_v27 = vld [vmem:[#allocation2 + $0x28] sm:$0xf] }
 0x22d   : > { %v3349_v34 = vrot.slane %v3347_v11, 5  ;;  %v3353_v36 = vrot.slane %v3351_v41, 4  ;;  %v3230_v41 = vld [vmem:[#allocation2 + $0x40] sm:$0xf]  ;;  %v2620_v60 = vrot.slane %v6535_v27, 5 }
 0x22e   : > { %v2511_v45 = vpop.f32.mrf.mxu2  ;;  %v3685_v6 = vpack.c.b16 %v3656_v49, %v3655_v12  ;;  %v1421_v49 = vshrl.u32 %v7677_v8, 16  ;;  %v3371_v31 = vshll.u32 %v3230_v41, 16 }
 0x22f   : > { %v3354_v40 = vor.u32 %v3353_v36, %v3349_v34  ;;  %v3350_v12 = vsel %vm6846_vm2, %v3345_v48, %v3349_v34  ;;  %v3375_v34 = vshrl.u32 %v3230_v41, 16  ;;  %v1429_v36 = vshrl.u32 %v1164_v26, 16 }
 0x230   : > { %v2476_v23 = vpop.f32.mrf.mxu0  ;;  %v3657_v7 = vunpack.c.l.b16 %v3350_v12  ;;  %v1423_v63 = vrot.slane %v1421_v49, 7  ;;  %v2622_v49 = vrot.slane %v2620_v60, 4 }
 0x231   : > { %v3355_v57 = vrot.slane %v3354_v40, 4 }
 0x233   : > { %v3360_v54 = vsel %vm6846_vm2, %v3355_v57, %v3359_v18  ;;  %v7693_v18 = vrot.slane %v1429_v36, 7 }
 0x234   : > { %6247 = vmatmul.msk.bf16.vlgmr.msrb.gmra.mxu1 %vm2184_vm14, %v6485_v50 }
 0x236   : > { %6381 = vmatmul.msk.bf16.gmra.mxu0 %vm2184_vm14, %v6504_v21  ;;  %v2513_v14 = vpop.f32.mrf.mxu2  ;;  %v6486_v21 = vld [vmem:[#allocation2 + $0x18] sm:$0xff] }
 0x238   : > { %v2478_v37 = vpop.f32.mrf.mxu0 }
 0x23a   : > { %6167 = vmatmul.msk.bf16.gmra.mxu3 %vm2184_vm14, %v2744_v32 }
 0x23c   : > { %v2291_v2 = vpop.f32.mrf.mxu3  ;;  %6266 = vmatmul.msk.bf16.gmra.mxu2 %vm2184_vm14, %v3685_v6 }
 0x23d   : > { %v7666_v28 = vadd.f32 %v2511_v45, %v2291_v2  ;;  %v3229_v45 = vld [vmem:[#allocation2 + $0x3c] sm:$0xf] }
 0x23e   : > { %v2256_v17 = vpop.f32.mrf.mxu1  ;;  %v2516_v29 = vpop.f32.mrf.mxu2  ;;  %v3362_v22 = vshrl.u32 %v3229_v45, 16  ;;  %v3365_v56 = vshll.u32 %v3229_v45, 16  ;;  %v3231_v45 = vld [vmem:[#allocation2 + $0x44] sm:$0x1] }
 0x23f   : > { %v7669_v50 = vadd.f32 %v2476_v23, %v2256_v17  ;;  %v2716_v23 = vunpack.c.l.b16 %v2617_v35  ;;  %v3658_v17 = vunpack.c.l.b16 %v3360_v54 }
 0x240   : > { %v2481_v46 = vpop.f32.mrf.mxu0  ;;  %v3364_v3 = vrot.slane %v3362_v22, 4  ;;  %v6536_v22 = vld [vmem:[#allocation2 + $0x2c] sm:$0x1] }
 0x241   : > { %v2745_v6 = vpack.c.b16 %v2716_v23, %v2715_v15  ;;  %v3686_v40 = vpack.c.b16 %v3658_v17, %v3657_v7  ;;  %v3373_v15 = vrot.slane %v3371_v31, 5  ;;  %v3377_v23 = vrot.slane %v3375_v34, 4  ;;  %v3232_v31 = vld [vmem:[#allocation2 + $0x48] sm:$0xf] }
 0x244   : > { %6248 = vmatmul.msk.bf16.gmra.mxu1 %vm2184_vm14, %v6486_v21  ;;  %v2293_v32 = vpop.f32.mrf.mxu3 }
 0x245   : > { %v7684_v11 = vadd.f32 %v2513_v14, %v2293_v32  ;;  %v3367_v14 = vrot.slane %v3365_v56, 5  ;;  %v1432_v32 = vshll.u32 %v1164_v26, 16  ;;  %v2623_v56 = vrot.slane %v6536_v22, 5  ;;  %v3233_v22 = vld [vmem:[#allocation2 + $0x4c] sm:$0xf] }
 0x246   : > { %v2258_v43 = vpop.f32.mrf.mxu1  ;;  %6382 = vmatmul.msk.bf16.gmra.mxu0 %vm2184_vm14, %v6505_v38  ;;  %v2518_v16 = vpop.f32.mrf.mxu2  ;;  %v1424_v38 = vshll.u32 %v7677_v8, 16  ;;  %v1427_v26 = vrot.slane %v1423_v63, 4 }
 0x247   : > { %v7687_v2 = vadd.f32 %v2478_v37, %v2258_v43  ;;  %v6152_v37 = vrot.slane %v2549_v52, 9  ;;  %v3368_v21 = vor.u32 %v3367_v14, %v3364_v3  ;;  %v3381_v43 = vshll.u32 %v3231_v45, 16  ;;  %v6487_v14 = vld [vmem:[#allocation2 + $0x24] sm:$0xff] }
 0x248   : > { %v2483_v35 = vpop.f32.mrf.mxu0  ;;  %v3378_v52 = vor.u32 %v3377_v23, %v3373_v15  ;;  %v2624_v3 = vsel %vm7599_vm4, %v2622_v49, %v2623_v56  ;;  %v1426_v27 = vor.u32 %v1424_v38, %v1423_v63  ;;  %v2550_v49 = vld [vmem:[#allocation2 + $0x30] sm:$0xe] }
 0x249   : > { %v2621_v54 = vsel %vm7599_vm4, %v6152_v37, %v2620_v60  ;;  %v3369_v7 = vrot.slane %v3368_v21, 4  ;;  %v3383_v34 = vrot.slane %v3381_v43, 5  ;;  %v2718_v8 = vunpack.c.l.b16 %v2624_v3 }
 0x24a   : > { %6168 = vmatmul.msk.bf16.gmra.mxu3 %vm2184_vm14, %v2745_v6  ;;  %v3379_v37 = vrot.slane %v3378_v52, 4  ;;  %1527 = vrot.lane.b32.xlu0 %v1426_v27, %s6595_s17 }
 0x24b   : > { %v3374_v17 = vsel %vm6846_vm2, %v3369_v7, %v3373_v15  ;;  %v3399_v7 = vshrl.u32 %v3233_v22, 16 }
 0x24c   : > { %v2296_v48 = vpop.f32.mrf.mxu3  ;;  %6267 = vmatmul.msk.bf16.gmra.mxu2 %vm2184_vm14, %v3686_v40  ;;  %v3389_v40 = vshll.u32 %v3232_v31, 16  ;;  %v3384_v63 = vsel %vm6846_vm2, %v3379_v37, %v3383_v34 }
 0x24d   : > { %v7695_v12 = vadd.f32 %v2516_v29, %v2296_v48  ;;  %v1434_v29 = vor.u32 %v1432_v32, %v7693_v18  ;;  %v3386_v48 = vshrl.u32 %v3232_v31, 16  ;;  %v6506_v32 = vld [vmem:[#allocation2 + $0x54] sm:$0xff]  ;;  %v3660_v52 = vunpack.c.l.b16 %v3384_v63 }
 0x24e   : > { %v2261_v57 = vpop.f32.mrf.mxu1  ;;  %v2521_v6 = vpop.f32.mrf.mxu2  ;;  %v3391_v38 = vrot.slane %v3389_v40, 5  ;;  %v6538_v31 = vld [vmem:[#allocation2 + $0x38] sm:$0x1] }
 0x24f   : > { %v7698_v41 = vadd.f32 %v2481_v46, %v2261_v57  ;;  %v2717_v46 = vunpack.c.l.b16 %v2621_v54  ;;  %v1435_v45 = vsel %vm6679_vm3, %v1427_v26, %v1434_v29  ;;  %v3659_v57 = vunpack.c.l.b16 %v3374_v17  ;;  %v6537_v26 = vld [vmem:[#allocation2 + $0x34] sm:$0xf] }
 0x250   : > { %v2486_v21 = vpop.f32.mrf.mxu0  ;;  %1529 = vrot.lane.b32.xlu1 %v1435_v45, %s6595_s17  ;;  %v3388_v43 = vrot.slane %v3386_v48, 4  ;;  %v3395_v54 = vshll.u32 %v3233_v22, 16  ;;  %v2627_v29 = vrot.slane %v6537_v26, 5  ;;  %v2630_v34 = vrot.slane %v6538_v31, 5 }
 0x251   : > { %v2746_v15 = vpack.c.b16 %v2718_v8, %v2717_v46  ;;  %v3687_v3 = vpack.c.b16 %v3660_v52, %v3659_v57  ;;  %v3401_v17 = vrot.slane %v3399_v7, 4  ;;  %v6488_v57 = vld [vmem:[#allocation2 + $0x30] sm:$0xff] }
 0x252   : > { %v3392_v46 = vor.u32 %v3391_v38, %v3388_v43  ;;  %v3397_v8 = vrot.slane %v3395_v54, 5  ;;  %v2629_v40 = vrot.slane %v2627_v29, 4  ;;  %v3236_v54 = vld [vmem:[#allocation2 + $0x58] sm:$0xf] }
 0x254   : > { %6249 = vmatmul.msk.bf16.gmra.mxu1 %vm2184_vm14, %v6487_v14  ;;  %v2298_v36 = vpop.f32.mrf.mxu3  ;;  %v6153_v14 = vrot.slane %v2550_v49, 9  ;;  %v2631_v63 = vsel %vm7599_vm4, %v2629_v40, %v2630_v34  ;;  %v3419_v34 = vshll.u32 %v3236_v54, 16 }
 0x255   : > { %v7709_v60 = vadd.f32 %v2518_v16, %v2298_v36  ;;  %v3234_v36 = vld [vmem:[#allocation2 + $0x50] sm:$0x1] }
 0x256   : > { %v2263_v23 = vpop.f32.mrf.mxu1  ;;  %6383 = vmatmul.msk.bf16.gmra.mxu0 %vm2184_vm14, %v6506_v32  ;;  %v2523_v16 = vpop.f32.mrf.mxu2  ;;  %v3405_v45 = vshll.u32 %v3234_v36, 16  ;;  %v2628_v22 = vsel %vm7599_vm4, %v6153_v14, %v2627_v29  ;;  %v3235_v29 = vld [vmem:[#allocation2 + $0x54] sm:$0xf]  ;;  %v3423_v36 = vshrl.u32 %v3236_v54, 16 }
 0x257   : > { %v7715_v56 = vadd.f32 %v2483_v35, %v2263_v23  ;;  %v2719_v38 = vunpack.c.l.b16 %v2628_v22  ;;  %v3413_v40 = vshll.u32 %v3235_v29, 16  ;;  %v2551_v22 = vld [vmem:[#allocation2 + $0x3c] sm:$0xe] }
 0x258   : > { %v2488_v23 = vpop.f32.mrf.mxu0  ;;  %v3407_v49 = vrot.slane %v3405_v45, 5 }
 0x25a   : > { %6169 = vmatmul.msk.bf16.gmra.mxu3 %vm2184_vm14, %v2746_v15  ;;  %v3402_v15 = vor.u32 %v3401_v17, %v3397_v8 }
 0x25c   : > { %v2301_v35 = vpop.f32.mrf.mxu3  ;;  %6268 = vmatmul.msk.bf16.gmra.mxu2 %vm2184_vm14, %v3687_v3  ;;  %v3403_v26 = vrot.slane %v3402_v15, 4  ;;  %v6507_v3 = vld [vmem:[#allocation2 + $0x60] sm:$0xff]  ;;  %v3421_v15 = vrot.slane %v3419_v34, 5 }
 0x25d   : > { %v7721_v37 = vadd.f32 %v2521_v6, %v2301_v35  ;;  %v3393_v6 = vrot.slane %v3392_v46, 4 }
 0x25e   : > { %v2266_v27 = vpop.f32.mrf.mxu1  ;;  %v2526_v32 = vpop.f32.mrf.mxu2  ;;  %v3408_v31 = vsel %vm6846_vm2, %v3403_v26, %v3407_v49  ;;  %v3415_v26 = vrot.slane %v3413_v40, 5 }
 0x25f   : > { %v7724_v48 = vadd.f32 %v2486_v21, %v2266_v27  ;;  %v2720_v21 = vunpack.c.l.b16 %v2631_v63  ;;  %v3398_v52 = vsel %vm6846_vm2, %v3393_v6, %v3397_v8  ;;  %v3410_v27 = vshrl.u32 %v3235_v29, 16  ;;  %v3237_v63 = vld [vmem:[#allocation2 + $0x5c] sm:$0x1] }
 0x260   : > { %v2491_v45 = vpop.f32.mrf.mxu0  ;;  %v3662_v8 = vunpack.c.l.b16 %v3408_v31 }
 0x261   : > { %v2747_v17 = vpack.c.b16 %v2720_v21, %v2719_v38  ;;  %v3412_v54 = vrot.slane %v3410_v27, 4  ;;  %v6154_v21 = vrot.slane %v2551_v22, 9  ;;  %v1436_v22 = vrot.slane %v7693_v18, 4 }
 0x263   : > { %v3416_v34 = vor.u32 %v3415_v26, %v3412_v54  ;;  %v3238_v54 = vld [vmem:[#allocation2 + $0x60] sm:$0xf]  ;;  %1531 = vrot.lane.b32.xlu2 %v1436_v22, %s6595_s17  ;;  %v3240_v22 = vld [vmem:[#allocation2 + $0x68] sm:$0x1] }
 0x264   : > { %6250 = vmatmul.msk.bf16.gmra.mxu1 %vm2184_vm14, %v6488_v57  ;;  %v2303_v43 = vpop.f32.mrf.mxu3  ;;  %v3425_v57 = vrot.slane %v3423_v36, 4 }
 0x265   : > { %v7731_v7 = vadd.f32 %v2523_v16, %v2303_v43  ;;  %v3661_v16 = vunpack.c.l.b16 %v3398_v52  ;;  %v3429_v52 = vshll.u32 %v3237_v63, 16 }
 0x266   : > { %v2268_v35 = vpop.f32.mrf.mxu1  ;;  %6384 = vmatmul.msk.bf16.gmra.mxu0 %vm2184_vm14, %v6507_v3  ;;  %v2528_v46 = vpop.f32.mrf.mxu2 }
 0x267   : > { %8807 = vst [vmem:[#allocation4_spill] sm:$0xff] %v7731_v7  ;;  %v7735_v14 = vadd.f32 %v2488_v23, %v2268_v35  ;;  %v6539_v23 = vld [vmem:[#allocation2 + $0x40] sm:$0xf]  ;;  %v3688_v43 = vpack.c.b16 %v3662_v8, %v3661_v16  ;;  %v6540_v35 = vld [vmem:[#allocation2 + $0x44] sm:$0x1]  ;;  %v3426_v7 = vor.u32 %v3425_v57, %v3421_v15  ;;  %v3431_v27 = vrot.slane %v3429_v52, 5 }
 0x268   : > { %v2634_v6 = vrot.slane %v6539_v23, 5  ;;  %v2637_v3 = vrot.slane %v6540_v35, 5  ;;  %v3239_v8 = vld [vmem:[#allocation2 + $0x64] sm:$0xf]  ;;  %v2493_v63 = vpop.f32.mrf.mxu0  ;;  %v3434_v52 = vshrl.u32 %v3238_v54, 16 }
 0x269   : > { %v3427_v40 = vrot.slane %v3426_v7, 4  ;;  %v6508_v7 = vld [vmem:[#allocation2 + $0x6c] sm:$0xff] }
 0x26a   : > { %6170 = vmatmul.msk.bf16.gmra.mxu3 %vm2184_vm14, %v2747_v17  ;;  %v2636_v17 = vrot.slane %v2634_v6, 4  ;;  %v2635_v36 = vsel %vm7599_vm4, %v6154_v21, %v2634_v6 }
 0x26b   : > { %v3432_v6 = vsel %vm6846_vm2, %v3427_v40, %v3431_v27  ;;  %v2552_v27 = vld [vmem:[#allocation2 + $0x48] sm:$0xe] }
 0x26c   : > { %v2306_v49 = vpop.f32.mrf.mxu3  ;;  %6269 = vmatmul.msk.bf16.gmra.mxu2 %vm2184_vm14, %v3688_v43  ;;  %v2638_v16 = vsel %vm7599_vm4, %v2636_v17, %v2637_v3  ;;  %v3417_v43 = vrot.slane %v3416_v34, 4  ;;  %v3443_v3 = vshll.u32 %v3239_v8, 16  ;;  %v3447_v17 = vshrl.u32 %v3239_v8, 16 }
 0x26d   : > { %v7741_v38 = vadd.f32 %v2526_v32, %v2306_v49  ;;  %v6489_v32 = vld [vmem:[#allocation2 + $0x3c] sm:$0xff]  ;;  %v2721_v49 = vunpack.c.l.b16 %v2635_v36  ;;  %v2722_v57 = vunpack.c.l.b16 %v2638_v16  ;;  %v3664_v36 = vunpack.c.l.b16 %v3432_v6 }
 0x26e   : > { %v2271_v29 = vpop.f32.mrf.mxu1  ;;  %v2531_v23 = vpop.f32.mrf.mxu2  ;;  %v3422_v18 = vsel %vm6846_vm2, %v3417_v43, %v3421_v15  ;;  %v3445_v43 = vrot.slane %v3443_v3, 5  ;;  %v2644_v8 = vrot.slane %v7508_v58, 5 }
 0x26f   : > { %8808 = vst [vmem:[#allocation5_spill] sm:$0xff] %v7741_v38  ;;  %v7744_v31 = vadd.f32 %v2491_v45, %v2271_v29  ;;  %v3437_v29 = vshll.u32 %v3238_v54, 16  ;;  %v2748_v34 = vpack.c.b16 %v2722_v57, %v2721_v49  ;;  %v3663_v16 = vunpack.c.l.b16 %v3422_v18 }
 0x270   : > { %v3453_v49 = vshll.u32 %v3240_v22, 16 }
 0x271   : > { %v3439_v15 = vrot.slane %v3437_v29, 5 }
 0x272   : > { %v3455_v29 = vrot.slane %v3453_v49, 5 }
 0x273   : > { %v2496_v57 = vpop.f32.mrf.mxu0 }
 0x274   : > { %6251 = vmatmul.msk.bf16.gmra.mxu1 %vm2184_vm14, %v6489_v32  ;;  %v2308_v45 = vpop.f32.mrf.mxu3  ;;  %v6541_v32 = vld [vmem:[#allocation2 + $0x4c] sm:$0xf] }
 0x275   : > { %v7752_v26 = vadd.f32 %v2528_v46, %v2308_v45  ;;  %v2641_v40 = vrot.slane %v6541_v32, 5  ;;  %v3436_v45 = vrot.slane %v3434_v52, 4 }
 0x276   : > { %v2273_v35 = vpop.f32.mrf.mxu1  ;;  %6385 = vmatmul.msk.bf16.gmra.mxu0 %vm2184_vm14, %v6508_v7  ;;  %v2533_v46 = vpop.f32.mrf.mxu2  ;;  %v6155_v7 = vrot.slane %v2552_v27, 9 }
 0x277   : > { %8809 = vst [vmem:[#allocation6_spill] sm:$0xff] %v7752_v26  ;;  %v7759_v21 = vadd.f32 %v2493_v63, %v2273_v35  ;;  %v3449_v63 = vrot.slane %v3447_v17, 4  ;;  %v3689_v26 = vpack.c.b16 %v3664_v36, %v3663_v16  ;;  %v2643_v6 = vrot.slane %v2641_v40, 4  ;;  %v3242_v17 = vld [vmem:[#allocation2 + $0x70] sm:$0xf] }
 0x278   : > { %v3440_v18 = vor.u32 %v3439_v15, %v3436_v45  ;;  %v2642_v3 = vsel %vm7599_vm4, %v6155_v7, %v2641_v40  ;;  %v3467_v15 = vshll.u32 %v3242_v17, 16 }
 0x279   : > { %v2645_v52 = vsel %vm7599_vm4, %v2643_v6, %v2644_v8  ;;  %v2723_v27 = vunpack.c.l.b16 %v2642_v3  ;;  %v3241_v8 = vld [vmem:[#allocation2 + $0x6c] sm:$0xf] }
 0x27a   : > { %6171 = vmatmul.msk.bf16.gmra.mxu3 %vm2184_vm14, %v2748_v34  ;;  %v3450_v34 = vor.u32 %v3449_v63, %v3445_v43  ;;  %v3441_v36 = vrot.slane %v3440_v18, 4  ;;  %v2724_v22 = vunpack.c.l.b16 %v2645_v52  ;;  %v3471_v63 = vshrl.u32 %v3242_v17, 16  ;;  %v6542_v17 = vld [vmem:[#allocation2 + $0x58] sm:$0xf] }
 0x27b   : > { %v2498_v49 = vpop.f32.mrf.mxu0  ;;  %v3469_v3 = vrot.slane %v3467_v15, 5  ;;  %v2553_v15 = vld [vmem:[#allocation2 + $0x54] sm:$0xe] }
 0x27c   : > { %v2311_v35 = vpop.f32.mrf.mxu3  ;;  %6270 = vmatmul.msk.bf16.gmra.mxu2 %vm2184_vm14, %v3689_v26  ;;  %v3451_v16 = vrot.slane %v3450_v34, 4  ;;  %v3446_v7 = vsel %vm6846_vm2, %v3441_v36, %v3445_v43  ;;  %v3473_v52 = vrot.slane %v3471_v63, 4  ;;  %v3243_v43 = vld [vmem:[#allocation2 + $0x74] sm:$0x1]  ;;  %v2651_v36 = vrot.slane %v7553_v59, 5 }
 0x27d   : > { %v7764_v54 = vadd.f32 %v2531_v23, %v2311_v35  ;;  %v6490_v23 = vld [vmem:[#allocation2 + $0x48] sm:$0xff]  ;;  %v6509_v35 = vld [vmem:[#allocation2 + $0x78] sm:$0xff] }
 0x27e   : > { %v3456_v40 = vsel %vm6846_vm2, %v3451_v16, %v3455_v29  ;;  %v3665_v29 = vunpack.c.l.b16 %v3446_v7  ;;  %v2648_v16 = vrot.slane %v6542_v17, 5 }
 0x27f   : > { %v2536_v38 = vpop.f32.mrf.mxu2  ;;  %v3666_v6 = vunpack.c.l.b16 %v3456_v40  ;;  %v3474_v40 = vor.u32 %v3473_v52, %v3469_v3 }
 0x280   : > { %v2650_v63 = vrot.slane %v2648_v16, 4 }
 0x281   : > { %v2276_v32 = vpop.f32.mrf.mxu1  ;;  %v3475_v59 = vrot.slane %v3474_v40, 4 }
 0x282   : > { %v7771_v58 = vadd.f32 %v2496_v57, %v2276_v32  ;;  %v2749_v57 = vpack.c.b16 %v2724_v22, %v2723_v27  ;;  %v3458_v32 = vshrl.u32 %v3241_v8, 16 }
 0x284   : > { %6252 = vmatmul.msk.bf16.gmra.mxu1 %vm2184_vm14, %v6490_v23  ;;  %v2313_v26 = vpop.f32.mrf.mxu3  ;;  %v3460_v27 = vrot.slane %v3458_v32, 4  ;;  %v3244_v32 = vld [vmem:[#allocation2 + $0x78] sm:$0xf] }
 0x285   : > { %v7774_v45 = vadd.f32 %v2533_v46, %v2313_v26  ;;  %v3461_v46 = vshll.u32 %v3241_v8, 16  ;;  %v3690_v26 = vpack.c.b16 %v3666_v6, %v3665_v29  ;;  %v3477_v8 = vshll.u32 %v3243_v43, 16  ;;  %v6491_v29 = vld [vmem:[#allocation2 + $0x54] sm:$0xff] }
 0x286   : > { %6386 = vmatmul.msk.bf16.gmra.mxu0 %vm2184_vm14, %v6509_v35  ;;  %v2652_v6 = vsel %vm7599_vm4, %v2650_v63, %v2651_v36  ;;  %v6510_v36 = vld [vmem:[#allocation2 + $0x84] sm:$0xff] }
 0x287   : > { %8810 = vst [vmem:[#allocation7_spill] sm:$0xff] %v7774_v45  ;;  %v2538_v34 = vpop.f32.mrf.mxu2  ;;  %v3463_v22 = vrot.slane %v3461_v46, 5  ;;  %v3479_v46 = vrot.slane %v3477_v8, 5  ;;  %v2726_v52 = vunpack.c.l.b16 %v2652_v6 }
 0x289   : > { %v2278_v18 = vpop.f32.mrf.mxu1  ;;  %v3480_v43 = vsel %vm6846_vm2, %v3475_v59, %v3479_v46  ;;  %v2554_v46 = vld [vmem:[#allocation2 + $0x60] sm:$0xe] }
 0x28a   : > { %v7781_v23 = vadd.f32 %v2498_v49, %v2278_v18  ;;  %6172 = vmatmul.msk.bf16.gmra.mxu3 %vm2184_vm14, %v2749_v57  ;;  %v6156_v57 = vrot.slane %v2553_v15, 9  ;;  %v3464_v18 = vor.u32 %v3463_v22, %v3460_v27  ;;  %v3485_v15 = vshll.u32 %v3244_v32, 16  ;;  %v3245_v22 = vld [vmem:[#allocation2 + $0x7c] sm:$0xf] }
 0x28b   : > { %v3668_v63 = vunpack.c.l.b16 %v3480_v43  ;;  %v3491_v59 = vshll.u32 %v3245_v22, 16 }
 0x28c   : > { %6271 = vmatmul.msk.bf16.gmra.mxu2 %vm2184_vm14, %v3690_v26  ;;  %v3465_v26 = vrot.slane %v3464_v18, 4  ;;  %v3487_v18 = vrot.slane %v3485_v15, 5 }
 0x28d   : > { %v2316_v35 = vpop.f32.mrf.mxu3  ;;  %v3493_v43 = vrot.slane %v3491_v59, 5 }
 0x28e   : > { %v7785_v45 = vadd.f32 %v2536_v38, %v2316_v35  ;;  %v2649_v38 = vsel %vm7599_vm4, %v6156_v57, %v2648_v16  ;;  %v3482_v35 = vshrl.u32 %v3244_v32, 16  ;;  %v3470_v40 = vsel %vm6846_vm2, %v3465_v26, %v3469_v3 }
 0x28f   : > { %v2541_v7 = vpop.f32.mrf.mxu2  ;;  %v2725_v27 = vunpack.c.l.b16 %v2649_v38  ;;  %v2655_v32 = vrot.slane %v7565_v47, 5  ;;  %v2658_v3 = vrot.slane %v7587_v10, 5 }
 0x290   : > { %8811 = vst [vmem:[#allocation8_spill] sm:$0xff] %v7785_v45  ;;  %v3484_v6 = vrot.slane %v3482_v35, 4  ;;  %v6157_v35 = vrot.slane %v2554_v46, 9 }
 0x291   : > { %v7788_v49 = vpop.f32.mrf.mxu1  ;;  %v2750_v16 = vpack.c.b16 %v2726_v52, %v2725_v27  ;;  %v2657_v15 = vrot.slane %v2655_v32, 4 }
 0x292   : > { %v3488_v52 = vor.u32 %v3487_v18, %v3484_v6  ;;  %v3247_v6 = vld [vmem:[#allocation2 + $0x84] sm:$0xf] }
 0x293   : > { %v2659_v47 = vsel %vm7599_vm4, %v2657_v15, %v2658_v3  ;;  %v6511_v3 = vld [vmem:[#allocation2 + $0x90] sm:$0xff] }
 0x294   : > { %6253 = vmatmul.msk.bf16.gmra.mxu1 %vm2184_vm14, %v6491_v29  ;;  %v3495_v29 = vshrl.u32 %v3245_v22, 16  ;;  %v2728_v59 = vunpack.c.l.b16 %v2659_v47 }
 0x295   : > { %v2318_v17 = vpop.f32.mrf.mxu3 }
 0x296   : > { %v7797_v45 = vadd.f32 %v2538_v34, %v2318_v17  ;;  %6387 = vmatmul.msk.bf16.gmra.mxu0 %vm2184_vm14, %v6510_v36  ;;  %v3667_v34 = vunpack.c.l.b16 %v3470_v40  ;;  %v3246_v17 = vld [vmem:[#allocation2 + $0x80] sm:$0x1]  ;;  %v3497_v36 = vrot.slane %v3495_v29, 4 }
 0x297   : > { %v2543_v57 = vpop.f32.mrf.mxu2  ;;  %v3501_v22 = vshll.u32 %v3246_v17, 16  ;;  %v3506_v17 = vshrl.u32 %v3247_v6, 16 }
 0x298   : > { %8812 = vst [vmem:[#allocation9_spill] sm:$0xff] %v7797_v45  ;;  %v3691_v38 = vpack.c.b16 %v3668_v63, %v3667_v34  ;;  %v3489_v63 = vrot.slane %v3488_v52, 4  ;;  %v3498_v10 = vor.u32 %v3497_v36, %v3493_v43  ;;  %v6492_v34 = vld [vmem:[#allocation2 + $0x60] sm:$0xff]  ;;  %v3248_v36 = vld [vmem:[#allocation2 + $0x88] sm:$0xf] }
 0x299   : > { %v7802_v8 = vpop.f32.mrf.mxu1  ;;  %v3503_v18 = vrot.slane %v3501_v22, 5  ;;  %v6543_v22 = vld [vmem:[#allocation2 + $0x70] sm:$0xf] }
 0x29a   : > { %6173 = vmatmul.msk.bf16.gmra.mxu3 %vm2184_vm14, %v2750_v16  ;;  %v3499_v46 = vrot.slane %v3498_v10, 4  ;;  %v2662_v47 = vrot.slane %v6543_v22, 5  ;;  %v2555_v22 = vld [vmem:[#allocation2 + $0x6c] sm:$0xe] }
 0x29c   : > { %6272 = vmatmul.msk.bf16.gmra.mxu2 %vm2184_vm14, %v3691_v38  ;;  %v3494_v38 = vsel %vm6846_vm2, %v3489_v63, %v3493_v43  ;;  %v3504_v15 = vsel %vm6846_vm2, %v3499_v46, %v3503_v18  ;;  %v3508_v63 = vrot.slane %v3506_v17, 4  ;;  %v2664_v46 = vrot.slane %v2662_v47, 4 }
 0x29d   : > { %v2321_v26 = vpop.f32.mrf.mxu3 }
 0x29e   : > { %v7807_v27 = vadd.f32 %v2541_v7, %v2321_v26  ;;  %v2656_v7 = vsel %vm7599_vm4, %v6157_v35, %v2655_v32  ;;  %v3509_v26 = vshll.u32 %v3247_v6, 16  ;;  %v3669_v35 = vunpack.c.l.b16 %v3494_v38 }
 0x29f   : > { %v7812_v40 = vpop.f32.mrf.mxu2  ;;  %v2727_v52 = vunpack.c.l.b16 %v2656_v7  ;;  %v3519_v6 = vshrl.u32 %v3248_v36, 16  ;;  %v3670_v7 = vunpack.c.l.b16 %v3504_v15 }
 0x2a0   : > { %8813 = vst [vmem:[#allocation10_spill] sm:$0xff] %v7807_v27  ;;  %v3511_v10 = vrot.slane %v3509_v26, 5 }
 0x2a1   : > { %v7810_v16 = vpop.f32.mrf.mxu1  ;;  %8814 = vst [vmem:[#allocation11_spill] sm:$0xff] %v7812_v40  ;;  %v2751_v32 = vpack.c.b16 %v2728_v59, %v2727_v52  ;;  %v3521_v38 = vrot.slane %v3519_v6, 4 }
 0x2a4   : > { %6254 = vmatmul.msk.bf16.gmra.mxu1 %vm2184_vm14, %v6492_v34 }
 0x2a5   : > { %v2323_v29 = vpop.f32.mrf.mxu3 }
 0x2a6   : > { %v7821_v40 = vadd.f32 %v2543_v57, %v2323_v29  ;;  %6388 = vmatmul.msk.bf16.gmra.mxu0 %vm2184_vm14, %v6511_v3  ;;  %v3515_v57 = vshll.u32 %v3248_v36, 16  ;;  %v3692_v29 = vpack.c.b16 %v3670_v7, %v3669_v35  ;;  %v3512_v3 = vor.u32 %v3511_v10, %v3508_v63  ;;  %v6493_v10 = vld [vmem:[#allocation2 + $0x6c] sm:$0xff] }
 0x2a7   : > { %v7828_v43 = vpop.f32.mrf.mxu2 }
 0x2a8   : > { %8815 = vst [vmem:[#allocation12_spill] sm:$0xff] %v7821_v40  ;;  %v3249_v40 = vld [vmem:[#allocation2 + $0x8c] sm:$0x1]  ;;  %v3517_v59 = vrot.slane %v3515_v57, 5  ;;  %v3513_v35 = vrot.slane %v3512_v3, 4 }
 0x2a9   : > { %v7826_v34 = vpop.f32.mrf.mxu1  ;;  %8816 = vst [vmem:[#allocation13_spill] sm:$0xff] %v7828_v43  ;;  %v6544_v43 = vld [vmem:[#allocation2 + $0x74] sm:$0x1]  ;;  %v3525_v26 = vshll.u32 %v3249_v40, 16  ;;  %v3250_v57 = vld [vmem:[#allocation2 + $0x90] sm:$0xf]  ;;  %v2469_v40 = vadd.f32 %v7224_v25, %v7226_v0 }
 0x2aa   : > { %6174 = vmatmul.msk.bf16.gmra.mxu3 %vm2184_vm14, %v2751_v32  ;;  %v2665_v17 = vrot.slane %v6544_v43, 5  ;;  %v6158_v32 = vrot.slane %v2555_v22, 9  ;;  %v3522_v7 = vor.u32 %v3521_v38, %v3517_v59  ;;  %v3251_v3 = vld [vmem:[#allocation2 + $0x94] sm:$0xf]  ;;  %v3533_v38 = vshll.u32 %v3250_v57, 16 }
 0x2ab   : > { %v3527_v6 = vrot.slane %v3525_v26, 5 }
 0x2ac   : > { %6273 = vmatmul.msk.bf16.gmra.mxu2 %vm2184_vm14, %v3692_v29  ;;  %v2666_v15 = vsel %vm7599_vm4, %v2664_v46, %v2665_v17  ;;  %v3523_v46 = vrot.slane %v3522_v7, 4  ;;  %v6512_v17 = vld [vmem:[#allocation2 + $0x9c] sm:$0xff] }
 0x2ad   : > { %v2819_v18 = vpop.f32.mrf.mxu3  ;;  %v2730_v43 = vunpack.c.l.b16 %v2666_v15  ;;  %v3539_v15 = vshll.u32 %v3251_v3, 16  ;;  %v6545_v7 = vld [vmem:[#allocation2 + $0x7c] sm:$0xf] }
 0x2ae   : > { %v2899_v52 = vadd.f32 %v2819_v18, %v7171_v1  ;;  %v2663_v1 = vsel %vm7599_vm4, %v6158_v32, %v2662_v47  ;;  %v3518_v18 = vsel %vm6846_vm2, %v3513_v35, %v3517_v59  ;;  %v3528_v26 = vsel %vm6846_vm2, %v3523_v46, %v3527_v6  ;;  %v2556_v32 = vld [vmem:[#allocation2 + $0x78] sm:$0xe]  ;;  %v6546_v6 = vld [vmem:[#allocation2 + $0x80] sm:$0x1] }
 0x2af   : > { %v7833_v36 = vpop.f32.mrf.mxu2  ;;  %v2729_v47 = vunpack.c.l.b16 %v2663_v1  ;;  %v3671_v0 = vunpack.c.l.b16 %v3518_v18  ;;  %v3672_v1 = vunpack.c.l.b16 %v3528_v26  ;;  %v6159_v46 = vrot.slane %v2556_v32, 9  ;;  %v3252_v18 = vld [vmem:[#allocation2 + $0x98] sm:$0x1] }
 0x2b0   : > { %8817 = vst [vmem:[#allocation14_spill] sm:$0xff] %v7833_v36 }
 0x2b1   : > { %v3105_v27 = vpop.f32.mrf.mxu1  ;;  %v2752_v25 = vpack.c.b16 %v2730_v43, %v2729_v47  ;;  %v3693_v43 = vpack.c.b16 %v3672_v1, %v3671_v0 }
 0x2b2   : > { %v7837_v63 = vadd.f32 %v3105_v27, %v2899_v52  ;;  %v3530_v27 = vshrl.u32 %v3250_v57, 16  ;;  %v7846_v52 = vpop.f32.mrf.mxu0  ;;  %v2669_v57 = vrot.slane %v6545_v7, 5  ;;  %v3254_v7 = vld [vmem:[#allocation2 + $0xa0] sm:$0xf] }
 0x2b3   : > { %8819 = vst [vmem:[#allocation16_spill] sm:$0xff] %v7846_v52  ;;  %v3535_v52 = vrot.slane %v3533_v38, 5 }
 0x2b4   : > { %8818 = vst [vmem:[#allocation15_spill] sm:$0xff] %v7837_v63  ;;  %6255 = vmatmul.msk.bf16.gmra.mxu1 %vm2184_vm14, %v6493_v10  ;;  %v3543_v10 = vshrl.u32 %v3251_v3, 16  ;;  %v3532_v36 = vrot.slane %v3530_v27, 4  ;;  %v2671_v63 = vrot.slane %v2669_v57, 4  ;;  %v2670_v27 = vsel %vm7599_vm4, %v6159_v46, %v2669_v57 }
 0x2b5   : > { %v2821_v29 = vpop.f32.mrf.mxu3 }
 0x2b6   : > { %v2900_v22 = vadd.f32 %v2821_v29, %v2469_v40  ;;  %6389 = vmatmul.msk.bf16.gmra.mxu0 %vm2184_vm14, %v6512_v17  ;;  %v2672_v29 = vrot.slane %v6546_v6, 5  ;;  %v3541_v17 = vrot.slane %v3539_v15, 5  ;;  %v3545_v47 = vrot.slane %v3543_v10, 4 }
 0x2b7   : > { %v7851_v35 = vpop.f32.mrf.mxu2  ;;  %v3536_v45 = vor.u32 %v3535_v52, %v3532_v36  ;;  %v6494_v36 = vld [vmem:[#allocation2 + $0x78] sm:$0xff] }
 0x2b8   : > { %8820 = vst [vmem:[#allocation17_spill] sm:$0xff] %v7851_v35  ;;  %v2673_v38 = vsel %vm7599_vm4, %v2671_v63, %v2672_v29  ;;  %v2474_v63 = vadd.f32 %v7649_v4, %v7660_v19  ;;  %v6513_v29 = vld [vmem:[#allocation2 + $0xa8] sm:$0xff]  ;;  %v3567_v4 = vshrl.u32 %v3254_v7, 16 }
 0x2b9   : > { %v3107_v59 = vpop.f32.mrf.mxu1  ;;  %v3537_v15 = vrot.slane %v3536_v45, 4  ;;  %v2732_v52 = vunpack.c.l.b16 %v2673_v38  ;;  %v410_v38 = vld [vmem:[%s6734_s29 + $0x7c] sm:$0xf] }
 0x2ba   : > { %v7853_v40 = vadd.f32 %v3107_v59, %v2900_v22  ;;  %6175 = vmatmul.msk.bf16.gmra.mxu3 %vm2184_vm14, %v2752_v25  ;;  %v3549_v22 = vshll.u32 %v3252_v18, 16  ;;  %v7862_v26 = vpop.f32.mrf.mxu0  ;;  %v3546_v25 = vor.u32 %v3545_v47, %v3541_v17  ;;  %v3253_v59 = vld [vmem:[#allocation2 + $0x9c] sm:$0xf] }
 0x2bb   : > { %v3542_v45 = vsel %vm6846_vm2, %v3537_v15, %v3541_v17  ;;  %v3557_v46 = vshll.u32 %v3253_v59, 16  ;;  %v677_v15 = vshrl.u32 %v410_v38, 16 }
 0x2bc   : > { %6274 = vmatmul.msk.bf16.gmra.mxu2 %vm2184_vm14, %v3693_v43  ;;  %v3551_v57 = vrot.slane %v3549_v22, 5  ;;  %v3547_v1 = vrot.slane %v3546_v25, 4  ;;  %v3563_v43 = vshll.u32 %v3254_v7, 16 }
 0x2bd   : > { %v2824_v3 = vpop.f32.mrf.mxu3 }
 0x2be   : > { %v2901_v35 = vadd.f32 %v2824_v3, %v7274_v9  ;;  %v2731_v9 = vunpack.c.l.b16 %v2670_v27  ;;  %v317_v3 = vld [vmem:[#allocation2 + $0xc0] sm:$0x1]  ;;  %v409_v27 = vld [vmem:[%s6734_s29 + $0x78] sm:$0xf]  ;;  %v3552_v22 = vsel %vm6846_vm2, %v3547_v1, %v3551_v57  ;;  %v2557_v1 = vld [vmem:[#allocation2 + $0x84] sm:$0xe] }
 0x2bf   : > { %v7864_v32 = vpop.f32.mrf.mxu2  ;;  %v318_v19 = vsel %vm6778_vm9, 0, %v317_v3  ;;  %v669_v25 = vshrl.u32 %v409_v27, 16  ;;  %v672_v17 = vshll.u32 %v409_v27, 16  ;;  %v3674_v57 = vunpack.c.l.b16 %v3552_v22  ;;  %v6547_v3 = vld [vmem:[#allocation2 + $0x88] sm:$0xf] }
 0x2c0   : > { %8821 = vst [vmem:[#allocation18_spill] sm:$0xff] %v7864_v32  ;;  %v2753_v47 = vpack.c.b16 %v2732_v52, %v2731_v9  ;;  %v2676_v27 = vrot.slane %v6547_v3, 5  ;;  %v6160_v22 = vrot.slane %v2557_v1, 9  ;;  %v3256_v1 = vld [vmem:[#allocation2 + $0xa8] sm:$0xf] }
 0x2c1   : > { %v3110_v0 = vpop.f32.mrf.mxu1  ;;  %319 = vst [vmem:[#allocation2 + $0xc0] sm:$0x1] %v318_v19  ;;  %v3565_v19 = vrot.slane %v3563_v43, 5 }
 0x2c2   : > { %v7866_v10 = vadd.f32 %v3110_v0, %v2901_v35  ;;  %v3554_v35 = vshrl.u32 %v3253_v59, 16  ;;  %v3673_v0 = vunpack.c.l.b16 %v3542_v45  ;;  %v7882_v32 = vpop.f32.mrf.mxu0  ;;  %v373_v45 = vld [vmem:[#allocation2 + $0xc8] sm:$0x1] }
 0x2c3   : > { %8824 = vst [vmem:[#allocation21_spill] sm:$0xff] %v7882_v32  ;;  %v374_v20 = vsel %vm6738_vm6, 0, %v373_v45  ;;  %v2678_v45 = vrot.slane %v2676_v27, 4 }
 0x2c4   : > { %8822 = vst [vmem:[#allocation19_spill] sm:$0xff] %v7866_v10  ;;  %6256 = vmatmul.msk.bf16.gmra.mxu1 %vm2184_vm14, %v6494_v36  ;;  %v680_v36 = vshll.u32 %v410_v38, 16  ;;  %v3556_v52 = vrot.slane %v3554_v35, 4  ;;  %v3694_v35 = vpack.c.b16 %v3674_v57, %v3673_v0 }
 0x2c5   : > { %v2826_v6 = vpop.f32.mrf.mxu3  ;;  %375 = vst [vmem:[#allocation2 + $0xc8] sm:$0x1] %v374_v20 }
 0x2c6   : > { %v2902_v18 = vadd.f32 %v2826_v6, %v2474_v63  ;;  %6390 = vmatmul.msk.bf16.gmra.mxu0 %vm2184_vm14, %v6513_v29  ;;  %v3559_v63 = vrot.slane %v3557_v46, 5  ;;  %v671_v6 = vrot.slane %v669_v25, 7  ;;  %v679_v29 = vrot.slane %v677_v15, 7  ;;  %v3255_v46 = vld [vmem:[#allocation2 + $0xa4] sm:$0x1]  ;;  %v1530_v15 = vpop.permute.xlu1 %1529 }
 0x2c7   : > { %v7880_v9 = vpop.f32.mrf.mxu2  ;;  %v3569_v25 = vrot.slane %v3567_v4, 4  ;;  %v3573_v0 = vshll.u32 %v3255_v46, 16 }
 0x2c8   : > { %8823 = vst [vmem:[#allocation20_spill] sm:$0xff] %v7880_v9  ;;  %v675_v38 = vrot.slane %v671_v6, 4  ;;  %v674_v9 = vor.u32 %v672_v17, %v671_v6  ;;  %v682_v32 = vor.u32 %v680_v36, %v679_v29  ;;  %v844_v57 = vld [vmem:[#allocation2 + $0xc0] sm:$0xf]  ;;  %v684_v17 = vrot.slane %v679_v29, 4  ;;  %v6495_v6 = vld [vmem:[#allocation2 + $0x84] sm:$0xff] }
 0x2c9   : > { %v3112_v59 = vpop.f32.mrf.mxu1  ;;  %v3570_v4 = vor.u32 %v3569_v25, %v3565_v19  ;;  %v3575_v42 = vrot.slane %v3573_v0, 5  ;;  %v3578_v25 = vshrl.u32 %v3256_v1, 16 }
 0x2ca   : > { %v7884_v7 = vadd.f32 %v3112_v59, %v2902_v18  ;;  %6176 = vmatmul.msk.bf16.gmra.mxu3 %vm2184_vm14, %v2753_v47  ;;  %v6548_v18 = vld [vmem:[#allocation2 + $0x8c] sm:$0x1]  ;;  %v683_v43 = vsel %vm6679_vm3, %v675_v38, %v682_v32  ;;  %v845_v20 = vsel %vm6805_vm12, %v674_v9, %v844_v57  ;;  %v7905_v29 = vpop.f32.mrf.mxu0  ;;  %vm5672_vm3 = vcmask 31744  }
 0x2cb   : > { %v2679_v59 = vrot.slane %v6548_v18, 5  ;;  %847 = vst.msk [vmem:[#allocation2 + $0xc4] sm:$0xf] %vm734_vm11, %v683_v43  ;;  %v3581_v18 = vshll.u32 %v3256_v1, 16 }
 0x2cc   : > { %8825 = vst [vmem:[#allocation22_spill] sm:$0xff] %v7884_v7  ;;  %v3560_v7 = vor.u32 %v3559_v63, %v3556_v52  ;;  %6275 = vmatmul.msk.bf16.gmra.mxu2 %vm2184_vm14, %v3694_v35  ;;  %v848_v9 = vld [vmem:[#allocation2 + $0xc8] sm:$0x1]  ;;  %v3571_v35 = vrot.slane %v3570_v4, 4 }
 0x2cd   : > { %v2829_v47 = vpop.f32.mrf.mxu3  ;;  %1694 = vst.msk [vmem:[#allocation2 + $0xc4] sm:$0xf] %vm1581_vm1, %v1530_v15  ;;  %v2680_v24 = vsel %vm7599_vm4, %v2678_v45, %v2679_v59 }
 0x2ce   : > { %v2903_v10 = vadd.f32 %v2829_v47, %v7669_v50  ;;  %v2677_v50 = vsel %vm7599_vm4, %v6160_v22, %v2676_v27  ;;  %v3561_v32 = vrot.slane %v3560_v7, 4  ;;  %846 = vst [vmem:[#allocation2 + $0xc0] sm:$0xf] %v845_v20  ;;  %v2734_v38 = vunpack.c.l.b16 %v2680_v24  ;;  %v6514_v47 = vld [vmem:[#allocation2 + $0xb4] sm:$0xff]  ;;  %v1528_v22 = vpop.permute.xlu0 %1527  ;;  %v2558_v20 = vld [vmem:[#allocation2 + $0x90] sm:$0xe] }
 0x2cf   : > { %v7897_v52 = vpop.f32.mrf.mxu2  ;;  %v2733_v3 = vunpack.c.l.b16 %v2677_v50  ;;  %v849_v27 = vsel %vm6766_vm8, %v684_v17, %v848_v9  ;;  %v3576_v15 = vsel %vm6846_vm2, %v3571_v35, %v3575_v42  ;;  %v3580_v17 = vrot.slane %v3578_v25, 4  ;;  %v6550_v42 = vld [vmem:[#allocation2 + $0x98] sm:$0x1] }
 0x2d0   : > { %v3566_v7 = vsel %vm6846_vm2, %v3561_v32, %v3565_v19  ;;  %850 = vst [vmem:[#allocation2 + $0xc8] sm:$0x1] %v849_v27  ;;  %v3676_v24 = vunpack.c.l.b16 %v3576_v15  ;;  %v1532_v32 = vpop.permute.xlu2 %1531  ;;  %v2686_v9 = vrot.slane %v6550_v42, 5  ;;  %v6161_v35 = vrot.slane %v2558_v20, 9 }
 0x2d1   : > { %v3115_v36 = vpop.f32.mrf.mxu1  ;;  %v2754_v43 = vpack.c.b16 %v2734_v38, %v2733_v3  ;;  %v3675_v13 = vunpack.c.l.b16 %v3566_v7 }
 0x2d2   : > { %v7903_v63 = vadd.f32 %v3115_v36, %v2903_v10  ;;  %v3257_v10 = vld [vmem:[#allocation2 + $0xac] sm:$0xf] }
 0x2d3   : > { %v3587_v0 = vshll.u32 %v3257_v10, 16  ;;  %v3591_v36 = vshrl.u32 %v3257_v10, 16  ;;  %v3695_v3 = vpack.c.b16 %v3676_v24, %v3675_v13 }
 0x2d4   : > { %6257 = vmatmul.msk.bf16.gmra.mxu1 %vm2184_vm14, %v6495_v6  ;;  %v6549_v6 = vld [vmem:[#allocation2 + $0x94] sm:$0xf] }
 0x2d5   : > { %v2831_v46 = vpop.f32.mrf.mxu3  ;;  %v1691_v45 = vld [vmem:[#allocation2 + $0xc0] sm:$0xf]  ;;  %v2683_v1 = vrot.slane %v6549_v6, 5  ;;  %v3589_v10 = vrot.slane %v3587_v0, 5  ;;  %v3593_v25 = vrot.slane %v3591_v36, 4 }
 0x2d6   : > { %v2904_v59 = vadd.f32 %v2831_v46, %v7687_v2  ;;  %6391 = vmatmul.msk.bf16.gmra.mxu0 %vm2184_vm14, %v6514_v47  ;;  %v1692_v19 = vsel %vm6876_vm15, %v1528_v22, %v1691_v45  ;;  %v3583_v2 = vrot.slane %v3581_v18, 5  ;;  %v7925_v18 = vpop.f32.mrf.mxu0  ;;  %v3597_v22 = vshll.u32 %v3258_v33, 16  ;;  %v3259_v36 = vld [vmem:[#allocation2 + $0xb4] sm:$0xf] }
 0x2d7   : > { %v7916_v4 = vpop.f32.mrf.mxu2  ;;  %1693 = vst [vmem:[#allocation2 + $0xc0] sm:$0xf] %v1692_v19  ;;  %v1695_v38 = vld [vmem:[#allocation2 + $0xc8] sm:$0x1]  ;;  %v2685_v47 = vrot.slane %v2683_v1, 4  ;;  %v2684_v15 = vsel %vm7599_vm4, %v6161_v35, %v2683_v1  ;;  %v3594_v0 = vor.u32 %v3593_v25, %v3589_v10  ;;  %v6496_v19 = vld [vmem:[#allocation2 + $0x90] sm:$0xff] }
 0x2d8   : > { %v1696_v46 = vsel %vm6857_vm10, %v1532_v32, %v1695_v38  ;;  %v3584_v7 = vor.u32 %v3583_v2, %v3580_v17  ;;  %v2735_v20 = vunpack.c.l.b16 %v2684_v15  ;;  %v3599_v2 = vrot.slane %v3597_v22, 5  ;;  %v2559_v15 = vld [vmem:[#allocation2 + $0x9c] sm:$0xe] }
 0x2d9   : > { %v3117_v57 = vpop.f32.mrf.mxu1  ;;  %1697 = vst [vmem:[#allocation2 + $0xc8] sm:$0x1] %v1696_v46  ;;  %v3602_v33 = vshrl.u32 %v3259_v36, 16 }
 0x2da   : > { %v7920_v50 = vadd.f32 %v3117_v57, %v2904_v59  ;;  %6177 = vmatmul.msk.bf16.gmra.mxu3 %vm2184_vm14, %v2754_v43  ;;  %v2687_v43 = vsel %vm7599_vm4, %v2685_v47, %v2686_v9  ;;  %v3585_v45 = vrot.slane %v3584_v7, 4  ;;  %v3595_v9 = vrot.slane %v3594_v0, 4 }
 0x2db   : > { %v2736_v17 = vunpack.c.l.b16 %v2687_v43  ;;  %v3605_v7 = vshll.u32 %v3259_v36, 16  ;;  %v6551_v43 = vld [vmem:[#allocation2 + $0xa0] sm:$0xf] }
 0x2dc   : > { %6276 = vmatmul.msk.bf16.gmra.mxu2 %vm2184_vm14, %v3695_v3  ;;  %v3590_v42 = vsel %vm6846_vm2, %v3585_v45, %v3589_v10  ;;  %v3600_v35 = vsel %vm6846_vm2, %v3595_v9, %v3599_v2  ;;  %v3261_v45 = vld [vmem:[#allocation2 + $0xbc] sm:$0x1] }
 0x2dd   : > { %v2834_v27 = vpop.f32.mrf.mxu3  ;;  %v2755_v38 = vpack.c.b16 %v2736_v17, %v2735_v20  ;;  %v3677_v46 = vunpack.c.l.b16 %v3590_v42  ;;  %v6552_v17 = vld [vmem:[#allocation2 + $0xa4] sm:$0x1] }
 0x2de   : > { %v2905_v59 = vadd.f32 %v2834_v27, %v7698_v41  ;;  %v3260_v41 = vld [vmem:[#allocation2 + $0xb8] sm:$0xf]  ;;  %v6515_v6 = vld [vmem:[#allocation2 + $0xc0] sm:$0xff]  ;;  %v7943_v27 = vpop.f32.mrf.mxu0  ;;  %v2693_v2 = vrot.slane %v6552_v17, 5 }
 0x2df   : > { %v7933_v13 = vpop.f32.mrf.mxu2  ;;  %v3611_v24 = vshll.u32 %v3260_v41, 16  ;;  %v3615_v32 = vshrl.u32 %v3260_v41, 16  ;;  %v3607_v41 = vrot.slane %v3605_v7, 5  ;;  %v6497_v7 = vld [vmem:[#allocation2 + $0x9c] sm:$0xff] }
 0x2e1   : > { %v3120_v5 = vpop.f32.mrf.mxu1  ;;  %v3613_v25 = vrot.slane %v3611_v24, 5  ;;  %v6162_v24 = vrot.slane %v2559_v15, 9 }
 0x2e2   : > { %v7935_v57 = vadd.f32 %v3120_v5, %v2905_v59  ;;  %v3617_v59 = vrot.slane %v3615_v32, 4  ;;  %v2690_v5 = vrot.slane %v6551_v43, 5 }
 0x2e4   : > { %6258 = vmatmul.msk.bf16.gmra.mxu1 %vm2184_vm14, %v6496_v19  ;;  %v3604_v19 = vrot.slane %v3602_v33, 4  ;;  %v3618_v20 = vor.u32 %v3617_v59, %v3613_v25 }
 0x2e5   : > { %v2836_v1 = vpop.f32.mrf.mxu3 }
 0x2e6   : > { %v2906_v3 = vadd.f32 %v2836_v1, %v7715_v56  ;;  %6392 = vmatmul.msk.bf16.gmra.mxu0 %vm2184_vm14, %v6515_v6  ;;  %v3678_v56 = vunpack.c.l.b16 %v3600_v35  ;;  %v3621_v6 = vshll.u32 %v3261_v45, 16  ;;  %v2692_v1 = vrot.slane %v2690_v5, 4 }
 0x2e7   : > { %v7946_v22 = vpop.f32.mrf.mxu2  ;;  %v3608_v42 = vor.u32 %v3607_v41, %v3604_v19  ;;  %v3619_v9 = vrot.slane %v3618_v20, 4  ;;  %v2691_v35 = vsel %vm7599_vm4, %v6162_v24, %v2690_v5 }
 0x2e8   : > { %v3696_v0 = vpack.c.b16 %v3678_v56, %v3677_v46  ;;  %v2694_v33 = vsel %vm7599_vm4, %v2692_v1, %v2693_v2  ;;  %v3623_v59 = vrot.slane %v3621_v6, 5  ;;  %v2737_v56 = vunpack.c.l.b16 %v2691_v35 }
 0x2e9   : > { %v3122_v47 = vpop.f32.mrf.mxu1  ;;  %v2738_v15 = vunpack.c.l.b16 %v2694_v33  ;;  %v3609_v43 = vrot.slane %v3608_v42, 4 }
 0x2ea   : > { %v7948_v10 = vadd.f32 %v3122_v47, %v2906_v3  ;;  %6178 = vmatmul.msk.bf16.gmra.mxu3 %vm2184_vm14, %v2755_v38  ;;  %v3263_v47 = vld [vmem:[#allocation2 + $0xc4] sm:$0xf]  ;;  %v3624_v45 = vsel %vm6846_vm2, %v3619_v9, %v3623_v59  ;;  %v6553_v59 = vld [vmem:[#allocation2 + $0xac] sm:$0xf] }
 0x2eb   : > { %v3635_v41 = vshll.u32 %v3263_v47, 16  ;;  %v3639_v20 = vshrl.u32 %v3263_v47, 16  ;;  %v3614_v2 = vsel %vm6846_vm2, %v3609_v43, %v3613_v25  ;;  %v3680_v24 = vunpack.c.l.b16 %v3624_v45  ;;  %v6554_v47 = vld [vmem:[#allocation2 + $0xb0] sm:$0x1] }
 0x2ec   : > { %6277 = vmatmul.msk.bf16.gmra.mxu2 %vm2184_vm14, %v3696_v0  ;;  %v3679_v33 = vunpack.c.l.b16 %v3614_v2  ;;  %v2700_v25 = vrot.slane %v6554_v47, 5 }
 0x2ed   : > { %v2839_v36 = vpop.f32.mrf.mxu3  ;;  %v3641_v35 = vrot.slane %v3639_v20, 4 }
 0x2ee   : > { %v2907_v32 = vadd.f32 %v2839_v36, %v7724_v48  ;;  %v3262_v48 = vld [vmem:[#allocation2 + $0xc0] sm:$0xf]  ;;  %v2756_v36 = vpack.c.b16 %v2738_v15, %v2737_v56  ;;  %v3697_v56 = vpack.c.b16 %v3680_v24, %v3679_v33 }
 0x2ef   : > { %v7953_v38 = vpop.f32.mrf.mxu2  ;;  %v3626_v19 = vshrl.u32 %v3262_v48, 16  ;;  %v3629_v5 = vshll.u32 %v3262_v48, 16  ;;  %v3264_v48 = vld [vmem:[#allocation2 + $0xc8] sm:$0x1] }
 0x2f1   : > { %v3125_v3 = vpop.f32.mrf.mxu1  ;;  %v3628_v1 = vrot.slane %v3626_v19, 4  ;;  %v3631_v42 = vrot.slane %v3629_v5, 5  ;;  %v3645_v19 = vshll.u32 %v3264_v48, 16 }
 0x2f2   : > { %v7959_v46 = vadd.f32 %v3125_v3, %v2907_v32  ;;  %v3637_v3 = vrot.slane %v3635_v41, 5 }
 0x2f3   : > { %v3632_v45 = vor.u32 %v3631_v42, %v3628_v1  ;;  %v3647_v33 = vrot.slane %v3645_v19, 5  ;;  %v6498_v42 = vld [vmem:[#allocation2 + $0xa8] sm:$0xff] }
 0x2f4   : > { %6259 = vmatmul.msk.bf16.gmra.mxu1 %vm2184_vm14, %v6497_v7  ;;  %v2560_v7 = vld [vmem:[#allocation2 + $0xa8] sm:$0xe] }
 0x2f5   : > { %v2841_v0 = vpop.f32.mrf.mxu3  ;;  %v6163_v43 = vrot.slane %v2560_v7, 9  ;;  %v3633_v24 = vrot.slane %v3632_v45, 4  ;;  %v6555_v45 = vld [vmem:[#allocation2 + $0xb8] sm:$0xf] }
 0x2f6   : > { %v2908_v17 = vadd.f32 %v2841_v0, %v7735_v14  ;;  %v2697_v14 = vrot.slane %v6553_v59, 5  ;;  %v3642_v0 = vor.u32 %v3641_v35, %v3637_v3 }
 0x2f7   : > { %v7967_v6 = vpop.f32.mrf.mxu2  ;;  %v3638_v59 = vsel %vm6846_vm2, %v3633_v24, %v3637_v3  ;;  %v6556_v3 = vld [vmem:[#allocation2 + $0xbc] sm:$0x1]  ;;  %v2561_v24 = vld [vmem:[#allocation2 + $0xb4] sm:$0xe] }
 0x2f8   : > { %v2699_v41 = vrot.slane %v2697_v14, 4 }
 0x2f9   : > { %v3127_v32 = vpop.f32.mrf.mxu1 }
 0x2fa   : > { %v7969_v9 = vadd.f32 %v3127_v32, %v2908_v17  ;;  %6179 = vmatmul.msk.bf16.gmra.mxu3 %vm2184_vm14, %v2756_v36  ;;  %v2701_v20 = vsel %vm7599_vm4, %v2699_v41, %v2700_v25  ;;  %v2698_v36 = vsel %vm7599_vm4, %v6163_v43, %v2697_v14  ;;  %v3643_v32 = vrot.slane %v3642_v0, 4  ;;  %v4557_v41 = vld [vmem:[#allocation2 + $0x1c] sm:$0xf] }
 0x2fb   : > { %v2740_v35 = vunpack.c.l.b16 %v2701_v20  ;;  %v3681_v25 = vunpack.c.l.b16 %v3638_v59  ;;  %v2704_v0 = vrot.slane %v6555_v45, 5  ;;  %v2707_v20 = vrot.slane %v6556_v3, 5 }
 0x2fc   : > { %6278 = vmatmul.msk.bf16.gmra.mxu2 %vm2184_vm14, %v3697_v56  ;;  %v3648_v48 = vsel %vm6846_vm2, %v3643_v32, %v3647_v33  ;;  %v7995_v32 = vld [vmem:[#allocation2 + $0x20] sm:$0x1]  ;;  %v5210_v33 = vld [vmem:[#allocation2 + $0x18] sm:$0xe] }
 0x2fd   : > { %v2844_v15 = vpop.f32.mrf.mxu3  ;;  %v3682_v56 = vunpack.c.l.b16 %v3648_v48  ;;  %v6411_v48 = vrot.slane %v5210_v33, 9  ;;  %v4556_v33 = vld [vmem:[#allocation2 + $0x18] sm:$0xf] }
 0x2fe   : > { %v2909_v5 = vadd.f32 %v2844_v15, %v7744_v31  ;;  %v2739_v31 = vunpack.c.l.b16 %v2698_v36  ;;  %v2706_v36 = vrot.slane %v2704_v0, 4 }
 0x2ff   : > { %v7976_v2 = vpop.f32.mrf.mxu2 }
 0x300   : > { %v2757_v14 = vpack.c.b16 %v2740_v35, %v2739_v31  ;;  %v2708_v59 = vsel %vm7599_vm4, %v2706_v36, %v2707_v20 }
 0x301   : > { %v3130_v17 = vpop.f32.mrf.mxu1 }
 0x302   : > { %v7980_v1 = vadd.f32 %v3130_v17, %v2909_v5  ;;  %v3698_v5 = vpack.c.b16 %v3682_v56, %v3681_v25 }
 0x304   : > { %6260 = vmatmul.msk.bf16.gmra.mxu1 %vm2184_vm14, %v6498_v42  ;;  %v5276_v42 = vrot.slane %v4557_v41, 5 }
 0x305   : > { %v2846_v7 = vpop.f32.mrf.mxu3 }
 0x306   : > { %v2910_v47 = vadd.f32 %v2846_v7, %v7759_v21  ;;  %v6164_v7 = vrot.slane %v2561_v24, 9  ;;  %v5278_v56 = vrot.slane %v5276_v42, 4 }
 0x307   : > { %v7988_v43 = vpop.f32.mrf.mxu2 }
 0x308   : > { %v2705_v25 = vsel %vm7599_vm4, %v6164_v7, %v2704_v0 }
 0x309   : > { %v3132_v15 = vpop.f32.mrf.mxu1 }
 0x30a   : > { %v7990_v19 = vadd.f32 %v3132_v15, %v2910_v47  ;;  %6180 = vmatmul.msk.bf16.gmra.mxu3 %vm2184_vm14, %v2757_v14  ;;  %v5279_v47 = vrot.slane %v7995_v32, 5  ;;  %v2742_v15 = vunpack.c.l.b16 %v2708_v59  ;;  %v4605_v59 = vshrl.u32 %v4556_v33, 16 }
 0x30c   : > { %6279 = vmatmul.msk.bf16.gmra.mxu2 %vm2184_vm14, %v3698_v5  ;;  %v5277_v5 = vsel %vm7599_vm4, %v6411_v48, %v5276_v42  ;;  %v5280_v3 = vsel %vm7599_vm4, %v5278_v56, %v5279_v47  ;;  %v2502_v42 = vadd.f32 %v7589_v53, %v7788_v49  ;;  %v8019_v47 = vld [vmem:[#allocation2 + $0x28] sm:$0xf]  ;;  %v8022_v56 = vld [vmem:[#allocation2 + $0x2c] sm:$0x1] }
 0x30d   : > { %v2849_v17 = vpop.f32.mrf.mxu3  ;;  %v5389_v24 = vunpack.c.l.b16 %v5280_v3  ;;  %v4607_v3 = vrot.slane %v4605_v59, 4  ;;  %v5286_v49 = vrot.slane %v8022_v56, 5 }
 0x30e   : > { %v2911_v21 = vadd.f32 %v2849_v17, %v7771_v58  ;;  %v6499_v58 = vld [vmem:[#allocation2 + $0xb4] sm:$0xff]  ;;  %v2741_v17 = vunpack.c.l.b16 %v2705_v25 }
 0x30f   : > { %v7997_v35 = vpop.f32.mrf.mxu2 }
 0x310   : > { %8826 = vst [vmem:[#allocation23_spill] sm:$0xff] %v7997_v35  ;;  %v2758_v36 = vpack.c.b16 %v2742_v15, %v2741_v17  ;;  %v5211_v15 = vld [vmem:[#allocation2 + $0x24] sm:$0xe]  ;;  %v4618_v17 = vshrl.u32 %v4557_v41, 16 }
 0x311   : > { %v3135_v31 = vpop.f32.mrf.mxu1  ;;  %v6412_v53 = vrot.slane %v5211_v15, 9 }
 0x312   : > { %v8002_v14 = vadd.f32 %v3135_v31, %v2911_v21  ;;  %v5388_v21 = vunpack.c.l.b16 %v5277_v5  ;;  %v5283_v5 = vrot.slane %v8019_v47, 5 }
 0x314   : > { %6261 = vmatmul.msk.bf16.gmra.mxu1 %vm2184_vm14, %v6499_v58  ;;  %v4608_v58 = vshll.u32 %v4556_v33, 16  ;;  %v5420_v48 = vpack.c.b16 %v5389_v24, %v5388_v21  ;;  %v6500_v24 = vld [vmem:[#allocation2 + $0xc0] sm:$0xff] }
 0x315   : > { %v2851_v45 = vpop.f32.mrf.mxu3 }
 0x316   : > { %v2912_v20 = vadd.f32 %v2851_v45, %v7781_v23  ;;  %v4614_v45 = vshll.u32 %v4557_v41, 16  ;;  %v5284_v41 = vsel %vm7599_vm4, %v6412_v53, %v5283_v5  ;;  %v6557_v53 = vld [vmem:[#allocation2 + $0x1c] sm:$0xf] }
 0x317   : > { %v8012_v0 = vpop.f32.mrf.mxu2 }
 0x318   : > { %8827 = vst [vmem:[#allocation24_spill] sm:$0xff] %v8012_v0  ;;  %v2504_v0 = vadd.f32 %v7624_v30, %v7802_v8 }
 0x319   : > { %v3137_v31 = vpop.f32.mrf.mxu1 }
 0x31a   : > { %v8014_v7 = vadd.f32 %v3137_v31, %v2912_v20  ;;  %6181 = vmatmul.msk.bf16.gmra.mxu3 %vm2184_vm14, %v2758_v36  ;;  %v4610_v20 = vrot.slane %v4608_v58, 5  ;;  %v5285_v31 = vrot.slane %v5283_v5, 4  ;;  %v3872_v5 = vld [vmem:[#allocation2 + $0x18] sm:$0xe] }
 0x31c   : > { %6428 = vmatmul.msk.bf16.vlgmr.msra.gmra.mxu2 %vm2184_vm14, %v5420_v48  ;;  %v4616_v48 = vrot.slane %v4614_v45, 5  ;;  %v5287_v58 = vsel %vm7599_vm4, %v5285_v31, %v5286_v49  ;;  %v3944_v49 = vrot.slane %v6557_v53, 5  ;;  %v4642_v53 = vshrl.u32 %v8019_v47, 16 }
 0x31d   : > { %v2854_v23 = vpop.f32.mrf.mxu3  ;;  %v5391_v45 = vunpack.c.l.b16 %v5287_v58 }
 0x31e   : > { %v2913_v25 = vadd.f32 %v2854_v23, %v2502_v42  ;;  %v4611_v42 = vor.u32 %v4610_v20, %v4607_v3  ;;  %v4620_v23 = vrot.slane %v4618_v17, 4  ;;  %v5390_v3 = vunpack.c.l.b16 %v5284_v41  ;;  %v4559_v20 = vld [vmem:[#allocation2 + $0x24] sm:$0xf]  ;;  %v6558_v41 = vld [vmem:[#allocation2 + $0x20] sm:$0x1] }
 0x31f   : > { %v8025_v33 = vpop.f32.mrf.mxu2  ;;  %v4632_v31 = vshll.u32 %v4559_v20, 16  ;;  %v3947_v58 = vrot.slane %v6558_v41, 5 }
 0x320   : > { %8828 = vst [vmem:[#allocation25_spill] sm:$0xff] %v8025_v33  ;;  %v4621_v33 = vor.u32 %v4620_v23, %v4616_v48  ;;  %v5421_v23 = vpack.c.b16 %v5391_v45, %v5390_v3 }
 0x321   : > { %v3140_v36 = vpop.f32.mrf.mxu1  ;;  %v4634_v45 = vrot.slane %v4632_v31, 5 }
 0x322   : > { %v8028_v21 = vadd.f32 %v3140_v36, %v2913_v25  ;;  %v4624_v25 = vshll.u32 %v7995_v32, 16  ;;  %v4612_v36 = vrot.slane %v4611_v42, 4  ;;  %v2507_v42 = vadd.f32 %v7639_v55, %v7810_v16 }
 0x323   : > { %v4638_v55 = vshll.u32 %v8019_v47, 16  ;;  %v4644_v47 = vrot.slane %v4642_v53, 4 }
 0x324   : > { %6262 = vmatmul.msk.bf16.gmra.mxu1 %vm2184_vm14, %v6500_v24  ;;  %v4626_v30 = vrot.slane %v4624_v25, 5  ;;  %v4617_v32 = vsel %vm6846_vm2, %v4612_v36, %v4616_v48  ;;  %v4629_v24 = vshrl.u32 %v4559_v20, 16  ;;  %v8053_v36 = vld [vmem:[#allocation2 + $0x38] sm:$0x1]  ;;  %v5212_v20 = vld [vmem:[#allocation2 + $0x30] sm:$0xe] }
 0x325   : > { %v2856_v59 = vpop.f32.mrf.mxu3  ;;  %v4990_v48 = vunpack.c.l.b16 %v4617_v32 }
 0x326   : > { %v2914_v15 = vadd.f32 %v2856_v59, %v2504_v0  ;;  %v4622_v0 = vrot.slane %v4621_v33, 4  ;;  %v8048_v59 = vld [vmem:[#allocation2 + $0x34] sm:$0xf]  ;;  %v3946_v33 = vrot.slane %v3944_v49, 4  ;;  %v4631_v3 = vrot.slane %v4629_v24, 4 }
 0x327   : > { %v8038_v35 = vpop.f32.mrf.mxu2  ;;  %v5290_v16 = vrot.slane %v8048_v59, 5 }
 0x328   : > { %8829 = vst [vmem:[#allocation26_spill] sm:$0xff] %v8038_v35  ;;  %v3948_v32 = vsel %vm7599_vm4, %v3946_v33, %v3947_v58  ;;  %v4635_v31 = vor.u32 %v4634_v45, %v4631_v3 }
 0x329   : > { %v3142_v17 = vpop.f32.mrf.mxu1  ;;  %v5292_v24 = vrot.slane %v5290_v16, 4 }
 0x32a   : > { %v8040_v8 = vadd.f32 %v3142_v17, %v2914_v15  ;;  %6297 = vmatmul.msk.bf16.vlgmr.msra.gmra.mxu3 %vm2184_vm14, %v7626_v39  ;;  %v4627_v39 = vsel %vm6846_vm2, %v4622_v0, %v4626_v30  ;;  %v6281_v15 = vrot.slane %v3872_v5, 9  ;;  %v6413_v0 = vrot.slane %v5212_v20, 9 }
 0x32b   : > { %v4991_v41 = vunpack.c.l.b16 %v4627_v39  ;;  %v2509_v39 = vadd.f32 %v7647_v62, %v7826_v34  ;;  %v4636_v33 = vrot.slane %v4635_v31, 4  ;;  %v4562_v62 = vld [vmem:[#allocation2 + $0x30] sm:$0xf]  ;;  %v8082_v31 = vld [vmem:[#allocation2 + $0x40] sm:$0xf] }
 0x32c   : > { %8830 = vst [vmem:[#allocation27_spill] sm:$0xff] %v8040_v8  ;;  %6429 = vmatmul.msk.bf16.gmra.mxu2 %vm2184_vm14, %v5421_v23  ;;  %v3945_v5 = vsel %vm7599_vm4, %v6281_v15, %v3944_v49  ;;  %v4640_v8 = vrot.slane %v4638_v55, 5  ;;  %v4052_v49 = vunpack.c.l.b16 %v3948_v32  ;;  %v5291_v58 = vsel %vm7599_vm4, %v6413_v0, %v5290_v16  ;;  %v3873_v16 = vld [vmem:[#allocation2 + $0x24] sm:$0xe]  ;;  %v6559_v32 = vld [vmem:[#allocation2 + $0x28] sm:$0xf] }
 0x32d   : > { %v2859_v25 = vpop.f32.mrf.mxu3  ;;  %v5392_v3 = vunpack.c.l.b16 %v5291_v58  ;;  %v3951_v0 = vrot.slane %v6559_v32, 5  ;;  %v6282_v58 = vrot.slane %v3873_v16, 9 }
 0x32e   : > { %v2915_v17 = vadd.f32 %v2859_v25, %v2507_v42  ;;  %v5293_v42 = vrot.slane %v8053_v36, 5  ;;  %v5022_v25 = vpack.c.b16 %v4991_v41, %v4990_v48  ;;  %v4645_v20 = vor.u32 %v4644_v47, %v4640_v8  ;;  %v6560_v47 = vld [vmem:[#allocation2 + $0x2c] sm:$0x1] }
 0x32f   : > { %v8058_v30 = vpop.f32.mrf.mxu2 }
 0x330   : > { %8831 = vst [vmem:[#allocation28_spill] sm:$0xff] %v8058_v30  ;;  %v4051_v30 = vunpack.c.l.b16 %v3945_v5 }
 0x331   : > { %v3145_v35 = vpop.f32.mrf.mxu1 }
 0x332   : > { %v8065_v23 = vadd.f32 %v3145_v35, %v2915_v17  ;;  %v5294_v35 = vsel %vm7599_vm4, %v5292_v24, %v5293_v42  ;;  %v4648_v17 = vshll.u32 %v8022_v56, 16  ;;  %v4082_v55 = vpack.c.b16 %v4052_v49, %v4051_v30 }
 0x333   : > { %v5393_v45 = vunpack.c.l.b16 %v5294_v35  ;;  %v4641_v56 = vsel %vm6846_vm2, %v4636_v33, %v4640_v8  ;;  %v4646_v42 = vrot.slane %v4645_v20, 4  ;;  %v4656_v30 = vshll.u32 %v4562_v62, 16  ;;  %v8088_v8 = vld [vmem:[#allocation2 + $0x44] sm:$0x1]  ;;  %v5213_v33 = vld [vmem:[#allocation2 + $0x3c] sm:$0xe] }
 0x334   : > { %8832 = vst [vmem:[#allocation29_spill] sm:$0xff] %v8065_v23  ;;  %6395 = vmatmul.msk.bf16.vlgmr.msra.gmra.mxu1 %vm2184_vm14, %v5022_v25  ;;  %v4650_v41 = vrot.slane %v4648_v17, 5  ;;  %v4653_v25 = vshrl.u32 %v4562_v62, 16  ;;  %v4992_v17 = vunpack.c.l.b16 %v4641_v56  ;;  %v4662_v20 = vshll.u32 %v8048_v59, 16 }
 0x335   : > { %v2861_v15 = vpop.f32.mrf.mxu3  ;;  %v5422_v24 = vpack.c.b16 %v5393_v45, %v5392_v3  ;;  %v4658_v45 = vrot.slane %v4656_v30, 5  ;;  %v4666_v62 = vshrl.u32 %v8048_v59, 16  ;;  %v6414_v56 = vrot.slane %v5213_v33, 9 }
 0x336   : > { %v2916_v48 = vadd.f32 %v2861_v15, %v2509_v39  ;;  %v3954_v39 = vrot.slane %v6560_v47, 5  ;;  %v4651_v15 = vsel %vm6846_vm2, %v4646_v42, %v4650_v41  ;;  %v4655_v3 = vrot.slane %v4653_v25, 4 }
 0x337   : > { %v8075_v53 = vpop.f32.mrf.mxu2  ;;  %v5300_v42 = vrot.slane %v8088_v8, 5  ;;  %v4668_v59 = vrot.slane %v4666_v62, 4 }
 0x338   : > { %8833 = vst [vmem:[#allocation30_spill] sm:$0xff] %v8075_v53  ;;  %v4659_v30 = vor.u32 %v4658_v45, %v4655_v3  ;;  %v4565_v45 = vld [vmem:[#allocation2 + $0x3c] sm:$0xf] }
 0x339   : > { %v3147_v34 = vpop.f32.mrf.mxu1 }
 0x33a   : > { %v8077_v5 = vadd.f32 %v3147_v34, %v2916_v48  ;;  %6298 = vmatmul.msk.bf16.gmra.mxu3 %vm2184_vm14, %v4082_v55  ;;  %v3953_v48 = vrot.slane %v3951_v0, 4  ;;  %v5297_v55 = vrot.slane %v8082_v31, 5  ;;  %v4993_v34 = vunpack.c.l.b16 %v4651_v15 }
 0x33c   : > { %8834 = vst [vmem:[#allocation31_spill] sm:$0xff] %v8077_v5  ;;  %6430 = vmatmul.msk.bf16.gmra.mxu2 %vm2184_vm14, %v5422_v24  ;;  %v3955_v32 = vsel %vm7599_vm4, %v3953_v48, %v3954_v39  ;;  %v5023_v47 = vpack.c.b16 %v4993_v34, %v4992_v17  ;;  %v5299_v25 = vrot.slane %v5297_v55, 4  ;;  %v4660_v17 = vrot.slane %v4659_v30, 4 }
 0x33d   : > { %v2864_v49 = vpop.f32.mrf.mxu3 }
 0x33e   : > { %v2917_v35 = vadd.f32 %v2864_v49, %v7666_v28  ;;  %v3952_v28 = vsel %vm7599_vm4, %v6282_v58, %v3951_v0  ;;  %v4664_v49 = vrot.slane %v4662_v20, 5  ;;  %v5298_v0 = vsel %vm7599_vm4, %v6414_v56, %v5297_v55  ;;  %v3874_v55 = vld [vmem:[#allocation2 + $0x30] sm:$0xe] }
 0x33f   : > { %v8093_v16 = vpop.f32.mrf.mxu2  ;;  %v4053_v15 = vunpack.c.l.b16 %v3952_v28  ;;  %v5301_v39 = vsel %vm7599_vm4, %v5299_v25, %v5300_v42  ;;  %v4672_v58 = vshll.u32 %v8053_v36, 16  ;;  %v5394_v20 = vunpack.c.l.b16 %v5298_v0 }
 0x340   : > { %8835 = vst [vmem:[#allocation32_spill] sm:$0xff] %v8093_v16  ;;  %v4054_v16 = vunpack.c.l.b16 %v3955_v32  ;;  %v4669_v48 = vor.u32 %v4668_v59, %v4664_v49  ;;  %v5395_v3 = vunpack.c.l.b16 %v5301_v39  ;;  %v6561_v32 = vld [vmem:[#allocation2 + $0x34] sm:$0xf]  ;;  %v6283_v59 = vrot.slane %v3874_v55, 9 }
 0x341   : > { %v3150_v41 = vpop.f32.mrf.mxu1  ;;  %v3958_v56 = vrot.slane %v6561_v32, 5 }
 0x342   : > { %v8100_v24 = vadd.f32 %v3150_v41, %v2917_v35  ;;  %v4083_v33 = vpack.c.b16 %v4054_v16, %v4053_v15  ;;  %v4674_v41 = vrot.slane %v4672_v58, 5  ;;  %v4670_v36 = vrot.slane %v4669_v48, 4  ;;  %v6562_v15 = vld [vmem:[#allocation2 + $0x38] sm:$0x1] }
 0x343   : > { %v4680_v16 = vshll.u32 %v4565_v45, 16  ;;  %v5423_v42 = vpack.c.b16 %v5395_v3, %v5394_v20  ;;  %v3961_v0 = vrot.slane %v6562_v15, 5  ;;  %v4686_v48 = vshll.u32 %v8082_v31, 16 }
 0x344   : > { %8836 = vst [vmem:[#allocation33_spill] sm:$0xff] %v8100_v24  ;;  %6396 = vmatmul.msk.bf16.gmra.mxu1 %vm2184_vm14, %v5023_v47  ;;  %v8116_v47 = vld [vmem:[#allocation2 + $0x4c] sm:$0xf]  ;;  %v4675_v30 = vsel %vm6846_vm2, %v4670_v36, %v4674_v41 }
 0x345   : > { %v2866_v53 = vpop.f32.mrf.mxu3  ;;  %v4682_v3 = vrot.slane %v4680_v16, 5  ;;  %v4688_v15 = vrot.slane %v4686_v48, 5 }
 0x346   : > { %v2918_v35 = vadd.f32 %v2866_v53, %v7684_v11  ;;  %v4665_v11 = vsel %vm6846_vm2, %v4660_v17, %v4664_v49  ;;  %v4677_v53 = vshrl.u32 %v4565_v45, 16  ;;  %v8122_v49 = vld [vmem:[#allocation2 + $0x50] sm:$0x1]  ;;  %v5214_v17 = vld [vmem:[#allocation2 + $0x48] sm:$0xe]  ;;  %v4690_v45 = vshrl.u32 %v8082_v31, 16 }
 0x347   : > { %v8109_v34 = vpop.f32.mrf.mxu2  ;;  %v4994_v58 = vunpack.c.l.b16 %v4665_v11  ;;  %v6415_v11 = vrot.slane %v5214_v17, 9  ;;  %v5307_v36 = vrot.slane %v8122_v49, 5 }
 0x348   : > { %8837 = vst [vmem:[#allocation34_spill] sm:$0xff] %v8109_v34  ;;  %v4679_v20 = vrot.slane %v4677_v53, 4  ;;  %v4692_v31 = vrot.slane %v4690_v45, 4 }
 0x349   : > { %v3152_v62 = vpop.f32.mrf.mxu1 }
 0x34a   : > { %v8111_v28 = vadd.f32 %v3152_v62, %v2918_v35  ;;  %6299 = vmatmul.msk.bf16.gmra.mxu3 %vm2184_vm14, %v4083_v33  ;;  %v3960_v35 = vrot.slane %v3958_v56, 4  ;;  %v5304_v33 = vrot.slane %v8116_v47, 5  ;;  %v4995_v62 = vunpack.c.l.b16 %v4675_v30 }
 0x34b   : > { %v4683_v16 = vor.u32 %v4682_v3, %v4679_v20  ;;  %v4568_v3 = vld [vmem:[#allocation2 + $0x48] sm:$0xf] }
 0x34c   : > { %8838 = vst [vmem:[#allocation35_spill] sm:$0xff] %v8111_v28  ;;  %6431 = vmatmul.msk.bf16.gmra.mxu2 %vm2184_vm14, %v5423_v42  ;;  %v3962_v32 = vsel %vm7599_vm4, %v3960_v35, %v3961_v0  ;;  %v5306_v53 = vrot.slane %v5304_v33, 4  ;;  %v4696_v0 = vshll.u32 %v8088_v8, 16  ;;  %v4693_v35 = vor.u32 %v4692_v31, %v4688_v15 }
 0x34d   : > { %v2869_v25 = vpop.f32.mrf.mxu3 }
 0x34e   : > { %v2919_v39 = vadd.f32 %v2869_v25, %v7695_v12  ;;  %v3959_v12 = vsel %vm7599_vm4, %v6283_v59, %v3958_v56  ;;  %v5024_v25 = vpack.c.b16 %v4995_v62, %v4994_v58  ;;  %v5305_v56 = vsel %vm7599_vm4, %v6415_v11, %v5304_v33  ;;  %v3875_v33 = vld [vmem:[#allocation2 + $0x3c] sm:$0xe] }
 0x34f   : > { %v8127_v55 = vpop.f32.mrf.mxu2  ;;  %v4055_v30 = vunpack.c.l.b16 %v3959_v12  ;;  %v5308_v59 = vsel %vm7599_vm4, %v5306_v53, %v5307_v36  ;;  %v4684_v58 = vrot.slane %v4683_v16, 4  ;;  %v5396_v48 = vunpack.c.l.b16 %v5305_v56 }
 0x350   : > { %8839 = vst [vmem:[#allocation36_spill] sm:$0xff] %v8127_v55  ;;  %v4056_v55 = vunpack.c.l.b16 %v3962_v32  ;;  %v5397_v20 = vunpack.c.l.b16 %v5308_v59  ;;  %v6563_v32 = vld [vmem:[#allocation2 + $0x40] sm:$0xf]  ;;  %v4694_v8 = vrot.slane %v4693_v35, 4  ;;  %v4704_v36 = vshll.u32 %v4568_v3, 16 }
 0x351   : > { %v3155_v41 = vpop.f32.mrf.mxu1  ;;  %v3965_v11 = vrot.slane %v6563_v32, 5  ;;  %v6284_v31 = vrot.slane %v3875_v33, 9 }
 0x352   : > { %v8134_v42 = vadd.f32 %v3155_v41, %v2919_v39  ;;  %v4084_v17 = vpack.c.b16 %v4056_v55, %v4055_v30  ;;  %v4698_v41 = vrot.slane %v4696_v0, 5  ;;  %v4701_v55 = vshrl.u32 %v4568_v3, 16  ;;  %v6564_v30 = vld [vmem:[#allocation2 + $0x44] sm:$0x1] }
 0x353   : > { %v3968_v56 = vrot.slane %v6564_v30, 5 }
 0x354   : > { %8840 = vst [vmem:[#allocation37_spill] sm:$0xff] %v8134_v42  ;;  %6397 = vmatmul.msk.bf16.gmra.mxu1 %vm2184_vm14, %v5024_v25  ;;  %v5424_v25 = vpack.c.b16 %v5397_v20, %v5396_v48  ;;  %v4699_v16 = vsel %vm6846_vm2, %v4694_v8, %v4698_v41  ;;  %v4703_v35 = vrot.slane %v4701_v55, 4  ;;  %v4710_v48 = vshll.u32 %v8116_v47, 16  ;;  %v5215_v55 = vld [vmem:[#allocation2 + $0x54] sm:$0xe] }
 0x355   : > { %v2871_v34 = vpop.f32.mrf.mxu3  ;;  %v4714_v20 = vshrl.u32 %v8116_v47, 16  ;;  %v4997_v3 = vunpack.c.l.b16 %v4699_v16 }
 0x356   : > { %v2920_v39 = vadd.f32 %v2871_v34, %v7709_v60  ;;  %v4689_v60 = vsel %vm6846_vm2, %v4684_v58, %v4688_v15  ;;  %v8150_v34 = vld [vmem:[#allocation2 + $0x58] sm:$0xf]  ;;  %v8156_v15 = vld [vmem:[#allocation2 + $0x5c] sm:$0x1] }
 0x357   : > { %v8143_v62 = vpop.f32.mrf.mxu2  ;;  %v4996_v0 = vunpack.c.l.b16 %v4689_v60  ;;  %v5311_v58 = vrot.slane %v8150_v34, 5  ;;  %v5314_v32 = vrot.slane %v8156_v15, 5  ;;  %v4716_v47 = vrot.slane %v4714_v20, 4 }
 0x358   : > { %8841 = vst [vmem:[#allocation38_spill] sm:$0xff] %v8143_v62  ;;  %v6416_v62 = vrot.slane %v5215_v55, 9 }
 0x359   : > { %v3157_v45 = vpop.f32.mrf.mxu1  ;;  %v5025_v8 = vpack.c.b16 %v4997_v3, %v4996_v0 }
 0x35a   : > { %v8145_v12 = vadd.f32 %v3157_v45, %v2920_v39  ;;  %6300 = vmatmul.msk.bf16.gmra.mxu3 %vm2184_vm14, %v4084_v17  ;;  %v3967_v39 = vrot.slane %v3965_v11, 4  ;;  %v4706_v17 = vrot.slane %v4704_v36, 5  ;;  %v5313_v36 = vrot.slane %v5311_v58, 4 }
 0x35b   : > { %v5312_v0 = vsel %vm7599_vm4, %v6416_v62, %v5311_v58  ;;  %v4571_v58 = vld [vmem:[#allocation2 + $0x54] sm:$0xf] }
 0x35c   : > { %8842 = vst [vmem:[#allocation39_spill] sm:$0xff] %v8145_v12  ;;  %6432 = vmatmul.msk.bf16.gmra.mxu2 %vm2184_vm14, %v5424_v25  ;;  %v3969_v33 = vsel %vm7599_vm4, %v3967_v39, %v3968_v56  ;;  %v4707_v25 = vor.u32 %v4706_v17, %v4703_v35  ;;  %v8845_v56 = vld [vmem:[#allocation4_spill] sm:$0xff] }
 0x35d   : > { %v2874_v53 = vpop.f32.mrf.mxu3  ;;  %v4058_v30 = vunpack.c.l.b16 %v3969_v33  ;;  %v5398_v33 = vunpack.c.l.b16 %v5312_v0 }
 0x35e   : > { %v2921_v59 = vadd.f32 %v2874_v53, %v7721_v37  ;;  %v3966_v37 = vsel %vm7599_vm4, %v6284_v31, %v3965_v11  ;;  %v4712_v53 = vrot.slane %v4710_v48, 5  ;;  %v5315_v11 = vsel %vm7599_vm4, %v5313_v36, %v5314_v32  ;;  %v3876_v32 = vld [vmem:[#allocation2 + $0x48] sm:$0xe]  ;;  %v8184_v36 = vld [vmem:[#allocation2 + $0x64] sm:$0xf] }
 0x35f   : > { %v8161_v41 = vpop.f32.mrf.mxu2  ;;  %v4057_v16 = vunpack.c.l.b16 %v3966_v37  ;;  %v4720_v31 = vshll.u32 %v8122_v49, 16  ;;  %v4708_v39 = vrot.slane %v4707_v25, 4  ;;  %v5399_v48 = vunpack.c.l.b16 %v5315_v11  ;;  %v6566_v11 = vld [vmem:[#allocation2 + $0x50] sm:$0x1] }
 0x360   : > { %8843 = vst [vmem:[#allocation40_spill] sm:$0xff] %v8161_v41  ;;  %v4717_v35 = vor.u32 %v4716_v47, %v4712_v53  ;;  %v4734_v25 = vshll.u32 %v8150_v34, 16 }
 0x361   : > { %v3160_v45 = vpop.f32.mrf.mxu1  ;;  %v4085_v17 = vpack.c.b16 %v4058_v30, %v4057_v16  ;;  %v4713_v49 = vsel %vm6846_vm2, %v4708_v39, %v4712_v53  ;;  %v5425_v55 = vpack.c.b16 %v5399_v48, %v5398_v33  ;;  %v6285_v30 = vrot.slane %v3876_v32, 9  ;;  %v8192_v39 = vld [vmem:[#allocation2 + $0x68] sm:$0x1] }
 0x362   : > { %v8168_v60 = vadd.f32 %v3160_v45, %v2921_v59  ;;  %v4722_v45 = vrot.slane %v4720_v31, 5  ;;  %v3975_v31 = vrot.slane %v6566_v11, 5  ;;  %v4998_v0 = vunpack.c.l.b16 %v4713_v49 }
 0x363   : > { %v5321_v49 = vrot.slane %v8192_v39, 5 }
 0x364   : > { %8844 = vst [vmem:[#allocation41_spill] sm:$0xff] %v8168_v60  ;;  %6398 = vmatmul.msk.bf16.gmra.mxu1 %vm2184_vm14, %v5025_v8  ;;  %v6565_v8 = vld [vmem:[#allocation2 + $0x4c] sm:$0xf] }
 0x365   : > { %v2876_v41 = vpop.f32.mrf.mxu3  ;;  %v3972_v62 = vrot.slane %v6565_v8, 5  ;;  %v5216_v8 = vld [vmem:[#allocation2 + $0x60] sm:$0xe] }
 0x366   : > { %v2922_v59 = vadd.f32 %v2876_v41, %v8845_v56  ;;  %v4718_v41 = vrot.slane %v4717_v35, 4  ;;  %v4738_v56 = vshrl.u32 %v8150_v34, 16  ;;  %v4725_v35 = vshrl.u32 %v4571_v58, 16 }
 0x367   : > { %v8177_v3 = vpop.f32.mrf.mxu2  ;;  %v3974_v48 = vrot.slane %v3972_v62, 4  ;;  %v3973_v34 = vsel %vm7599_vm4, %v6285_v30, %v3972_v62 }
 0x368   : > { %8846 = vst [vmem:[#allocation4_spill] sm:$0xff] %v8177_v3  ;;  %v4723_v16 = vsel %vm6846_vm2, %v4718_v41, %v4722_v45  ;;  %v4736_v45 = vrot.slane %v4734_v25, 5  ;;  %v4744_v25 = vshll.u32 %v8156_v15, 16 }
 0x369   : > { %v3162_v20 = vpop.f32.mrf.mxu1  ;;  %v4999_v33 = vunpack.c.l.b16 %v4723_v16  ;;  %v6417_v16 = vrot.slane %v5216_v8, 9 }
 0x36a   : > { %v8179_v37 = vadd.f32 %v3162_v20, %v2922_v59  ;;  %6301 = vmatmul.msk.bf16.gmra.mxu3 %vm2184_vm14, %v4085_v17  ;;  %v8848_v59 = vld [vmem:[#allocation5_spill] sm:$0xff]  ;;  %v4728_v17 = vshll.u32 %v4571_v58, 16  ;;  %v5318_v20 = vrot.slane %v8184_v36, 5 }
 0x36b   : > { %v5026_v58 = vpack.c.b16 %v4999_v33, %v4998_v0 }
 0x36c   : > { %8847 = vst [vmem:[#allocation42_spill] sm:$0xff] %v8179_v37  ;;  %6433 = vmatmul.msk.bf16.gmra.mxu2 %vm2184_vm14, %v5425_v55  ;;  %v3976_v55 = vsel %vm7599_vm4, %v3974_v48, %v3975_v31  ;;  %v4730_v3 = vrot.slane %v4728_v17, 5  ;;  %v5320_v37 = vrot.slane %v5318_v20, 4  ;;  %v8851_v48 = vld [vmem:[#allocation6_spill] sm:$0xff]  ;;  %v5319_v0 = vsel %vm7599_vm4, %v6417_v16, %v5318_v20  ;;  %v6567_v20 = vld [vmem:[#allocation2 + $0x58] sm:$0xf] }
 0x36d   : > { %v2879_v47 = vpop.f32.mrf.mxu3  ;;  %v4060_v60 = vunpack.c.l.b16 %v3976_v55  ;;  %v4574_v55 = vld [vmem:[#allocation2 + $0x60] sm:$0xf] }
 0x36e   : > { %v2923_v53 = vadd.f32 %v2879_v47, %v8848_v59  ;;  %v4740_v47 = vrot.slane %v4738_v56, 4  ;;  %v4727_v59 = vrot.slane %v4725_v35, 4  ;;  %v5322_v30 = vsel %vm7599_vm4, %v5320_v37, %v5321_v49 }
 0x36f   : > { %v8195_v41 = vpop.f32.mrf.mxu2  ;;  %v4746_v35 = vrot.slane %v4744_v25, 5  ;;  %v5401_v33 = vunpack.c.l.b16 %v5322_v30  ;;  %v5400_v37 = vunpack.c.l.b16 %v5319_v0  ;;  %v4749_v16 = vshrl.u32 %v4574_v55, 16  ;;  %v6568_v30 = vld [vmem:[#allocation2 + $0x5c] sm:$0x1] }
 0x370   : > { %8849 = vst [vmem:[#allocation5_spill] sm:$0xff] %v8195_v41  ;;  %v4059_v41 = vunpack.c.l.b16 %v3973_v34  ;;  %v4741_v31 = vor.u32 %v4740_v47, %v4736_v45  ;;  %v8213_v34 = vld [vmem:[#allocation2 + $0x70] sm:$0xf]  ;;  %v3979_v47 = vrot.slane %v6567_v20, 5 }
 0x371   : > { %v3165_v32 = vpop.f32.mrf.mxu1 }
 0x372   : > { %v8202_v11 = vadd.f32 %v3165_v32, %v2923_v53  ;;  %v4731_v53 = vor.u32 %v4730_v3, %v4727_v59  ;;  %v4086_v17 = vpack.c.b16 %v4060_v60, %v4059_v41  ;;  %v4742_v32 = vrot.slane %v4741_v31, 4 }
 0x373   : > { %v5426_v60 = vpack.c.b16 %v5401_v33, %v5400_v37  ;;  %v5325_v59 = vrot.slane %v8213_v34, 5  ;;  %v3982_v31 = vrot.slane %v6568_v30, 5  ;;  %v4751_v37 = vrot.slane %v4749_v16, 4 }
 0x374   : > { %8850 = vst [vmem:[#allocation43_spill] sm:$0xff] %v8202_v11  ;;  %6399 = vmatmul.msk.bf16.gmra.mxu1 %vm2184_vm14, %v5026_v58  ;;  %v4732_v49 = vrot.slane %v4731_v53, 4  ;;  %v4747_v3 = vsel %vm6846_vm2, %v4742_v32, %v4746_v35  ;;  %v4762_v53 = vshrl.u32 %v8184_v36, 16  ;;  %v4768_v16 = vshll.u32 %v8192_v39, 16 }
 0x375   : > { %v2881_v62 = vpop.f32.mrf.mxu3  ;;  %v5001_v35 = vunpack.c.l.b16 %v4747_v3  ;;  %v5327_v32 = vrot.slane %v5325_v59, 4  ;;  %v5217_v3 = vld [vmem:[#allocation2 + $0x6c] sm:$0xe] }
 0x376   : > { %v2924_v56 = vadd.f32 %v2881_v62, %v8851_v48  ;;  %v4737_v41 = vsel %vm6846_vm2, %v4732_v49, %v4736_v45  ;;  %v3877_v62 = vld [vmem:[#allocation2 + $0x54] sm:$0xe]  ;;  %v4752_v48 = vshll.u32 %v4574_v55, 16 }
 0x377   : > { %v8211_v15 = vpop.f32.mrf.mxu2  ;;  %v5000_v33 = vunpack.c.l.b16 %v4737_v41  ;;  %v6286_v45 = vrot.slane %v3877_v62, 9 }
 0x378   : > { %8852 = vst [vmem:[#allocation6_spill] sm:$0xff] %v8211_v15  ;;  %v4754_v30 = vrot.slane %v4752_v48, 5  ;;  %v4764_v15 = vrot.slane %v4762_v53, 4  ;;  %v8856_v53 = vld [vmem:[#allocation7_spill] sm:$0xff] }
 0x379   : > { %v3167_v8 = vpop.f32.mrf.mxu1  ;;  %v3980_v41 = vsel %vm7599_vm4, %v6286_v45, %v3979_v47 }
 0x37a   : > { %v8215_v58 = vadd.f32 %v3167_v8, %v2924_v56  ;;  %6302 = vmatmul.msk.bf16.gmra.mxu3 %vm2184_vm14, %v4086_v17  ;;  %v4758_v56 = vshll.u32 %v8184_v36, 16  ;;  %v3981_v17 = vrot.slane %v3979_v47, 4  ;;  %v8227_v8 = vld [vmem:[#allocation2 + $0x74] sm:$0x1]  ;;  %v4755_v48 = vor.u32 %v4754_v30, %v4751_v37  ;;  %v4577_v37 = vld [vmem:[#allocation2 + $0x6c] sm:$0xf] }
 0x37b   : > { %v6569_v30 = vld [vmem:[#allocation2 + $0x64] sm:$0xf] }
 0x37c   : > { %8853 = vst [vmem:[#allocation44_spill] sm:$0xff] %v8215_v58  ;;  %6434 = vmatmul.msk.bf16.gmra.mxu2 %vm2184_vm14, %v5426_v60  ;;  %v3983_v55 = vsel %vm7599_vm4, %v3981_v17, %v3982_v31  ;;  %v4760_v36 = vrot.slane %v4758_v56, 5  ;;  %v5027_v60 = vpack.c.b16 %v5001_v35, %v5000_v33  ;;  %v6418_v58 = vrot.slane %v5217_v3, 9 }
 0x37d   : > { %v2884_v25 = vpop.f32.mrf.mxu3  ;;  %v4062_v62 = vunpack.c.l.b16 %v3983_v55  ;;  %v4061_v35 = vunpack.c.l.b16 %v3980_v41  ;;  %v4770_v17 = vrot.slane %v4768_v16, 5  ;;  %v4756_v55 = vrot.slane %v4755_v48, 4 }
 0x37e   : > { %v2925_v0 = vadd.f32 %v2884_v25, %v7764_v54  ;;  %v5328_v25 = vrot.slane %v8227_v8, 5  ;;  %v4765_v56 = vor.u32 %v4764_v15, %v4760_v36  ;;  %v5326_v47 = vsel %vm7599_vm4, %v6418_v58, %v5325_v59  ;;  %v3878_v15 = vld [vmem:[#allocation2 + $0x60] sm:$0xe]  ;;  %v8252_v59 = vld [vmem:[#allocation2 + $0x7c] sm:$0xf] }
 0x37f   : > { %v8229_v20 = vpop.f32.mrf.mxu2  ;;  %v4087_v33 = vpack.c.b16 %v4062_v62, %v4061_v35  ;;  %v3986_v58 = vrot.slane %v6569_v30, 5  ;;  %v4782_v41 = vshll.u32 %v8213_v34, 16  ;;  %v6287_v48 = vrot.slane %v3878_v15, 9 }
 0x380   : > { %8854 = vst [vmem:[#allocation45_spill] sm:$0xff] %v8229_v20  ;;  %v5329_v31 = vsel %vm7599_vm4, %v5327_v32, %v5328_v25  ;;  %v5402_v32 = vunpack.c.l.b16 %v5326_v47  ;;  %v4786_v25 = vshrl.u32 %v8213_v34, 16 }
 0x381   : > { %v3170_v49 = vpop.f32.mrf.mxu1  ;;  %v5403_v45 = vunpack.c.l.b16 %v5329_v31  ;;  %v4761_v31 = vsel %vm6846_vm2, %v4756_v55, %v4760_v36  ;;  %v3988_v34 = vrot.slane %v3986_v58, 4 }
 0x382   : > { %v8233_v54 = vadd.f32 %v3170_v49, %v2925_v0  ;;  %v4788_v30 = vrot.slane %v4786_v25, 4 }
 0x383   : > { %v5427_v16 = vpack.c.b16 %v5403_v45, %v5402_v32  ;;  %v4776_v45 = vshll.u32 %v4577_v37, 16  ;;  %v4784_v32 = vrot.slane %v4782_v41, 5 }
 0x384   : > { %8855 = vst [vmem:[#allocation46_spill] sm:$0xff] %v8233_v54  ;;  %6400 = vmatmul.msk.bf16.gmra.mxu1 %vm2184_vm14, %v5027_v60  ;;  %v4766_v60 = vrot.slane %v4765_v56, 4  ;;  %v6570_v56 = vld [vmem:[#allocation2 + $0x68] sm:$0x1]  ;;  %v6571_v54 = vld [vmem:[#allocation2 + $0x70] sm:$0xf] }
 0x385   : > { %v2886_v20 = vpop.f32.mrf.mxu3  ;;  %v4778_v41 = vrot.slane %v4776_v45, 5  ;;  %v4789_v25 = vor.u32 %v4788_v30, %v4784_v32 }
 0x386   : > { %v2926_v0 = vadd.f32 %v2886_v20, %v8856_v53  ;;  %v4771_v20 = vsel %vm6846_vm2, %v4766_v60, %v4770_v17  ;;  %v3989_v53 = vrot.slane %v6570_v56, 5  ;;  %v8260_v17 = vld [vmem:[#allocation2 + $0x80] sm:$0x1]  ;;  %v4773_v60 = vshrl.u32 %v4577_v37, 16 }
 0x387   : > { %v8245_v49 = vpop.f32.mrf.mxu2  ;;  %v5003_v47 = vunpack.c.l.b16 %v4771_v20  ;;  %v5335_v20 = vrot.slane %v8260_v17, 5 }
 0x388   : > { %8857 = vst [vmem:[#allocation7_spill] sm:$0xff] %v8245_v49  ;;  %v5002_v49 = vunpack.c.l.b16 %v4761_v31  ;;  %v3990_v15 = vsel %vm7599_vm4, %v3988_v34, %v3989_v53  ;;  %v4775_v37 = vrot.slane %v4773_v60, 4 }
 0x389   : > { %v3172_v39 = vpop.f32.mrf.mxu1  ;;  %v4064_v31 = vunpack.c.l.b16 %v3990_v15 }
 0x38a   : > { %v8247_v3 = vadd.f32 %v3172_v39, %v2926_v0  ;;  %6303 = vmatmul.msk.bf16.gmra.mxu3 %vm2184_vm14, %v4087_v33  ;;  %v8859_v0 = vld [vmem:[#allocation8_spill] sm:$0xff]  ;;  %v5218_v33 = vld [vmem:[#allocation2 + $0x78] sm:$0xe]  ;;  %v5332_v39 = vrot.slane %v8252_v59, 5  ;;  %v5028_v56 = vpack.c.b16 %v5003_v47, %v5002_v49  ;;  %v8862_v49 = vld [vmem:[#allocation9_spill] sm:$0xff] }
 0x38c   : > { %8858 = vst [vmem:[#allocation47_spill] sm:$0xff] %v8247_v3  ;;  %6435 = vmatmul.msk.bf16.gmra.mxu2 %vm2184_vm14, %v5427_v16  ;;  %v5334_v3 = vrot.slane %v5332_v39, 4 }
 0x38d   : > { %v2889_v62 = vpop.f32.mrf.mxu3 }
 0x38e   : > { %v2927_v35 = vadd.f32 %v2889_v62, %v8859_v0  ;;  %v6419_v62 = vrot.slane %v5218_v33, 9  ;;  %v3987_v0 = vsel %vm7599_vm4, %v6287_v48, %v3986_v58  ;;  %v5336_v33 = vsel %vm7599_vm4, %v5334_v3, %v5335_v20 }
 0x38f   : > { %v8263_v55 = vpop.f32.mrf.mxu2  ;;  %v4063_v34 = vunpack.c.l.b16 %v3987_v0  ;;  %v4779_v58 = vor.u32 %v4778_v41, %v4775_v37  ;;  %v4790_v48 = vrot.slane %v4789_v25, 4  ;;  %v5405_v30 = vunpack.c.l.b16 %v5336_v33  ;;  %v8286_v37 = vld [vmem:[#allocation2 + $0x88] sm:$0xf] }
 0x390   : > { %8860 = vst [vmem:[#allocation8_spill] sm:$0xff] %v8263_v55  ;;  %v5333_v53 = vsel %vm7599_vm4, %v6419_v62, %v5332_v39  ;;  %v3993_v39 = vrot.slane %v6571_v54, 5  ;;  %v8865_v54 = vld [vmem:[#allocation10_spill] sm:$0xff] }
 0x391   : > { %v3175_v36 = vpop.f32.mrf.mxu1  ;;  %v4088_v60 = vpack.c.b16 %v4064_v31, %v4063_v34  ;;  %v5404_v45 = vunpack.c.l.b16 %v5333_v53  ;;  %v3879_v31 = vld [vmem:[#allocation2 + $0x6c] sm:$0xe]  ;;  %v8292_v34 = vld [vmem:[#allocation2 + $0x8c] sm:$0x1] }
 0x392   : > { %v8268_v16 = vadd.f32 %v3175_v36, %v2927_v35  ;;  %v4792_v35 = vshll.u32 %v8227_v8, 16  ;;  %v4580_v36 = vld [vmem:[#allocation2 + $0x78] sm:$0xf]  ;;  %v4780_v8 = vrot.slane %v4779_v58, 4  ;;  %v3995_v53 = vrot.slane %v3993_v39, 4 }
 0x393   : > { %v4800_v20 = vshll.u32 %v4580_v36, 16  ;;  %v5428_v0 = vpack.c.b16 %v5405_v30, %v5404_v45  ;;  %v4806_v58 = vshll.u32 %v8252_v59, 16 }
 0x394   : > { %8861 = vst [vmem:[#allocation48_spill] sm:$0xff] %v8268_v16  ;;  %6401 = vmatmul.msk.bf16.gmra.mxu1 %vm2184_vm14, %v5028_v56  ;;  %v4794_v16 = vrot.slane %v4792_v35, 5  ;;  %v4785_v25 = vsel %vm6846_vm2, %v4780_v8, %v4784_v32  ;;  %v4810_v32 = vshrl.u32 %v8252_v59, 16 }
 0x395   : > { %v2891_v55 = vpop.f32.mrf.mxu3  ;;  %v4802_v45 = vrot.slane %v4800_v20, 5  ;;  %v5004_v30 = vunpack.c.l.b16 %v4785_v25  ;;  %v4808_v59 = vrot.slane %v4806_v58, 5 }
 0x396   : > { %v2928_v47 = vadd.f32 %v2891_v55, %v8862_v49  ;;  %v4795_v3 = vsel %vm6846_vm2, %v4790_v48, %v4794_v16  ;;  %v4797_v55 = vshrl.u32 %v4580_v36, 16  ;;  %v6572_v49 = vld [vmem:[#allocation2 + $0x74] sm:$0x1]  ;;  %v5219_v16 = vld [vmem:[#allocation2 + $0x84] sm:$0xe]  ;;  %v5339_v48 = vrot.slane %v8286_v37, 5 }
 0x397   : > { %v8279_v15 = vpop.f32.mrf.mxu2  ;;  %v5005_v35 = vunpack.c.l.b16 %v4795_v3  ;;  %v6288_v36 = vrot.slane %v3879_v31, 9  ;;  %v4812_v25 = vrot.slane %v4810_v32, 4 }
 0x398   : > { %8863 = vst [vmem:[#allocation9_spill] sm:$0xff] %v8279_v15  ;;  %v5341_v20 = vrot.slane %v5339_v48, 4 }
 0x399   : > { %v3177_v56 = vpop.f32.mrf.mxu1 }
 0x39a   : > { %v8281_v62 = vadd.f32 %v3177_v56, %v2928_v47  ;;  %6304 = vmatmul.msk.bf16.gmra.mxu3 %vm2184_vm14, %v4088_v60  ;;  %v3996_v47 = vrot.slane %v6572_v49, 5  ;;  %v4799_v60 = vrot.slane %v4797_v55, 4  ;;  %v5029_v49 = vpack.c.b16 %v5005_v35, %v5004_v30  ;;  %v8867_v35 = vld [vmem:[#allocation12_spill] sm:$0xff] }
 0x39b   : > { %v3994_v55 = vsel %vm7599_vm4, %v6288_v36, %v3993_v39  ;;  %v4813_v36 = vor.u32 %v4812_v25, %v4808_v59  ;;  %v8870_v25 = vld [vmem:[#allocation11_spill] sm:$0xff] }
 0x39c   : > { %8864 = vst [vmem:[#allocation49_spill] sm:$0xff] %v8281_v62  ;;  %6436 = vmatmul.msk.bf16.gmra.mxu2 %vm2184_vm14, %v5428_v0  ;;  %v3997_v3 = vsel %vm7599_vm4, %v3995_v53, %v3996_v47  ;;  %v6420_v0 = vrot.slane %v5219_v16, 9  ;;  %v4803_v15 = vor.u32 %v4802_v45, %v4799_v60  ;;  %v4065_v30 = vunpack.c.l.b16 %v3994_v55  ;;  %v4583_v60 = vld [vmem:[#allocation2 + $0x84] sm:$0xf] }
 0x39d   : > { %v2894_v41 = vpop.f32.mrf.mxu3  ;;  %v4066_v31 = vunpack.c.l.b16 %v3997_v3 }
 0x39e   : > { %v2929_v33 = vadd.f32 %v2894_v41, %v8865_v54  ;;  %v5342_v41 = vrot.slane %v8292_v34, 5  ;;  %v5340_v53 = vsel %vm7599_vm4, %v6420_v0, %v5339_v48  ;;  %v4804_v39 = vrot.slane %v4803_v15, 4  ;;  %v3880_v48 = vld [vmem:[#allocation2 + $0x78] sm:$0xe] }
 0x39f   : > { %v8297_v8 = vpop.f32.mrf.mxu2  ;;  %v4089_v58 = vpack.c.b16 %v4066_v31, %v4065_v30  ;;  %v5406_v45 = vunpack.c.l.b16 %v5340_v53  ;;  %v4821_v0 = vshrl.u32 %v4583_v60, 16  ;;  %v4814_v15 = vrot.slane %v4813_v36, 4 }
 0x3a0   : > { %v5343_v47 = vsel %vm7599_vm4, %v5341_v20, %v5342_v41  ;;  %v6573_v41 = vld [vmem:[#allocation2 + $0x7c] sm:$0xf] }
 0x3a1   : > { %v3180_v56 = vpop.f32.mrf.mxu1  ;;  %v5407_v32 = vunpack.c.l.b16 %v5343_v47  ;;  %v4000_v55 = vrot.slane %v6573_v41, 5  ;;  %v8869_v20 = vld [vmem:[#allocation15_spill] sm:$0xff]  ;;  %v8322_v47 = vld [vmem:[#allocation2 + $0x94] sm:$0xf] }
 0x3a2   : > { %v8302_v54 = vadd.f32 %v3180_v56, %v2929_v33  ;;  %v4816_v33 = vshll.u32 %v8260_v17, 16  ;;  %v4824_v17 = vshll.u32 %v4583_v60, 16  ;;  %v3839_v31 = vadd.f32 %v8870_v25, %v8869_v20 }
 0x3a3   : > { %v5429_v53 = vpack.c.b16 %v5407_v32, %v5406_v45  ;;  %v6289_v60 = vrot.slane %v3880_v48, 9  ;;  %v5220_v45 = vld [vmem:[#allocation2 + $0x90] sm:$0xe]  ;;  %v4823_v32 = vrot.slane %v4821_v0, 4  ;;  %v4002_v20 = vrot.slane %v4000_v55, 4 }
 0x3a4   : > { %8866 = vst [vmem:[#allocation10_spill] sm:$0xff] %v8302_v54  ;;  %6402 = vmatmul.msk.bf16.gmra.mxu1 %vm2184_vm14, %v5029_v49  ;;  %v4818_v49 = vrot.slane %v4816_v33, 5  ;;  %v4830_v33 = vshll.u32 %v8286_v37, 16  ;;  %v4826_v41 = vrot.slane %v4824_v17, 5  ;;  %v5346_v25 = vrot.slane %v8322_v47, 5 }
 0x3a5   : > { %v2896_v62 = vpop.f32.mrf.mxu3  ;;  %v6421_v17 = vrot.slane %v5220_v45, 9 }
 0x3a6   : > { %v2930_v16 = vadd.f32 %v2896_v62, %v8867_v35  ;;  %v4809_v62 = vsel %vm6846_vm2, %v4804_v39, %v4808_v59  ;;  %v4834_v35 = vshrl.u32 %v8286_v37, 16  ;;  %v4819_v30 = vsel %vm6846_vm2, %v4814_v15, %v4818_v49  ;;  %v8332_v37 = vpop.f32.mrf.mxu0 }
 0x3a7   : > { %v8313_v3 = vpop.f32.mrf.mxu2  ;;  %v5006_v36 = vunpack.c.l.b16 %v4809_v62  ;;  %v5007_v49 = vunpack.c.l.b16 %v4819_v30  ;;  %v4832_v48 = vrot.slane %v4830_v33, 5  ;;  %v4001_v62 = vsel %vm7599_vm4, %v6289_v60, %v4000_v55  ;;  %v8872_v30 = vld [vmem:[#allocation13_spill] sm:$0xff] }
 0x3a8   : > { %v4836_v15 = vrot.slane %v4834_v35, 4  ;;  %v4827_v42 = vor.u32 %v4826_v41, %v4823_v32  ;;  %v4840_v33 = vshll.u32 %v8292_v34, 16  ;;  %v4067_v55 = vunpack.c.l.b16 %v4001_v62  ;;  %v4586_v41 = vld [vmem:[#allocation2 + $0x90] sm:$0xf] }
 0x3a9   : > { %v3182_v56 = vpop.f32.mrf.mxu1  ;;  %v5030_v12 = vpack.c.b16 %v5007_v49, %v5006_v36  ;;  %v5347_v34 = vsel %vm7599_vm4, %v6421_v17, %v5346_v25 }
 0x3aa   : > { %v8315_v54 = vadd.f32 %v3182_v56, %v2930_v16  ;;  %6305 = vmatmul.msk.bf16.gmra.mxu3 %vm2184_vm14, %v4089_v58  ;;  %v6574_v58 = vld [vmem:[#allocation2 + $0x80] sm:$0x1]  ;;  %v8329_v56 = vld [vmem:[#allocation2 + $0x98] sm:$0x1]  ;;  %v4828_v32 = vrot.slane %v4827_v42, 4  ;;  %v5408_v62 = vunpack.c.l.b16 %v5347_v34  ;;  %v4858_v34 = vshrl.u32 %v8322_v47, 16 }
 0x3ab   : > { %v4003_v59 = vrot.slane %v6574_v58, 5 }
 0x3ac   : > { %8868 = vst [vmem:[#allocation12_spill] sm:$0xff] %v8315_v54  ;;  %6437 = vmatmul.msk.bf16.gmra.mxu2 %vm2184_vm14, %v5429_v53  ;;  %v8871_v54 = vld [vmem:[#allocation16_spill] sm:$0xff]  ;;  %v5349_v53 = vrot.slane %v8329_v56, 5 }
 0x3ad   : > { %v4157_v16 = vpop.f32.mrf.mxu3  ;;  %v4004_v0 = vsel %vm7599_vm4, %v4002_v20, %v4003_v59  ;;  %v6575_v59 = vld [vmem:[#allocation2 + $0x88] sm:$0xf]  ;;  %v4842_v20 = vrot.slane %v4840_v33, 5  ;;  %v4854_v33 = vshll.u32 %v8322_v47, 16 }
 0x3ae   : > { %v4237_v39 = vadd.f32 %v4157_v16, %v3839_v31  ;;  %v4068_v60 = vunpack.c.l.b16 %v4004_v0  ;;  %v4007_v36 = vrot.slane %v6575_v59, 5  ;;  %v8363_v59 = vpop.f32.mrf.mxu0 }
 0x3af   : > { %v8335_v31 = vpop.f32.mrf.mxu2 }
 0x3b0   : > { %v4524_v11 = vadd.f32 %v8871_v54, %v4237_v39  ;;  %v5348_v54 = vrot.slane %v5346_v25, 4  ;;  %v3840_v39 = vadd.f32 %v8872_v30, %v7853_v40  ;;  %v4848_v30 = vshll.u32 %v4586_v41, 16 }
 0x3b1   : > { %v5098_v58 = vpop.f32.mrf.mxu1 }
 0x3b2   : > { %v5178_v16 = vadd.f32 %v5098_v58, %v4524_v11  ;;  %v4090_v58 = vpack.c.b16 %v4068_v60, %v4067_v55  ;;  %v6576_v60 = vld [vmem:[#allocation2 + $0x8c] sm:$0x1] }
 0x3b4   : > { %v5576_v35 = vadd.f32 %v8297_v8, %v5178_v16  ;;  %6403 = vmatmul.msk.bf16.gmra.mxu1 %vm2184_vm14, %v5030_v12  ;;  %v5350_v8 = vsel %vm7599_vm4, %v5348_v54, %v5349_v53  ;;  %v4837_v12 = vor.u32 %v4836_v15, %v4832_v48  ;;  %v3881_v16 = vld [vmem:[#allocation2 + $0x84] sm:$0xe]  ;;  %v4009_v15 = vrot.slane %v4007_v36, 4 }
 0x3b5   : > { %v4159_v11 = vpop.f32.mrf.mxu3  ;;  %v5409_v0 = vunpack.c.l.b16 %v5350_v8  ;;  %v4845_v54 = vshrl.u32 %v4586_v41, 16  ;;  %v6290_v55 = vrot.slane %v3881_v16, 9  ;;  %v4850_v16 = vrot.slane %v4848_v30, 5 }
 0x3b6   : > { %v5608_v40 = vpack.c.bf16 %v5576_v35, %v5576_v35  ;;  %v4238_v45 = vadd.f32 %v4159_v11, %v3840_v39  ;;  %v4838_v53 = vrot.slane %v4837_v12, 4  ;;  %v4010_v11 = vrot.slane %v6576_v60, 5  ;;  %v8395_v23 = vpop.f32.mrf.mxu0 }
 0x3b7   : > { %v8361_v17 = vpop.f32.mrf.mxu2  ;;  %v5744_v8 = vmul.f32 %v5576_v35, %v5576_v35 }
 0x3b8   : > { %5640 = vst.msk [vmem:[%s8352_s11] sm:$0xf] %vm734_vm11, %v5608_v40  ;;  %v4525_v49 = vadd.f32 %v7862_v26, %v4238_v45  ;;  %v4833_v26 = vsel %vm6846_vm2, %v4828_v32, %v4832_v48  ;;  %v4843_v39 = vsel %vm6846_vm2, %v4838_v53, %v4842_v20  ;;  %v8873_v40 = vld [vmem:[#allocation19_spill] sm:$0xff]  ;;  %v8874_v45 = vld [vmem:[#allocation14_spill] sm:$0xff]  ;;  %v5673_v48 = vsel %vm5672_vm3, %v5576_v35, 0.0 }
 0x3b9   : > { %v5100_v25 = vpop.f32.mrf.mxu1  ;;  %v3841_v41 = vadd.f32 %v8874_v45, %v8873_v40  ;;  %v4847_v20 = vrot.slane %v4845_v54, 4  ;;  %v4011_v35 = vsel %vm7599_vm4, %v4009_v15, %v4010_v11  ;;  %v5776_v30 = vsel %vm5672_vm3, %v5744_v8, 0.0 }
 0x3ba   : > { %v5179_v42 = vadd.f32 %v5100_v25, %v4525_v49  ;;  %6306 = vmatmul.msk.bf16.gmra.mxu3 %vm2184_vm14, %v4090_v58  ;;  %v5430_v49 = vpack.c.b16 %v5409_v0, %v5408_v62  ;;  %v8375_v58 = vld [vmem:[#allocation2 + $0xa0] sm:$0xf]  ;;  %v5008_v25 = vunpack.c.l.b16 %v4833_v26  ;;  %v4008_v0 = vsel %vm7599_vm4, %v6290_v55, %v4007_v36 }
 0x3bb   : > { %v5353_v54 = vrot.slane %v8375_v58, 5  ;;  %v5009_v45 = vunpack.c.l.b16 %v4843_v39  ;;  %v4851_v55 = vor.u32 %v4850_v16, %v4847_v20  ;;  %v4069_v24 = vunpack.c.l.b16 %v4008_v0  ;;  %v8876_v39 = vld [vmem:[#allocation22_spill] sm:$0xff] }
 0x3bc   : > { %v5577_v12 = vadd.f32 %v8313_v3, %v5179_v42  ;;  %6438 = vmatmul.msk.bf16.gmra.mxu2 %vm2184_vm14, %v5430_v49  ;;  %v8380_v3 = vld [vmem:[#allocation2 + $0xa4] sm:$0x1]  ;;  %v5221_v42 = vld [vmem:[#allocation2 + $0x9c] sm:$0xe]  ;;  %v4070_v8 = vunpack.c.l.b16 %v4011_v35  ;;  %v4864_v16 = vshll.u32 %v8329_v56, 16 }
 0x3bd   : > { %v4162_v32 = vpop.f32.mrf.mxu3  ;;  %v5356_v36 = vrot.slane %v8380_v3, 5  ;;  %v5031_v11 = vpack.c.b16 %v5009_v45, %v5008_v25  ;;  %v5355_v5 = vrot.slane %v5353_v54, 4  ;;  %v3882_v56 = vld [vmem:[#allocation2 + $0x90] sm:$0xe] }
 0x3be   : > { %v5609_v53 = vpack.c.bf16 %v5577_v12, %v5577_v12  ;;  %v5674_v60 = vsel %vm5672_vm3, %v5577_v12, 0.0  ;;  %v5745_v47 = vmul.f32 %v5577_v12, %v5577_v12  ;;  %v4239_v28 = vadd.f32 %v4162_v32, %v3841_v41  ;;  %v8875_v12 = vld [vmem:[#allocation21_spill] sm:$0xff] }
 0x3bf   : > { %v5675_v62 = vadd.f32 %v5674_v60, %v5673_v48  ;;  %v8392_v48 = vpop.f32.mrf.mxu2  ;;  %v6422_v32 = vrot.slane %v5221_v42, 9  ;;  %v4856_v60 = vrot.slane %v4854_v33, 5  ;;  %v6577_v42 = vld [vmem:[#allocation2 + $0x94] sm:$0xf]  ;;  %v5357_v25 = vsel %vm7599_vm4, %v5355_v5, %v5356_v36 }
 0x3c0   : > { %5641 = vst.msk [vmem:[%s8352_s11 + $0x4] sm:$0xf] %vm734_vm11, %v5609_v53  ;;  %v5777_v26 = vsel %vm5672_vm3, %v5745_v47, 0.0  ;;  %v4526_v40 = vadd.f32 %v8875_v12, %v4239_v28  ;;  %v4860_v53 = vrot.slane %v4858_v34, 4  ;;  %v8877_v47 = vld [vmem:[#allocation17_spill] sm:$0xff]  ;;  %v4852_v34 = vrot.slane %v4851_v55, 4 }
 0x3c1   : > { %v5778_v41 = vadd.f32 %v5777_v26, %v5776_v30  ;;  %v5103_v49 = vpop.f32.mrf.mxu1  ;;  %v3842_v30 = vadd.f32 %v8877_v47, %v8876_v39  ;;  %v4014_v26 = vrot.slane %v6577_v42, 5  ;;  %v5354_v33 = vsel %vm7599_vm4, %v6422_v32, %v5353_v54 }
 0x3c2   : > { %v5180_v15 = vadd.f32 %v5103_v49, %v4526_v40  ;;  %v4589_v40 = vld [vmem:[#allocation2 + $0x9c] sm:$0xf]  ;;  %v4091_v49 = vpack.c.b16 %v4070_v8, %v4069_v24  ;;  %v5410_v32 = vunpack.c.l.b16 %v5354_v33  ;;  %v5411_v36 = vunpack.c.l.b16 %v5357_v25  ;;  %v8878_v25 = vld [vmem:[#allocation18_spill] sm:$0xff] }
 0x3c3   : > { %v4857_v8 = vsel %vm6846_vm2, %v4852_v34, %v4856_v60  ;;  %v4882_v33 = vshrl.u32 %v8375_v58, 16 }
 0x3c4   : > { %v5578_v28 = vadd.f32 %v8335_v31, %v5180_v15  ;;  %6404 = vmatmul.msk.bf16.gmra.mxu1 %vm2184_vm14, %v5031_v11  ;;  %v4861_v15 = vor.u32 %v4860_v53, %v4856_v60  ;;  %v4878_v11 = vshll.u32 %v8375_v58, 16  ;;  %v4016_v53 = vrot.slane %v4014_v26, 4 }
 0x3c5   : > { %v4164_v20 = vpop.f32.mrf.mxu3  ;;  %v5010_v34 = vunpack.c.l.b16 %v4857_v8 }
 0x3c6   : > { %v5610_v0 = vpack.c.bf16 %v5578_v28, %v5578_v28  ;;  %v5676_v31 = vsel %vm5672_vm3, %v5578_v28, 0.0  ;;  %v5746_v35 = vmul.f32 %v5578_v28, %v5578_v28  ;;  %v4240_v12 = vadd.f32 %v4164_v20, %v3842_v30 }
 0x3c7   : > { %v5677_v45 = vadd.f32 %v5676_v31, %v5675_v62  ;;  %v8412_v47 = vpop.f32.mrf.mxu2  ;;  %v4866_v28 = vrot.slane %v4864_v16, 5  ;;  %v4869_v30 = vshrl.u32 %v4589_v40, 16  ;;  %v4872_v62 = vshll.u32 %v4589_v40, 16  ;;  %v6578_v31 = vld [vmem:[#allocation2 + $0x98] sm:$0x1] }
 0x3c8   : > { %5642 = vst.msk [vmem:[%s8352_s11 + $0x8] sm:$0xf] %vm734_vm11, %v5610_v0  ;;  %v5779_v54 = vsel %vm5672_vm3, %v5746_v35, 0.0  ;;  %v4527_v5 = vadd.f32 %v7905_v29, %v4240_v12  ;;  %v4862_v42 = vrot.slane %v4861_v15, 4  ;;  %v6291_v20 = vrot.slane %v3882_v56, 9 }
 0x3c9   : > { %v5780_v55 = vadd.f32 %v5779_v54, %v5778_v41  ;;  %v5105_v39 = vpop.f32.mrf.mxu1  ;;  %v8417_v29 = vrot.slane %v4878_v11, 5  ;;  %v3843_v16 = vadd.f32 %v8878_v25, %v7903_v63  ;;  %v5431_v0 = vpack.c.b16 %v5411_v36, %v5410_v32  ;;  %v8423_v12 = vld [vmem:[#allocation2 + $0xac] sm:$0xf]  ;;  %v8427_v11 = vpop.f32.mrf.mxu0  ;;  %v5222_v32 = vld [vmem:[#allocation2 + $0xa8] sm:$0xe] }
 0x3ca   : > { %v5181_v24 = vadd.f32 %v5105_v39, %v4527_v5  ;;  %6307 = vmatmul.msk.bf16.gmra.mxu3 %vm2184_vm14, %v4091_v49  ;;  %v4017_v35 = vrot.slane %v6578_v31, 5  ;;  %v4867_v60 = vsel %vm6846_vm2, %v4862_v42, %v4866_v28  ;;  %v4871_v49 = vrot.slane %v4869_v30, 4  ;;  %v8431_v5 = vld [vmem:[#allocation2 + $0xb0] sm:$0x1] }
 0x3cb   : > { %v4874_v15 = vrot.slane %v4872_v62, 5  ;;  %v4015_v56 = vsel %vm7599_vm4, %v6291_v20, %v4014_v26  ;;  %v5360_v39 = vrot.slane %v8423_v12, 5  ;;  %v4884_v28 = vrot.slane %v4882_v33, 4 }
 0x3cc   : > { %v5579_v41 = vadd.f32 %v8361_v17, %v5181_v24  ;;  %6439 = vmatmul.msk.bf16.gmra.mxu2 %vm2184_vm14, %v5431_v0  ;;  %v5011_v24 = vunpack.c.l.b16 %v4867_v60  ;;  %v4018_v8 = vsel %vm7599_vm4, %v4016_v53, %v4017_v35  ;;  %v5363_v26 = vrot.slane %v8431_v5, 5  ;;  %v6579_v35 = vld [vmem:[#allocation2 + $0xa0] sm:$0xf] }
 0x3cd   : > { %v4167_v40 = vpop.f32.mrf.mxu3  ;;  %v4875_v20 = vor.u32 %v4874_v15, %v4871_v49  ;;  %v4071_v0 = vunpack.c.l.b16 %v4015_v56  ;;  %v4072_v31 = vunpack.c.l.b16 %v4018_v8  ;;  %v4021_v60 = vrot.slane %v6579_v35, 5  ;;  %v4592_v56 = vld [vmem:[#allocation2 + $0xa8] sm:$0xf] }
 0x3ce   : > { %v5611_v58 = vpack.c.bf16 %v5579_v41, %v5579_v41  ;;  %v5678_v17 = vsel %vm5672_vm3, %v5579_v41, 0.0  ;;  %v5747_v54 = vmul.f32 %v5579_v41, %v5579_v41  ;;  %v4241_v63 = vadd.f32 %v4167_v40, %v3843_v16 }
 0x3cf   : > { %v5679_v36 = vadd.f32 %v5678_v17, %v5677_v45  ;;  %v8442_v25 = vpop.f32.mrf.mxu2  ;;  %v6423_v45 = vrot.slane %v5222_v32, 9  ;;  %v5032_v33 = vpack.c.b16 %v5011_v24, %v5010_v34  ;;  %v5362_v40 = vrot.slane %v5360_v39, 4 }
 0x3d0   : > { %5643 = vst.msk [vmem:[%s8352_s11 + $0xc] sm:$0xf] %vm734_vm11, %v5611_v58  ;;  %v5781_v30 = vsel %vm5672_vm3, %v5747_v54, 0.0  ;;  %v4528_v62 = vadd.f32 %v7925_v18, %v4241_v63  ;;  %v4888_v58 = vshll.u32 %v8380_v3, 16  ;;  %v4876_v15 = vrot.slane %v4875_v20, 4 }
 0x3d1   : > { %v5782_v42 = vadd.f32 %v5781_v30, %v5780_v55  ;;  %v5108_v41 = vpop.f32.mrf.mxu1  ;;  %v8879_v55 = vld [vmem:[#allocation20_spill] sm:$0xff]  ;;  %v5361_v49 = vsel %vm7599_vm4, %v6423_v45, %v5360_v39  ;;  %v5364_v34 = vsel %vm7599_vm4, %v5362_v40, %v5363_v26  ;;  %v4885_v3 = vor.u32 %v4884_v28, %v8417_v29  ;;  %v8456_v24 = vpop.f32.mrf.mxu0  ;;  %v3883_v28 = vld [vmem:[#allocation2 + $0x9c] sm:$0xe] }
 0x3d2   : > { %v5182_v16 = vadd.f32 %v5108_v41, %v4528_v62  ;;  %v3844_v53 = vadd.f32 %v8879_v55, %v7920_v50  ;;  %v4092_v30 = vpack.c.b16 %v4072_v31, %v4071_v0  ;;  %v4890_v62 = vrot.slane %v4888_v58, 5 }
 0x3d3   : > { %v5412_v41 = vunpack.c.l.b16 %v5361_v49  ;;  %v5413_v45 = vunpack.c.l.b16 %v5364_v34  ;;  %v4893_v40 = vshrl.u32 %v4592_v56, 16  ;;  %v4881_v31 = vsel %vm6846_vm2, %v4876_v15, %v8417_v29  ;;  %v6580_v34 = vld [vmem:[#allocation2 + $0xa4] sm:$0x1] }
 0x3d4   : > { %v5580_v18 = vadd.f32 %v8392_v48, %v5182_v16  ;;  %6405 = vmatmul.msk.bf16.gmra.mxu1 %vm2184_vm14, %v5032_v33  ;;  %v4886_v33 = vrot.slane %v4885_v3, 4  ;;  %v4023_v58 = vrot.slane %v4021_v60, 4  ;;  %v4902_v55 = vshll.u32 %v8423_v12, 16 }
 0x3d5   : > { %v4169_v17 = vpop.f32.mrf.mxu3  ;;  %v5432_v49 = vpack.c.b16 %v5413_v45, %v5412_v41  ;;  %v4024_v3 = vrot.slane %v6580_v34, 5  ;;  %v5012_v15 = vunpack.c.l.b16 %v4881_v31 }
 0x3d6   : > { %v5612_v54 = vpack.c.bf16 %v5580_v18, %v5580_v18  ;;  %v5680_v48 = vsel %vm5672_vm3, %v5580_v18, 0.0  ;;  %v5748_v63 = vmul.f32 %v5580_v18, %v5580_v18  ;;  %v4242_v32 = vadd.f32 %v4169_v17, %v3844_v53  ;;  %v8468_v18 = vld [vmem:[#allocation2 + $0xb8] sm:$0xf] }
 0x3d7   : > { %v5681_v50 = vadd.f32 %v5680_v48, %v5679_v36  ;;  %v8462_v16 = vpop.f32.mrf.mxu2  ;;  %v4896_v36 = vshll.u32 %v4592_v56, 16  ;;  %v4906_v53 = vshrl.u32 %v8423_v12, 16  ;;  %v3845_v17 = vadd.f32 %v7897_v52, %v7935_v57 }
 0x3d8   : > { %5644 = vst.msk [vmem:[%s8352_s11 + $0x10] sm:$0xf] %vm734_vm11, %v5612_v54  ;;  %v5783_v39 = vsel %vm5672_vm3, %v5748_v63, 0.0  ;;  %v4529_v8 = vadd.f32 %v7943_v27, %v4242_v32  ;;  %v4891_v27 = vsel %vm6846_vm2, %v4886_v33, %v4890_v62  ;;  %v5367_v54 = vrot.slane %v8468_v18, 5 }
 0x3d9   : > { %v5784_v26 = vadd.f32 %v5783_v39, %v5782_v42  ;;  %v5110_v20 = vpop.f32.mrf.mxu1  ;;  %v6292_v42 = vrot.slane %v3883_v28, 9  ;;  %v4895_v48 = vrot.slane %v4893_v40, 4  ;;  %v4898_v63 = vrot.slane %v4896_v36, 5  ;;  %v8495_v31 = vpop.f32.mrf.mxu0 }
 0x3da   : > { %v5183_v0 = vadd.f32 %v5110_v20, %v4529_v8  ;;  %6308 = vmatmul.msk.bf16.gmra.mxu3 %vm2184_vm14, %v4092_v30  ;;  %v5013_v57 = vunpack.c.l.b16 %v4891_v27  ;;  %v8482_v62 = vrot.slane %v4902_v55, 5  ;;  %v4908_v39 = vrot.slane %v4906_v53, 4  ;;  %v5223_v53 = vld [vmem:[#allocation2 + $0xb4] sm:$0xe] }
 0x3db   : > { %v4022_v45 = vsel %vm7599_vm4, %v6292_v42, %v4021_v60  ;;  %v4025_v28 = vsel %vm7599_vm4, %v4023_v58, %v4024_v3  ;;  %v6581_v42 = vld [vmem:[#allocation2 + $0xac] sm:$0xf]  ;;  %v6424_v34 = vrot.slane %v5223_v53, 9  ;;  %v6582_v53 = vld [vmem:[#allocation2 + $0xb0] sm:$0x1] }
 0x3dc   : > { %v5581_v35 = vadd.f32 %v8412_v47, %v5183_v0  ;;  %6440 = vmatmul.msk.bf16.gmra.mxu2 %vm2184_vm14, %v5432_v49  ;;  %v8480_v47 = vld [vmem:[#allocation2 + $0xbc] sm:$0x1]  ;;  %v4899_v0 = vor.u32 %v4898_v63, %v4895_v48  ;;  %v5033_v55 = vpack.c.b16 %v5013_v57, %v5012_v15  ;;  %v4909_v58 = vor.u32 %v4908_v39, %v8482_v62 }
 0x3dd   : > { %v4172_v29 = vpop.f32.mrf.mxu3  ;;  %v5370_v36 = vrot.slane %v8480_v47, 5  ;;  %v4912_v15 = vshll.u32 %v8431_v5, 16 }
 0x3de   : > { %v5613_v32 = vpack.c.bf16 %v5581_v35, %v5581_v35  ;;  %v5682_v56 = vsel %vm5672_vm3, %v5581_v35, 0.0  ;;  %v5749_v30 = vmul.f32 %v5581_v35, %v5581_v35  ;;  %v4243_v12 = vadd.f32 %v4172_v29, %v3845_v17 }
 0x3df   : > { %v5683_v52 = vadd.f32 %v5682_v56, %v5681_v50  ;;  %v8492_v40 = vpop.f32.mrf.mxu2  ;;  %v5369_v50 = vrot.slane %v5367_v54, 4  ;;  %v4074_v35 = vunpack.c.l.b16 %v4025_v28  ;;  %v4028_v17 = vrot.slane %v6581_v42, 5  ;;  %v4595_v56 = vld [vmem:[#allocation2 + $0xb4] sm:$0xf] }
 0x3e0   : > { %5645 = vst.msk [vmem:[%s8352_s11 + $0x14] sm:$0xf] %vm734_vm11, %v5613_v32  ;;  %v5785_v8 = vsel %vm5672_vm3, %v5749_v30, 0.0  ;;  %v4530_v41 = vadd.f32 %v8332_v37, %v4243_v12  ;;  %v4073_v37 = vunpack.c.l.b16 %v4022_v45  ;;  %v4900_v29 = vrot.slane %v4899_v0, 4 }
 0x3e1   : > { %v5786_v20 = vadd.f32 %v5785_v8, %v5784_v26  ;;  %v5113_v33 = vpop.f32.mrf.mxu1  ;;  %v3846_v26 = vadd.f32 %v7916_v4, %v7948_v10  ;;  %v5371_v3 = vsel %vm7599_vm4, %v5369_v50, %v5370_v36  ;;  %v5368_v30 = vsel %vm7599_vm4, %v6424_v34, %v5367_v54  ;;  %v3884_v8 = vld [vmem:[#allocation2 + $0xa8] sm:$0xe] }
 0x3e2   : > { %v5184_v27 = vadd.f32 %v5113_v33, %v4530_v41  ;;  %v4093_v10 = vpack.c.b16 %v4074_v35, %v4073_v37  ;;  %v4926_v12 = vshll.u32 %v8468_v18, 16  ;;  %v5415_v5 = vunpack.c.l.b16 %v5371_v3  ;;  %v8522_v35 = vpop.f32.mrf.mxu0 }
 0x3e3   : > { %v4930_v41 = vshrl.u32 %v8468_v18, 16  ;;  %v4030_v50 = vrot.slane %v4028_v17, 4  ;;  %v4917_v36 = vshrl.u32 %v4595_v56, 16  ;;  %v5414_v0 = vunpack.c.l.b16 %v5368_v30 }
 0x3e4   : > { %v5582_v60 = vadd.f32 %v8442_v25, %v5184_v27  ;;  %6406 = vmatmul.msk.bf16.gmra.mxu1 %vm2184_vm14, %v5033_v55  ;;  %v4905_v27 = vsel %vm6846_vm2, %v4900_v29, %v8482_v62  ;;  %v6293_v55 = vrot.slane %v3884_v8, 9  ;;  %v4031_v37 = vrot.slane %v6582_v53, 5 }
 0x3e5   : > { %v4174_v49 = vpop.f32.mrf.mxu3  ;;  %v4920_v18 = vshll.u32 %v4595_v56, 16  ;;  %v5433_v42 = vpack.c.b16 %v5415_v5, %v5414_v0  ;;  %v4932_v34 = vrot.slane %v4930_v41, 4 }
 0x3e6   : > { %v5614_v48 = vpack.c.bf16 %v5582_v60, %v5582_v60  ;;  %v5684_v25 = vsel %vm5672_vm3, %v5582_v60, 0.0  ;;  %v5750_v63 = vmul.f32 %v5582_v60, %v5582_v60  ;;  %v4244_v32 = vadd.f32 %v4174_v49, %v3846_v26  ;;  %v8527_v49 = vld [vmem:[#allocation2 + $0xc4] sm:$0xf] }
 0x3e7   : > { %v5685_v4 = vadd.f32 %v5684_v25, %v5683_v52  ;;  %v8514_v33 = vpop.f32.mrf.mxu2  ;;  %v4914_v52 = vrot.slane %v4912_v15, 5  ;;  %v3847_v26 = vadd.f32 %v7933_v13, %v7959_v46  ;;  %v5374_v29 = vrot.slane %v8527_v49, 5  ;;  %v8536_v13 = vld [vmem:[#allocation2 + $0xc8] sm:$0x1]  ;;  %v5224_v46 = vld [vmem:[#allocation2 + $0xc0] sm:$0xe] }
 0x3e8   : > { %5646 = vst.msk [vmem:[%s8352_s11 + $0x18] sm:$0xf] %vm734_vm11, %v5614_v48  ;;  %v5787_v57 = vsel %vm5672_vm3, %v5750_v63, 0.0  ;;  %v4531_v39 = vadd.f32 %v8363_v59, %v4244_v32  ;;  %v4910_v59 = vrot.slane %v4909_v58, 4  ;;  %v5014_v58 = vunpack.c.l.b16 %v4905_v27 }
 0x3e9   : > { %v5788_v45 = vadd.f32 %v5787_v57, %v5786_v20  ;;  %v5115_v28 = vpop.f32.mrf.mxu1  ;;  %v8520_v20 = vrot.slane %v4926_v12, 5  ;;  %v8532_v15 = vrot.slane %v4917_v36, 4  ;;  %v4029_v56 = vsel %vm7599_vm4, %v6293_v55, %v4028_v17 }
 0x3ea   : > { %v5185_v54 = vadd.f32 %v5115_v28, %v4531_v39  ;;  %6309 = vmatmul.msk.bf16.gmra.mxu3 %vm2184_vm14, %v4093_v10  ;;  %v4915_v62 = vsel %vm6846_vm2, %v4910_v59, %v4914_v52  ;;  %v4032_v10 = vsel %vm7599_vm4, %v4030_v50, %v4031_v37  ;;  %v4922_v30 = vrot.slane %v4920_v18, 5 }
 0x3eb   : > { %v5015_v39 = vunpack.c.l.b16 %v4915_v62  ;;  %v4933_v5 = vor.u32 %v4932_v34, %v8520_v20  ;;  %v5376_v52 = vrot.slane %v5374_v29, 4  ;;  %v5377_v17 = vrot.slane %v8536_v13, 5 }
 0x3ec   : > { %v5583_v60 = vadd.f32 %v8462_v16, %v5185_v54  ;;  %6441 = vmatmul.msk.bf16.gmra.mxu2 %vm2184_vm14, %v5433_v42  ;;  %v4075_v54 = vunpack.c.l.b16 %v4029_v56  ;;  %v4076_v0 = vunpack.c.l.b16 %v4032_v10  ;;  %v4936_v27 = vshll.u32 %v8480_v47, 16 }
 0x3ed   : > { %v4177_v3 = vpop.f32.mrf.mxu3  ;;  %v5034_v50 = vpack.c.b16 %v5015_v39, %v5014_v58  ;;  %v5378_v37 = vsel %vm7599_vm4, %v5376_v52, %v5377_v17  ;;  %v4934_v18 = vrot.slane %v4933_v5, 4  ;;  %v6584_v58 = vld [vmem:[#allocation2 + $0xbc] sm:$0x1]  ;;  %v3885_v5 = vld [vmem:[#allocation2 + $0xb4] sm:$0xe] }
 0x3ee   : > { %v5615_v48 = vpack.c.bf16 %v5583_v60, %v5583_v60  ;;  %v5686_v16 = vsel %vm5672_vm3, %v5583_v60, 0.0  ;;  %v5751_v25 = vmul.f32 %v5583_v60, %v5583_v60  ;;  %v4245_v63 = vadd.f32 %v4177_v3, %v3847_v26  ;;  %v6583_v60 = vld [vmem:[#allocation2 + $0xb8] sm:$0xf]  ;;  %v8560_v26 = vpop.f32.mrf.mxu0 }
 0x3ef   : > { %v5687_v32 = vadd.f32 %v5686_v16, %v5685_v4  ;;  %v8547_v28 = vpop.f32.mrf.mxu2  ;;  %v6425_v4 = vrot.slane %v5224_v46, 9  ;;  %v4035_v47 = vrot.slane %v6583_v60, 5  ;;  %v4094_v3 = vpack.c.b16 %v4076_v0, %v4075_v54 }
 0x3f0   : > { %5647 = vst.msk [vmem:[%s8352_s11 + $0x1c] sm:$0xf] %vm734_vm11, %v5615_v48  ;;  %v5789_v12 = vsel %vm5672_vm3, %v5751_v25, 0.0  ;;  %v4532_v57 = vadd.f32 %v8395_v23, %v4245_v63  ;;  %v3848_v23 = vadd.f32 %v7946_v22, %v7969_v9  ;;  %v4938_v62 = vrot.slane %v4936_v27, 5 }
 0x3f1   : > { %v5790_v8 = vadd.f32 %v5789_v12, %v5788_v45  ;;  %v5118_v41 = vpop.f32.mrf.mxu1  ;;  %v4923_v45 = vor.u32 %v4922_v30, %v8532_v15  ;;  %v5375_v53 = vsel %vm7599_vm4, %v6425_v4, %v5374_v29  ;;  %v4038_v15 = vrot.slane %v6584_v58, 5  ;;  %v4598_v30 = vld [vmem:[#allocation2 + $0xc0] sm:$0xf] }
 0x3f2   : > { %v5186_v36 = vadd.f32 %v5118_v41, %v4532_v57  ;;  %v5416_v16 = vunpack.c.l.b16 %v5375_v53  ;;  %v5417_v25 = vunpack.c.l.b16 %v5378_v37  ;;  %v4037_v10 = vrot.slane %v4035_v47, 4 }
 0x3f3   : > { %v4954_v12 = vshrl.u32 %v8527_v49, 16  ;;  %v4939_v39 = vsel %vm6846_vm2, %v4934_v18, %v4938_v62  ;;  %v4944_v41 = vshll.u32 %v4598_v30, 16  ;;  %v4924_v4 = vrot.slane %v4923_v45, 4 }
 0x3f4   : > { %v5584_v59 = vadd.f32 %v8492_v40, %v5186_v36  ;;  %6407 = vmatmul.msk.bf16.gmra.mxu1 %vm2184_vm14, %v5034_v50  ;;  %v5434_v50 = vpack.c.b16 %v5417_v25, %v5416_v16  ;;  %v4960_v60 = vshll.u32 %v8536_v13, 16  ;;  %v5225_v25 = vld [vmem:[#allocation2 + $0xcc] sm:$0xe] }
 0x3f5   : > { %v4179_v55 = vpop.f32.mrf.mxu3  ;;  %v4956_v17 = vrot.slane %v4954_v12, 4  ;;  %v4946_v54 = vrot.slane %v4944_v41, 5  ;;  %v4929_v27 = vsel %vm6846_vm2, %v4924_v4, %v8520_v20  ;;  %v3886_v12 = vld [vmem:[#allocation2 + $0xc0] sm:$0xe]  ;;  %v6426_v41 = vrot.slane %v5225_v25, 9 }
 0x3f6   : > { %v5616_v40 = vpack.c.bf16 %v5584_v59, %v5584_v59  ;;  %v5688_v42 = vsel %vm5672_vm3, %v5584_v59, 0.0  ;;  %v5752_v34 = vmul.f32 %v5584_v59, %v5584_v59  ;;  %v4246_v22 = vadd.f32 %v4179_v55, %v3848_v23 }
 0x3f7   : > { %v5689_v9 = vadd.f32 %v5688_v42, %v5687_v32  ;;  %v8567_v56 = vpop.f32.mrf.mxu2  ;;  %v4950_v32 = vshll.u32 %v8527_v49, 16  ;;  %v5017_v59 = vunpack.c.l.b16 %v4939_v39  ;;  %v6294_v23 = vrot.slane %v3885_v5, 9 }
 0x3f8   : > { %5648 = vst.msk [vmem:[%s8352_s11 + $0x20] sm:$0xf] %vm734_vm11, %v5616_v40  ;;  %v5791_v29 = vsel %vm5672_vm3, %v5752_v34, 0.0  ;;  %v4533_v48 = vadd.f32 %v8427_v11, %v4246_v22  ;;  %v4941_v11 = vshrl.u32 %v4598_v30, 16  ;;  %v8588_v40 = vpop.f32.mrf.mxu0  ;;  %v5016_v34 = vunpack.c.l.b16 %v4929_v27 }
 0x3f9   : > { %v5792_v63 = vadd.f32 %v5791_v29, %v5790_v8  ;;  %v5120_v46 = vpop.f32.mrf.mxu1  ;;  %v3849_v8 = vadd.f32 %v7953_v38, %v7980_v1  ;;  %v8576_v52 = vrot.slane %v4950_v32, 5  ;;  %v4039_v38 = vsel %vm7599_vm4, %v4037_v10, %v4038_v15  ;;  %v376_v15 = vld [vmem:[#allocation2 + $0xd4] sm:$0x1]  ;;  %v4602_v29 = vld [vmem:[#allocation2 + $0xd0] sm:$0xf] }
 0x3fa   : > { %v5187_v57 = vadd.f32 %v5120_v46, %v4533_v48  ;;  %6310 = vmatmul.msk.bf16.gmra.mxu3 %vm2184_vm14, %v4094_v3  ;;  %v4943_v49 = vrot.slane %v4941_v11, 4  ;;  %v4036_v22 = vsel %vm7599_vm4, %v6294_v23, %v4035_v47  ;;  %v4078_v58 = vunpack.c.l.b16 %v4039_v38 }
 0x3fb   : > { %v4957_v18 = vor.u32 %v4956_v17, %v8576_v52  ;;  %v5035_v48 = vpack.c.b16 %v5017_v59, %v5016_v34  ;;  %v377_v16 = vsel %vm6738_vm6, 0, %v376_v15  ;;  %v4077_v46 = vunpack.c.l.b16 %v4036_v22 }
 0x3fc   : > { %v5585_v36 = vadd.f32 %v8514_v33, %v5187_v57  ;;  %6442 = vmatmul.msk.bf16.gmra.mxu2 %vm2184_vm14, %v5434_v50  ;;  %v4947_v37 = vor.u32 %v4946_v54, %v4943_v49  ;;  %v4962_v30 = vrot.slane %v4960_v60, 5  ;;  %378 = vst [vmem:[#allocation2 + $0xd4] sm:$0x1] %v377_v16  ;;  %v5381_v32 = vrot.slane %v4602_v29, 5  ;;  %v6585_v57 = vld [vmem:[#allocation2 + $0xc4] sm:$0xf] }
 0x3fd   : > { %v4182_v0 = vpop.f32.mrf.mxu3  ;;  %v4042_v39 = vrot.slane %v6585_v57, 5  ;;  %v4095_v11 = vpack.c.b16 %v4078_v58, %v4077_v46  ;;  %v321_v4 = vsel %vm6778_vm9, 0, %v320_v61  ;;  %v6295_v54 = vrot.slane %v3886_v12, 9 }
 0x3fe   : > { %v5617_v1 = vpack.c.bf16 %v5585_v36, %v5585_v36  ;;  %v5690_v45 = vsel %vm5672_vm3, %v5585_v36, 0.0  ;;  %v5753_v55 = vmul.f32 %v5585_v36, %v5585_v36  ;;  %v4247_v53 = vadd.f32 %v4182_v0, %v3849_v8  ;;  %322 = vst [vmem:[#allocation2 + $0xcc] sm:$0x1] %v321_v4 }
 0x3ff   : > { %v5691_v33 = vadd.f32 %v5690_v45, %v5689_v9  ;;  %v8596_v9 = vpop.f32.mrf.mxu2  ;;  %v4948_v10 = vrot.slane %v4947_v37, 4  ;;  %v5383_v59 = vrot.slane %v5381_v32, 4  ;;  %v4044_v23 = vrot.slane %v4042_v39, 4 }
 0x400   : > { %5649 = vst.msk [vmem:[%s8352_s11 + $0x24] sm:$0xf] %vm734_vm11, %v5617_v1  ;;  %v5793_v20 = vsel %vm5672_vm3, %v5753_v55, 0.0  ;;  %v4534_v42 = vadd.f32 %v8456_v24, %v4247_v53  ;;  %v4958_v24 = vrot.slane %v4957_v18, 4  ;;  %v6586_v55 = vld [vmem:[#allocation2 + $0xc8] sm:$0x1]  ;;  %v8618_v37 = vpop.f32.mrf.mxu0 }
 0x401   : > { %v5794_v3 = vadd.f32 %v5793_v20, %v5792_v63  ;;  %v5123_v62 = vpop.f32.mrf.mxu1  ;;  %v3850_v63 = vadd.f32 %v7967_v6, %v7990_v19  ;;  %v4953_v6 = vsel %vm6846_vm2, %v4948_v10, %v8576_v52  ;;  %v4045_v53 = vrot.slane %v6586_v55, 5 }
 0x402   : > { %v5188_v13 = vadd.f32 %v5123_v62, %v4534_v42  ;;  %v4963_v19 = vsel %vm6846_vm2, %v4958_v24, %v4962_v30  ;;  %v4978_v52 = vshrl.u32 %v4602_v29, 16  ;;  %v5382_v20 = vsel %vm7599_vm4, %v6426_v41, %v5381_v32 }
 0x403   : > { %v4603_v60 = vld [vmem:[#allocation2 + $0xd4] sm:$0x1]  ;;  %v5019_v42 = vunpack.c.l.b16 %v4963_v19  ;;  %v4046_v16 = vsel %vm7599_vm4, %v4044_v23, %v4045_v53 }
 0x404   : > { %v5586_v47 = vadd.f32 %v8547_v28, %v5188_v13  ;;  %6408 = vmatmul.msk.bf16.gmra.mxu1 %vm2184_vm14, %v5035_v48  ;;  %v5384_v34 = vrot.slane %v4603_v60, 5  ;;  %v4980_v58 = vrot.slane %v4978_v52, 4  ;;  %v5418_v13 = vunpack.c.l.b16 %v5382_v20 }
 0x405   : > { %v4184_v5 = vpop.f32.mrf.mxu3  ;;  %v4043_v48 = vsel %vm7599_vm4, %v6295_v54, %v4042_v39  ;;  %v4984_v57 = vshll.u32 %v4603_v60, 16 }
 0x406   : > { %v5618_v17 = vpack.c.bf16 %v5586_v47, %v5586_v47  ;;  %v5692_v28 = vsel %vm5672_vm3, %v5586_v47, 0.0  ;;  %v5754_v36 = vmul.f32 %v5586_v47, %v5586_v47  ;;  %v4248_v50 = vadd.f32 %v4184_v5, %v3850_v63 }
 0x407   : > { %v5693_v49 = vadd.f32 %v5692_v28, %v5691_v33  ;;  %v8616_v45 = vpop.f32.mrf.mxu2  ;;  %v4974_v33 = vshll.u32 %v4602_v29, 16  ;;  %v5385_v29 = vsel %vm7599_vm4, %v5383_v59, %v5384_v34 }
 0x408   : > { %5650 = vst.msk [vmem:[%s8352_s11 + $0x28] sm:$0xf] %vm734_vm11, %v5618_v17  ;;  %v5795_v0 = vsel %vm5672_vm3, %v5754_v36, 0.0  ;;  %v4535_v27 = vadd.f32 %v8495_v31, %v4248_v50  ;;  %v3851_v31 = vadd.f32 %v7976_v2, %v8002_v14  ;;  %v6516_v2 = vld [vmem:[#allocation2 + $0xcc] sm:$0xff]  ;;  %v5419_v30 = vunpack.c.l.b16 %v5385_v29  ;;  %v8639_v36 = vpop.f32.mrf.mxu0 }
 0x409   : > { %v5796_v38 = vadd.f32 %v5795_v0, %v5794_v3  ;;  %v5125_v1 = vpop.f32.mrf.mxu1  ;;  %v5018_v3 = vunpack.c.l.b16 %v4953_v6  ;;  %v4976_v62 = vrot.slane %v4974_v33, 5  ;;  %v4601_v14 = vld [vmem:[#allocation2 + $0xcc] sm:$0xf]  ;;  %6393 = vmatmul.msk.bf16.gmra.mxu0 %vm2184_vm14, %v6516_v2  ;;  %v4080_v6 = vunpack.c.l.b16 %v4046_v16 }
 0x40a   : > { %v5189_v18 = vadd.f32 %v5125_v1, %v4535_v27  ;;  %6311 = vmatmul.msk.bf16.gmra.mxu3 %vm2184_vm14, %v4095_v11  ;;  %v4965_v47 = vshrl.u32 %v4601_v14, 16  ;;  %v4968_v63 = vshll.u32 %v4601_v14, 16  ;;  %v5435_v11 = vpack.c.b16 %v5419_v30, %v5418_v13 }
 0x40b   : > { %v4981_v12 = vor.u32 %v4980_v58, %v4976_v62  ;;  %v5036_v17 = vpack.c.b16 %v5019_v42, %v5018_v3  ;;  %v4986_v27 = vrot.slane %v4984_v57, 5  ;;  %v8881_v42 = vld [vmem:[#allocation23_spill] sm:$0xff] }
 0x40c   : > { %v5587_v22 = vadd.f32 %v8567_v56, %v5189_v18  ;;  %v4967_v41 = vrot.slane %v4965_v47, 4  ;;  %v4970_v8 = vrot.slane %v4968_v63, 5  ;;  %6443 = vmatmul.msk.bf16.gmra.mxu2 %vm2184_vm14, %v5435_v11  ;;  %v3853_v34 = vadd.f32 %v8881_v42, %v8028_v21 }
 0x40d   : > { %v4187_v15 = vpop.f32.mrf.mxu3  ;;  %v4982_v0 = vrot.slane %v4981_v12, 4 }
 0x40e   : > { %v5619_v25 = vpack.c.bf16 %v5587_v22, %v5587_v22  ;;  %v5694_v56 = vsel %vm5672_vm3, %v5587_v22, 0.0  ;;  %v5755_v46 = vmul.f32 %v5587_v22, %v5587_v22  ;;  %v4249_v10 = vadd.f32 %v4187_v15, %v3851_v31 }
 0x40f   : > { %v5695_v24 = vadd.f32 %v5694_v56, %v5693_v49  ;;  %v5531_v5 = vpop.f32.mrf.mxu2  ;;  %v4971_v28 = vor.u32 %v4970_v8, %v4967_v41  ;;  %v4079_v49 = vunpack.c.l.b16 %v4043_v48  ;;  %v4987_v60 = vsel %vm6846_vm2, %v4982_v0, %v4986_v27 }
 0x410   : > { %5651 = vst.msk [vmem:[%s8352_s11 + $0x2c] sm:$0xf] %vm734_vm11, %v5619_v25  ;;  %v5797_v32 = vsel %vm5672_vm3, %v5755_v46, 0.0  ;;  %v4536_v44 = vadd.f32 %v8522_v35, %v4249_v10  ;;  %v3852_v35 = vadd.f32 %v7988_v43, %v8014_v7  ;;  %v5021_v22 = vunpack.c.l.b16 %v4987_v60  ;;  %v4486_v58 = vpop.f32.mrf.mxu0  ;;  %v8882_v46 = vld [vmem:[#allocation27_spill] sm:$0xff]  ;;  %v8883_v10 = vld [vmem:[#allocation24_spill] sm:$0xff] }
 0x411   : > { %v5798_v39 = vadd.f32 %v5797_v32, %v5796_v38  ;;  %v5128_v61 = vpop.f32.mrf.mxu1  ;;  %v4972_v54 = vrot.slane %v4971_v28, 4  ;;  %v4096_v33 = vpack.c.b16 %v4080_v6, %v4079_v49 }
 0x412   : > { %v5190_v4 = vadd.f32 %v5128_v61, %v4536_v44 }
 0x413   : > { %v4977_v18 = vsel %vm6846_vm2, %v4972_v54, %v4976_v62 }
 0x414   : > { %v5588_v50 = vadd.f32 %v8596_v9, %v5190_v4  ;;  %6409 = vmatmul.msk.bf16.gmra.mxu1 %vm2184_vm14, %v5036_v17  ;;  %v8884_v4 = vld [vmem:[#allocation29_spill] sm:$0xff] }
 0x415   : > { %v4189_v19 = vpop.f32.mrf.mxu3  ;;  %v8885_v17 = vld [vmem:[#allocation25_spill] sm:$0xff] }
 0x416   : > { %v5620_v59 = vpack.c.bf16 %v5588_v50, %v5588_v50  ;;  %v5696_v23 = vsel %vm5672_vm3, %v5588_v50, 0.0  ;;  %v5756_v38 = vmul.f32 %v5588_v50, %v5588_v50  ;;  %v4250_v1 = vadd.f32 %v4189_v19, %v3852_v35 }
 0x417   : > { %v5697_v55 = vadd.f32 %v5696_v23, %v5695_v24  ;;  %v5533_v52 = vpop.f32.mrf.mxu2  ;;  %v3854_v24 = vadd.f32 %v8883_v10, %v8882_v46  ;;  %v3855_v28 = vadd.f32 %v8885_v17, %v8884_v4 }
 0x418   : > { %5652 = vst.msk [vmem:[%s8352_s11 + $0x30] sm:$0xf] %vm734_vm11, %v5620_v59  ;;  %v5799_v9 = vsel %vm5672_vm3, %v5756_v38, 0.0  ;;  %v4537_v53 = vadd.f32 %v8560_v26, %v4250_v1  ;;  %v5020_v26 = vunpack.c.l.b16 %v4977_v18 }
 0x419   : > { %v5800_v43 = vadd.f32 %v5799_v9, %v5798_v39  ;;  %v5130_v7 = vpop.f32.mrf.mxu1  ;;  %v8886_v9 = vld [vmem:[#allocation31_spill] sm:$0xff] }
 0x41a   : > { %v5191_v20 = vadd.f32 %v5130_v7, %v4537_v53  ;;  %6312 = vmatmul.msk.bf16.gmra.mxu3 %vm2184_vm14, %v4096_v33  ;;  %v8887_v53 = vld [vmem:[#allocation26_spill] sm:$0xff] }
 0x41b   : > { %v3856_v33 = vadd.f32 %v8887_v53, %v8886_v9 }
 0x41c   : > { %v5589_v31 = vadd.f32 %v8616_v45, %v5191_v20  ;;  %v5037_v45 = vpack.c.b16 %v5021_v22, %v5020_v26 }
 0x41d   : > { %v4192_v3 = vpop.f32.mrf.mxu3 }
 0x41e   : > { %v5621_v15 = vpack.c.bf16 %v5589_v31, %v5589_v31  ;;  %v5698_v29 = vsel %vm5672_vm3, %v5589_v31, 0.0  ;;  %v5757_v13 = vmul.f32 %v5589_v31, %v5589_v31  ;;  %v4251_v62 = vadd.f32 %v4192_v3, %v3853_v34 }
 0x41f   : > { %v5699_v48 = vadd.f32 %v5698_v29, %v5697_v55  ;;  %v5536_v14 = vpop.f32.mrf.mxu2  ;;  %v8889_v29 = vld [vmem:[#allocation28_spill] sm:$0xff] }
 0x420   : > { %5653 = vst.msk [vmem:[%s8352_s11 + $0x34] sm:$0xf] %vm734_vm11, %v5621_v15  ;;  %v5801_v51 = vsel %vm5672_vm3, %v5757_v13, 0.0  ;;  %v4538_v16 = vadd.f32 %v8588_v40, %v4251_v62  ;;  %v4489_v40 = vpop.f32.mrf.mxu0  ;;  %v8888_v15 = vld [vmem:[#allocation33_spill] sm:$0xff] }
 0x421   : > { %v5802_v2 = vadd.f32 %v5801_v51, %v5800_v43  ;;  %v5133_v21 = vpop.f32.mrf.mxu1  ;;  %v3857_v13 = vadd.f32 %v8889_v29, %v8888_v15 }
 0x422   : > { %v5192_v25 = vadd.f32 %v5133_v21, %v4538_v16 }
 0x424   : > { %v5590_v56 = vadd.f32 %v5531_v5, %v5192_v25  ;;  %6410 = vmatmul.msk.bf16.gmra.mxu1 %vm2184_vm14, %v5037_v45 }
 0x425   : > { %v4194_v30 = vpop.f32.mrf.mxu3 }
 0x426   : > { %v5622_v47 = vpack.c.bf16 %v5590_v56, %v5590_v56  ;;  %v5700_v63 = vsel %vm5672_vm3, %v5590_v56, 0.0  ;;  %v5758_v32 = vmul.f32 %v5590_v56, %v5590_v56  ;;  %v4252_v44 = vadd.f32 %v4194_v30, %v3854_v24  ;;  %v8890_v30 = vld [vmem:[#allocation35_spill] sm:$0xff] }
 0x427   : > { %v5701_v12 = vadd.f32 %v5700_v63, %v5699_v48  ;;  %v5538_v11 = vpop.f32.mrf.mxu2 }
 0x428   : > { %5654 = vst.msk [vmem:[%s8352_s11 + $0x38] sm:$0xf] %vm734_vm11, %v5622_v47  ;;  %v5803_v57 = vsel %vm5672_vm3, %v5758_v32, 0.0  ;;  %v4539_v39 = vadd.f32 %v8618_v37, %v4252_v44  ;;  %v4491_v1 = vpop.f32.mrf.mxu0  ;;  %v8891_v47 = vld [vmem:[#allocation30_spill] sm:$0xff] }
 0x429   : > { %v5804_v61 = vadd.f32 %v5803_v57, %v5802_v2  ;;  %v5135_v5 = vpop.f32.mrf.mxu1  ;;  %v3858_v63 = vadd.f32 %v8891_v47, %v8890_v30 }
 0x42a   : > { %v5193_v41 = vadd.f32 %v5135_v5, %v4539_v39 }
 0x42c   : > { %v5591_v8 = vadd.f32 %v5533_v52, %v5193_v41 }
 0x42d   : > { %v4197_v50 = vpop.f32.mrf.mxu3 }
 0x42e   : > { %v5623_v35 = vpack.c.bf16 %v5591_v8, %v5591_v8  ;;  %v5702_v49 = vsel %vm5672_vm3, %v5591_v8, 0.0  ;;  %v5759_v6 = vmul.f32 %v5591_v8, %v5591_v8  ;;  %v4253_v19 = vadd.f32 %v4197_v50, %v3855_v28  ;;  %v8892_v50 = vld [vmem:[#allocation37_spill] sm:$0xff] }
 0x42f   : > { %v5703_v54 = vadd.f32 %v5702_v49, %v5701_v12  ;;  %v5541_v23 = vpop.f32.mrf.mxu2 }
 0x430   : > { %5655 = vst.msk [vmem:[%s8352_s11 + $0x3c] sm:$0xf] %vm734_vm11, %v5623_v35  ;;  %v5805_v37 = vsel %vm5672_vm3, %v5759_v6, 0.0  ;;  %v4540_v0 = vadd.f32 %v8639_v36, %v4253_v19  ;;  %v4494_v62 = vpop.f32.mrf.mxu0  ;;  %v8893_v35 = vld [vmem:[#allocation32_spill] sm:$0xff] }
 0x431   : > { %v5806_v27 = vadd.f32 %v5805_v37, %v5804_v61  ;;  %v5138_v59 = vpop.f32.mrf.mxu1  ;;  %v3859_v49 = vadd.f32 %v8893_v35, %v8892_v50 }
 0x432   : > { %v5194_v38 = vadd.f32 %v5138_v59, %v4540_v0 }
 0x434   : > { %v5592_v55 = vadd.f32 %v5536_v14, %v5194_v38 }
 0x435   : > { %v4199_v43 = vpop.f32.mrf.mxu3 }
 0x436   : > { %v5624_v7 = vpack.c.bf16 %v5592_v55, %v5592_v55  ;;  %v5704_v52 = vsel %vm5672_vm3, %v5592_v55, 0.0  ;;  %v5760_v18 = vmul.f32 %v5592_v55, %v5592_v55  ;;  %v4254_v60 = vadd.f32 %v4199_v43, %v3856_v33  ;;  %v8894_v43 = vld [vmem:[#allocation39_spill] sm:$0xff] }
 0x437   : > { %v5705_v20 = vadd.f32 %v5704_v52, %v5703_v54  ;;  %v5543_v26 = vpop.f32.mrf.mxu2 }
 0x438   : > { %5656 = vst.msk [vmem:[%s8352_s11 + $0x40] sm:$0xf] %vm734_vm11, %v5624_v7  ;;  %v5807_v36 = vsel %vm5672_vm3, %v5760_v18, 0.0  ;;  %v4541_v31 = vadd.f32 %v4486_v58, %v4254_v60  ;;  %v4496_v61 = vpop.f32.mrf.mxu0  ;;  %v8895_v7 = vld [vmem:[#allocation34_spill] sm:$0xff] }
 0x439   : > { %v5808_v42 = vadd.f32 %v5807_v36, %v5806_v27  ;;  %v5140_v34 = vpop.f32.mrf.mxu1  ;;  %v3860_v52 = vadd.f32 %v8895_v7, %v8894_v43 }
 0x43a   : > { %v5195_v22 = vadd.f32 %v5140_v34, %v4541_v31 }
 0x43c   : > { %v5593_v3 = vadd.f32 %v5538_v11, %v5195_v22 }
 0x43d   : > { %v4202_v48 = vpop.f32.mrf.mxu3 }
 0x43e   : > { %v5625_v51 = vpack.c.bf16 %v5593_v3, %v5593_v3  ;;  %v5706_v16 = vsel %vm5672_vm3, %v5593_v3, 0.0  ;;  %v5761_v45 = vmul.f32 %v5593_v3, %v5593_v3  ;;  %v4255_v2 = vadd.f32 %v4202_v48, %v3857_v13  ;;  %v8897_v48 = vld [vmem:[#allocation36_spill] sm:$0xff] }
 0x43f   : > { %v5707_v21 = vadd.f32 %v5706_v16, %v5705_v20  ;;  %v5546_v46 = vpop.f32.mrf.mxu2 }
 0x440   : > { %5657 = vst.msk [vmem:[%s8352_s11 + $0x44] sm:$0xf] %vm734_vm11, %v5625_v51  ;;  %v5809_v58 = vsel %vm5672_vm3, %v5761_v45, 0.0  ;;  %v4542_v14 = vadd.f32 %v4489_v40, %v4255_v2  ;;  %v4499_v38 = vpop.f32.mrf.mxu0 }
 0x441   : > { %v5810_v25 = vadd.f32 %v5809_v58, %v5808_v42  ;;  %v5143_v56 = vpop.f32.mrf.mxu1 }
 0x442   : > { %v5196_v10 = vadd.f32 %v5143_v56, %v4542_v14 }
 0x444   : > { %v5594_v24 = vadd.f32 %v5541_v23, %v5196_v10 }
 0x445   : > { %v4204_v32 = vpop.f32.mrf.mxu3 }
 0x446   : > { %v5626_v44 = vpack.c.bf16 %v5594_v24, %v5594_v24  ;;  %v5708_v12 = vsel %vm5672_vm3, %v5594_v24, 0.0  ;;  %v5762_v57 = vmul.f32 %v5594_v24, %v5594_v24  ;;  %v4256_v39 = vadd.f32 %v4204_v32, %v3858_v63  ;;  %v8898_v63 = vld [vmem:[#allocation42_spill] sm:$0xff] }
 0x447   : > { %v5709_v5 = vadd.f32 %v5708_v12, %v5707_v21  ;;  %v5548_v4 = vpop.f32.mrf.mxu2  ;;  %v8899_v32 = vld [vmem:[#allocation38_spill] sm:$0xff] }
 0x448   : > { %5658 = vst.msk [vmem:[%s8352_s11 + $0x48] sm:$0xf] %vm734_vm11, %v5626_v44  ;;  %v5811_v40 = vsel %vm5672_vm3, %v5762_v57, 0.0  ;;  %v4543_v11 = vadd.f32 %v4491_v1, %v4256_v39  ;;  %v4501_v29 = vpop.f32.mrf.mxu0  ;;  %v3862_v44 = vadd.f32 %v8899_v32, %v8898_v63 }
 0x449   : > { %v5812_v41 = vadd.f32 %v5811_v40, %v5810_v25  ;;  %v5145_v8 = vpop.f32.mrf.mxu1 }
 0x44a   : > { %v5197_v17 = vadd.f32 %v5145_v8, %v4543_v11 }
 0x44c   : > { %v5595_v28 = vadd.f32 %v5543_v26, %v5197_v17 }
 0x44d   : > { %v4207_v6 = vpop.f32.mrf.mxu3 }
 0x44e   : > { %v5627_v19 = vpack.c.bf16 %v5595_v28, %v5595_v28  ;;  %v5710_v54 = vsel %vm5672_vm3, %v5595_v28, 0.0  ;;  %v5763_v37 = vmul.f32 %v5595_v28, %v5595_v28  ;;  %v4257_v0 = vadd.f32 %v4207_v6, %v3859_v49  ;;  %v8900_v49 = vld [vmem:[#allocation43_spill] sm:$0xff]  ;;  %v8901_v6 = vld [vmem:[#allocation40_spill] sm:$0xff] }
 0x44f   : > { %v5711_v27 = vadd.f32 %v5710_v54, %v5709_v5  ;;  %v5551_v53 = vpop.f32.mrf.mxu2 }
 0x450   : > { %5659 = vst.msk [vmem:[%s8352_s11 + $0x4c] sm:$0xf] %vm734_vm11, %v5627_v19  ;;  %v5813_v59 = vsel %vm5672_vm3, %v5763_v37, 0.0  ;;  %v4544_v23 = vadd.f32 %v4494_v62, %v4257_v0  ;;  %v8896_v62 = vld [vmem:[#allocation41_spill] sm:$0xff]  ;;  %v4504_v12 = vpop.f32.mrf.mxu0  ;;  %v3863_v19 = vadd.f32 %v8901_v6, %v8900_v49 }
 0x451   : > { %v5814_v1 = vadd.f32 %v5813_v59, %v5812_v41  ;;  %v5148_v55 = vpop.f32.mrf.mxu1  ;;  %v3861_v51 = vadd.f32 %v8897_v48, %v8896_v62 }
 0x452   : > { %v5198_v9 = vadd.f32 %v5148_v55, %v4544_v23 }
 0x454   : > { %v5596_v33 = vadd.f32 %v5546_v46, %v5198_v9 }
 0x455   : > { %v4209_v18 = vpop.f32.mrf.mxu3 }
 0x456   : > { %v5628_v60 = vpack.c.bf16 %v5596_v33, %v5596_v33  ;;  %v5712_v20 = vsel %vm5672_vm3, %v5596_v33, 0.0  ;;  %v5764_v36 = vmul.f32 %v5596_v33, %v5596_v33  ;;  %v4258_v31 = vadd.f32 %v4209_v18, %v3860_v52  ;;  %v8902_v52 = vld [vmem:[#allocation44_spill] sm:$0xff] }
 0x457   : > { %v5713_v42 = vadd.f32 %v5712_v20, %v5711_v27  ;;  %v5553_v16 = vpop.f32.mrf.mxu2  ;;  %v8903_v18 = vld [vmem:[#allocation4_spill] sm:$0xff] }
 0x458   : > { %5660 = vst.msk [vmem:[%s8352_s11 + $0x50] sm:$0xf] %vm734_vm11, %v5628_v60  ;;  %v5815_v34 = vsel %vm5672_vm3, %v5764_v36, 0.0  ;;  %v4545_v26 = vadd.f32 %v4496_v61, %v4258_v31  ;;  %v4506_v23 = vpop.f32.mrf.mxu0  ;;  %v3864_v60 = vadd.f32 %v8903_v18, %v8902_v52 }
 0x459   : > { %v5816_v22 = vadd.f32 %v5815_v34, %v5814_v1  ;;  %v5150_v3 = vpop.f32.mrf.mxu1 }
 0x45a   : > { %v5199_v15 = vadd.f32 %v5150_v3, %v4545_v26 }
 0x45c   : > { %v5597_v13 = vadd.f32 %v5548_v4, %v5199_v15 }
 0x45d   : > { %v4212_v45 = vpop.f32.mrf.mxu3 }
 0x45e   : > { %v5629_v2 = vpack.c.bf16 %v5597_v13, %v5597_v13  ;;  %v5714_v21 = vsel %vm5672_vm3, %v5597_v13, 0.0  ;;  %v5765_v58 = vmul.f32 %v5597_v13, %v5597_v13  ;;  %v4259_v14 = vadd.f32 %v4212_v45, %v3861_v51  ;;  %v8905_v45 = vld [vmem:[#allocation5_spill] sm:$0xff] }
 0x45f   : > { %v5715_v25 = vadd.f32 %v5714_v21, %v5713_v42  ;;  %v5556_v41 = vpop.f32.mrf.mxu2 }
 0x460   : > { %5661 = vst.msk [vmem:[%s8352_s11 + $0x54] sm:$0xf] %vm734_vm11, %v5629_v2  ;;  %v5817_v56 = vsel %vm5672_vm3, %v5765_v58, 0.0  ;;  %v4546_v46 = vadd.f32 %v4499_v38, %v4259_v14  ;;  %v4509_v15 = vpop.f32.mrf.mxu0 }
 0x461   : > { %v5818_v10 = vadd.f32 %v5817_v56, %v5816_v22  ;;  %v5153_v24 = vpop.f32.mrf.mxu1 }
 0x462   : > { %v5200_v30 = vadd.f32 %v5153_v24, %v4546_v46 }
 0x464   : > { %v5598_v47 = vadd.f32 %v5551_v53, %v5200_v30 }
 0x465   : > { %v4214_v57 = vpop.f32.mrf.mxu3 }
 0x466   : > { %v5630_v39 = vpack.c.bf16 %v5598_v47, %v5598_v47  ;;  %v5716_v61 = vsel %vm5672_vm3, %v5598_v47, 0.0  ;;  %v5766_v5 = vmul.f32 %v5598_v47, %v5598_v47  ;;  %v4260_v40 = vadd.f32 %v4214_v57, %v3862_v44  ;;  %v8907_v57 = vld [vmem:[#allocation6_spill] sm:$0xff] }
 0x467   : > { %v5717_v11 = vadd.f32 %v5716_v61, %v5715_v25  ;;  %v5558_v53 = vpop.f32.mrf.mxu2 }
 0x468   : > { %5662 = vst.msk [vmem:[%s8352_s11 + $0x58] sm:$0xf] %vm734_vm11, %v5630_v39  ;;  %v5819_v8 = vsel %vm5672_vm3, %v5766_v5, 0.0  ;;  %v4547_v4 = vadd.f32 %v4501_v29, %v4260_v40  ;;  %v4511_v32 = vpop.f32.mrf.mxu0 }
 0x469   : > { %v5820_v17 = vadd.f32 %v5819_v8, %v5818_v10  ;;  %v5155_v28 = vpop.f32.mrf.mxu1 }
 0x46a   : > { %v5201_v50 = vadd.f32 %v5155_v28, %v4547_v4 }
 0x46c   : > { %v5599_v35 = vadd.f32 %v5553_v16, %v5201_v50  ;;  %v8904_v16 = vld [vmem:[#allocation46_spill] sm:$0xff] }
 0x46d   : > { %v4217_v54 = vpop.f32.mrf.mxu3  ;;  %v3865_v2 = vadd.f32 %v8905_v45, %v8904_v16 }
 0x46e   : > { %v5631_v37 = vpack.c.bf16 %v5599_v35, %v5599_v35  ;;  %v5718_v0 = vsel %vm5672_vm3, %v5599_v35, 0.0  ;;  %v5767_v27 = vmul.f32 %v5599_v35, %v5599_v35  ;;  %v4261_v59 = vadd.f32 %v4217_v54, %v3863_v19  ;;  %v8908_v54 = vld [vmem:[#allocation48_spill] sm:$0xff] }
 0x46f   : > { %v5719_v38 = vadd.f32 %v5718_v0, %v5717_v11  ;;  %v5561_v48 = vpop.f32.mrf.mxu2 }
 0x470   : > { %5663 = vst.msk [vmem:[%s8352_s11 + $0x5c] sm:$0xf] %vm734_vm11, %v5631_v37  ;;  %v5821_v1 = vsel %vm5672_vm3, %v5767_v27, 0.0  ;;  %v4548_v55 = vadd.f32 %v4504_v12, %v4261_v59  ;;  %v8906_v12 = vld [vmem:[#allocation47_spill] sm:$0xff]  ;;  %v4514_v6 = vpop.f32.mrf.mxu0  ;;  %v8909_v37 = vld [vmem:[#allocation45_spill] sm:$0xff] }
 0x471   : > { %v5822_v9 = vadd.f32 %v5821_v1, %v5820_v17  ;;  %v5158_v33 = vpop.f32.mrf.mxu1  ;;  %v3866_v39 = vadd.f32 %v8907_v57, %v8906_v12  ;;  %v3867_v0 = vadd.f32 %v8909_v37, %v8908_v54 }
 0x472   : > { %v5202_v43 = vadd.f32 %v5158_v33, %v4548_v55 }
 0x474   : > { %v5600_v7 = vadd.f32 %v5556_v41, %v5202_v43 }
 0x475   : > { %v4219_v20 = vpop.f32.mrf.mxu3 }
 0x476   : > { %v5632_v36 = vpack.c.bf16 %v5600_v7, %v5600_v7  ;;  %v5720_v31 = vsel %vm5672_vm3, %v5600_v7, 0.0  ;;  %v5768_v42 = vmul.f32 %v5600_v7, %v5600_v7  ;;  %v4262_v34 = vadd.f32 %v4219_v20, %v3864_v60  ;;  %v8910_v60 = vld [vmem:[#allocation49_spill] sm:$0xff]  ;;  %v8911_v20 = vld [vmem:[#allocation7_spill] sm:$0xff] }
 0x477   : > { %v5721_v26 = vadd.f32 %v5720_v31, %v5719_v38  ;;  %v5563_v61 = vpop.f32.mrf.mxu2 }
 0x478   : > { %5664 = vst.msk [vmem:[%s8352_s11 + $0x60] sm:$0xf] %vm734_vm11, %v5632_v36  ;;  %v5823_v22 = vsel %vm5672_vm3, %v5768_v42, 0.0  ;;  %v4549_v3 = vadd.f32 %v4506_v23, %v4262_v34  ;;  %v3868_v36 = vadd.f32 %v8911_v20, %v8910_v60  ;;  %v4516_v31 = vpop.f32.mrf.mxu0 }
 0x479   : > { %v5824_v29 = vadd.f32 %v5823_v22, %v5822_v9  ;;  %v5160_v13 = vpop.f32.mrf.mxu1 }
 0x47a   : > { %v5203_v62 = vadd.f32 %v5160_v13, %v4549_v3 }
 0x47c   : > { %v5601_v51 = vadd.f32 %v5558_v53, %v5203_v62 }
 0x47d   : > { %v4222_v21 = vpop.f32.mrf.mxu3 }
 0x47e   : > { %v5633_v58 = vpack.c.bf16 %v5601_v51, %v5601_v51  ;;  %v5722_v14 = vsel %vm5672_vm3, %v5601_v51, 0.0  ;;  %v5769_v25 = vmul.f32 %v5601_v51, %v5601_v51  ;;  %v4263_v56 = vadd.f32 %v4222_v21, %v3865_v2  ;;  %v8912_v2 = vld [vmem:[#allocation10_spill] sm:$0xff]  ;;  %v8913_v21 = vld [vmem:[#allocation8_spill] sm:$0xff] }
 0x47f   : > { %v5723_v46 = vadd.f32 %v5722_v14, %v5721_v26  ;;  %v5566_v55 = vpop.f32.mrf.mxu2 }
 0x480   : > { %5665 = vst.msk [vmem:[%s8352_s11 + $0x64] sm:$0xf] %vm734_vm11, %v5633_v58  ;;  %v5825_v10 = vsel %vm5672_vm3, %v5769_v25, 0.0  ;;  %v4550_v24 = vadd.f32 %v4509_v15, %v4263_v56  ;;  %v3869_v58 = vadd.f32 %v8913_v21, %v8912_v2 }
 0x481   : > { %v5826_v30 = vadd.f32 %v5825_v10, %v5824_v29  ;;  %v5163_v47 = vpop.f32.mrf.mxu1 }
 0x482   : > { %v5204_v63 = vadd.f32 %v5163_v47, %v4550_v24 }
 0x484   : > { %v5602_v44 = vadd.f32 %v5561_v48, %v5204_v63 }
 0x485   : > { %v4224_v5 = vpop.f32.mrf.mxu3 }
 0x486   : > { %v5634_v40 = vpack.c.bf16 %v5602_v44, %v5602_v44  ;;  %v5724_v11 = vsel %vm5672_vm3, %v5602_v44, 0.0  ;;  %v5770_v41 = vmul.f32 %v5602_v44, %v5602_v44  ;;  %v4264_v8 = vadd.f32 %v4224_v5, %v3866_v39  ;;  %v4519_v14 = vpop.f32.mrf.mxu0  ;;  %v8915_v5 = vld [vmem:[#allocation9_spill] sm:$0xff] }
 0x487   : > { %v5725_v4 = vadd.f32 %v5724_v11, %v5723_v46  ;;  %v5568_v62 = vpop.f32.mrf.mxu2 }
 0x488   : > { %5666 = vst.msk [vmem:[%s8352_s11 + $0x68] sm:$0xf] %vm734_vm11, %v5634_v40  ;;  %v5827_v17 = vsel %vm5672_vm3, %v5770_v41, 0.0  ;;  %v4551_v28 = vadd.f32 %v4511_v32, %v4264_v8 }
 0x489   : > { %v5828_v50 = vadd.f32 %v5827_v17, %v5826_v30  ;;  %v5165_v35 = vpop.f32.mrf.mxu1 }
 0x48a   : > { %v5205_v49 = vadd.f32 %v5165_v35, %v4551_v28 }
 0x48c   : > { %v5603_v19 = vadd.f32 %v5563_v61, %v5205_v49  ;;  %v8914_v61 = vld [vmem:[#allocation12_spill] sm:$0xff] }
 0x48d   : > { %v4227_v27 = vpop.f32.mrf.mxu3  ;;  %v3870_v40 = vadd.f32 %v8915_v5, %v8914_v61 }
 0x48e   : > { %v5635_v59 = vpack.c.bf16 %v5603_v19, %v5603_v19  ;;  %v5726_v23 = vsel %vm5672_vm3, %v5603_v19, 0.0  ;;  %v5771_v38 = vmul.f32 %v5603_v19, %v5603_v19  ;;  %v4265_v1 = vadd.f32 %v4227_v27, %v3867_v0  ;;  %v4521_v28 = vpop.f32.mrf.mxu0 }
 0x48f   : > { %v5727_v9 = vadd.f32 %v5726_v23, %v5725_v4  ;;  %v5571_v44 = vpop.f32.mrf.mxu2 }
 0x490   : > { %5667 = vst.msk [vmem:[%s8352_s11 + $0x6c] sm:$0xf] %vm734_vm11, %v5635_v59  ;;  %v5829_v53 = vsel %vm5672_vm3, %v5771_v38, 0.0  ;;  %v4552_v33 = vadd.f32 %v4514_v6, %v4265_v1 }
 0x491   : > { %v5830_v43 = vadd.f32 %v5829_v53, %v5828_v50  ;;  %v5168_v7 = vpop.f32.mrf.mxu1 }
 0x492   : > { %v5206_v52 = vadd.f32 %v5168_v7, %v4552_v33 }
 0x494   : > { %v5604_v18 = vadd.f32 %v5566_v55, %v5206_v52 }
 0x495   : > { %v4229_v42 = vpop.f32.mrf.mxu3 }
 0x496   : > { %v5636_v34 = vpack.c.bf16 %v5604_v18, %v5604_v18  ;;  %v5728_v26 = vsel %vm5672_vm3, %v5604_v18, 0.0  ;;  %v5772_v22 = vmul.f32 %v5604_v18, %v5604_v18  ;;  %v4266_v3 = vadd.f32 %v4229_v42, %v3868_v36 }
 0x497   : > { %v5729_v15 = vadd.f32 %v5728_v26, %v5727_v9  ;;  %v5573_v37 = vpop.f32.mrf.mxu2 }
 0x498   : > { %5668 = vst.msk [vmem:[%s8352_s11 + $0x70] sm:$0xf] %vm734_vm11, %v5636_v34  ;;  %v5831_v29 = vsel %vm5672_vm3, %v5772_v22, 0.0  ;;  %v4553_v13 = vadd.f32 %v4516_v31, %v4266_v3 }
 0x499   : > { %v5832_v48 = vadd.f32 %v5831_v29, %v5830_v43  ;;  %v5170_v51 = vpop.f32.mrf.mxu1 }
 0x49a   : > { %v5207_v16 = vadd.f32 %v5170_v51, %v4553_v13 }
 0x49c   : > { %v5605_v45 = vadd.f32 %v5568_v62, %v5207_v16 }
 0x49d   : > { %v4232_v25 = vpop.f32.mrf.mxu3 }
 0x49e   : > { %v5637_v56 = vpack.c.bf16 %v5605_v45, %v5605_v45  ;;  %v5730_v46 = vsel %vm5672_vm3, %v5605_v45, 0.0  ;;  %v5773_v10 = vmul.f32 %v5605_v45, %v5605_v45  ;;  %v4267_v24 = vadd.f32 %v4232_v25, %v3869_v58 }
 0x49f   : > { %v5731_v30 = vadd.f32 %v5730_v46, %v5729_v15 }
 0x4a0   : > { %5669 = vst.msk [vmem:[%s8352_s11 + $0x74] sm:$0xf] %vm734_vm11, %v5637_v56  ;;  %v5833_v47 = vsel %vm5672_vm3, %v5773_v10, 0.0  ;;  %v4554_v63 = vadd.f32 %v4519_v14, %v4267_v24 }
 0x4a1   : > { %v5834_v32 = vadd.f32 %v5833_v47, %v5832_v48  ;;  %v5173_v12 = vpop.f32.mrf.mxu1 }
 0x4a2   : > { %v5208_v57 = vadd.f32 %v5173_v12, %v4554_v63 }
 0x4a4   : > { %v5606_v39 = vadd.f32 %v5571_v44, %v5208_v57 }
 0x4a5   : > { %v4234_v11 = vpop.f32.mrf.mxu3 }
 0x4a6   : > { %v5638_v41 = vpack.c.bf16 %v5606_v39, %v5606_v39  ;;  %v5732_v8 = vsel %vm5672_vm3, %v5606_v39, 0.0  ;;  %v5774_v4 = vmul.f32 %v5606_v39, %v5606_v39  ;;  %v4268_v17 = vadd.f32 %v4234_v11, %v3870_v40 }
 0x4a7   : > { %v5733_v50 = vadd.f32 %v5732_v8, %v5731_v30 }
 0x4a8   : > { %5670 = vst.msk [vmem:[%s8352_s11 + $0x78] sm:$0xf] %vm734_vm11, %v5638_v41  ;;  %v5835_v35 = vsel %vm5672_vm3, %v5774_v4, 0.0  ;;  %v4555_v49 = vadd.f32 %v4521_v28, %v4268_v17 }
 0x4a9   : > { %v5836_v6 = vadd.f32 %v5835_v35, %v5834_v32  ;;  %v5175_v19 = vpop.f32.mrf.mxu1 }
 0x4aa   : > { %v5209_v54 = vadd.f32 %v5175_v19, %v4555_v49 }
 0x4ac   : > { %v5607_v0 = vadd.f32 %v5573_v37, %v5209_v54 }
 0x4ae   : > { %v5639_v27 = vpack.c.bf16 %v5607_v0, %v5607_v0  ;;  %v5734_v59 = vsel %vm5672_vm3, %v5607_v0, 0.0  ;;  %v5775_v23 = vmul.f32 %v5607_v0, %v5607_v0 }
 0x4af   : > { %v5735_v38 = vadd.f32 %v5734_v59, %v5733_v50 }
 0x4b0   : > { %5671 = vst.msk [vmem:[%s8352_s11 + $0x7c] sm:$0xf] %vm734_vm11, %v5639_v27  ;;  %v5837_v1 = vsel %vm5672_vm3, %v5775_v23, 0.0 }
 0x4b1   : > { %v5736_v55 = vrot.slane %v5735_v38, 4  ;;  %v5838_v9 = vadd.f32 %v5837_v1, %v5836_v6 }
 0x4b3   : > { %v5737_v53 = vadd.f32 %v5736_v55, %v5735_v38  ;;  %v5839_v33 = vrot.slane %v5838_v9, 4 }
 0x4b5   : > { %v5738_v43 = vrot.slane %v5737_v53, 2  ;;  %v5840_v7 = vadd.f32 %v5839_v33, %v5838_v9 }
 0x4b7   : > { %v5739_v52 = vadd.f32 %v5738_v43, %v5737_v53  ;;  %v5841_v18 = vrot.slane %v5840_v7, 2 }
 0x4b9   : > { %v5740_v60 = vrot.slane %v5739_v52, 1  ;;  %v5842_v20 = vadd.f32 %v5841_v18, %v5840_v7 }
 0x4bb   : > { %v5741_v36 = vadd.f32 %v5740_v60, %v5739_v52  ;;  %v5843_v31 = vrot.slane %v5842_v20, 1 }
 0x4bd   : > { %5743 = vst.msk [vmem:[%s255_s14] sm:$0x1] %vm741_vm7, %v5741_v36  ;;  %v5844_v42 = vadd.f32 %v5843_v31, %v5842_v20 }
 0x4bf   : > { %5845 = vst.msk [vmem:[%s255_s14 + $0x1] sm:$0x1] %vm741_vm7, %v5844_v42 }
 0x4c0 PF: > { %s16_s18 = sadd.s32 1, %s6593_s18  }
 0x4c1   : > { %p13_p4 = scmp.ge.s32.totalorder %s16_s18, 4  }
 0x4c3   :  { %15 = sbr.rel (!%p13_p4) target bundleno = 1 (0x1), region = 92 }

</bundles_post_ra>
